<compile_context>
chip_gen: v7x
topology: tpu7x:2x2x1
jax: 0.10.0
libtpu: 0.0.40
codegen_flags: <defaults>
</compile_context>

<pallas_src>
import functools
import math

import jax
import jax.numpy as jnp
from jax.experimental import pallas as pl
from jax.experimental.pallas import tpu as pltpu


# ----------------------------------------------------------------------------
# helpers
# ----------------------------------------------------------------------------
def _pad128(c):
    return ((c + 127) // 128) * 128


def _round_up(x, m):
    return ((x + m - 1) // m) * m


def _pick_tile(dim, cap, mult=128):
    """dim is a multiple of `mult`. Largest multiple of `mult` <= cap that
    divides dim, or dim itself if dim <= cap."""
    if dim <= cap:
        return dim
    best = mult
    t = mult
    while t <= cap:
        if dim % t == 0:
            best = t
        t += mult
    return best


def _m_tiling(M, cap=512):
    """Return (tm, M_pad) with tm | M_pad, tm <= cap (bounded padding waste)."""
    if M <= cap:
        tm = _round_up(M, 8)
        return tm, tm
    for tm in range(cap, 127, -128):
        if M % tm == 0:
            return tm, M
    tm = 256
    return tm, _round_up(M, tm)


def _ew_m_tile(Mp, cap=1024):
    """Largest tile dividing Mp (Mp is a multiple of 8/128 by construction)."""
    if Mp <= cap:
        return Mp
    best = 128
    t = 128
    while t <= cap:
        if Mp % t == 0:
            best = t
        t += 128
    return best


def log2_diff(a, b):
    return int(round(math.log2(a) - math.log2(b)))


def _mish(y):
    # mish(x) = x * tanh(softplus(x)) = x * u / (u + 2) with u = e^x (e^x + 2).
    # Single-exp, overflow-safe form (clamp); far cheaper on the EUP than
    # exp + log1p + tanh.  f32 math throughout.
    e = jnp.exp(jnp.minimum(y, 20.0))
    u = e * (e + 2.0)
    return y * (u / (u + 2.0))


# ----------------------------------------------------------------------------
# Pallas kernel 1: tiled matmul (+bias) (+optional mish) (+optional BN stats)
# ----------------------------------------------------------------------------
def _matmul_kernel(*refs, apply_act, compute_stats, has_bias, single_k):
    i = 0
    x_ref = refs[i]; i += 1
    w_ref = refs[i]; i += 1
    b_ref = None
    if has_bias:
        b_ref = refs[i]; i += 1
    y_ref = refs[i]; i += 1
    if compute_stats:
        ssum_ref = refs[i]; i += 1
        ssq_ref = refs[i]; i += 1
    acc_ref = None
    if not single_k:
        acc_ref = refs[i]; i += 1

    def epilogue(y):                                   # y: f32 (tm, tn)
        if has_bias:
            y = y + b_ref[...]
        if compute_stats:
            # Per-M-tile partial batch statistics, written as lane-dense
            # (8, tn) blocks (every row identical; glue divides by 8*M).
            ssum_ref[...] = jnp.broadcast_to(
                jnp.sum(y, axis=0, keepdims=True), ssum_ref.shape)
            ssq_ref[...] = jnp.broadcast_to(
                jnp.sum(y * y, axis=0, keepdims=True), ssq_ref.shape)
        if apply_act:
            y = _mish(y)
        y_ref[...] = y.astype(y_ref.dtype)

    if single_k:
        # K fits in one tile: no accumulator scratch, write the result directly.
        epilogue(jnp.dot(x_ref[...], w_ref[...],
                         preferred_element_type=jnp.float32))
    else:
        kk = pl.program_id(2)

        @pl.when(kk == 0)
        def _():
            acc_ref[...] = jnp.zeros_like(acc_ref)

        acc_ref[...] += jnp.dot(x_ref[...], w_ref[...],
                                preferred_element_type=jnp.float32)

        @pl.when(kk == pl.num_programs(2) - 1)
        def _():
            epilogue(acc_ref[...])


def tiled_matmul(x, w, b, *, tm, apply_act, compute_stats, out_dtype):
    """x:(M,K) bf16, w:(K,Cout) bf16, b:(1,Cout) f32 or None.
    M multiple of tm; K, Cout multiples of 128."""
    M, K = x.shape
    Cout = w.shape[1]
    tk = _pick_tile(K, 512)
    tn = _pick_tile(Cout, 512)
    m_t, n_t, k_t = M // tm, Cout // tn, K // tk
    single_k = (k_t == 1)
    has_bias = b is not None

    kernel = functools.partial(_matmul_kernel, apply_act=apply_act,
                               compute_stats=compute_stats,
                               has_bias=has_bias, single_k=single_k)

    in_specs = [
        pl.BlockSpec((tm, tk), lambda i, j, k: (i, k)),
        pl.BlockSpec((tk, tn), lambda i, j, k: (k, j)),
    ]
    args = [x, w]
    if has_bias:
        in_specs.append(pl.BlockSpec((1, tn), lambda i, j, k: (0, j)))
        args.append(b)

    y_shape = jax.ShapeDtypeStruct((M, Cout), out_dtype)
    y_spec = pl.BlockSpec((tm, tn), lambda i, j, k: (i, j))
    if compute_stats:
        s_shape = jax.ShapeDtypeStruct((m_t * 8, Cout), jnp.float32)
        s_spec = pl.BlockSpec((8, tn), lambda i, j, k: (i, j))
        out_shape = (y_shape, s_shape, s_shape)
        out_specs = (y_spec, s_spec, s_spec)
    else:
        out_shape = y_shape
        out_specs = y_spec

    return pl.pallas_call(
        kernel,
        out_shape=out_shape,
        grid=(m_t, n_t, k_t),
        in_specs=in_specs,
        out_specs=out_specs,
        scratch_shapes=([] if single_k
                        else [pltpu.VMEM((tm, tn), jnp.float32)]),
        compiler_params=pltpu.CompilerParams(
            dimension_semantics=("parallel", "parallel", "arbitrary"),
            vmem_limit_bytes=32 * 1024 * 1024),
    )(*args)


# ----------------------------------------------------------------------------
# Pallas kernel 2: elementwise  y*scale+shift (+mish) (+residual)  (BN apply)
# ----------------------------------------------------------------------------
def _apply_kernel(*refs, apply_act, has_residual):
    i = 0
    y_ref = refs[i]; i += 1
    s_ref = refs[i]; i += 1
    t_ref = refs[i]; i += 1
    r_ref = None
    if has_residual:
        r_ref = refs[i]; i += 1
    o_ref = refs[i]

    y = y_ref[...].astype(jnp.float32) * s_ref[...] + t_ref[...]
    if apply_act:
        y = _mish(y)
    if has_residual:
        y = y + r_ref[...].astype(jnp.float32)
    o_ref[...] = y.astype(o_ref.dtype)


def bn_act_residual(y, scale, shift, residual, *, apply_act, out_dtype):
    M, C = y.shape
    tm = _ew_m_tile(M, 1024)
    tn = _pick_tile(C, 512)
    has_res = residual is not None

    kernel = functools.partial(_apply_kernel, apply_act=apply_act,
                               has_residual=has_res)
    in_specs = [
        pl.BlockSpec((tm, tn), lambda i, j: (i, j)),
        pl.BlockSpec((1, tn), lambda i, j: (0, j)),
        pl.BlockSpec((1, tn), lambda i, j: (0, j)),
    ]
    args = [y, scale, shift]
    if has_res:
        in_specs.append(pl.BlockSpec((tm, tn), lambda i, j: (i, j)))
        args.append(residual)

    return pl.pallas_call(
        kernel,
        out_shape=jax.ShapeDtypeStruct((M, C), out_dtype),
        grid=(M // tm, C // tn),
        in_specs=in_specs,
        out_specs=pl.BlockSpec((tm, tn), lambda i, j: (i, j)),
        compiler_params=pltpu.CompilerParams(
            dimension_semantics=("parallel", "parallel")),
    )(*args)


# ----------------------------------------------------------------------------
# Glue: im2col, conv wrapper, parameter init
# ----------------------------------------------------------------------------
def _im2col(x_nhwc, kh, kw, stride, pad):
    # TODO(synk): replace with an implicit (shifted-matmul) conv kernel to
    # avoid materializing the kh*kw-expanded patch matrix in HBM.
    N, H, W, C = x_nhwc.shape
    if kh == 1 and kw == 1 and pad == 0 and stride == 1:
        return x_nhwc.reshape(N * H * W, C), (N, H, W)
    xp = jnp.pad(x_nhwc, ((0, 0), (pad, pad), (pad, pad), (0, 0)))
    Ho = (H + 2 * pad - kh) // stride + 1
    Wo = (W + 2 * pad - kw) // stride + 1
    cols = []
    for i in range(kh):
        for j in range(kw):
            cols.append(xp[:, i:i + stride * Ho:stride,
                           j:j + stride * Wo:stride, :])
    patches = jnp.concatenate(cols, axis=-1)          # (N, Ho, Wo, kh*kw*C)
    return patches.reshape(N * Ho * Wo, kh * kw * C), (N, Ho, Wo)


def conv_block(x_nhwc, p, *, k, stride, pad, apply_bn, apply_act,
               residual=None, out_f32=False):
    """One conv layer: im2col (JAX glue) + tiled Pallas matmul [+ two-pass BN]."""
    wmat = p["w"]
    Cout = wmat.shape[1]
    xm, (N, Ho, Wo) = _im2col(x_nhwc, k, k, stride, pad)   # bf16 (M, K)
    M = N * Ho * Wo
    tm, M_pad = _m_tiling(M)
    if M_pad != M:
        # Zero rows are harmless: BN convs have no bias (so padded rows give
        # y == 0 and contribute nothing to the batch statistics) and the rows
        # are sliced off before the reshape below.
        xm = jnp.pad(xm, ((0, M_pad - M), (0, 0)))

    out_dtype = jnp.float32 if out_f32 else jnp.bfloat16

    if apply_bn:
        # pass 1: matmul (bias dropped — cancelled by BN) + partial statistics.
        y, ssum, ssq = tiled_matmul(xm, wmat, None, tm=tm, apply_act=False,
                                    compute_stats=True, out_dtype=jnp.bfloat16)
        mean = ssum.sum(axis=0) / (8.0 * M)
        var = jnp.maximum(ssq.sum(axis=0) / (8.0 * M) - mean * mean, 0.0)
        scale = p["g"] * jax.lax.rsqrt(var + 1e-5)
        shift = p["bt"] - mean * scale
        rm = None
        if residual is not None:
            rm = residual.reshape(M, Cout)
            if M_pad != M:
                rm = jnp.pad(rm, ((0, M_pad - M), (0, 0)))
        # pass 2: fused BN * mish * residual (elementwise, tiled, parallel).
        out = bn_act_residual(y, scale.reshape(1, Cout), shift.reshape(1, Cout),
                              rm, apply_act=apply_act, out_dtype=out_dtype)
    else:
        out = tiled_matmul(xm, wmat, p["b"], tm=tm, apply_act=apply_act,
                           compute_stats=False, out_dtype=out_dtype)

    if M_pad != M:
        out = out[:M]
    out = out.reshape(N, Ho, Wo, Cout)
    if (not apply_bn) and residual is not None:        # not used by this net
        out = out + residual.astype(out.dtype)
    return out


def _init_conv(key, cout, cin, k, cin_pad, cout_pad):
    fan_in = cin * k * k
    w = jax.random.normal(key, (cout, cin, k, k), jnp.float32) / math.sqrt(fan_in)
    b = jnp.zeros((cout,), jnp.float32)
    gamma = jnp.ones((cout,), jnp.float32)
    beta = jnp.zeros((cout,), jnp.float32)
    # (Cout, Cin, kh, kw) torch layout -> padded (kh*kw*Cin_pad, Cout_pad) bf16.
    wm = jnp.transpose(w, (2, 3, 1, 0))                          # (kh,kw,Cin,Cout)
    wm = jnp.pad(wm, ((0, 0), (0, 0), (0, cin_pad - cin), (0, cout_pad - cout)))
    wm = wm.reshape(k * k * cin_pad, cout_pad).astype(jnp.bfloat16)
    cpad = lambda v: jnp.pad(v, (0, cout_pad - cout))            # zero pad
    return {"w": wm, "b": cpad(b).reshape(1, cout_pad),
            "g": cpad(gamma), "bt": cpad(beta)}


# ----------------------------------------------------------------------------
# _SegToSeg model (Pallas version)
# ----------------------------------------------------------------------------
def init_seg_to_seg(key, imsize=16, smallest_imsize=8, nc_in=7, nc_out=4,
                    nc_base=16, nc_max=512):
    n_down_up = log2_diff(imsize, smallest_imsize)
    nc = [min(nc_max, nc_base * 2 ** i) for i in range(n_down_up + 1)]
    ncp = [_pad128(c) for c in nc]
    cin_pad = _pad128(nc_in)
    keys = iter(jax.random.split(key, 4 + 5 * max(n_down_up, 1)))
    # params: arrays only (jit-traced).  cfg: plain-Python static config.
    params = {
        "enc0": _init_conv(next(keys), nc[0], nc_in, 3, cin_pad, ncp[0]),
        "down": [],
        "up": [],
        "head": _init_conv(next(keys), nc_out, nc[0], 1, ncp[0], _pad128(nc_out)),
    }
    for i in range(n_down_up):
        # TODO(synk): FancyMultiLayerDownBlock internals not provided; assumed
        # stride-2 3x3 conv + n_layers(=2) residual 3x3 convs (BN + mish).
        params["down"].append({
            "down": _init_conv(next(keys), nc[i + 1], nc[i], 3, ncp[i], ncp[i + 1]),
            "res1": _init_conv(next(keys), nc[i + 1], nc[i + 1], 3, ncp[i + 1], ncp[i + 1]),
            "res2": _init_conv(next(keys), nc[i + 1], nc[i + 1], 3, ncp[i + 1], ncp[i + 1]),
        })
        # TODO(synk): ResUpConvBlock internals not provided; assumed nearest x2
        # upsample + 3x3 conv (BN + mish) with 1x1-conv residual skip.
        params["up"].append({
            "conv": _init_conv(next(keys), nc[i], nc[i + 1], 3, ncp[i + 1], ncp[i]),
            "skip": _init_conv(next(keys), nc[i], nc[i + 1], 1, ncp[i + 1], ncp[i]),
        })
    params["up"] = params["up"][::-1]   # decoder runs deepest block first
    cfg = {"imsize": imsize, "nc_out": nc_out, "cin_pad": cin_pad}
    return params, cfg


def seg_to_seg_forward(x_nchw, params, cfg):
    N, C, h, w = x_nchw.shape
    assert h == w
    imsize = cfg["imsize"]
    x = jnp.transpose(x_nchw, (0, 2, 3, 1))             # NCHW -> NHWC
    # TODO(synk): `resize` helper source not given; bilinear resize assumed.
    x = jax.image.resize(x, (N, imsize, imsize, C), method="bilinear")
    # Zero-pad channels to a lane-dense multiple of 128; padded channels stay
    # exactly zero through every layer (weights/bias/gamma/beta zero-padded).
    x = jnp.pad(x, ((0, 0), (0, 0), (0, 0), (0, cfg["cin_pad"] - C)))
    x = x.astype(jnp.bfloat16)

    # ---- encoder ----
    x = conv_block(x, params["enc0"], k=3, stride=1, pad=1,
                   apply_bn=False, apply_act=True)
    for blk in params["down"]:
        x = conv_block(x, blk["down"], k=3, stride=2, pad=1,
                       apply_bn=True, apply_act=True)
        r = x
        y = conv_block(x, blk["res1"], k=3, stride=1, pad=1,
                       apply_bn=True, apply_act=True)
        x = conv_block(y, blk["res2"], k=3, stride=1, pad=1,
                       apply_bn=True, apply_act=True, residual=r)

    # ---- decoder ----
    for blk in params["up"]:
        # 1x1 skip conv commutes with nearest x2: compute it on the small
        # tensor (4x fewer FLOPs / bytes) and upsample its result.
        skip_small = conv_block(x, blk["skip"], k=1, stride=1, pad=0,
                                apply_bn=False, apply_act=False)
        skip = jnp.repeat(jnp.repeat(skip_small, 2, axis=1), 2, axis=2)
        # TODO(synk): nearest x2 of the main path kept in JAX; fusing it into
        # an implicit-conv index_map would save one HBM round trip per stage.
        xu = jnp.repeat(jnp.repeat(x, 2, axis=1), 2, axis=2)
        x = conv_block(xu, blk["conv"], k=3, stride=1, pad=1,
                       apply_bn=True, apply_act=True, residual=skip)

    out = conv_block(x, params["head"], k=1, stride=1, pad=0,
                     apply_bn=False, apply_act=False, out_f32=True)
    out = out[..., :cfg["nc_out"]]                       # drop lane padding
    out = jax.image.resize(out, (N, h, w, cfg["nc_out"]), method="bilinear")
    return jnp.transpose(out, (0, 3, 1, 2))              # NHWC -> NCHW


# ----------------------------------------------------------------------------
if __name__ == "__main__":
    key = jax.random.PRNGKey(0)
    k_x, k_p = jax.random.split(key)

    # Small config consistent with the module: imsize=16, smallest_imsize=8
    # -> n_down_up=1, nc=[16, 32]; nc_in=7, nc_out=4.
    x = jax.random.normal(k_x, (2, 7, 16, 16), jnp.float32)   # NCHW
    params, cfg = init_seg_to_seg(k_p, imsize=16, smallest_imsize=8,
                                  nc_in=7, nc_out=4, nc_base=16, nc_max=512)

    fwd = jax.jit(functools.partial(seg_to_seg_forward, cfg=cfg))
    out = fwd(x, params)
    out = jax.block_until_ready(out)

    assert out.shape == (2, 4, 16, 16), out.shape
    assert bool(jnp.all(jnp.isfinite(out)))
    print("KERNEL_OK")
</pallas_src>

<mosaic_0001>
module attributes {stable_mosaic.version = 11 : i64} {
  func.func @_matmul_kernel(%arg0: i32, %arg1: i32, %arg2: i32, %arg3: memref<512x384xbf16, #tpu.memory_space<vmem>>, %arg4: memref<384x128xbf16, #tpu.memory_space<vmem>>, %arg5: memref<1x128xf32, #tpu.memory_space<vmem>>, %arg6: memref<512x128xbf16, #tpu.memory_space<vmem>>, %arg7: memref<512x128xf32, #tpu.memory_space<vmem>>) attributes {dimension_semantics = [#tpu.dimension_semantics<parallel>, #tpu.dimension_semantics<parallel>, #tpu.dimension_semantics<arbitrary>], iteration_bounds = array<i64: 1, 1, 3>, scalar_prefetch = 0 : i64, scratch_operands = 1 : i64, tpu.core_type = #tpu.core_type<tc>, window_params = [{transform_indices = @transform_0, window_bounds = array<i64: 512, 384>}, {transform_indices = @transform_1, window_bounds = array<i64: 384, 128>}, {transform_indices = @transform_2, window_bounds = array<i64: 1, 128>}, {transform_indices = @transform_3, window_bounds = array<i64: 512, 128>}]} {
    %c0_i32 = arith.constant 0 : i32
    %0 = arith.cmpi eq, %arg2, %c0_i32 : i32
    %1 = arith.extui %0 : i1 to i32
    %c0_i32_0 = arith.constant 0 : i32
    %2 = arith.cmpi ne, %1, %c0_i32_0 : i32
    scf.if %2 {
      %cst_9 = arith.constant 0.000000e+00 : f32
      %12 = vector.broadcast %cst_9 : f32 to vector<512x128xf32>
      %c0_10 = arith.constant 0 : index
      %c0_11 = arith.constant 0 : index
      %13 = vector.load %arg7[%c0_10, %c0_11] : memref<512x128xf32, #tpu.memory_space<vmem>>, vector<512x128xf32>
      tpu.vector_store %arg7[%c0_10, %c0_11], %12 {strides = array<i32>} : memref<512x128xf32, #tpu.memory_space<vmem>>, vector<512x128xf32>,
    } else {
    }
    %c0 = arith.constant 0 : index
    %c0_1 = arith.constant 0 : index
    %3 = vector.load %arg7[%c0, %c0_1] : memref<512x128xf32, #tpu.memory_space<vmem>>, vector<512x128xf32>
    %c0_2 = arith.constant 0 : index
    %c0_3 = arith.constant 0 : index
    %4 = vector.load %arg3[%c0_2, %c0_3] : memref<512x384xbf16, #tpu.memory_space<vmem>>, vector<512x384xbf16>
    %c0_4 = arith.constant 0 : index
    %c0_5 = arith.constant 0 : index
    %5 = vector.load %arg4[%c0_4, %c0_5] : memref<384x128xbf16, #tpu.memory_space<vmem>>, vector<384x128xbf16>
    %cst = arith.constant dense<0.000000e+00> : vector<512x128xf32>
    %6 = tpu.matmul %4, %5, %cst {dimension_numbers = #tpu.dot_dimension_numbers<[1], [0], [0], [1], [0, 0, 1, 1], [], []>} : vector<512x384xbf16>, vector<384x128xbf16>, vector<512x128xf32> -> vector<512x128xf32>
    %7 = arith.addf %3, %6 : vector<512x128xf32>
    %c0_6 = arith.constant 0 : index
    %c0_7 = arith.constant 0 : index
    %8 = vector.load %arg7[%c0_6, %c0_7] : memref<512x128xf32, #tpu.memory_space<vmem>>, vector<512x128xf32>
    tpu.vector_store %arg7[%c0_6, %c0_7], %7 {strides = array<i32>} : memref<512x128xf32, #tpu.memory_space<vmem>>, vector<512x128xf32>,
    %c2_i32 = arith.constant 2 : i32
    %9 = arith.cmpi eq, %arg2, %c2_i32 : i32
    %10 = arith.extui %9 : i1 to i32
    %c0_i32_8 = arith.constant 0 : i32
    %11 = arith.cmpi ne, %10, %c0_i32_8 : i32
    scf.if %11 {
      %c0_9 = arith.constant 0 : index
      %c0_10 = arith.constant 0 : index
      %12 = vector.load %arg7[%c0_9, %c0_10] : memref<512x128xf32, #tpu.memory_space<vmem>>, vector<512x128xf32>
      %c0_11 = arith.constant 0 : index
      %c0_12 = arith.constant 0 : index
      %13 = vector.load %arg5[%c0_11, %c0_12] : memref<1x128xf32, #tpu.memory_space<vmem>>, vector<1x128xf32>
      %14 = vector.broadcast %13 : vector<1x128xf32> to vector<512x128xf32>
      %15 = arith.addf %12, %14 : vector<512x128xf32>
      %cst_13 = arith.constant 2.000000e+01 : f32
      %16 = vector.broadcast %cst_13 : f32 to vector<512x128xf32>
      %17 = arith.minimumf %15, %16 : vector<512x128xf32>
      %18 = math.exp %17 : vector<512x128xf32>
      %cst_14 = arith.constant 2.000000e+00 : f32
      %19 = vector.broadcast %cst_14 : f32 to vector<512x128xf32>
      %20 = arith.addf %18, %19 : vector<512x128xf32>
      %21 = arith.mulf %18, %20 : vector<512x128xf32>
      %cst_15 = arith.constant 2.000000e+00 : f32
      %22 = vector.broadcast %cst_15 : f32 to vector<512x128xf32>
      %23 = arith.addf %21, %22 : vector<512x128xf32>
      %24 = arith.divf %21, %23 : vector<512x128xf32>
      %25 = arith.mulf %15, %24 : vector<512x128xf32>
      %26 = arith.truncf %25 : vector<512x128xf32> to vector<512x128xbf16>
      %c0_16 = arith.constant 0 : index
      %c0_17 = arith.constant 0 : index
      %27 = vector.load %arg6[%c0_16, %c0_17] : memref<512x128xbf16, #tpu.memory_space<vmem>>, vector<512x128xbf16>
      tpu.vector_store %arg6[%c0_16, %c0_17], %26 {strides = array<i32>} : memref<512x128xbf16, #tpu.memory_space<vmem>>, vector<512x128xbf16>,
    } else {
    }
    return
  }
  func.func @transform_0(%arg0: i32, %arg1: i32, %arg2: i32) -> (i32, i32) {
    %c0_i32 = arith.constant 0 : i32
    return %arg0, %arg2 : i32, i32
  }
  func.func @transform_1(%arg0: i32, %arg1: i32, %arg2: i32) -> (i32, i32) {
    %c0_i32 = arith.constant 0 : i32
    return %arg2, %arg1 : i32, i32
  }
  func.func @transform_2(%arg0: i32, %arg1: i32, %arg2: i32) -> (i32, i32) {
    %c0_i32 = arith.constant 0 : i32
    %c0_i32_0 = arith.constant 0 : i32
    return %c0_i32, %arg1 : i32, i32
  }
  func.func @transform_3(%arg0: i32, %arg1: i32, %arg2: i32) -> (i32, i32) {
    %c0_i32 = arith.constant 0 : i32
    return %arg0, %arg1 : i32, i32
  }
}

module attributes {stable_mosaic.version = 11 : i64} {
  func.func @_matmul_kernel(%arg0: i32, %arg1: i32, %arg2: i32, %arg3: memref<128x384xbf16, #tpu.memory_space<vmem>>, %arg4: memref<384x128xbf16, #tpu.memory_space<vmem>>, %arg5: memref<128x128xbf16, #tpu.memory_space<vmem>>, %arg6: memref<8x128xf32, #tpu.memory_space<vmem>>, %arg7: memref<8x128xf32, #tpu.memory_space<vmem>>, %arg8: memref<128x128xf32, #tpu.memory_space<vmem>>) attributes {dimension_semantics = [#tpu.dimension_semantics<parallel>, #tpu.dimension_semantics<parallel>, #tpu.dimension_semantics<arbitrary>], iteration_bounds = array<i64: 1, 1, 3>, scalar_prefetch = 0 : i64, scratch_operands = 1 : i64, tpu.core_type = #tpu.core_type<tc>, window_params = [{transform_indices = @transform_0, window_bounds = array<i64: 128, 384>}, {transform_indices = @transform_1, window_bounds = array<i64: 384, 128>}, {transform_indices = @transform_2, window_bounds = array<i64: 128, 128>}, {transform_indices = @transform_3, window_bounds = array<i64: 8, 128>}, {transform_indices = @transform_4, window_bounds = array<i64: 8, 128>}]} {
    %c0_i32 = arith.constant 0 : i32
    %0 = arith.cmpi eq, %arg2, %c0_i32 : i32
    %1 = arith.extui %0 : i1 to i32
    %c0_i32_0 = arith.constant 0 : i32
    %2 = arith.cmpi ne, %1, %c0_i32_0 : i32
    scf.if %2 {
      %cst_9 = arith.constant 0.000000e+00 : f32
      %12 = vector.broadcast %cst_9 : f32 to vector<128x128xf32>
      %c0_10 = arith.constant 0 : index
      %c0_11 = arith.constant 0 : index
      %13 = vector.load %arg8[%c0_10, %c0_11] : memref<128x128xf32, #tpu.memory_space<vmem>>, vector<128x128xf32>
      tpu.vector_store %arg8[%c0_10, %c0_11], %12 {strides = array<i32>} : memref<128x128xf32, #tpu.memory_space<vmem>>, vector<128x128xf32>,
    } else {
    }
    %c0 = arith.constant 0 : index
    %c0_1 = arith.constant 0 : index
    %3 = vector.load %arg8[%c0, %c0_1] : memref<128x128xf32, #tpu.memory_space<vmem>>, vector<128x128xf32>
    %c0_2 = arith.constant 0 : index
    %c0_3 = arith.constant 0 : index
    %4 = vector.load %arg3[%c0_2, %c0_3] : memref<128x384xbf16, #tpu.memory_space<vmem>>, vector<128x384xbf16>
    %c0_4 = arith.constant 0 : index
    %c0_5 = arith.constant 0 : index
    %5 = vector.load %arg4[%c0_4, %c0_5] : memref<384x128xbf16, #tpu.memory_space<vmem>>, vector<384x128xbf16>
    %cst = arith.constant dense<0.000000e+00> : vector<128x128xf32>
    %6 = tpu.matmul %4, %5, %cst {dimension_numbers = #tpu.dot_dimension_numbers<[1], [0], [0], [1], [0, 0, 1, 1], [], []>} : vector<128x384xbf16>, vector<384x128xbf16>, vector<128x128xf32> -> vector<128x128xf32>
    %7 = arith.addf %3, %6 : vector<128x128xf32>
    %c0_6 = arith.constant 0 : index
    %c0_7 = arith.constant 0 : index
    %8 = vector.load %arg8[%c0_6, %c0_7] : memref<128x128xf32, #tpu.memory_space<vmem>>, vector<128x128xf32>
    tpu.vector_store %arg8[%c0_6, %c0_7], %7 {strides = array<i32>} : memref<128x128xf32, #tpu.memory_space<vmem>>, vector<128x128xf32>,
    %c2_i32 = arith.constant 2 : i32
    %9 = arith.cmpi eq, %arg2, %c2_i32 : i32
    %10 = arith.extui %9 : i1 to i32
    %c0_i32_8 = arith.constant 0 : i32
    %11 = arith.cmpi ne, %10, %c0_i32_8 : i32
    scf.if %11 {
      %c0_9 = arith.constant 0 : index
      %c0_10 = arith.constant 0 : index
      %12 = vector.load %arg8[%c0_9, %c0_10] : memref<128x128xf32, #tpu.memory_space<vmem>>, vector<128x128xf32>
      %cst_11 = arith.constant dense<0.000000e+00> : vector<128xf32>
      %13 = vector.multi_reduction <add>, %12, %cst_11 [0] : vector<128x128xf32> to vector<128xf32>
      %14 = vector.shape_cast %13 : vector<128xf32> to vector<1x128xf32>
      %15 = vector.shape_cast %14 : vector<1x128xf32> to vector<1x128xf32>
      %16 = vector.broadcast %15 : vector<1x128xf32> to vector<8x128xf32>
      %c0_12 = arith.constant 0 : index
      %c0_13 = arith.constant 0 : index
      %17 = vector.load %arg6[%c0_12, %c0_13] : memref<8x128xf32, #tpu.memory_space<vmem>>, vector<8x128xf32>
      tpu.vector_store %arg6[%c0_12, %c0_13], %16 {strides = array<i32>} : memref<8x128xf32, #tpu.memory_space<vmem>>, vector<8x128xf32>,
      %18 = arith.mulf %12, %12 : vector<128x128xf32>
      %cst_14 = arith.constant dense<0.000000e+00> : vector<128xf32>
      %19 = vector.multi_reduction <add>, %18, %cst_14 [0] : vector<128x128xf32> to vector<128xf32>
      %20 = vector.shape_cast %19 : vector<128xf32> to vector<1x128xf32>
      %21 = vector.shape_cast %20 : vector<1x128xf32> to vector<1x128xf32>
      %22 = vector.broadcast %21 : vector<1x128xf32> to vector<8x128xf32>
      %c0_15 = arith.constant 0 : index
      %c0_16 = arith.constant 0 : index
      %23 = vector.load %arg7[%c0_15, %c0_16] : memref<8x128xf32, #tpu.memory_space<vmem>>, vector<8x128xf32>
      tpu.vector_store %arg7[%c0_15, %c0_16], %22 {strides = array<i32>} : memref<8x128xf32, #tpu.memory_space<vmem>>, vector<8x128xf32>,
      %24 = arith.truncf %12 : vector<128x128xf32> to vector<128x128xbf16>
      %c0_17 = arith.constant 0 : index
      %c0_18 = arith.constant 0 : index
      %25 = vector.load %arg5[%c0_17, %c0_18] : memref<128x128xbf16, #tpu.memory_space<vmem>>, vector<128x128xbf16>
      tpu.vector_store %arg5[%c0_17, %c0_18], %24 {strides = array<i32>} : memref<128x128xbf16, #tpu.memory_space<vmem>>, vector<128x128xbf16>,
    } else {
    }
    return
  }
  func.func @transform_0(%arg0: i32, %arg1: i32, %arg2: i32) -> (i32, i32) {
    %c0_i32 = arith.constant 0 : i32
    return %arg0, %arg2 : i32, i32
  }
  func.func @transform_1(%arg0: i32, %arg1: i32, %arg2: i32) -> (i32, i32) {
    %c0_i32 = arith.constant 0 : i32
    return %arg2, %arg1 : i32, i32
  }
  func.func @transform_2(%arg0: i32, %arg1: i32, %arg2: i32) -> (i32, i32) {
    %c0_i32 = arith.constant 0 : i32
    return %arg0, %arg1 : i32, i32
  }
  func.func @transform_3(%arg0: i32, %arg1: i32, %arg2: i32) -> (i32, i32) {
    %c0_i32 = arith.constant 0 : i32
    return %arg0, %arg1 : i32, i32
  }
  func.func @transform_4(%arg0: i32, %arg1: i32, %arg2: i32) -> (i32, i32) {
    %c0_i32 = arith.constant 0 : i32
    return %arg0, %arg1 : i32, i32
  }
}

module attributes {stable_mosaic.version = 11 : i64} {
  func.func @_apply_kernel(%arg0: i32, %arg1: i32, %arg2: memref<128x128xbf16, #tpu.memory_space<vmem>>, %arg3: memref<1x128xf32, #tpu.memory_space<vmem>>, %arg4: memref<1x128xf32, #tpu.memory_space<vmem>>, %arg5: memref<128x128xbf16, #tpu.memory_space<vmem>>) attributes {dimension_semantics = [#tpu.dimension_semantics<parallel>, #tpu.dimension_semantics<parallel>], iteration_bounds = array<i64: 1, 1>, scalar_prefetch = 0 : i64, scratch_operands = 0 : i64, tpu.core_type = #tpu.core_type<tc>, window_params = [{transform_indices = @transform_0, window_bounds = array<i64: 128, 128>}, {transform_indices = @transform_1, window_bounds = array<i64: 1, 128>}, {transform_indices = @transform_2, window_bounds = array<i64: 1, 128>}, {transform_indices = @transform_3, window_bounds = array<i64: 128, 128>}]} {
    %c0 = arith.constant 0 : index
    %c0_0 = arith.constant 0 : index
    %0 = vector.load %arg2[%c0, %c0_0] : memref<128x128xbf16, #tpu.memory_space<vmem>>, vector<128x128xbf16>
    %1 = arith.extf %0 : vector<128x128xbf16> to vector<128x128xf32>
    %c0_1 = arith.constant 0 : index
    %c0_2 = arith.constant 0 : index
    %2 = vector.load %arg3[%c0_1, %c0_2] : memref<1x128xf32, #tpu.memory_space<vmem>>, vector<1x128xf32>
    %3 = vector.broadcast %2 : vector<1x128xf32> to vector<128x128xf32>
    %4 = arith.mulf %1, %3 : vector<128x128xf32>
    %c0_3 = arith.constant 0 : index
    %c0_4 = arith.constant 0 : index
    %5 = vector.load %arg4[%c0_3, %c0_4] : memref<1x128xf32, #tpu.memory_space<vmem>>, vector<1x128xf32>
    %6 = vector.broadcast %5 : vector<1x128xf32> to vector<128x128xf32>
    %7 = arith.addf %4, %6 : vector<128x128xf32>
    %cst = arith.constant 2.000000e+01 : f32
    %8 = vector.broadcast %cst : f32 to vector<128x128xf32>
    %9 = arith.minimumf %7, %8 : vector<128x128xf32>
    %10 = math.exp %9 : vector<128x128xf32>
    %cst_5 = arith.constant 2.000000e+00 : f32
    %11 = vector.broadcast %cst_5 : f32 to vector<128x128xf32>
    %12 = arith.addf %10, %11 : vector<128x128xf32>
    %13 = arith.mulf %10, %12 : vector<128x128xf32>
    %cst_6 = arith.constant 2.000000e+00 : f32
    %14 = vector.broadcast %cst_6 : f32 to vector<128x128xf32>
    %15 = arith.addf %13, %14 : vector<128x128xf32>
    %16 = arith.divf %13, %15 : vector<128x128xf32>
    %17 = arith.mulf %7, %16 : vector<128x128xf32>
    %18 = arith.truncf %17 : vector<128x128xf32> to vector<128x128xbf16>
    %c0_7 = arith.constant 0 : index
    %c0_8 = arith.constant 0 : index
    %19 = vector.load %arg5[%c0_7, %c0_8] : memref<128x128xbf16, #tpu.memory_space<vmem>>, vector<128x128xbf16>
    tpu.vector_store %arg5[%c0_7, %c0_8], %18 {strides = array<i32>} : memref<128x128xbf16, #tpu.memory_space<vmem>>, vector<128x128xbf16>,
    return
  }
  func.func @transform_0(%arg0: i32, %arg1: i32) -> (i32, i32) {
    %c0_i32 = arith.constant 0 : i32
    return %arg0, %arg1 : i32, i32
  }
  func.func @transform_1(%arg0: i32, %arg1: i32) -> (i32, i32) {
    %c0_i32 = arith.constant 0 : i32
    %c0_i32_0 = arith.constant 0 : i32
    return %c0_i32, %arg1 : i32, i32
  }
  func.func @transform_2(%arg0: i32, %arg1: i32) -> (i32, i32) {
    %c0_i32 = arith.constant 0 : i32
    %c0_i32_0 = arith.constant 0 : i32
    return %c0_i32, %arg1 : i32, i32
  }
  func.func @transform_3(%arg0: i32, %arg1: i32) -> (i32, i32) {
    %c0_i32 = arith.constant 0 : i32
    return %arg0, %arg1 : i32, i32
  }
}

module attributes {stable_mosaic.version = 11 : i64} {
  func.func @_apply_kernel(%arg0: i32, %arg1: i32, %arg2: memref<128x128xbf16, #tpu.memory_space<vmem>>, %arg3: memref<1x128xf32, #tpu.memory_space<vmem>>, %arg4: memref<1x128xf32, #tpu.memory_space<vmem>>, %arg5: memref<128x128xbf16, #tpu.memory_space<vmem>>, %arg6: memref<128x128xbf16, #tpu.memory_space<vmem>>) attributes {dimension_semantics = [#tpu.dimension_semantics<parallel>, #tpu.dimension_semantics<parallel>], iteration_bounds = array<i64: 1, 1>, scalar_prefetch = 0 : i64, scratch_operands = 0 : i64, tpu.core_type = #tpu.core_type<tc>, window_params = [{transform_indices = @transform_0, window_bounds = array<i64: 128, 128>}, {transform_indices = @transform_1, window_bounds = array<i64: 1, 128>}, {transform_indices = @transform_2, window_bounds = array<i64: 1, 128>}, {transform_indices = @transform_3, window_bounds = array<i64: 128, 128>}, {transform_indices = @transform_4, window_bounds = array<i64: 128, 128>}]} {
    %c0 = arith.constant 0 : index
    %c0_0 = arith.constant 0 : index
    %0 = vector.load %arg2[%c0, %c0_0] : memref<128x128xbf16, #tpu.memory_space<vmem>>, vector<128x128xbf16>
    %1 = arith.extf %0 : vector<128x128xbf16> to vector<128x128xf32>
    %c0_1 = arith.constant 0 : index
    %c0_2 = arith.constant 0 : index
    %2 = vector.load %arg3[%c0_1, %c0_2] : memref<1x128xf32, #tpu.memory_space<vmem>>, vector<1x128xf32>
    %3 = vector.broadcast %2 : vector<1x128xf32> to vector<128x128xf32>
    %4 = arith.mulf %1, %3 : vector<128x128xf32>
    %c0_3 = arith.constant 0 : index
    %c0_4 = arith.constant 0 : index
    %5 = vector.load %arg4[%c0_3, %c0_4] : memref<1x128xf32, #tpu.memory_space<vmem>>, vector<1x128xf32>
    %6 = vector.broadcast %5 : vector<1x128xf32> to vector<128x128xf32>
    %7 = arith.addf %4, %6 : vector<128x128xf32>
    %cst = arith.constant 2.000000e+01 : f32
    %8 = vector.broadcast %cst : f32 to vector<128x128xf32>
    %9 = arith.minimumf %7, %8 : vector<128x128xf32>
    %10 = math.exp %9 : vector<128x128xf32>
    %cst_5 = arith.constant 2.000000e+00 : f32
    %11 = vector.broadcast %cst_5 : f32 to vector<128x128xf32>
    %12 = arith.addf %10, %11 : vector<128x128xf32>
    %13 = arith.mulf %10, %12 : vector<128x128xf32>
    %cst_6 = arith.constant 2.000000e+00 : f32
    %14 = vector.broadcast %cst_6 : f32 to vector<128x128xf32>
    %15 = arith.addf %13, %14 : vector<128x128xf32>
    %16 = arith.divf %13, %15 : vector<128x128xf32>
    %17 = arith.mulf %7, %16 : vector<128x128xf32>
    %c0_7 = arith.constant 0 : index
    %c0_8 = arith.constant 0 : index
    %18 = vector.load %arg5[%c0_7, %c0_8] : memref<128x128xbf16, #tpu.memory_space<vmem>>, vector<128x128xbf16>
    %19 = arith.extf %18 : vector<128x128xbf16> to vector<128x128xf32>
    %20 = arith.addf %17, %19 : vector<128x128xf32>
    %21 = arith.truncf %20 : vector<128x128xf32> to vector<128x128xbf16>
    %c0_9 = arith.constant 0 : index
    %c0_10 = arith.constant 0 : index
    %22 = vector.load %arg6[%c0_9, %c0_10] : memref<128x128xbf16, #tpu.memory_space<vmem>>, vector<128x128xbf16>
    tpu.vector_store %arg6[%c0_9, %c0_10], %21 {strides = array<i32>} : memref<128x128xbf16, #tpu.memory_space<vmem>>, vector<128x128xbf16>,
    return
  }
  func.func @transform_0(%arg0: i32, %arg1: i32) -> (i32, i32) {
    %c0_i32 = arith.constant 0 : i32
    return %arg0, %arg1 : i32, i32
  }
  func.func @transform_1(%arg0: i32, %arg1: i32) -> (i32, i32) {
    %c0_i32 = arith.constant 0 : i32
    %c0_i32_0 = arith.constant 0 : i32
    return %c0_i32, %arg1 : i32, i32
  }
  func.func @transform_2(%arg0: i32, %arg1: i32) -> (i32, i32) {
    %c0_i32 = arith.constant 0 : i32
    %c0_i32_0 = arith.constant 0 : i32
    return %c0_i32, %arg1 : i32, i32
  }
  func.func @transform_3(%arg0: i32, %arg1: i32) -> (i32, i32) {
    %c0_i32 = arith.constant 0 : i32
    return %arg0, %arg1 : i32, i32
  }
  func.func @transform_4(%arg0: i32, %arg1: i32) -> (i32, i32) {
    %c0_i32 = arith.constant 0 : i32
    return %arg0, %arg1 : i32, i32
  }
}

module attributes {stable_mosaic.version = 11 : i64} {
  func.func @_matmul_kernel(%arg0: i32, %arg1: i32, %arg2: i32, %arg3: memref<128x128xbf16, #tpu.memory_space<vmem>>, %arg4: memref<128x128xbf16, #tpu.memory_space<vmem>>, %arg5: memref<1x128xf32, #tpu.memory_space<vmem>>, %arg6: memref<128x128xbf16, #tpu.memory_space<vmem>>) attributes {dimension_semantics = [#tpu.dimension_semantics<parallel>, #tpu.dimension_semantics<parallel>, #tpu.dimension_semantics<arbitrary>], iteration_bounds = array<i64: 1, 1, 1>, scalar_prefetch = 0 : i64, scratch_operands = 0 : i64, tpu.core_type = #tpu.core_type<tc>, window_params = [{transform_indices = @transform_0, window_bounds = array<i64: 128, 128>}, {transform_indices = @transform_1, window_bounds = array<i64: 128, 128>}, {transform_indices = @transform_2, window_bounds = array<i64: 1, 128>}, {transform_indices = @transform_3, window_bounds = array<i64: 128, 128>}]} {
    %c0 = arith.constant 0 : index
    %c0_0 = arith.constant 0 : index
    %0 = vector.load %arg3[%c0, %c0_0] : memref<128x128xbf16, #tpu.memory_space<vmem>>, vector<128x128xbf16>
    %c0_1 = arith.constant 0 : index
    %c0_2 = arith.constant 0 : index
    %1 = vector.load %arg4[%c0_1, %c0_2] : memref<128x128xbf16, #tpu.memory_space<vmem>>, vector<128x128xbf16>
    %cst = arith.constant dense<0.000000e+00> : vector<128x128xf32>
    %2 = tpu.matmul %0, %1, %cst {dimension_numbers = #tpu.dot_dimension_numbers<[1], [0], [0], [1], [0, 0, 1, 1], [], []>} : vector<128x128xbf16>, vector<128x128xbf16>, vector<128x128xf32> -> vector<128x128xf32>
    %c0_3 = arith.constant 0 : index
    %c0_4 = arith.constant 0 : index
    %3 = vector.load %arg5[%c0_3, %c0_4] : memref<1x128xf32, #tpu.memory_space<vmem>>, vector<1x128xf32>
    %4 = vector.broadcast %3 : vector<1x128xf32> to vector<128x128xf32>
    %5 = arith.addf %2, %4 : vector<128x128xf32>
    %6 = arith.truncf %5 : vector<128x128xf32> to vector<128x128xbf16>
    %c0_5 = arith.constant 0 : index
    %c0_6 = arith.constant 0 : index
    %7 = vector.load %arg6[%c0_5, %c0_6] : memref<128x128xbf16, #tpu.memory_space<vmem>>, vector<128x128xbf16>
    tpu.vector_store %arg6[%c0_5, %c0_6], %6 {strides = array<i32>} : memref<128x128xbf16, #tpu.memory_space<vmem>>, vector<128x128xbf16>,
    return
  }
  func.func @transform_0(%arg0: i32, %arg1: i32, %arg2: i32) -> (i32, i32) {
    %c0_i32 = arith.constant 0 : i32
    return %arg0, %arg2 : i32, i32
  }
  func.func @transform_1(%arg0: i32, %arg1: i32, %arg2: i32) -> (i32, i32) {
    %c0_i32 = arith.constant 0 : i32
    return %arg2, %arg1 : i32, i32
  }
  func.func @transform_2(%arg0: i32, %arg1: i32, %arg2: i32) -> (i32, i32) {
    %c0_i32 = arith.constant 0 : i32
    %c0_i32_0 = arith.constant 0 : i32
    return %c0_i32, %arg1 : i32, i32
  }
  func.func @transform_3(%arg0: i32, %arg1: i32, %arg2: i32) -> (i32, i32) {
    %c0_i32 = arith.constant 0 : i32
    return %arg0, %arg1 : i32, i32
  }
}

module attributes {stable_mosaic.version = 11 : i64} {
  func.func @_matmul_kernel(%arg0: i32, %arg1: i32, %arg2: i32, %arg3: memref<512x384xbf16, #tpu.memory_space<vmem>>, %arg4: memref<384x128xbf16, #tpu.memory_space<vmem>>, %arg5: memref<512x128xbf16, #tpu.memory_space<vmem>>, %arg6: memref<8x128xf32, #tpu.memory_space<vmem>>, %arg7: memref<8x128xf32, #tpu.memory_space<vmem>>, %arg8: memref<512x128xf32, #tpu.memory_space<vmem>>) attributes {dimension_semantics = [#tpu.dimension_semantics<parallel>, #tpu.dimension_semantics<parallel>, #tpu.dimension_semantics<arbitrary>], iteration_bounds = array<i64: 1, 1, 3>, scalar_prefetch = 0 : i64, scratch_operands = 1 : i64, tpu.core_type = #tpu.core_type<tc>, window_params = [{transform_indices = @transform_0, window_bounds = array<i64: 512, 384>}, {transform_indices = @transform_1, window_bounds = array<i64: 384, 128>}, {transform_indices = @transform_2, window_bounds = array<i64: 512, 128>}, {transform_indices = @transform_3, window_bounds = array<i64: 8, 128>}, {transform_indices = @transform_4, window_bounds = array<i64: 8, 128>}]} {
    %c0_i32 = arith.constant 0 : i32
    %0 = arith.cmpi eq, %arg2, %c0_i32 : i32
    %1 = arith.extui %0 : i1 to i32
    %c0_i32_0 = arith.constant 0 : i32
    %2 = arith.cmpi ne, %1, %c0_i32_0 : i32
    scf.if %2 {
      %cst_9 = arith.constant 0.000000e+00 : f32
      %12 = vector.broadcast %cst_9 : f32 to vector<512x128xf32>
      %c0_10 = arith.constant 0 : index
      %c0_11 = arith.constant 0 : index
      %13 = vector.load %arg8[%c0_10, %c0_11] : memref<512x128xf32, #tpu.memory_space<vmem>>, vector<512x128xf32>
      tpu.vector_store %arg8[%c0_10, %c0_11], %12 {strides = array<i32>} : memref<512x128xf32, #tpu.memory_space<vmem>>, vector<512x128xf32>,
    } else {
    }
    %c0 = arith.constant 0 : index
    %c0_1 = arith.constant 0 : index
    %3 = vector.load %arg8[%c0, %c0_1] : memref<512x128xf32, #tpu.memory_space<vmem>>, vector<512x128xf32>
    %c0_2 = arith.constant 0 : index
    %c0_3 = arith.constant 0 : index
    %4 = vector.load %arg3[%c0_2, %c0_3] : memref<512x384xbf16, #tpu.memory_space<vmem>>, vector<512x384xbf16>
    %c0_4 = arith.constant 0 : index
    %c0_5 = arith.constant 0 : index
    %5 = vector.load %arg4[%c0_4, %c0_5] : memref<384x128xbf16, #tpu.memory_space<vmem>>, vector<384x128xbf16>
    %cst = arith.constant dense<0.000000e+00> : vector<512x128xf32>
    %6 = tpu.matmul %4, %5, %cst {dimension_numbers = #tpu.dot_dimension_numbers<[1], [0], [0], [1], [0, 0, 1, 1], [], []>} : vector<512x384xbf16>, vector<384x128xbf16>, vector<512x128xf32> -> vector<512x128xf32>
    %7 = arith.addf %3, %6 : vector<512x128xf32>
    %c0_6 = arith.constant 0 : index
    %c0_7 = arith.constant 0 : index
    %8 = vector.load %arg8[%c0_6, %c0_7] : memref<512x128xf32, #tpu.memory_space<vmem>>, vector<512x128xf32>
    tpu.vector_store %arg8[%c0_6, %c0_7], %7 {strides = array<i32>} : memref<512x128xf32, #tpu.memory_space<vmem>>, vector<512x128xf32>,
    %c2_i32 = arith.constant 2 : i32
    %9 = arith.cmpi eq, %arg2, %c2_i32 : i32
    %10 = arith.extui %9 : i1 to i32
    %c0_i32_8 = arith.constant 0 : i32
    %11 = arith.cmpi ne, %10, %c0_i32_8 : i32
    scf.if %11 {
      %c0_9 = arith.constant 0 : index
      %c0_10 = arith.constant 0 : index
      %12 = vector.load %arg8[%c0_9, %c0_10] : memref<512x128xf32, #tpu.memory_space<vmem>>, vector<512x128xf32>
      %cst_11 = arith.constant dense<0.000000e+00> : vector<128xf32>
      %13 = vector.multi_reduction <add>, %12, %cst_11 [0] : vector<512x128xf32> to vector<128xf32>
      %14 = vector.shape_cast %13 : vector<128xf32> to vector<1x128xf32>
      %15 = vector.shape_cast %14 : vector<1x128xf32> to vector<1x128xf32>
      %16 = vector.broadcast %15 : vector<1x128xf32> to vector<8x128xf32>
      %c0_12 = arith.constant 0 : index
      %c0_13 = arith.constant 0 : index
      %17 = vector.load %arg6[%c0_12, %c0_13] : memref<8x128xf32, #tpu.memory_space<vmem>>, vector<8x128xf32>
      tpu.vector_store %arg6[%c0_12, %c0_13], %16 {strides = array<i32>} : memref<8x128xf32, #tpu.memory_space<vmem>>, vector<8x128xf32>,
      %18 = arith.mulf %12, %12 : vector<512x128xf32>
      %cst_14 = arith.constant dense<0.000000e+00> : vector<128xf32>
      %19 = vector.multi_reduction <add>, %18, %cst_14 [0] : vector<512x128xf32> to vector<128xf32>
      %20 = vector.shape_cast %19 : vector<128xf32> to vector<1x128xf32>
      %21 = vector.shape_cast %20 : vector<1x128xf32> to vector<1x128xf32>
      %22 = vector.broadcast %21 : vector<1x128xf32> to vector<8x128xf32>
      %c0_15 = arith.constant 0 : index
      %c0_16 = arith.constant 0 : index
      %23 = vector.load %arg7[%c0_15, %c0_16] : memref<8x128xf32, #tpu.memory_space<vmem>>, vector<8x128xf32>
      tpu.vector_store %arg7[%c0_15, %c0_16], %22 {strides = array<i32>} : memref<8x128xf32, #tpu.memory_space<vmem>>, vector<8x128xf32>,
      %24 = arith.truncf %12 : vector<512x128xf32> to vector<512x128xbf16>
      %c0_17 = arith.constant 0 : index
      %c0_18 = arith.constant 0 : index
      %25 = vector.load %arg5[%c0_17, %c0_18] : memref<512x128xbf16, #tpu.memory_space<vmem>>, vector<512x128xbf16>
      tpu.vector_store %arg5[%c0_17, %c0_18], %24 {strides = array<i32>} : memref<512x128xbf16, #tpu.memory_space<vmem>>, vector<512x128xbf16>,
    } else {
    }
    return
  }
  func.func @transform_0(%arg0: i32, %arg1: i32, %arg2: i32) -> (i32, i32) {
    %c0_i32 = arith.constant 0 : i32
    return %arg0, %arg2 : i32, i32
  }
  func.func @transform_1(%arg0: i32, %arg1: i32, %arg2: i32) -> (i32, i32) {
    %c0_i32 = arith.constant 0 : i32
    return %arg2, %arg1 : i32, i32
  }
  func.func @transform_2(%arg0: i32, %arg1: i32, %arg2: i32) -> (i32, i32) {
    %c0_i32 = arith.constant 0 : i32
    return %arg0, %arg1 : i32, i32
  }
  func.func @transform_3(%arg0: i32, %arg1: i32, %arg2: i32) -> (i32, i32) {
    %c0_i32 = arith.constant 0 : i32
    return %arg0, %arg1 : i32, i32
  }
  func.func @transform_4(%arg0: i32, %arg1: i32, %arg2: i32) -> (i32, i32) {
    %c0_i32 = arith.constant 0 : i32
    return %arg0, %arg1 : i32, i32
  }
}

module attributes {stable_mosaic.version = 11 : i64} {
  func.func @_matmul_kernel(%arg0: i32, %arg1: i32, %arg2: i32, %arg3: memref<512x128xbf16, #tpu.memory_space<vmem>>, %arg4: memref<128x128xbf16, #tpu.memory_space<vmem>>, %arg5: memref<1x128xf32, #tpu.memory_space<vmem>>, %arg6: memref<512x128xf32, #tpu.memory_space<vmem>>) attributes {dimension_semantics = [#tpu.dimension_semantics<parallel>, #tpu.dimension_semantics<parallel>, #tpu.dimension_semantics<arbitrary>], iteration_bounds = array<i64: 1, 1, 1>, scalar_prefetch = 0 : i64, scratch_operands = 0 : i64, tpu.core_type = #tpu.core_type<tc>, window_params = [{transform_indices = @transform_0, window_bounds = array<i64: 512, 128>}, {transform_indices = @transform_1, window_bounds = array<i64: 128, 128>}, {transform_indices = @transform_2, window_bounds = array<i64: 1, 128>}, {transform_indices = @transform_3, window_bounds = array<i64: 512, 128>}]} {
    %c0 = arith.constant 0 : index
    %c0_0 = arith.constant 0 : index
    %0 = vector.load %arg3[%c0, %c0_0] : memref<512x128xbf16, #tpu.memory_space<vmem>>, vector<512x128xbf16>
    %c0_1 = arith.constant 0 : index
    %c0_2 = arith.constant 0 : index
    %1 = vector.load %arg4[%c0_1, %c0_2] : memref<128x128xbf16, #tpu.memory_space<vmem>>, vector<128x128xbf16>
    %cst = arith.constant dense<0.000000e+00> : vector<512x128xf32>
    %2 = tpu.matmul %0, %1, %cst {dimension_numbers = #tpu.dot_dimension_numbers<[1], [0], [0], [1], [0, 0, 1, 1], [], []>} : vector<512x128xbf16>, vector<128x128xbf16>, vector<512x128xf32> -> vector<512x128xf32>
    %c0_3 = arith.constant 0 : index
    %c0_4 = arith.constant 0 : index
    %3 = vector.load %arg5[%c0_3, %c0_4] : memref<1x128xf32, #tpu.memory_space<vmem>>, vector<1x128xf32>
    %4 = vector.broadcast %3 : vector<1x128xf32> to vector<512x128xf32>
    %5 = arith.addf %2, %4 : vector<512x128xf32>
    %c0_5 = arith.constant 0 : index
    %c0_6 = arith.constant 0 : index
    %6 = vector.load %arg6[%c0_5, %c0_6] : memref<512x128xf32, #tpu.memory_space<vmem>>, vector<512x128xf32>
    tpu.vector_store %arg6[%c0_5, %c0_6], %5 {strides = array<i32>} : memref<512x128xf32, #tpu.memory_space<vmem>>, vector<512x128xf32>,
    return
  }
  func.func @transform_0(%arg0: i32, %arg1: i32, %arg2: i32) -> (i32, i32) {
    %c0_i32 = arith.constant 0 : i32
    return %arg0, %arg2 : i32, i32
  }
  func.func @transform_1(%arg0: i32, %arg1: i32, %arg2: i32) -> (i32, i32) {
    %c0_i32 = arith.constant 0 : i32
    return %arg2, %arg1 : i32, i32
  }
  func.func @transform_2(%arg0: i32, %arg1: i32, %arg2: i32) -> (i32, i32) {
    %c0_i32 = arith.constant 0 : i32
    %c0_i32_0 = arith.constant 0 : i32
    return %c0_i32, %arg1 : i32, i32
  }
  func.func @transform_3(%arg0: i32, %arg1: i32, %arg2: i32) -> (i32, i32) {
    %c0_i32 = arith.constant 0 : i32
    return %arg0, %arg1 : i32, i32
  }
}

module attributes {stable_mosaic.version = 11 : i64} {
  func.func @_apply_kernel(%arg0: i32, %arg1: i32, %arg2: memref<512x128xbf16, #tpu.memory_space<vmem>>, %arg3: memref<1x128xf32, #tpu.memory_space<vmem>>, %arg4: memref<1x128xf32, #tpu.memory_space<vmem>>, %arg5: memref<512x128xbf16, #tpu.memory_space<vmem>>, %arg6: memref<512x128xbf16, #tpu.memory_space<vmem>>) attributes {dimension_semantics = [#tpu.dimension_semantics<parallel>, #tpu.dimension_semantics<parallel>], iteration_bounds = array<i64: 1, 1>, scalar_prefetch = 0 : i64, scratch_operands = 0 : i64, tpu.core_type = #tpu.core_type<tc>, window_params = [{transform_indices = @transform_0, window_bounds = array<i64: 512, 128>}, {transform_indices = @transform_1, window_bounds = array<i64: 1, 128>}, {transform_indices = @transform_2, window_bounds = array<i64: 1, 128>}, {transform_indices = @transform_3, window_bounds = array<i64: 512, 128>}, {transform_indices = @transform_4, window_bounds = array<i64: 512, 128>}]} {
    %c0 = arith.constant 0 : index
    %c0_0 = arith.constant 0 : index
    %0 = vector.load %arg2[%c0, %c0_0] : memref<512x128xbf16, #tpu.memory_space<vmem>>, vector<512x128xbf16>
    %1 = arith.extf %0 : vector<512x128xbf16> to vector<512x128xf32>
    %c0_1 = arith.constant 0 : index
    %c0_2 = arith.constant 0 : index
    %2 = vector.load %arg3[%c0_1, %c0_2] : memref<1x128xf32, #tpu.memory_space<vmem>>, vector<1x128xf32>
    %3 = vector.broadcast %2 : vector<1x128xf32> to vector<512x128xf32>
    %4 = arith.mulf %1, %3 : vector<512x128xf32>
    %c0_3 = arith.constant 0 : index
    %c0_4 = arith.constant 0 : index
    %5 = vector.load %arg4[%c0_3, %c0_4] : memref<1x128xf32, #tpu.memory_space<vmem>>, vector<1x128xf32>
    %6 = vector.broadcast %5 : vector<1x128xf32> to vector<512x128xf32>
    %7 = arith.addf %4, %6 : vector<512x128xf32>
    %cst = arith.constant 2.000000e+01 : f32
    %8 = vector.broadcast %cst : f32 to vector<512x128xf32>
    %9 = arith.minimumf %7, %8 : vector<512x128xf32>
    %10 = math.exp %9 : vector<512x128xf32>
    %cst_5 = arith.constant 2.000000e+00 : f32
    %11 = vector.broadcast %cst_5 : f32 to vector<512x128xf32>
    %12 = arith.addf %10, %11 : vector<512x128xf32>
    %13 = arith.mulf %10, %12 : vector<512x128xf32>
    %cst_6 = arith.constant 2.000000e+00 : f32
    %14 = vector.broadcast %cst_6 : f32 to vector<512x128xf32>
    %15 = arith.addf %13, %14 : vector<512x128xf32>
    %16 = arith.divf %13, %15 : vector<512x128xf32>
    %17 = arith.mulf %7, %16 : vector<512x128xf32>
    %c0_7 = arith.constant 0 : index
    %c0_8 = arith.constant 0 : index
    %18 = vector.load %arg5[%c0_7, %c0_8] : memref<512x128xbf16, #tpu.memory_space<vmem>>, vector<512x128xbf16>
    %19 = arith.extf %18 : vector<512x128xbf16> to vector<512x128xf32>
    %20 = arith.addf %17, %19 : vector<512x128xf32>
    %21 = arith.truncf %20 : vector<512x128xf32> to vector<512x128xbf16>
    %c0_9 = arith.constant 0 : index
    %c0_10 = arith.constant 0 : index
    %22 = vector.load %arg6[%c0_9, %c0_10] : memref<512x128xbf16, #tpu.memory_space<vmem>>, vector<512x128xbf16>
    tpu.vector_store %arg6[%c0_9, %c0_10], %21 {strides = array<i32>} : memref<512x128xbf16, #tpu.memory_space<vmem>>, vector<512x128xbf16>,
    return
  }
  func.func @transform_0(%arg0: i32, %arg1: i32) -> (i32, i32) {
    %c0_i32 = arith.constant 0 : i32
    return %arg0, %arg1 : i32, i32
  }
  func.func @transform_1(%arg0: i32, %arg1: i32) -> (i32, i32) {
    %c0_i32 = arith.constant 0 : i32
    %c0_i32_0 = arith.constant 0 : i32
    return %c0_i32, %arg1 : i32, i32
  }
  func.func @transform_2(%arg0: i32, %arg1: i32) -> (i32, i32) {
    %c0_i32 = arith.constant 0 : i32
    %c0_i32_0 = arith.constant 0 : i32
    return %c0_i32, %arg1 : i32, i32
  }
  func.func @transform_3(%arg0: i32, %arg1: i32) -> (i32, i32) {
    %c0_i32 = arith.constant 0 : i32
    return %arg0, %arg1 : i32, i32
  }
  func.func @transform_4(%arg0: i32, %arg1: i32) -> (i32, i32) {
    %c0_i32 = arith.constant 0 : i32
    return %arg0, %arg1 : i32, i32
  }
}

</mosaic_0001>

<bundles_post_ra>
// kernel: seg_to_seg_forward.11
= control target key start
LH: loop header
LB: loop body
LE: loop exit
PB: predicated region body
PF: predicated region fallthrough
CT: control target
= control target key end

     0   :  { %s4606_s12 = smov 0   ;;  %s4608_s13 = smov 0   ;;  %s5936_s0 = inlined_call_operand.vmem [shape: bf16[512,1152], index: 0, kind: input, shape index: {}]   ;;  %s5937_s1 = inlined_call_operand.vmem [shape: bf16[1152,128], index: 1, kind: input, shape index: {}]   ;;  %s5938_s2 = inlined_call_operand.vmem [shape: f32[1,128], index: 2, kind: input, shape index: {}]   ;;  %s5939_s3 = inlined_call_operand.vmem [shape: bf16[512,128], index: 3, kind: output, shape index: {}]  }
   0x1   :  { %s4610_s14 = smov 0   ;;  %s4612_s15 = smov 0  }
   0x2   :  { %s4614_s16 = smov 0  }
   0x3 LB: > { %s25_s17 = sadd.s32 1, %s4578_s15  ;;  %p48_p1 = scmp.ne.s32.totalorder %s4570_s13, %s4566_s12  ;;  %s4582_s16 = sphi %s4614_s16, %s13_s16   ;;  %s4578_s15 = sphi %s4612_s15, %s5943_s15   ;;  %s4574_s14 = sphi %s4610_s14, %s5942_s14   ;;  %s4570_s13 = sphi %s4608_s13, %s5941_s13   ;;  %s4566_s12 = sphi %s4606_s12, %s5940_s12  }
   0x4   : > { %p26_p0 = scmp.ge.s32.totalorder %s25_s17, 3  ;;  %p49_p2 = scmp.eq.s32.totalorder %s4582_s16, 0 }
   0x5   : > { %s41_s19 = sadd.s32 1, %s4570_s13  ;;  %p3360_p5 = scmp.ge.s32.totalorder %s4582_s16, 3 }
   0x6   : > { %s5945_s17 = smov (%p26_p0, %s25_s17), 0  ;;  %p50_p3 = por %p49_p2, %p48_p1 }
   0x7   : > { %s37_s18 = ssub.s32 %s4578_s15, %s5945_s17  ;;  %162 = sbr.rel (%p3360_p5) target bundleno = 93 (0x5d), region = 20 }
   0x8   : > { %p39_p4 = scmp.eq.s32.totalorder %s37_s18, 0 }
   0xa   : > { %s4641_s20 = scalar_select %p39_p4, %s4570_s13, %s41_s19  }
   0xe   : > { %165 = sbr.rel (!%p50_p3) target bundleno = 93 (0x5d), region = 24  ;;  %s167_s21 = sand.u32 (%p50_p3), 1, %s4570_s13  }
   0xf   : > { %s3683_s22 = smul.u32 (%p50_p3), 12, %s4578_s15 }
  0x10   : > { %s4091_s23 = smul.u32 (%p50_p3), 768, %s167_s21 }
  0x11   : > { %s4649_s26 = scalar_lea.vmem (%p50_p3), %s5936_s0, %s3683_s22 }
  0x12   : > { %v190_v0 = vld [vmem:[%s4649_s26] sm:$0xff] (%p50_p3)  ;;  %v194_v2 = vld [vmem:[%s4649_s26 + $0x48] sm:$0xff] (%p50_p3)  ;;  %s4654_s27 = scalar_lea.vmem (%p50_p3), [#allocation3], %s4091_s23  ;;  %v198_v4 = vld [vmem:[%s4649_s26 + $0x90] sm:$0xff] (%p50_p3) }
  0x13   : > { %v192_v1 = vld [vmem:[%s4649_s26 + $0x24] sm:$0xff] (%p50_p3)  ;;  %191 = vst [vmem:[%s4654_s27] sm:$0xff] (%p50_p3), %v190_v0  ;;  %195 = vst [vmem:[%s4654_s27 + $0x18] sm:$0xff] (%p50_p3), %v194_v2  ;;  %v196_v3 = vld [vmem:[%s4649_s26 + $0x6c] sm:$0xff] (%p50_p3) }
  0x14   : > { %193 = vst [vmem:[%s4654_s27 + $0xc] sm:$0xff] (%p50_p3), %v192_v1  ;;  %v200_v5 = vld [vmem:[%s4649_s26 + $0xb4] sm:$0xff] (%p50_p3)  ;;  %197 = vst [vmem:[%s4654_s27 + $0x24] sm:$0xff] (%p50_p3), %v196_v3  ;;  %v204_v7 = vld [vmem:[%s4649_s26 + $0xfc] sm:$0xff] (%p50_p3) }
  0x15   : > { %199 = vst [vmem:[%s4654_s27 + $0x30] sm:$0xff] %v198_v4  ;;  %201 = vst [vmem:[%s4654_s27 + $0x3c] sm:$0xff] %v200_v5  ;;  %v202_v6 = vld [vmem:[%s4649_s26 + $0xd8] sm:$0xff]  ;;  %v206_v8 = vld [vmem:[%s4649_s26 + $0x120] sm:$0xff] }
  0x16   : > { %203 = vst [vmem:[%s4654_s27 + $0x48] sm:$0xff] %v202_v6  ;;  %205 = vst [vmem:[%s4654_s27 + $0x54] sm:$0xff] %v204_v7  ;;  %v208_v9 = vld [vmem:[%s4649_s26 + $0x144] sm:$0xff]  ;;  %v212_v11 = vld [vmem:[%s4649_s26 + $0x18c] sm:$0xff] }
  0x17   : > { %207 = vst [vmem:[%s4654_s27 + $0x60] sm:$0xff] %v206_v8  ;;  %v210_v10 = vld [vmem:[%s4649_s26 + $0x168] sm:$0xff]  ;;  %209 = vst [vmem:[%s4654_s27 + $0x6c] sm:$0xff] %v208_v9  ;;  %v214_v12 = vld [vmem:[%s4649_s26 + $0x1b0] sm:$0xff] }
  0x18   : > { %211 = vst [vmem:[%s4654_s27 + $0x78] sm:$0xff] %v210_v10  ;;  %213 = vst [vmem:[%s4654_s27 + $0x84] sm:$0xff] %v212_v11  ;;  %v216_v13 = vld [vmem:[%s4649_s26 + $0x1d4] sm:$0xff]  ;;  %v220_v15 = vld [vmem:[%s4649_s26 + $0x21c] sm:$0xff] }
  0x19   : > { %v218_v14 = vld [vmem:[%s4649_s26 + $0x1f8] sm:$0xff]  ;;  %215 = vst [vmem:[%s4654_s27 + $0x90] sm:$0xff] %v214_v12  ;;  %217 = vst [vmem:[%s4654_s27 + $0x9c] sm:$0xff] %v216_v13  ;;  %v222_v16 = vld [vmem:[%s4649_s26 + $0x240] sm:$0xff] }
  0x1a   : > { %219 = vst [vmem:[%s4654_s27 + $0xa8] sm:$0xff] %v218_v14  ;;  %v224_v17 = vld [vmem:[%s4649_s26 + $0x264] sm:$0xff]  ;;  %221 = vst [vmem:[%s4654_s27 + $0xb4] sm:$0xff] %v220_v15  ;;  %v228_v19 = vld [vmem:[%s4649_s26 + $0x2ac] sm:$0xff] }
  0x1b   : > { %223 = vst [vmem:[%s4654_s27 + $0xc0] sm:$0xff] %v222_v16  ;;  %225 = vst [vmem:[%s4654_s27 + $0xcc] sm:$0xff] %v224_v17  ;;  %v226_v18 = vld [vmem:[%s4649_s26 + $0x288] sm:$0xff]  ;;  %v230_v20 = vld [vmem:[%s4649_s26 + $0x2d0] sm:$0xff] }
  0x1c   : > { %227 = vst [vmem:[%s4654_s27 + $0xd8] sm:$0xff] %v226_v18  ;;  %229 = vst [vmem:[%s4654_s27 + $0xe4] sm:$0xff] %v228_v19  ;;  %v232_v21 = vld [vmem:[%s4649_s26 + $0x2f4] sm:$0xff]  ;;  %v236_v23 = vld [vmem:[%s4649_s26 + $0x33c] sm:$0xff] }
  0x1d   : > { %231 = vst [vmem:[%s4654_s27 + $0xf0] sm:$0xff] %v230_v20  ;;  %v234_v22 = vld [vmem:[%s4649_s26 + $0x318] sm:$0xff]  ;;  %233 = vst [vmem:[%s4654_s27 + $0xfc] sm:$0xff] %v232_v21  ;;  %v238_v24 = vld [vmem:[%s4649_s26 + $0x360] sm:$0xff] }
  0x1e   : > { %235 = vst [vmem:[%s4654_s27 + $0x108] sm:$0xff] %v234_v22  ;;  %237 = vst [vmem:[%s4654_s27 + $0x114] sm:$0xff] %v236_v23  ;;  %v240_v25 = vld [vmem:[%s4649_s26 + $0x384] sm:$0xff]  ;;  %v244_v27 = vld [vmem:[%s4649_s26 + $0x3cc] sm:$0xff] }
  0x1f   : > { %v242_v26 = vld [vmem:[%s4649_s26 + $0x3a8] sm:$0xff]  ;;  %239 = vst [vmem:[%s4654_s27 + $0x120] sm:$0xff] %v238_v24  ;;  %241 = vst [vmem:[%s4654_s27 + $0x12c] sm:$0xff] %v240_v25  ;;  %v246_v28 = vld [vmem:[%s4649_s26 + $0x3f0] sm:$0xff] }
  0x20   : > { %243 = vst [vmem:[%s4654_s27 + $0x138] sm:$0xff] %v242_v26  ;;  %v248_v29 = vld [vmem:[%s4649_s26 + $0x414] sm:$0xff]  ;;  %245 = vst [vmem:[%s4654_s27 + $0x144] sm:$0xff] %v244_v27  ;;  %v252_v31 = vld [vmem:[%s4649_s26 + $0x45c] sm:$0xff] }
  0x21   : > { %247 = vst [vmem:[%s4654_s27 + $0x150] sm:$0xff] %v246_v28  ;;  %249 = vst [vmem:[%s4654_s27 + $0x15c] sm:$0xff] %v248_v29  ;;  %v250_v30 = vld [vmem:[%s4649_s26 + $0x438] sm:$0xff]  ;;  %v254_v32 = vld [vmem:[%s4649_s26 + $0x480] sm:$0xff] }
  0x22   : > { %251 = vst [vmem:[%s4654_s27 + $0x168] sm:$0xff] %v250_v30  ;;  %253 = vst [vmem:[%s4654_s27 + $0x174] sm:$0xff] %v252_v31  ;;  %v256_v33 = vld [vmem:[%s4649_s26 + $0x4a4] sm:$0xff]  ;;  %v260_v35 = vld [vmem:[%s4649_s26 + $0x4ec] sm:$0xff] }
  0x23   : > { %255 = vst [vmem:[%s4654_s27 + $0x180] sm:$0xff] %v254_v32  ;;  %v258_v34 = vld [vmem:[%s4649_s26 + $0x4c8] sm:$0xff]  ;;  %257 = vst [vmem:[%s4654_s27 + $0x18c] sm:$0xff] %v256_v33  ;;  %v262_v36 = vld [vmem:[%s4649_s26 + $0x510] sm:$0xff] }
  0x24   : > { %259 = vst [vmem:[%s4654_s27 + $0x198] sm:$0xff] %v258_v34  ;;  %261 = vst [vmem:[%s4654_s27 + $0x1a4] sm:$0xff] %v260_v35  ;;  %v264_v37 = vld [vmem:[%s4649_s26 + $0x534] sm:$0xff]  ;;  %v268_v39 = vld [vmem:[%s4649_s26 + $0x57c] sm:$0xff] }
  0x25   : > { %v266_v38 = vld [vmem:[%s4649_s26 + $0x558] sm:$0xff]  ;;  %263 = vst [vmem:[%s4654_s27 + $0x1b0] sm:$0xff] %v262_v36  ;;  %265 = vst [vmem:[%s4654_s27 + $0x1bc] sm:$0xff] %v264_v37  ;;  %v270_v40 = vld [vmem:[%s4649_s26 + $0x5a0] sm:$0xff] }
  0x26   : > { %267 = vst [vmem:[%s4654_s27 + $0x1c8] sm:$0xff] %v266_v38  ;;  %v272_v41 = vld [vmem:[%s4649_s26 + $0x5c4] sm:$0xff]  ;;  %269 = vst [vmem:[%s4654_s27 + $0x1d4] sm:$0xff] %v268_v39  ;;  %v276_v43 = vld [vmem:[%s4649_s26 + $0x60c] sm:$0xff] }
  0x27   : > { %271 = vst [vmem:[%s4654_s27 + $0x1e0] sm:$0xff] %v270_v40  ;;  %273 = vst [vmem:[%s4654_s27 + $0x1ec] sm:$0xff] %v272_v41  ;;  %v274_v42 = vld [vmem:[%s4649_s26 + $0x5e8] sm:$0xff]  ;;  %v278_v44 = vld [vmem:[%s4649_s26 + $0x630] sm:$0xff] }
  0x28   : > { %275 = vst [vmem:[%s4654_s27 + $0x1f8] sm:$0xff] %v274_v42  ;;  %277 = vst [vmem:[%s4654_s27 + $0x204] sm:$0xff] %v276_v43  ;;  %v280_v45 = vld [vmem:[%s4649_s26 + $0x654] sm:$0xff]  ;;  %v284_v47 = vld [vmem:[%s4649_s26 + $0x69c] sm:$0xff] }
  0x29   : > { %279 = vst [vmem:[%s4654_s27 + $0x210] sm:$0xff] %v278_v44  ;;  %v282_v46 = vld [vmem:[%s4649_s26 + $0x678] sm:$0xff]  ;;  %281 = vst [vmem:[%s4654_s27 + $0x21c] sm:$0xff] %v280_v45  ;;  %v286_v48 = vld [vmem:[%s4649_s26 + $0x6c0] sm:$0xff] }
  0x2a   : > { %283 = vst [vmem:[%s4654_s27 + $0x228] sm:$0xff] %v282_v46  ;;  %285 = vst [vmem:[%s4654_s27 + $0x234] sm:$0xff] %v284_v47  ;;  %v288_v49 = vld [vmem:[%s4649_s26 + $0x6e4] sm:$0xff]  ;;  %v292_v51 = vld [vmem:[%s4649_s26 + $0x72c] sm:$0xff] }
  0x2b   : > { %v290_v50 = vld [vmem:[%s4649_s26 + $0x708] sm:$0xff]  ;;  %287 = vst [vmem:[%s4654_s27 + $0x240] sm:$0xff] %v286_v48  ;;  %289 = vst [vmem:[%s4654_s27 + $0x24c] sm:$0xff] %v288_v49  ;;  %v294_v52 = vld [vmem:[%s4649_s26 + $0x750] sm:$0xff] }
  0x2c   : > { %291 = vst [vmem:[%s4654_s27 + $0x258] sm:$0xff] %v290_v50  ;;  %v296_v53 = vld [vmem:[%s4649_s26 + $0x774] sm:$0xff]  ;;  %293 = vst [vmem:[%s4654_s27 + $0x264] sm:$0xff] %v292_v51  ;;  %v300_v55 = vld [vmem:[%s4649_s26 + $0x7bc] sm:$0xff] }
  0x2d   : > { %295 = vst [vmem:[%s4654_s27 + $0x270] sm:$0xff] %v294_v52  ;;  %297 = vst [vmem:[%s4654_s27 + $0x27c] sm:$0xff] %v296_v53  ;;  %v298_v54 = vld [vmem:[%s4649_s26 + $0x798] sm:$0xff]  ;;  %v302_v56 = vld [vmem:[%s4649_s26 + $0x7e0] sm:$0xff] }
  0x2e   : > { %299 = vst [vmem:[%s4654_s27 + $0x288] sm:$0xff] %v298_v54  ;;  %301 = vst [vmem:[%s4654_s27 + $0x294] sm:$0xff] %v300_v55  ;;  %v304_v57 = vld [vmem:[%s4649_s26 + $0x804] sm:$0xff]  ;;  %v308_v59 = vld [vmem:[%s4649_s26 + $0x84c] sm:$0xff] }
  0x2f   : > { %303 = vst [vmem:[%s4654_s27 + $0x2a0] sm:$0xff] %v302_v56  ;;  %v306_v58 = vld [vmem:[%s4649_s26 + $0x828] sm:$0xff]  ;;  %305 = vst [vmem:[%s4654_s27 + $0x2ac] sm:$0xff] %v304_v57  ;;  %v310_v60 = vld [vmem:[%s4649_s26 + $0x870] sm:$0xff] }
  0x30   : > { %307 = vst [vmem:[%s4654_s27 + $0x2b8] sm:$0xff] %v306_v58  ;;  %309 = vst [vmem:[%s4654_s27 + $0x2c4] sm:$0xff] %v308_v59  ;;  %v312_v61 = vld [vmem:[%s4649_s26 + $0x894] sm:$0xff]  ;;  %v316_v63 = vld [vmem:[%s4649_s26 + $0x8dc] sm:$0xff] }
  0x31   : > { %v314_v62 = vld [vmem:[%s4649_s26 + $0x8b8] sm:$0xff]  ;;  %311 = vst [vmem:[%s4654_s27 + $0x2d0] sm:$0xff] %v310_v60  ;;  %313 = vst [vmem:[%s4654_s27 + $0x2dc] sm:$0xff] %v312_v61  ;;  %v3362_v0 = vld [vmem:[%s4649_s26 + $0x8] sm:$0xf] }
  0x32   : > { %315 = vst [vmem:[%s4654_s27 + $0x2e8] sm:$0xff] %v314_v62  ;;  %v3364_v1 = vld [vmem:[%s4649_s26 + $0x2c] sm:$0xf]  ;;  %317 = vst [vmem:[%s4654_s27 + $0x2f4] sm:$0xff] %v316_v63  ;;  %v3366_v2 = vld [vmem:[%s4649_s26 + $0x50] sm:$0xf] }
  0x33   : > { %3363 = vst [vmem:[%s4654_s27 + $0x8] sm:$0xf] %v3362_v0  ;;  %3365 = vst [vmem:[%s4654_s27 + $0x14] sm:$0xf] %v3364_v1  ;;  %v3368_v3 = vld [vmem:[%s4649_s26 + $0x74] sm:$0xf] }
  0x34   : > { %v3370_v4 = vld [vmem:[%s4649_s26 + $0x98] sm:$0xf]  ;;  %3367 = vst [vmem:[%s4654_s27 + $0x20] sm:$0xf] %v3366_v2  ;;  %3369 = vst [vmem:[%s4654_s27 + $0x2c] sm:$0xf] %v3368_v3 }
  0x35   : > { %3371 = vst [vmem:[%s4654_s27 + $0x38] sm:$0xf] %v3370_v4  ;;  %v3372_v5 = vld [vmem:[%s4649_s26 + $0xbc] sm:$0xf]  ;;  %v3374_v6 = vld [vmem:[%s4649_s26 + $0xe0] sm:$0xf] }
  0x36   : > { %v3376_v7 = vld [vmem:[%s4649_s26 + $0x104] sm:$0xf]  ;;  %3373 = vst [vmem:[%s4654_s27 + $0x44] sm:$0xf] %v3372_v5  ;;  %3375 = vst [vmem:[%s4654_s27 + $0x50] sm:$0xf] %v3374_v6 }
  0x37   : > { %3377 = vst [vmem:[%s4654_s27 + $0x5c] sm:$0xf] %v3376_v7  ;;  %v3378_v8 = vld [vmem:[%s4649_s26 + $0x128] sm:$0xf]  ;;  %v3380_v9 = vld [vmem:[%s4649_s26 + $0x14c] sm:$0xf] }
  0x38   : > { %v3382_v10 = vld [vmem:[%s4649_s26 + $0x170] sm:$0xf]  ;;  %3379 = vst [vmem:[%s4654_s27 + $0x68] sm:$0xf] %v3378_v8  ;;  %3381 = vst [vmem:[%s4654_s27 + $0x74] sm:$0xf] %v3380_v9 }
  0x39   : > { %3383 = vst [vmem:[%s4654_s27 + $0x80] sm:$0xf] %v3382_v10  ;;  %v3384_v11 = vld [vmem:[%s4649_s26 + $0x194] sm:$0xf]  ;;  %v3386_v12 = vld [vmem:[%s4649_s26 + $0x1b8] sm:$0xf] }
  0x3a   : > { %v3388_v13 = vld [vmem:[%s4649_s26 + $0x1dc] sm:$0xf]  ;;  %3385 = vst [vmem:[%s4654_s27 + $0x8c] sm:$0xf] %v3384_v11  ;;  %3387 = vst [vmem:[%s4654_s27 + $0x98] sm:$0xf] %v3386_v12 }
  0x3b   : > { %3389 = vst [vmem:[%s4654_s27 + $0xa4] sm:$0xf] %v3388_v13  ;;  %v3390_v14 = vld [vmem:[%s4649_s26 + $0x200] sm:$0xf]  ;;  %v3392_v15 = vld [vmem:[%s4649_s26 + $0x224] sm:$0xf] }
  0x3c   : > { %v3394_v16 = vld [vmem:[%s4649_s26 + $0x248] sm:$0xf]  ;;  %3391 = vst [vmem:[%s4654_s27 + $0xb0] sm:$0xf] %v3390_v14  ;;  %3393 = vst [vmem:[%s4654_s27 + $0xbc] sm:$0xf] %v3392_v15 }
  0x3d   : > { %3395 = vst [vmem:[%s4654_s27 + $0xc8] sm:$0xf] %v3394_v16  ;;  %v3396_v17 = vld [vmem:[%s4649_s26 + $0x26c] sm:$0xf]  ;;  %v3398_v18 = vld [vmem:[%s4649_s26 + $0x290] sm:$0xf] }
  0x3e   : > { %v3400_v19 = vld [vmem:[%s4649_s26 + $0x2b4] sm:$0xf]  ;;  %3397 = vst [vmem:[%s4654_s27 + $0xd4] sm:$0xf] %v3396_v17  ;;  %3399 = vst [vmem:[%s4654_s27 + $0xe0] sm:$0xf] %v3398_v18 }
  0x3f   : > { %3401 = vst [vmem:[%s4654_s27 + $0xec] sm:$0xf] %v3400_v19  ;;  %v3402_v20 = vld [vmem:[%s4649_s26 + $0x2d8] sm:$0xf]  ;;  %v3404_v21 = vld [vmem:[%s4649_s26 + $0x2fc] sm:$0xf] }
  0x40   : > { %v3406_v22 = vld [vmem:[%s4649_s26 + $0x320] sm:$0xf]  ;;  %3403 = vst [vmem:[%s4654_s27 + $0xf8] sm:$0xf] %v3402_v20  ;;  %3405 = vst [vmem:[%s4654_s27 + $0x104] sm:$0xf] %v3404_v21 }
  0x41   : > { %3407 = vst [vmem:[%s4654_s27 + $0x110] sm:$0xf] %v3406_v22  ;;  %v3408_v23 = vld [vmem:[%s4649_s26 + $0x344] sm:$0xf]  ;;  %v3410_v24 = vld [vmem:[%s4649_s26 + $0x368] sm:$0xf] }
  0x42   : > { %v3412_v25 = vld [vmem:[%s4649_s26 + $0x38c] sm:$0xf]  ;;  %3409 = vst [vmem:[%s4654_s27 + $0x11c] sm:$0xf] %v3408_v23  ;;  %3411 = vst [vmem:[%s4654_s27 + $0x128] sm:$0xf] %v3410_v24 }
  0x43   : > { %3413 = vst [vmem:[%s4654_s27 + $0x134] sm:$0xf] %v3412_v25  ;;  %v3414_v26 = vld [vmem:[%s4649_s26 + $0x3b0] sm:$0xf]  ;;  %v3416_v27 = vld [vmem:[%s4649_s26 + $0x3d4] sm:$0xf] }
  0x44   : > { %v3418_v28 = vld [vmem:[%s4649_s26 + $0x3f8] sm:$0xf]  ;;  %3415 = vst [vmem:[%s4654_s27 + $0x140] sm:$0xf] %v3414_v26  ;;  %3417 = vst [vmem:[%s4654_s27 + $0x14c] sm:$0xf] %v3416_v27 }
  0x45   : > { %3419 = vst [vmem:[%s4654_s27 + $0x158] sm:$0xf] %v3418_v28  ;;  %v3420_v29 = vld [vmem:[%s4649_s26 + $0x41c] sm:$0xf]  ;;  %v3422_v30 = vld [vmem:[%s4649_s26 + $0x440] sm:$0xf] }
  0x46   : > { %v3424_v31 = vld [vmem:[%s4649_s26 + $0x464] sm:$0xf]  ;;  %3421 = vst [vmem:[%s4654_s27 + $0x164] sm:$0xf] %v3420_v29  ;;  %3423 = vst [vmem:[%s4654_s27 + $0x170] sm:$0xf] %v3422_v30 }
  0x47   : > { %3425 = vst [vmem:[%s4654_s27 + $0x17c] sm:$0xf] %v3424_v31  ;;  %v3426_v32 = vld [vmem:[%s4649_s26 + $0x488] sm:$0xf]  ;;  %v3428_v33 = vld [vmem:[%s4649_s26 + $0x4ac] sm:$0xf] }
  0x48   : > { %v3430_v34 = vld [vmem:[%s4649_s26 + $0x4d0] sm:$0xf]  ;;  %3427 = vst [vmem:[%s4654_s27 + $0x188] sm:$0xf] %v3426_v32  ;;  %3429 = vst [vmem:[%s4654_s27 + $0x194] sm:$0xf] %v3428_v33 }
  0x49   : > { %3431 = vst [vmem:[%s4654_s27 + $0x1a0] sm:$0xf] %v3430_v34  ;;  %v3432_v35 = vld [vmem:[%s4649_s26 + $0x4f4] sm:$0xf]  ;;  %v3434_v36 = vld [vmem:[%s4649_s26 + $0x518] sm:$0xf] }
  0x4a   : > { %v3436_v37 = vld [vmem:[%s4649_s26 + $0x53c] sm:$0xf]  ;;  %3433 = vst [vmem:[%s4654_s27 + $0x1ac] sm:$0xf] %v3432_v35  ;;  %3435 = vst [vmem:[%s4654_s27 + $0x1b8] sm:$0xf] %v3434_v36 }
  0x4b   : > { %3437 = vst [vmem:[%s4654_s27 + $0x1c4] sm:$0xf] %v3436_v37  ;;  %v3438_v38 = vld [vmem:[%s4649_s26 + $0x560] sm:$0xf]  ;;  %v3440_v39 = vld [vmem:[%s4649_s26 + $0x584] sm:$0xf] }
  0x4c   : > { %v3442_v40 = vld [vmem:[%s4649_s26 + $0x5a8] sm:$0xf]  ;;  %3439 = vst [vmem:[%s4654_s27 + $0x1d0] sm:$0xf] %v3438_v38  ;;  %3441 = vst [vmem:[%s4654_s27 + $0x1dc] sm:$0xf] %v3440_v39 }
  0x4d   : > { %3443 = vst [vmem:[%s4654_s27 + $0x1e8] sm:$0xf] %v3442_v40  ;;  %v3444_v41 = vld [vmem:[%s4649_s26 + $0x5cc] sm:$0xf]  ;;  %v3446_v42 = vld [vmem:[%s4649_s26 + $0x5f0] sm:$0xf] }
  0x4e   : > { %v3448_v43 = vld [vmem:[%s4649_s26 + $0x614] sm:$0xf]  ;;  %3445 = vst [vmem:[%s4654_s27 + $0x1f4] sm:$0xf] %v3444_v41  ;;  %3447 = vst [vmem:[%s4654_s27 + $0x200] sm:$0xf] %v3446_v42 }
  0x4f   : > { %3449 = vst [vmem:[%s4654_s27 + $0x20c] sm:$0xf] %v3448_v43  ;;  %v3450_v44 = vld [vmem:[%s4649_s26 + $0x638] sm:$0xf]  ;;  %v3452_v45 = vld [vmem:[%s4649_s26 + $0x65c] sm:$0xf] }
  0x50   : > { %v3454_v46 = vld [vmem:[%s4649_s26 + $0x680] sm:$0xf]  ;;  %3451 = vst [vmem:[%s4654_s27 + $0x218] sm:$0xf] %v3450_v44  ;;  %3453 = vst [vmem:[%s4654_s27 + $0x224] sm:$0xf] %v3452_v45 }
  0x51   : > { %3455 = vst [vmem:[%s4654_s27 + $0x230] sm:$0xf] %v3454_v46  ;;  %v3456_v47 = vld [vmem:[%s4649_s26 + $0x6a4] sm:$0xf]  ;;  %v3458_v48 = vld [vmem:[%s4649_s26 + $0x6c8] sm:$0xf] }
  0x52   : > { %v3460_v49 = vld [vmem:[%s4649_s26 + $0x6ec] sm:$0xf]  ;;  %3457 = vst [vmem:[%s4654_s27 + $0x23c] sm:$0xf] %v3456_v47  ;;  %3459 = vst [vmem:[%s4654_s27 + $0x248] sm:$0xf] %v3458_v48 }
  0x53   : > { %3461 = vst [vmem:[%s4654_s27 + $0x254] sm:$0xf] %v3460_v49  ;;  %v3462_v50 = vld [vmem:[%s4649_s26 + $0x710] sm:$0xf]  ;;  %v3464_v51 = vld [vmem:[%s4649_s26 + $0x734] sm:$0xf] }
  0x54   : > { %v3466_v52 = vld [vmem:[%s4649_s26 + $0x758] sm:$0xf]  ;;  %3463 = vst [vmem:[%s4654_s27 + $0x260] sm:$0xf] %v3462_v50  ;;  %3465 = vst [vmem:[%s4654_s27 + $0x26c] sm:$0xf] %v3464_v51 }
  0x55   : > { %3467 = vst [vmem:[%s4654_s27 + $0x278] sm:$0xf] %v3466_v52  ;;  %v3468_v53 = vld [vmem:[%s4649_s26 + $0x77c] sm:$0xf]  ;;  %v3470_v54 = vld [vmem:[%s4649_s26 + $0x7a0] sm:$0xf] }
  0x56   : > { %v3472_v55 = vld [vmem:[%s4649_s26 + $0x7c4] sm:$0xf]  ;;  %3469 = vst [vmem:[%s4654_s27 + $0x284] sm:$0xf] %v3468_v53  ;;  %3471 = vst [vmem:[%s4654_s27 + $0x290] sm:$0xf] %v3470_v54 }
  0x57   : > { %3473 = vst [vmem:[%s4654_s27 + $0x29c] sm:$0xf] %v3472_v55  ;;  %v3474_v56 = vld [vmem:[%s4649_s26 + $0x7e8] sm:$0xf]  ;;  %v3476_v57 = vld [vmem:[%s4649_s26 + $0x80c] sm:$0xf] }
  0x58   : > { %v3478_v58 = vld [vmem:[%s4649_s26 + $0x830] sm:$0xf]  ;;  %3475 = vst [vmem:[%s4654_s27 + $0x2a8] sm:$0xf] %v3474_v56  ;;  %3477 = vst [vmem:[%s4654_s27 + $0x2b4] sm:$0xf] %v3476_v57 }
  0x59   : > { %3479 = vst [vmem:[%s4654_s27 + $0x2c0] sm:$0xf] %v3478_v58  ;;  %v3480_v59 = vld [vmem:[%s4649_s26 + $0x854] sm:$0xf]  ;;  %v3482_v60 = vld [vmem:[%s4649_s26 + $0x878] sm:$0xf] }
  0x5a   : > { %v3484_v61 = vld [vmem:[%s4649_s26 + $0x89c] sm:$0xf]  ;;  %3481 = vst [vmem:[%s4654_s27 + $0x2cc] sm:$0xf] %v3480_v59  ;;  %3483 = vst [vmem:[%s4654_s27 + $0x2d8] sm:$0xf] %v3482_v60 }
  0x5b   : > { %3485 = vst [vmem:[%s4654_s27 + $0x2e4] sm:$0xf] %v3484_v61  ;;  %v3486_v62 = vld [vmem:[%s4649_s26 + $0x8c0] sm:$0xf]  ;;  %v3488_v63 = vld [vmem:[%s4649_s26 + $0x8e4] sm:$0xf] }
  0x5c   : > { %3487 = vst [vmem:[%s4654_s27 + $0x2f0] sm:$0xf] %v3486_v62  ;;  %3489 = vst [vmem:[%s4654_s27 + $0x2fc] sm:$0xf] %v3488_v63 }
  0x5d PF: > { %p3490_p6 = scmp.ge.s32.totalorder %s4582_s16, 1  ;;  %p469_p7 = scmp.lt.s32.totalorder %s4582_s16, 4 }
  0x5f   : > { %p470_p8 = pnand %p3490_p6, %p469_p7 }
  0x60   : > { %s476_s28 = sand.u32 (!%p470_p8), 1, %s4566_s12   ;;  %s515_s29 = smul.u32 (!%p470_p8), 48, %s4574_s14 }
  0x61   : > { %473 = sbr.rel (%p470_p8) target bundleno = 792 (0x318), region = 54  ;;  %p3492_p10 = scmp.ne.s32.totalorder (!%p470_p8), %s4574_s14, 0 }
  0x62   : > { %s4092_s30 = smul.u32 (!%p470_p8), 768, %s476_s28  ;;  %p516_p9 = scmp.lt.s32.totalorder (!%p470_p8), %s515_s29, 143 }
  0x64   : > { %s4918_s8 = scalar_lea.vmem (!%p470_p8), [#allocation3], %s4092_s30 }
  0x68   : > { %s5947_s29 = smov (!%p516_p9, %s515_s29), 143  ;;  %540 = sbr.rel (%p3492_p10) target bundleno = 138 (0x8a), region = 62 }
  0x69   : > { %s3491_s4 = sshll.u32 %s5947_s29, 2  ;;  %v4584_v0 = vmov (!%p3492_p10), 0.0  }
  0x6a   : > { %s4916_s7 = scalar_lea.vmem %s5937_s1, %s3491_s4  ;;  %541 = vst [vmem:[#allocation2] sm:$0xff] (!%p3492_p10), %v4584_v0  ;;  %542 = vst [vmem:[#allocation2 + $0x8] sm:$0xff] (!%p3492_p10), %v4584_v0 }
  0x6b   : > { %543 = vst [vmem:[#allocation2 + $0x10] sm:$0xff] (!%p3492_p10), %v4584_v0  ;;  %544 = vst [vmem:[#allocation2 + $0x18] sm:$0xff] (!%p3492_p10), %v4584_v0 }
  0x6c   : > { %545 = vst [vmem:[#allocation2 + $0x20] sm:$0xff] (!%p3492_p10), %v4584_v0  ;;  %546 = vst [vmem:[#allocation2 + $0x28] sm:$0xff] (!%p3492_p10), %v4584_v0 }
  0x6d   : > { %547 = vst [vmem:[#allocation2 + $0x30] sm:$0xff] (!%p3492_p10), %v4584_v0  ;;  %548 = vst [vmem:[#allocation2 + $0x38] sm:$0xff] (!%p3492_p10), %v4584_v0 }
  0x6e   : > { %549 = vst [vmem:[#allocation2 + $0x40] sm:$0xff] (!%p3492_p10), %v4584_v0  ;;  %550 = vst [vmem:[#allocation2 + $0x48] sm:$0xff] (!%p3492_p10), %v4584_v0 }
  0x6f   : > { %551 = vst [vmem:[#allocation2 + $0x50] sm:$0xff] %v4584_v0  ;;  %552 = vst [vmem:[#allocation2 + $0x58] sm:$0xff] %v4584_v0 }
  0x70   : > { %553 = vst [vmem:[#allocation2 + $0x60] sm:$0xff] %v4584_v0  ;;  %554 = vst [vmem:[#allocation2 + $0x68] sm:$0xff] %v4584_v0 }
  0x71   : > { %555 = vst [vmem:[#allocation2 + $0x70] sm:$0xff] %v4584_v0  ;;  %556 = vst [vmem:[#allocation2 + $0x78] sm:$0xff] %v4584_v0 }
  0x72   : > { %557 = vst [vmem:[#allocation2 + $0x80] sm:$0xff] %v4584_v0  ;;  %558 = vst [vmem:[#allocation2 + $0x88] sm:$0xff] %v4584_v0 }
  0x73   : > { %559 = vst [vmem:[#allocation2 + $0x90] sm:$0xff] %v4584_v0  ;;  %560 = vst [vmem:[#allocation2 + $0x98] sm:$0xff] %v4584_v0 }
  0x74   : > { %561 = vst [vmem:[#allocation2 + $0xa0] sm:$0xff] %v4584_v0  ;;  %562 = vst [vmem:[#allocation2 + $0xa8] sm:$0xff] %v4584_v0 }
  0x75   : > { %563 = vst [vmem:[#allocation2 + $0xb0] sm:$0xff] %v4584_v0  ;;  %564 = vst [vmem:[#allocation2 + $0xb8] sm:$0xff] %v4584_v0 }
  0x76   : > { %565 = vst [vmem:[#allocation2 + $0xc0] sm:$0xff] %v4584_v0  ;;  %566 = vst [vmem:[#allocation2 + $0xc8] sm:$0xff] %v4584_v0 }
  0x77   : > { %567 = vst [vmem:[#allocation2 + $0xd0] sm:$0xff] %v4584_v0  ;;  %568 = vst [vmem:[#allocation2 + $0xd8] sm:$0xff] %v4584_v0 }
  0x78   : > { %569 = vst [vmem:[#allocation2 + $0xe0] sm:$0xff] %v4584_v0  ;;  %570 = vst [vmem:[#allocation2 + $0xe8] sm:$0xff] %v4584_v0 }
  0x79   : > { %571 = vst [vmem:[#allocation2 + $0xf0] sm:$0xff] %v4584_v0  ;;  %572 = vst [vmem:[#allocation2 + $0xf8] sm:$0xff] %v4584_v0 }
  0x7a   : > { %573 = vst [vmem:[#allocation2 + $0x100] sm:$0xff] %v4584_v0  ;;  %574 = vst [vmem:[#allocation2 + $0x108] sm:$0xff] %v4584_v0 }
  0x7b   : > { %575 = vst [vmem:[#allocation2 + $0x110] sm:$0xff] %v4584_v0  ;;  %576 = vst [vmem:[#allocation2 + $0x118] sm:$0xff] %v4584_v0 }
  0x7c   : > { %577 = vst [vmem:[#allocation2 + $0x120] sm:$0xff] %v4584_v0  ;;  %578 = vst [vmem:[#allocation2 + $0x128] sm:$0xff] %v4584_v0 }
  0x7d   : > { %579 = vst [vmem:[#allocation2 + $0x130] sm:$0xff] %v4584_v0  ;;  %580 = vst [vmem:[#allocation2 + $0x138] sm:$0xff] %v4584_v0 }
  0x7e   : > { %581 = vst [vmem:[#allocation2 + $0x140] sm:$0xff] %v4584_v0  ;;  %582 = vst [vmem:[#allocation2 + $0x148] sm:$0xff] %v4584_v0 }
  0x7f   : > { %583 = vst [vmem:[#allocation2 + $0x150] sm:$0xff] %v4584_v0  ;;  %584 = vst [vmem:[#allocation2 + $0x158] sm:$0xff] %v4584_v0 }
  0x80   : > { %585 = vst [vmem:[#allocation2 + $0x160] sm:$0xff] %v4584_v0  ;;  %586 = vst [vmem:[#allocation2 + $0x168] sm:$0xff] %v4584_v0 }
  0x81   : > { %587 = vst [vmem:[#allocation2 + $0x170] sm:$0xff] %v4584_v0  ;;  %588 = vst [vmem:[#allocation2 + $0x178] sm:$0xff] %v4584_v0 }
  0x82   : > { %589 = vst [vmem:[#allocation2 + $0x180] sm:$0xff] %v4584_v0  ;;  %590 = vst [vmem:[#allocation2 + $0x188] sm:$0xff] %v4584_v0 }
  0x83   : > { %591 = vst [vmem:[#allocation2 + $0x190] sm:$0xff] %v4584_v0  ;;  %592 = vst [vmem:[#allocation2 + $0x198] sm:$0xff] %v4584_v0 }
  0x84   : > { %593 = vst [vmem:[#allocation2 + $0x1a0] sm:$0xff] %v4584_v0  ;;  %594 = vst [vmem:[#allocation2 + $0x1a8] sm:$0xff] %v4584_v0 }
  0x85   : > { %595 = vst [vmem:[#allocation2 + $0x1b0] sm:$0xff] %v4584_v0  ;;  %596 = vst [vmem:[#allocation2 + $0x1b8] sm:$0xff] %v4584_v0 }
  0x86   : > { %597 = vst [vmem:[#allocation2 + $0x1c0] sm:$0xff] %v4584_v0  ;;  %598 = vst [vmem:[#allocation2 + $0x1c8] sm:$0xff] %v4584_v0 }
  0x87   : > { %599 = vst [vmem:[#allocation2 + $0x1d0] sm:$0xff] %v4584_v0  ;;  %600 = vst [vmem:[#allocation2 + $0x1d8] sm:$0xff] %v4584_v0 }
  0x88   : > { %601 = vst [vmem:[#allocation2 + $0x1e0] sm:$0xff] %v4584_v0  ;;  %602 = vst [vmem:[#allocation2 + $0x1e8] sm:$0xff] %v4584_v0 }
  0x89   : > { %603 = vst [vmem:[#allocation2 + $0x1f0] sm:$0xff] %v4584_v0  ;;  %604 = vst [vmem:[#allocation2 + $0x1f8] sm:$0xff] %v4584_v0 }
  0x8a PF: > { %v4135_v1 = vld [vmem:[%s4916_s7] sm:$0xff]   ;;  %v4585_v2 = vmov 0   ;;  %v4136_v3 = vld [vmem:[%s4916_s7 + $0x8] sm:$0xff]   ;;  %v4137_v4 = vld [vmem:[%s4916_s7 + $0x10] sm:$0xff]   ;;  %p3613_p11 = scmp.ne.s32.totalorder %s4574_s14, 2 }
  0x8b   : > { %1501 = vmatprep.subr.bf16.mxu0 %v4585_v2  ;;  %4059 = vmatprep.subr.bf16.mxu1 %v4585_v2  ;;  %v4138_v5 = vld [vmem:[%s4916_s7 + $0x18] sm:$0xff]   ;;  %v4139_v6 = vld [vmem:[%s4916_s7 + $0x20] sm:$0xff]   ;;  %v4140_v8 = vld [vmem:[%s4916_s7 + $0x28] sm:$0xff]  }
  0x8c   : > { %1502 = vmatpush1.bf16.msra.mxu0 %v4135_v1  ;;  %4075 = vmatpush1.bf16.msra.mxu1 %v4135_v1  ;;  %v4153_v7 = vld [vmem:[%s4918_s8 + $0x4] ss:$12 sps:$4 sm:$0xff]   ;;  %v4142_v11 = vld [vmem:[%s4916_s7 + $0x38] sm:$0xff]   ;;  %v4144_v13 = vld [vmem:[%s4916_s7 + $0x48] sm:$0xff]  }
  0x8d   : > { %1503 = vmatprep.subr.bf16.mxu0 %v4585_v2  ;;  %4060 = vmatprep.subr.bf16.mxu1 %v4585_v2  ;;  %v4156_v9 = vld [vmem:[%s4918_s8 + $0x244] ss:$12 sps:$4 sm:$0xff]   ;;  %v4146_v15 = vld [vmem:[%s4916_s7 + $0x58] sm:$0xff]   ;;  %v4148_v17 = vld [vmem:[%s4916_s7 + $0x68] sm:$0xff]  }
  0x8e   : > { %1533 = vmatprep.mubr.bf16.mxu0 %v4153_v7  ;;  %1725 = vmatprep.mubr.bf16.mxu1 %v4156_v9  ;;  %v4141_v10 = vld [vmem:[%s4916_s7 + $0x30] sm:$0xff]   ;;  %v4143_v12 = vld [vmem:[%s4916_s7 + $0x40] sm:$0xff]   ;;  %v4150_v19 = vld [vmem:[%s4916_s7 + $0x78] sm:$0xff]  }
  0x8f   : > { %v4145_v14 = vld [vmem:[%s4916_s7 + $0x50] sm:$0xff]   ;;  %v4147_v16 = vld [vmem:[%s4916_s7 + $0x60] sm:$0xff]   ;;  %v4158_v23 = vld [vmem:[%s4918_s8 + $0x1c] ss:$12 sps:$4 sm:$0xff]  }
  0x90   : > { %1504 = vmatpush1.bf16.msra.mxu0 %v4136_v3  ;;  %4076 = vmatpush1.bf16.msra.mxu1 %v4136_v3  ;;  %v4149_v18 = vld [vmem:[%s4916_s7 + $0x70] sm:$0xff]   ;;  %v4157_v20 = vld [vmem:[%s4916_s7 + $0x80] sm:$0xff]   ;;  %v4160_v24 = vld [vmem:[%s4918_s8 + $0x25c] ss:$12 sps:$4 sm:$0xff]  }
  0x91   : > { %1505 = vmatprep.subr.bf16.mxu0 %v4585_v2  ;;  %4061 = vmatprep.subr.bf16.mxu1 %v4585_v2  ;;  %v4151_v21 = vld [vmem:[%s4918_s8] ss:$12 sps:$4 sm:$0xff]   ;;  %v4171_v26 = vld [vmem:[%s4916_s7 + $0x90] sm:$0xff]   ;;  %v4162_v27 = vld [vmem:[%s4918_s8 + $0x18] ss:$12 sps:$4 sm:$0xff]  }
  0x92   : > { %v4154_v22 = vld [vmem:[%s4918_s8 + $0x240] ss:$12 sps:$4 sm:$0xff]   ;;  %v4163_v28 = vld [vmem:[%s4918_s8 + $0x258] ss:$12 sps:$4 sm:$0xff]   ;;  %v4169_v32 = vld [vmem:[%s4918_s8 + $0x30] ss:$12 sps:$4 sm:$0xff]  }
  0x93   : > { %v4164_v25 = vld [vmem:[%s4916_s7 + $0x88] sm:$0xff]   ;;  %v4165_v29 = vld [vmem:[%s4918_s8 + $0x34] ss:$12 sps:$4 sm:$0xff]   ;;  %v4178_v31 = vld [vmem:[%s4916_s7 + $0x98] sm:$0xff]  }
  0x94   : > { %1506 = vmatpush1.bf16.msra.mxu0 %v4137_v4  ;;  %4077 = vmatpush1.bf16.msra.mxu1 %v4137_v4  ;;  %v4167_v30 = vld [vmem:[%s4918_s8 + $0x274] ss:$12 sps:$4 sm:$0xff]   ;;  %v4170_v34 = vld [vmem:[%s4918_s8 + $0x270] ss:$12 sps:$4 sm:$0xff]   ;;  %v4172_v35 = vld [vmem:[%s4918_s8 + $0x4c] ss:$12 sps:$4 sm:$0xff]  }
  0x95   : > { %1507 = vmatprep.subr.bf16.mxu0 %v4585_v2  ;;  %4062 = vmatprep.subr.bf16.mxu1 %v4585_v2  ;;  %v4185_v33 = vld [vmem:[%s4916_s7 + $0xa0] sm:$0xff]   ;;  %v4174_v36 = vld [vmem:[%s4918_s8 + $0x28c] ss:$12 sps:$4 sm:$0xff]   ;;  %v4176_v38 = vld [vmem:[%s4918_s8 + $0x48] ss:$12 sps:$4 sm:$0xff]  }
  0x96   : > { %v4192_v37 = vld [vmem:[%s4916_s7 + $0xa8] sm:$0xff]   ;;  %v4179_v40 = vld [vmem:[%s4918_s8 + $0x64] ss:$12 sps:$4 sm:$0xff]   ;;  %v4206_v43 = vld [vmem:[%s4916_s7 + $0xb8] sm:$0xff]  }
  0x97   : > { %v4177_v39 = vld [vmem:[%s4918_s8 + $0x288] ss:$12 sps:$4 sm:$0xff]   ;;  %v4181_v41 = vld [vmem:[%s4918_s8 + $0x2a4] ss:$12 sps:$4 sm:$0xff]   ;;  %v4183_v44 = vld [vmem:[%s4918_s8 + $0x60] ss:$12 sps:$4 sm:$0xff]  }
  0x98   : > { %1508 = vmatpush1.bf16.msra.mxu0 %v4138_v5  ;;  %4078 = vmatpush1.bf16.msra.mxu1 %v4138_v5  ;;  %v4199_v42 = vld [vmem:[%s4916_s7 + $0xb0] sm:$0xff]   ;;  %v4184_v45 = vld [vmem:[%s4918_s8 + $0x2a0] ss:$12 sps:$4 sm:$0xff]   ;;  %v4186_v46 = vld [vmem:[%s4918_s8 + $0x7c] ss:$12 sps:$4 sm:$0xff]  }
  0x99   : > { %1509 = vmatprep.subr.bf16.mxu0 %v4585_v2  ;;  %4063 = vmatprep.subr.bf16.mxu1 %v4585_v2  ;;  %v4188_v47 = vld [vmem:[%s4918_s8 + $0x2bc] ss:$12 sps:$4 sm:$0xff]   ;;  %v4190_v48 = vld [vmem:[%s4918_s8 + $0x78] ss:$12 sps:$4 sm:$0xff]   ;;  %v4193_v50 = vld [vmem:[%s4918_s8 + $0x94] ss:$12 sps:$4 sm:$0xff]  }
  0x9a   : > { %v4191_v49 = vld [vmem:[%s4918_s8 + $0x2b8] ss:$12 sps:$4 sm:$0xff]   ;;  %v4195_v51 = vld [vmem:[%s4918_s8 + $0x2d4] ss:$12 sps:$4 sm:$0xff]   ;;  %v4197_v52 = vld [vmem:[%s4918_s8 + $0x90] ss:$12 sps:$4 sm:$0xff]  }
  0x9b   : > { %v4198_v53 = vld [vmem:[%s4918_s8 + $0x2d0] ss:$12 sps:$4 sm:$0xff]   ;;  %v4200_v54 = vld [vmem:[%s4918_s8 + $0xac] ss:$12 sps:$4 sm:$0xff]   ;;  %v4204_v56 = vld [vmem:[%s4918_s8 + $0xa8] ss:$12 sps:$4 sm:$0xff]  }
  0x9c   : > { %1510 = vmatpush1.bf16.msra.mxu0 %v4139_v6  ;;  %4079 = vmatpush1.bf16.msra.mxu1 %v4139_v6  ;;  %v4202_v55 = vld [vmem:[%s4918_s8 + $0x2ec] ss:$12 sps:$4 sm:$0xff]   ;;  %v4205_v57 = vld [vmem:[%s4918_s8 + $0x2e8] ss:$12 sps:$4 sm:$0xff]   ;;  %v4207_v58 = vld [vmem:[%s4918_s8 + $0xc4] ss:$12 sps:$4 sm:$0xff]  }
  0x9d   : > { %1511 = vmatprep.subr.bf16.mxu0 %v4585_v2  ;;  %4064 = vmatprep.subr.bf16.mxu1 %v4585_v2  ;;  %v4209_v59 = vld [vmem:[%s4918_s8 + $0x8] ss:$12 sps:$4 sm:$0xff]   ;;  %v4210_v60 = vld [vmem:[%s4918_s8 + $0xc0] ss:$12 sps:$4 sm:$0xff]   ;;  %v4214_v63 = vld [vmem:[%s4918_s8 + $0x38] ss:$12 sps:$4 sm:$0xff]  }
  0x9e   : > { %v4211_v61 = vld [vmem:[%s4918_s8 + $0x20] ss:$12 sps:$4 sm:$0xff]   ;;  %v4212_v62 = vld [vmem:[%s4918_s8 + $0xdc] ss:$12 sps:$4 sm:$0xff]   ;;  %v4215_v0 = vld [vmem:[%s4918_s8 + $0xd8] ss:$12 sps:$4 sm:$0xff]  }
  0x9f   : > { %v4216_v1 = vld [vmem:[%s4918_s8 + $0x50] ss:$12 sps:$4 sm:$0xff]   ;;  %v4219_v3 = vld [vmem:[%s4918_s8 + $0x68] ss:$12 sps:$4 sm:$0xff]   ;;  %v4221_v5 = vld [vmem:[%s4918_s8 + $0x80] ss:$12 sps:$4 sm:$0xff]  }
  0xa0   : > { %1512 = vmatpush1.bf16.msra.mxu0 %v4140_v8  ;;  %4080 = vmatpush1.bf16.msra.mxu1 %v4140_v8  ;;  %v4220_v4 = vld [vmem:[%s4918_s8 + $0xf0] ss:$12 sps:$4 sm:$0xff]   ;;  %v4222_v6 = vld [vmem:[%s4918_s8 + $0x10c] ss:$12 sps:$4 sm:$0xff]   ;;  %v4225_v8 = vld [vmem:[%s4918_s8 + $0x108] ss:$12 sps:$4 sm:$0xff]  }
  0xa1   : > { %1513 = vmatprep.subr.bf16.mxu0 %v4585_v2  ;;  %4065 = vmatprep.subr.bf16.mxu1 %v4585_v2  ;;  %v4224_v7 = vld [vmem:[%s4918_s8 + $0x98] ss:$12 sps:$4 sm:$0xff]   ;;  %v4226_v9 = vld [vmem:[%s4918_s8 + $0xb0] ss:$12 sps:$4 sm:$0xff]  }
  0xa4   : > { %1514 = vmatpush1.bf16.msra.mxu0 %v4141_v10  ;;  %4081 = vmatpush1.bf16.msra.mxu1 %v4141_v10  ;;  %v4227_v10 = vld [vmem:[%s4918_s8 + $0x124] ss:$12 sps:$4 sm:$0xff]  }
  0xa5   : > { %1515 = vmatprep.subr.bf16.mxu0 %v4585_v2  ;;  %4066 = vmatprep.subr.bf16.mxu1 %v4585_v2 }
  0xa8   : > { %1516 = vmatpush1.bf16.msra.mxu0 %v4142_v11  ;;  %4082 = vmatpush1.bf16.msra.mxu1 %v4142_v11  ;;  %v4229_v11 = vld [vmem:[%s4918_s8 + $0xc8] ss:$12 sps:$4 sm:$0xff]  }
  0xa9   : > { %1517 = vmatprep.subr.bf16.mxu0 %v4585_v2  ;;  %4067 = vmatprep.subr.bf16.mxu1 %v4585_v2 }
  0xac   : > { %1518 = vmatpush1.bf16.msra.mxu0 %v4143_v12  ;;  %4083 = vmatpush1.bf16.msra.mxu1 %v4143_v12  ;;  %v4230_v12 = vld [vmem:[%s4918_s8 + $0x120] ss:$12 sps:$4 sm:$0xff]  }
  0xad   : > { %1519 = vmatprep.subr.bf16.mxu0 %v4585_v2  ;;  %4068 = vmatprep.subr.bf16.mxu1 %v4585_v2 }
  0xb0   : > { %1520 = vmatpush1.bf16.msra.mxu0 %v4144_v13  ;;  %4084 = vmatpush1.bf16.msra.mxu1 %v4144_v13  ;;  %v4231_v13 = vld [vmem:[%s4918_s8 + $0xe0] ss:$12 sps:$4 sm:$0xff]  }
  0xb1   : > { %1521 = vmatprep.subr.bf16.mxu0 %v4585_v2  ;;  %4069 = vmatprep.subr.bf16.mxu1 %v4585_v2 }
  0xb4   : > { %1522 = vmatpush1.bf16.msra.mxu0 %v4145_v14  ;;  %4085 = vmatpush1.bf16.msra.mxu1 %v4145_v14  ;;  %v4232_v14 = vld [vmem:[%s4918_s8 + $0x13c] ss:$12 sps:$4 sm:$0xff]  }
  0xb5   : > { %1523 = vmatprep.subr.bf16.mxu0 %v4585_v2  ;;  %4070 = vmatprep.subr.bf16.mxu1 %v4585_v2 }
  0xb8   : > { %1524 = vmatpush1.bf16.msra.mxu0 %v4146_v15  ;;  %4086 = vmatpush1.bf16.msra.mxu1 %v4146_v15  ;;  %v4234_v15 = vld [vmem:[%s4918_s8 + $0xf8] ss:$12 sps:$4 sm:$0xff]  }
  0xb9   : > { %1525 = vmatprep.subr.bf16.mxu0 %v4585_v2  ;;  %4071 = vmatprep.subr.bf16.mxu1 %v4585_v2 }
  0xbc   : > { %1526 = vmatpush1.bf16.msra.mxu0 %v4147_v16  ;;  %4087 = vmatpush1.bf16.msra.mxu1 %v4147_v16  ;;  %v4235_v16 = vld [vmem:[%s4918_s8 + $0x138] ss:$12 sps:$4 sm:$0xff]  }
  0xbd   : > { %1527 = vmatprep.subr.bf16.mxu0 %v4585_v2  ;;  %4072 = vmatprep.subr.bf16.mxu1 %v4585_v2 }
  0xc0   : > { %1528 = vmatpush1.bf16.msra.mxu0 %v4148_v17  ;;  %4088 = vmatpush1.bf16.msra.mxu1 %v4148_v17  ;;  %v4236_v17 = vld [vmem:[%s4918_s8 + $0x110] ss:$12 sps:$4 sm:$0xff]  }
  0xc1   : > { %1529 = vmatprep.subr.bf16.mxu0 %v4585_v2  ;;  %4073 = vmatprep.subr.bf16.mxu1 %v4585_v2 }
  0xc4   : > { %1530 = vmatpush1.bf16.msra.mxu0 %v4149_v18  ;;  %4089 = vmatpush1.bf16.msra.mxu1 %v4149_v18  ;;  %v4237_v18 = vld [vmem:[%s4918_s8 + $0x154] ss:$12 sps:$4 sm:$0xff]  }
  0xc5   : > { %1531 = vmatprep.subr.bf16.mxu0 %v4585_v2  ;;  %4074 = vmatprep.subr.bf16.mxu1 %v4585_v2  ;;  %v4217_v2 = vld [vmem:[%s4918_s8 + $0xf4] ss:$12 sps:$4 sm:$0xff]  }
  0xc8   : > { %1532 = vmatpush1.bf16.msra.mxu0 %v4150_v19  ;;  %4090 = vmatpush1.bf16.msra.mxu1 %v4150_v19  ;;  %v4239_v19 = vld [vmem:[%s4918_s8 + $0x128] ss:$12 sps:$4 sm:$0xff]  }
  0xc9   : > { %3979 = vmatprep.subr.bf16.mxu1 %v4157_v20 }
  0xcb   : > { %1534 = vmatmul.mubr.bf16.vlgmr.msra.gmra.mrb[0].mxu0 %v4151_v21  ;;  %1726 = vmatmul.mubr.bf16.vlgmr.msra.gmra.mrb[0].mxu1 %v4154_v22  ;;  %v4241_v21 = vld [vmem:[%s4918_s8 + $0x140] ss:$12 sps:$4 sm:$0xff]  }
  0xcc   : > { %3980 = vmatpush3.bf16.msra.mxu1 %v4157_v20  ;;  %1541 = vmatprep.mubr.bf16.mxu0 %v4158_v23  ;;  %v4240_v20 = vld [vmem:[%s4918_s8 + $0x150] ss:$12 sps:$4 sm:$0xff]   ;;  %v4242_v22 = vld [vmem:[%s4918_s8 + $0x16c] ss:$12 sps:$4 sm:$0xff]  }
  0xcd   : > { %1733 = vmatprep.mubr.bf16.mxu1 %v4160_v24  ;;  %3981 = vmatprep.subr.bf16.mxu1 %v4164_v25  ;;  %v4244_v23 = vld [vmem:[%s4918_s8 + $0x158] ss:$12 sps:$4 sm:$0xff]   ;;  %v4245_v24 = vld [vmem:[%s4918_s8 + $0x168] ss:$12 sps:$4 sm:$0xff]  }
  0xd0   : > { %3982 = vmatpush3.bf16.msra.mxu1 %v4164_v25  ;;  %v4246_v25 = vld [vmem:[%s4918_s8 + $0x170] ss:$12 sps:$4 sm:$0xff]  }
  0xd1   : > { %3983 = vmatprep.subr.bf16.mxu1 %v4171_v26 }
  0xd3   : > { %1542 = vmatmul.mubr.bf16.gmra.mrb[4].mxu0 %v4162_v27  ;;  %1734 = vmatmul.mubr.bf16.gmra.mrb[4].mxu1 %v4163_v28  ;;  %v4249_v27 = vld [vmem:[%s4918_s8 + $0x188] ss:$12 sps:$4 sm:$0xff]   ;;  %v4250_v28 = vld [vmem:[%s4918_s8 + $0x180] ss:$12 sps:$4 sm:$0xff]  }
  0xd4   : > { %1549 = vmatprep.mubr.bf16.mxu0 %v4165_v29  ;;  %1741 = vmatprep.mubr.bf16.mxu1 %v4167_v30  ;;  %v4251_v29 = vld [vmem:[%s4918_s8 + $0x1a0] ss:$12 sps:$4 sm:$0xff]   ;;  %v4252_v30 = vld [vmem:[%s4918_s8 + $0x19c] ss:$12 sps:$4 sm:$0xff]  }
  0xd5   : > { %3984 = vmatpush3.bf16.msra.mxu1 %v4171_v26  ;;  %v4247_v26 = vld [vmem:[%s4918_s8 + $0x184] ss:$12 sps:$4 sm:$0xff]  }
  0xd6   : > { %3985 = vmatprep.subr.bf16.mxu1 %v4178_v31 }
  0xd9   : > { %3986 = vmatpush3.bf16.msra.mxu1 %v4178_v31  ;;  %v4254_v31 = vld [vmem:[%s4918_s8 + $0x1b8] ss:$12 sps:$4 sm:$0xff]  }
  0xda   : > { %3987 = vmatprep.subr.bf16.mxu1 %v4185_v33 }
  0xdb   : > { %1550 = vmatmul.mubr.bf16.gmra.mrb[8].mxu0 %v4169_v32  ;;  %1742 = vmatmul.mubr.bf16.gmra.mrb[8].mxu1 %v4170_v34  ;;  %v4255_v32 = vld [vmem:[%s4918_s8 + $0x198] ss:$12 sps:$4 sm:$0xff]   ;;  %v4257_v34 = vld [vmem:[%s4918_s8 + $0x1b4] ss:$12 sps:$4 sm:$0xff]  }
  0xdc   : > { %1557 = vmatprep.mubr.bf16.mxu0 %v4172_v35  ;;  %1749 = vmatprep.mubr.bf16.mxu1 %v4174_v36  ;;  %v4259_v35 = vld [vmem:[%s4918_s8 + $0x1e8] ss:$12 sps:$4 sm:$0xff]   ;;  %v4260_v36 = vld [vmem:[%s4918_s8 + $0x1b0] ss:$12 sps:$4 sm:$0xff]  }
  0xdd   : > { %3988 = vmatpush3.bf16.msra.mxu1 %v4185_v33  ;;  %v4256_v33 = vld [vmem:[%s4918_s8 + $0x1d0] ss:$12 sps:$4 sm:$0xff]  }
  0xde   : > { %3989 = vmatprep.subr.bf16.mxu1 %v4192_v37 }
  0xe1   : > { %3990 = vmatpush3.bf16.msra.mxu1 %v4192_v37  ;;  %v4261_v37 = vld [vmem:[%s4918_s8 + $0x200] ss:$12 sps:$4 sm:$0xff]  }
  0xe2   : > { %3991 = vmatprep.subr.bf16.mxu1 %v4199_v42 }
  0xe3   : > { %1558 = vmatmul.mubr.bf16.gmra.mrb[12].mxu0 %v4176_v38  ;;  %1750 = vmatmul.mubr.bf16.gmra.mrb[12].mxu1 %v4177_v39  ;;  %v4262_v38 = vld [vmem:[%s4918_s8 + $0x1cc] ss:$12 sps:$4 sm:$0xff]  }
  0xe4   : > { %1565 = vmatprep.mubr.bf16.mxu0 %v4179_v40  ;;  %1757 = vmatprep.mubr.bf16.mxu1 %v4181_v41  ;;  %v4264_v39 = vld [vmem:[%s4918_s8 + $0x218] ss:$12 sps:$4 sm:$0xff]   ;;  %v4265_v40 = vld [vmem:[%s4918_s8 + $0x1c8] ss:$12 sps:$4 sm:$0xff]   ;;  %v4266_v41 = vld [vmem:[%s4918_s8 + $0x230] ss:$12 sps:$4 sm:$0xff]  }
  0xe5   : > { %3992 = vmatpush3.bf16.msra.mxu1 %v4199_v42  ;;  %v4267_v42 = vld [vmem:[%s4918_s8 + $0x1e4] ss:$12 sps:$4 sm:$0xff]  }
  0xe6   : > { %3993 = vmatprep.subr.bf16.mxu1 %v4206_v43 }
  0xe9   : > { %3994 = vmatpush3.bf16.msra.mxu1 %v4206_v43  ;;  %v4269_v43 = vld [vmem:[%s4918_s8 + $0x248] ss:$12 sps:$4 sm:$0xff]  }
  0xeb   : > { %1566 = vmatmul.mubr.bf16.gmra.mrb[16].mxu0 %v4183_v44  ;;  %1758 = vmatmul.mubr.bf16.gmra.mrb[16].mxu1 %v4184_v45  ;;  %v4270_v44 = vld [vmem:[%s4918_s8 + $0x1e0] ss:$12 sps:$4 sm:$0xff]  }
  0xec   : > { %1573 = vmatprep.mubr.bf16.mxu0 %v4186_v46  ;;  %1765 = vmatprep.mubr.bf16.mxu1 %v4188_v47  ;;  %v4271_v45 = vld [vmem:[%s4918_s8 + $0x260] ss:$12 sps:$4 sm:$0xff]   ;;  %v4272_v46 = vld [vmem:[%s4918_s8 + $0x1fc] ss:$12 sps:$4 sm:$0xff]   ;;  %v4274_v47 = vld [vmem:[%s4918_s8 + $0x278] ss:$12 sps:$4 sm:$0xff]  }
  0xf3   : > { %1574 = vmatmul.mubr.bf16.gmra.mrb[20].mxu0 %v4190_v48  ;;  %1766 = vmatmul.mubr.bf16.gmra.mrb[20].mxu1 %v4191_v49  ;;  %v4275_v48 = vld [vmem:[%s4918_s8 + $0x1f8] ss:$12 sps:$4 sm:$0xff]   ;;  %v4276_v49 = vld [vmem:[%s4918_s8 + $0x290] ss:$12 sps:$4 sm:$0xff]  }
  0xf4   : > { %1581 = vmatprep.mubr.bf16.mxu0 %v4193_v50  ;;  %1773 = vmatprep.mubr.bf16.mxu1 %v4195_v51  ;;  %v4277_v50 = vld [vmem:[%s4918_s8 + $0x214] ss:$12 sps:$4 sm:$0xff]  }
  0xf5   : > { %v4279_v51 = vld [vmem:[%s4918_s8 + $0x2a8] ss:$12 sps:$4 sm:$0xff]  }
  0xfb   : > { %1582 = vmatmul.mubr.bf16.gmra.mrb[24].mxu0 %v4197_v52  ;;  %1774 = vmatmul.mubr.bf16.gmra.mrb[24].mxu1 %v4198_v53  ;;  %v4280_v52 = vld [vmem:[%s4918_s8 + $0x210] ss:$12 sps:$4 sm:$0xff]   ;;  %v4281_v53 = vld [vmem:[%s4918_s8 + $0x2c0] ss:$12 sps:$4 sm:$0xff]  }
  0xfc   : > { %1589 = vmatprep.mubr.bf16.mxu0 %v4200_v54  ;;  %1781 = vmatprep.mubr.bf16.mxu1 %v4202_v55  ;;  %v4282_v54 = vld [vmem:[%s4918_s8 + $0x22c] ss:$12 sps:$4 sm:$0xff]  }
  0xfd   : > { %v4284_v55 = vld [vmem:[%s4918_s8 + $0x2d8] ss:$12 sps:$4 sm:$0xff]  }
 0x103   : > { %1590 = vmatmul.mubr.bf16.gmra.mrb[28].mxu0 %v4204_v56  ;;  %1782 = vmatmul.mubr.bf16.gmra.mrb[28].mxu1 %v4205_v57  ;;  %v4285_v56 = vld [vmem:[%s4918_s8 + $0x228] ss:$12 sps:$4 sm:$0xff]   ;;  %v4286_v57 = vld [vmem:[%s4918_s8 + $0x2f0] ss:$12 sps:$4 sm:$0xff]  }
 0x104   : > { %1597 = vmatprep.mubr.bf16.mxu0 %v4207_v58  ;;  %3995 = vmatprep.mubr.bf16.mxu1 %v4209_v59 }
 0x10b   : > { %1598 = vmatmul.mubr.bf16.gmra.mrb[32].mxu0 %v4210_v60  ;;  %3996 = vmatmul.mubr.bf16.vlgmr.msra.gmra.mrb[32].mxu1 %v4211_v61 }
 0x10c   : > { %1605 = vmatprep.mubr.bf16.mxu0 %v4212_v62  ;;  %3999 = vmatprep.mubr.bf16.mxu1 %v4214_v63 }
 0x113   : > { %1606 = vmatmul.mubr.bf16.gmra.mrb[36].mxu0 %v4215_v0  ;;  %4000 = vmatmul.mubr.bf16.gmra.mrb[36].mxu1 %v4216_v1 }
 0x114   : > { %1613 = vmatprep.mubr.bf16.mxu0 %v4217_v2  ;;  %4003 = vmatprep.mubr.bf16.mxu1 %v4219_v3 }
 0x11b   : > { %1614 = vmatmul.mubr.bf16.gmra.mrb[40].mxu0 %v4220_v4  ;;  %4004 = vmatmul.mubr.bf16.gmra.mrb[40].mxu1 %v4221_v5 }
 0x11c   : > { %1621 = vmatprep.mubr.bf16.mxu0 %v4222_v6  ;;  %4007 = vmatprep.mubr.bf16.mxu1 %v4224_v7 }
 0x123   : > { %1622 = vmatmul.mubr.bf16.gmra.mrb[44].mxu0 %v4225_v8  ;;  %4008 = vmatmul.mubr.bf16.gmra.mrb[44].mxu1 %v4226_v9 }
 0x124   : > { %1629 = vmatprep.mubr.bf16.mxu0 %v4227_v10  ;;  %4011 = vmatprep.mubr.bf16.mxu1 %v4229_v11 }
 0x12b   : > { %1630 = vmatmul.mubr.bf16.gmra.mrb[48].mxu0 %v4230_v12  ;;  %4012 = vmatmul.mubr.bf16.gmra.mrb[48].mxu1 %v4231_v13 }
 0x12c   : > { %1637 = vmatprep.mubr.bf16.mxu0 %v4232_v14  ;;  %4015 = vmatprep.mubr.bf16.mxu1 %v4234_v15 }
 0x133   : > { %1638 = vmatmul.mubr.bf16.gmra.mrb[52].mxu0 %v4235_v16  ;;  %4016 = vmatmul.mubr.bf16.gmra.mrb[52].mxu1 %v4236_v17 }
 0x134   : > { %1645 = vmatprep.mubr.bf16.mxu0 %v4237_v18  ;;  %4019 = vmatprep.mubr.bf16.mxu1 %v4239_v19 }
 0x13b   : > { %1646 = vmatmul.mubr.bf16.gmra.mrb[56].mxu0 %v4240_v20  ;;  %4020 = vmatmul.mubr.bf16.gmra.mrb[56].mxu1 %v4241_v21 }
 0x13c   : > { %1653 = vmatprep.mubr.bf16.mxu0 %v4242_v22  ;;  %4023 = vmatprep.mubr.bf16.mxu1 %v4244_v23 }
 0x143   : > { %1654 = vmatmul.mubr.bf16.gmra.mrb[60].mxu0 %v4245_v24  ;;  %4024 = vmatmul.mubr.bf16.gmra.mrb[60].mxu1 %v4246_v25 }
 0x144   : > { %1661 = vmatprep.mubr.bf16.mxu0 %v4247_v26  ;;  %4027 = vmatprep.mubr.bf16.mxu1 %v4249_v27 }
 0x14b   : > { %1662 = vmatmul.mubr.bf16.gmra.mrb[64].mxu0 %v4250_v28  ;;  %4028 = vmatmul.mubr.bf16.gmra.mrb[64].mxu1 %v4251_v29 }
 0x14c   : > { %1669 = vmatprep.mubr.bf16.mxu0 %v4252_v30  ;;  %4031 = vmatprep.mubr.bf16.mxu1 %v4254_v31 }
 0x153   : > { %1670 = vmatmul.mubr.bf16.gmra.mrb[68].mxu0 %v4255_v32  ;;  %4032 = vmatmul.mubr.bf16.gmra.mrb[68].mxu1 %v4256_v33 }
 0x154   : > { %1677 = vmatprep.mubr.bf16.mxu0 %v4257_v34  ;;  %4035 = vmatprep.mubr.bf16.mxu1 %v4259_v35 }
 0x15b   : > { %1678 = vmatmul.mubr.bf16.gmra.mrb[72].mxu0 %v4260_v36  ;;  %4036 = vmatmul.mubr.bf16.gmra.mrb[72].mxu1 %v4261_v37 }
 0x15c   : > { %1685 = vmatprep.mubr.bf16.mxu0 %v4262_v38  ;;  %4039 = vmatprep.mubr.bf16.mxu1 %v4264_v39 }
 0x163   : > { %1686 = vmatmul.mubr.bf16.gmra.mrb[76].mxu0 %v4265_v40  ;;  %4040 = vmatmul.mubr.bf16.gmra.mrb[76].mxu1 %v4266_v41 }
 0x164   : > { %1693 = vmatprep.mubr.bf16.mxu0 %v4267_v42  ;;  %4043 = vmatprep.mubr.bf16.mxu1 %v4269_v43 }
 0x16b   : > { %1694 = vmatmul.mubr.bf16.gmra.mrb[80].mxu0 %v4270_v44  ;;  %4044 = vmatmul.mubr.bf16.gmra.mrb[80].mxu1 %v4271_v45 }
 0x16c   : > { %1701 = vmatprep.mubr.bf16.mxu0 %v4272_v46  ;;  %4047 = vmatprep.mubr.bf16.mxu1 %v4274_v47 }
 0x173   : > { %1702 = vmatmul.mubr.bf16.gmra.mrb[84].mxu0 %v4275_v48  ;;  %4048 = vmatmul.mubr.bf16.gmra.mrb[84].mxu1 %v4276_v49 }
 0x174   : > { %1709 = vmatprep.mubr.bf16.mxu0 %v4277_v50  ;;  %4051 = vmatprep.mubr.bf16.mxu1 %v4279_v51 }
 0x17b   : > { %1710 = vmatmul.mubr.bf16.gmra.mrb[88].mxu0 %v4280_v52  ;;  %4052 = vmatmul.mubr.bf16.gmra.mrb[88].mxu1 %v4281_v53 }
 0x17c   : > { %1717 = vmatprep.mubr.bf16.mxu0 %v4282_v54  ;;  %4055 = vmatprep.mubr.bf16.mxu1 %v4284_v55 }
 0x183   : > { %1718 = vmatmul.mubr.bf16.gmra.mrb[92].mxu0 %v4285_v56  ;;  %4056 = vmatmul.mubr.bf16.gmra.mrb[92].mxu1 %v4286_v57 }
 0x19e   : > { %v5137_v58 = vpop.f32.mrb[0].mxu0  ;;  %v5139_v59 = vpop.f32.mrb[0].mxu1 }
 0x19f   : > { %v1537_v60 = vpop.f32.mrb[1].mxu0  ;;  %v1729_v61 = vpop.f32.mrb[1].mxu1 }
 0x1a0   : > { %v5141_v62 = vpop.f32.mrb[2].mxu0  ;;  %v5143_v63 = vpop.f32.mrb[2].mxu1  ;;  %v607_v61 = vld [vmem:[#allocation2 + $0x10] sm:$0xff] }
 0x1a1   : > { %v1540_v0 = vpop.f32.mrb[3].mxu0  ;;  %v1732_v1 = vpop.f32.mrb[3].mxu1 }
 0x1a6   : > { %v1543_v2 = vpop.f32.mrb[4].mxu0  ;;  %v5145_v3 = vpop.f32.mrb[4].mxu1 }
 0x1a7   : > { %v1545_v4 = vpop.f32.mrb[5].mxu0  ;;  %v1737_v5 = vpop.f32.mrb[5].mxu1 }
 0x1a8   : > { %v5147_v6 = vpop.f32.mrb[6].mxu0  ;;  %v5149_v7 = vpop.f32.mrb[6].mxu1  ;;  %v605_v5 = vld [vmem:[#allocation2] sm:$0xff] }
 0x1a9   : > { %v1548_v8 = vpop.f32.mrb[7].mxu0  ;;  %v1740_v9 = vpop.f32.mrb[7].mxu1 }
 0x1ae   : > { %v5151_v10 = vpop.f32.mrb[8].mxu0  ;;  %v5153_v11 = vpop.f32.mrb[8].mxu1 }
 0x1af   : > { %v1553_v12 = vpop.f32.mrb[9].mxu0  ;;  %v1745_v13 = vpop.f32.mrb[9].mxu1 }
 0x1b0   : > { %v5155_v14 = vpop.f32.mrb[10].mxu0  ;;  %v5157_v15 = vpop.f32.mrb[10].mxu1  ;;  %v608_v13 = vld [vmem:[#allocation2 + $0x18] sm:$0xff] }
 0x1b1   : > { %v1556_v16 = vpop.f32.mrb[11].mxu0  ;;  %v1748_v17 = vpop.f32.mrb[11].mxu1 }
 0x1b6   : > { %v5159_v18 = vpop.f32.mrb[12].mxu0  ;;  %v5161_v19 = vpop.f32.mrb[12].mxu1 }
 0x1b7   : > { %v1561_v20 = vpop.f32.mrb[13].mxu0  ;;  %v1753_v21 = vpop.f32.mrb[13].mxu1 }
 0x1b8   : > { %v5163_v22 = vpop.f32.mrb[14].mxu0  ;;  %v5165_v23 = vpop.f32.mrb[14].mxu1 }
 0x1b9   : > { %v1564_v24 = vpop.f32.mrb[15].mxu0  ;;  %v1756_v25 = vpop.f32.mrb[15].mxu1 }
 0x1ba   : > { %v606_v24 = vld [vmem:[#allocation2 + $0x8] sm:$0xff] }
 0x1be   : > { %v5167_v26 = vpop.f32.mrb[16].mxu0  ;;  %v5169_v27 = vpop.f32.mrb[16].mxu1 }
 0x1bf   : > { %v1569_v28 = vpop.f32.mrb[17].mxu0  ;;  %v1761_v29 = vpop.f32.mrb[17].mxu1 }
 0x1c0   : > { %v5171_v30 = vpop.f32.mrb[18].mxu0  ;;  %v5173_v31 = vpop.f32.mrb[18].mxu1 }
 0x1c1   : > { %v1572_v32 = vpop.f32.mrb[19].mxu0  ;;  %v1764_v33 = vpop.f32.mrb[19].mxu1 }
 0x1c2   : > { %v611_v33 = vld [vmem:[#allocation2 + $0x30] sm:$0xff] }
 0x1c6   : > { %v5175_v34 = vpop.f32.mrb[20].mxu0  ;;  %v5177_v35 = vpop.f32.mrb[20].mxu1 }
 0x1c7   : > { %v1577_v36 = vpop.f32.mrb[21].mxu0  ;;  %v1769_v37 = vpop.f32.mrb[21].mxu1 }
 0x1c8   : > { %v5179_v38 = vpop.f32.mrb[22].mxu0  ;;  %v5181_v39 = vpop.f32.mrb[22].mxu1 }
 0x1c9   : > { %v1580_v40 = vpop.f32.mrb[23].mxu0  ;;  %v1772_v41 = vpop.f32.mrb[23].mxu1 }
 0x1ce   : > { %v5183_v42 = vpop.f32.mrb[24].mxu0  ;;  %v5185_v43 = vpop.f32.mrb[24].mxu1 }
 0x1cf   : > { %v1585_v44 = vpop.f32.mrb[25].mxu0  ;;  %v1777_v45 = vpop.f32.mrb[25].mxu1 }
 0x1d0   : > { %v5187_v46 = vpop.f32.mrb[26].mxu0  ;;  %v5189_v47 = vpop.f32.mrb[26].mxu1 }
 0x1d1   : > { %v1588_v48 = vpop.f32.mrb[27].mxu0  ;;  %v1780_v49 = vpop.f32.mrb[27].mxu1 }
 0x1d6   : > { %v5191_v50 = vpop.f32.mrb[28].mxu0  ;;  %v5193_v51 = vpop.f32.mrb[28].mxu1 }
 0x1d7   : > { %v1593_v52 = vpop.f32.mrb[29].mxu0  ;;  %v1785_v53 = vpop.f32.mrb[29].mxu1 }
 0x1d8   : > { %v5195_v54 = vpop.f32.mrb[30].mxu0  ;;  %v5197_v55 = vpop.f32.mrb[30].mxu1 }
 0x1d9   : > { %v1596_v56 = vpop.f32.mrb[31].mxu0  ;;  %v1788_v57 = vpop.f32.mrb[31].mxu1 }
 0x1da   : > { %v610_v56 = vld [vmem:[#allocation2 + $0x28] sm:$0xff] }
 0x1de   : > { %v5199_v60 = vpop.f32.mrb[32].mxu0  ;;  %v3997_v0 = vpop.f32.mrb[32].mxu1 }
 0x1df   : > { %v1833_v1 = vadd.f32 %v3997_v0, %v1543_v2  ;;  %v1601_v4 = vpop.f32.mrb[33].mxu0  ;;  %v1824_v8 = vpop.f32.mrb[33].mxu1 }
 0x1e0   : > { %v1825_v9 = vadd.f32 %v1824_v8, %v5137_v58  ;;  %v5202_v12 = vpop.f32.mrb[34].mxu0  ;;  %v3998_v16 = vpop.f32.mrb[34].mxu1  ;;  %v615_v4 = vld [vmem:[#allocation2 + $0x50] sm:$0xff] }
 0x1e1   : > { %v2081_v17 = vadd.f32 %v1833_v1, %v607_v61  ;;  %v1836_v20 = vadd.f32 %v3998_v16, %v5147_v6  ;;  %v1604_v21 = vpop.f32.mrb[35].mxu0  ;;  %v1827_v25 = vpop.f32.mrb[35].mxu1  ;;  %v609_v6 = vld [vmem:[#allocation2 + $0x20] sm:$0xff] }
 0x1e2   : > { %v2079_v28 = vadd.f32 %v1825_v9, %v605_v5  ;;  %v1828_v29 = vadd.f32 %v1827_v25, %v5141_v62  ;;  %v612_v62 = vld [vmem:[#allocation2 + $0x38] sm:$0xff] }
 0x1e3   : > { %2145 = vst [vmem:[#allocation2 + $0x10] sm:$0xff] %v2081_v17  ;;  %v2082_v2 = vadd.f32 %v1836_v20, %v608_v13 }
 0x1e4   : > { %2143 = vst [vmem:[#allocation2] sm:$0xff] %v2079_v28  ;;  %v2080_v32 = vadd.f32 %v1828_v29, %v606_v24  ;;  %v614_v28 = vld [vmem:[#allocation2 + $0x48] sm:$0xff] }
 0x1e5   : > { %2146 = vst [vmem:[#allocation2 + $0x18] sm:$0xff] %v2082_v2 }
 0x1e6   : > { %2144 = vst [vmem:[#allocation2 + $0x8] sm:$0xff] %v2080_v32  ;;  %v5206_v58 = vpop.f32.mrb[36].mxu0  ;;  %v4001_v36 = vpop.f32.mrb[36].mxu1 }
 0x1e7   : > { %v1849_v37 = vadd.f32 %v4001_v36, %v5159_v18  ;;  %v1609_v40 = vpop.f32.mrb[37].mxu0  ;;  %v1840_v41 = vpop.f32.mrb[37].mxu1  ;;  %v619_v36 = vld [vmem:[#allocation2 + $0x70] sm:$0xff] }
 0x1e8   : > { %v1841_v44 = vadd.f32 %v1840_v41, %v5151_v10  ;;  %v5210_v45 = vpop.f32.mrb[38].mxu0  ;;  %v4002_v48 = vpop.f32.mrb[38].mxu1  ;;  %v617_v41 = vld [vmem:[#allocation2 + $0x60] sm:$0xff] }
 0x1e9   : > { %v2085_v49 = vadd.f32 %v1849_v37, %v611_v33  ;;  %v1852_v52 = vadd.f32 %v4002_v48, %v5163_v22  ;;  %v1612_v53 = vpop.f32.mrb[39].mxu0  ;;  %v1843_v57 = vpop.f32.mrb[39].mxu1  ;;  %v613_v22 = vld [vmem:[#allocation2 + $0x40] sm:$0xff]  ;;  %v620_v48 = vld [vmem:[#allocation2 + $0x78] sm:$0xff] }
 0x1ea   : > { %v2083_v61 = vadd.f32 %v1841_v44, %v609_v6  ;;  %v1844_v0 = vadd.f32 %v1843_v57, %v5155_v14  ;;  %v616_v14 = vld [vmem:[#allocation2 + $0x58] sm:$0xff] }
 0x1eb   : > { %2149 = vst [vmem:[#allocation2 + $0x30] sm:$0xff] %v2085_v49  ;;  %v2086_v18 = vadd.f32 %v1852_v52, %v612_v62 }
 0x1ec   : > { %2147 = vst [vmem:[#allocation2 + $0x20] sm:$0xff] %v2083_v61  ;;  %v2084_v1 = vadd.f32 %v1844_v0, %v610_v56  ;;  %v618_v56 = vld [vmem:[#allocation2 + $0x68] sm:$0xff] }
 0x1ed   : > { %2150 = vst [vmem:[#allocation2 + $0x38] sm:$0xff] %v2086_v18 }
 0x1ee   : > { %2148 = vst [vmem:[#allocation2 + $0x28] sm:$0xff] %v2084_v1  ;;  %v5214_v10 = vpop.f32.mrb[40].mxu0  ;;  %v4005_v5 = vpop.f32.mrb[40].mxu1 }
 0x1ef   : > { %v1865_v8 = vadd.f32 %v4005_v5, %v5175_v34  ;;  %v1617_v9 = vpop.f32.mrb[41].mxu0  ;;  %v1856_v13 = vpop.f32.mrb[41].mxu1 }
 0x1f0   : > { %v1857_v16 = vadd.f32 %v1856_v13, %v5167_v26  ;;  %v5218_v17 = vpop.f32.mrb[42].mxu0  ;;  %v4006_v20 = vpop.f32.mrb[42].mxu1  ;;  %v621_v9 = vld [vmem:[#allocation2 + $0x80] sm:$0xff] }
 0x1f1   : > { %v2089_v21 = vadd.f32 %v1865_v8, %v615_v4  ;;  %v1868_v24 = vadd.f32 %v4006_v20, %v5179_v38  ;;  %v1620_v25 = vpop.f32.mrb[43].mxu0  ;;  %v1859_v29 = vpop.f32.mrb[43].mxu1 }
 0x1f2   : > { %v2087_v2 = vadd.f32 %v1857_v16, %v613_v22  ;;  %v1860_v32 = vadd.f32 %v1859_v29, %v5171_v30  ;;  %v624_v16 = vld [vmem:[#allocation2 + $0x98] sm:$0xff] }
 0x1f3   : > { %2153 = vst [vmem:[#allocation2 + $0x50] sm:$0xff] %v2089_v21  ;;  %v2090_v34 = vadd.f32 %v1868_v24, %v616_v14  ;;  %v622_v24 = vld [vmem:[#allocation2 + $0x88] sm:$0xff] }
 0x1f4   : > { %2151 = vst [vmem:[#allocation2 + $0x40] sm:$0xff] %v2087_v2  ;;  %v2088_v33 = vadd.f32 %v1860_v32, %v614_v28 }
 0x1f5   : > { %2154 = vst [vmem:[#allocation2 + $0x58] sm:$0xff] %v2090_v34 }
 0x1f6   : > { %2152 = vst [vmem:[#allocation2 + $0x48] sm:$0xff] %v2088_v33  ;;  %v1623_v26 = vpop.f32.mrb[44].mxu0  ;;  %v4009_v37 = vpop.f32.mrb[44].mxu1 }
 0x1f7   : > { %v1881_v40 = vadd.f32 %v4009_v37, %v5191_v50  ;;  %v1625_v6 = vpop.f32.mrb[45].mxu0  ;;  %v1872_v38 = vpop.f32.mrb[45].mxu1  ;;  %v625_v37 = vld [vmem:[#allocation2 + $0xa0] sm:$0xff] }
 0x1f8   : > { %v1873_v44 = vadd.f32 %v1872_v38, %v5183_v42  ;;  %v1626_v62 = vpop.f32.mrb[46].mxu0  ;;  %v4010_v49 = vpop.f32.mrb[46].mxu1  ;;  %v623_v42 = vld [vmem:[#allocation2 + $0x90] sm:$0xff] }
 0x1f9   : > { %v2093_v30 = vadd.f32 %v1881_v40, %v619_v36  ;;  %v1884_v52 = vadd.f32 %v4010_v49, %v5195_v54  ;;  %v1628_v53 = vpop.f32.mrb[47].mxu0  ;;  %v1875_v57 = vpop.f32.mrb[47].mxu1  ;;  %v626_v49 = vld [vmem:[#allocation2 + $0xa8] sm:$0xff] }
 0x1fa   : > { %v2091_v61 = vadd.f32 %v1873_v44, %v617_v41  ;;  %v1876_v0 = vadd.f32 %v1875_v57, %v5187_v46  ;;  %v628_v41 = vld [vmem:[#allocation2 + $0xb8] sm:$0xff] }
 0x1fb   : > { %2157 = vst [vmem:[#allocation2 + $0x70] sm:$0xff] %v2093_v30  ;;  %v2094_v18 = vadd.f32 %v1884_v52, %v620_v48 }
 0x1fc   : > { %2155 = vst [vmem:[#allocation2 + $0x60] sm:$0xff] %v2091_v61  ;;  %v2092_v50 = vadd.f32 %v1876_v0, %v618_v56  ;;  %v631_v61 = vld [vmem:[#allocation2 + $0xd0] sm:$0xff] }
 0x1fd   : > { %2158 = vst [vmem:[#allocation2 + $0x78] sm:$0xff] %v2094_v18 }
 0x1fe   : > { %2156 = vst [vmem:[#allocation2 + $0x68] sm:$0xff] %v2092_v50  ;;  %v1631_v1 = vpop.f32.mrb[48].mxu0  ;;  %v4013_v4 = vpop.f32.mrb[48].mxu1  ;;  %v629_v50 = vld [vmem:[#allocation2 + $0xc0] sm:$0xff] }
 0x1ff   : > { %v1897_v5 = vadd.f32 %v4013_v4, %v5206_v58  ;;  %v1633_v8 = vpop.f32.mrb[49].mxu0  ;;  %v1888_v54 = vpop.f32.mrb[49].mxu1 }
 0x200   : > { %v1889_v22 = vadd.f32 %v1888_v54, %v5199_v60  ;;  %v1634_v13 = vpop.f32.mrb[50].mxu0  ;;  %v4014_v14 = vpop.f32.mrb[50].mxu1  ;;  %v627_v60 = vld [vmem:[#allocation2 + $0xb0] sm:$0xff] }
 0x201   : > { %v2097_v46 = vadd.f32 %v1897_v5, %v623_v42  ;;  %v1900_v20 = vadd.f32 %v4014_v14, %v5210_v45  ;;  %v1636_v21 = vpop.f32.mrb[51].mxu0  ;;  %v1891_v25 = vpop.f32.mrb[51].mxu1  ;;  %v632_v5 = vld [vmem:[#allocation2 + $0xd8] sm:$0xff] }
 0x202   : > { %v2095_v28 = vadd.f32 %v1889_v22, %v621_v9  ;;  %v1892_v29 = vadd.f32 %v1891_v25, %v5202_v12  ;;  %v630_v22 = vld [vmem:[#allocation2 + $0xc8] sm:$0xff]  ;;  %v635_v25 = vld [vmem:[#allocation2 + $0xf0] sm:$0xff] }
 0x203   : > { %2161 = vst [vmem:[#allocation2 + $0x90] sm:$0xff] %v2097_v46  ;;  %v2098_v2 = vadd.f32 %v1900_v20, %v624_v16 }
 0x204   : > { %2159 = vst [vmem:[#allocation2 + $0x80] sm:$0xff] %v2095_v28  ;;  %v2096_v58 = vadd.f32 %v1892_v29, %v622_v24 }
 0x205   : > { %2162 = vst [vmem:[#allocation2 + $0x98] sm:$0xff] %v2098_v2  ;;  %v633_v2 = vld [vmem:[#allocation2 + $0xe0] sm:$0xff] }
 0x206   : > { %2160 = vst [vmem:[#allocation2 + $0x88] sm:$0xff] %v2096_v58  ;;  %v1639_v32 = vpop.f32.mrb[52].mxu0  ;;  %v4017_v34 = vpop.f32.mrb[52].mxu1 }
 0x207   : > { %v1913_v33 = vadd.f32 %v4017_v34, %v1623_v26  ;;  %v1641_v36 = vpop.f32.mrb[53].mxu0  ;;  %v1904_v40 = vpop.f32.mrb[53].mxu1  ;;  %v636_v34 = vld [vmem:[#allocation2 + $0xf8] sm:$0xff] }
 0x208   : > { %v1905_v45 = vadd.f32 %v1904_v40, %v5214_v10  ;;  %v1642_v6 = vpop.f32.mrb[54].mxu0  ;;  %v4018_v38 = vpop.f32.mrb[54].mxu1  ;;  %v634_v40 = vld [vmem:[#allocation2 + $0xe8] sm:$0xff] }
 0x209   : > { %v2101_v44 = vadd.f32 %v1913_v33, %v627_v60  ;;  %v1916_v12 = vadd.f32 %v4018_v38, %v1626_v62  ;;  %v1644_v48 = vpop.f32.mrb[55].mxu0  ;;  %v1907_v30 = vpop.f32.mrb[55].mxu1 }
 0x20a   : > { %v2099_v52 = vadd.f32 %v1905_v45, %v625_v37  ;;  %v1908_v53 = vadd.f32 %v1907_v30, %v5218_v17  ;;  %v637_v30 = vld [vmem:[#allocation2 + $0x100] sm:$0xff] }
 0x20b   : > { %2165 = vst [vmem:[#allocation2 + $0xb0] sm:$0xff] %v2101_v44  ;;  %v2102_v56 = vadd.f32 %v1916_v12, %v628_v41 }
 0x20c   : > { %2163 = vst [vmem:[#allocation2 + $0xa0] sm:$0xff] %v2099_v52  ;;  %v2100_v26 = vadd.f32 %v1908_v53, %v626_v49 }
 0x20d   : > { %2166 = vst [vmem:[#allocation2 + $0xb8] sm:$0xff] %v2102_v56 }
 0x20e   : > { %2164 = vst [vmem:[#allocation2 + $0xa8] sm:$0xff] %v2100_v26  ;;  %v1647_v57 = vpop.f32.mrb[56].mxu0  ;;  %v4021_v10 = vpop.f32.mrb[56].mxu1 }
 0x20f   : > { %v1929_v0 = vadd.f32 %v4021_v10, %v1639_v32  ;;  %v1649_v18 = vpop.f32.mrb[57].mxu0  ;;  %v1920_v42 = vpop.f32.mrb[57].mxu1 }
 0x210   : > { %v1921_v62 = vadd.f32 %v1920_v42, %v1631_v1  ;;  %v1650_v4 = vpop.f32.mrb[58].mxu0  ;;  %v4022_v8 = vpop.f32.mrb[58].mxu1  ;;  %v639_v42 = vld [vmem:[#allocation2 + $0x110] sm:$0xff] }
 0x211   : > { %v2105_v9 = vadd.f32 %v1929_v0, %v631_v61  ;;  %v1932_v54 = vadd.f32 %v4022_v8, %v1642_v6  ;;  %v1652_v17 = vpop.f32.mrb[59].mxu0  ;;  %v1923_v16 = vpop.f32.mrb[59].mxu1  ;;  %v638_v61 = vld [vmem:[#allocation2 + $0x108] sm:$0xff] }
 0x212   : > { %v2103_v14 = vadd.f32 %v1921_v62, %v629_v50  ;;  %v1924_v46 = vadd.f32 %v1923_v16, %v1634_v13 }
 0x213   : > { %2169 = vst [vmem:[#allocation2 + $0xd0] sm:$0xff] %v2105_v9  ;;  %v2106_v20 = vadd.f32 %v1932_v54, %v632_v5  ;;  %v640_v54 = vld [vmem:[#allocation2 + $0x118] sm:$0xff] }
 0x214   : > { %2167 = vst [vmem:[#allocation2 + $0xc0] sm:$0xff] %v2103_v14  ;;  %v2104_v21 = vadd.f32 %v1924_v46, %v630_v22 }
 0x215   : > { %2170 = vst [vmem:[#allocation2 + $0xd8] sm:$0xff] %v2106_v20 }
 0x216   : > { %2168 = vst [vmem:[#allocation2 + $0xc8] sm:$0xff] %v2104_v21  ;;  %v1655_v24 = vpop.f32.mrb[60].mxu0  ;;  %v4025_v28 = vpop.f32.mrb[60].mxu1 }
 0x217   : > { %v1945_v1 = vadd.f32 %v4025_v28, %v1655_v24  ;;  %v1657_v29 = vpop.f32.mrb[61].mxu0  ;;  %v1936_v58 = vpop.f32.mrb[61].mxu1  ;;  %v641_v24 = vld [vmem:[#allocation2 + $0x120] sm:$0xff] }
 0x218   : > { %v1937_v32 = vadd.f32 %v1936_v58, %v1647_v57  ;;  %v1658_v60 = vpop.f32.mrb[62].mxu0  ;;  %v4026_v33 = vpop.f32.mrb[62].mxu1  ;;  %v642_v58 = vld [vmem:[#allocation2 + $0x128] sm:$0xff] }
 0x219   : > { %v2109_v36 = vadd.f32 %v1945_v1, %v635_v25  ;;  %v1948_v37 = vadd.f32 %v4026_v33, %v1658_v60  ;;  %v1660_v13 = vpop.f32.mrb[63].mxu0  ;;  %v1939_v45 = vpop.f32.mrb[63].mxu1 }
 0x21a   : > { %v2107_v6 = vadd.f32 %v1937_v32, %v633_v2  ;;  %v1940_v41 = vadd.f32 %v1939_v45, %v1650_v4 }
 0x21b   : > { %2173 = vst [vmem:[#allocation2 + $0xf0] sm:$0xff] %v2109_v36  ;;  %v2110_v38 = vadd.f32 %v1948_v37, %v636_v34 }
 0x21c   : > { %2171 = vst [vmem:[#allocation2 + $0xe0] sm:$0xff] %v2107_v6  ;;  %v2108_v44 = vadd.f32 %v1940_v41, %v634_v40  ;;  %v643_v40 = vld [vmem:[#allocation2 + $0x130] sm:$0xff] }
 0x21d   : > { %2174 = vst [vmem:[#allocation2 + $0xf8] sm:$0xff] %v2110_v38 }
 0x21e   : > { %2172 = vst [vmem:[#allocation2 + $0xe8] sm:$0xff] %v2108_v44  ;;  %v1663_v12 = vpop.f32.mrb[64].mxu0  ;;  %v4029_v48 = vpop.f32.mrb[64].mxu1 }
 0x21f   : > { %v1665_v49 = vpop.f32.mrb[65].mxu0  ;;  %v1952_v52 = vpop.f32.mrb[65].mxu1 }
 0x220   : > { %v1953_v53 = vadd.f32 %v1952_v52, %v1663_v12  ;;  %v1666_v56 = vpop.f32.mrb[66].mxu0  ;;  %v4030_v26 = vpop.f32.mrb[66].mxu1  ;;  %v644_v12 = vld [vmem:[#allocation2 + $0x138] sm:$0xff] }
 0x221   : > { %v1668_v57 = vpop.f32.mrb[67].mxu0  ;;  %v1955_v10 = vpop.f32.mrb[67].mxu1 }
 0x222   : > { %v2111_v0 = vadd.f32 %v1953_v53, %v637_v30  ;;  %v1956_v18 = vadd.f32 %v1955_v10, %v1666_v56  ;;  %v645_v57 = vld [vmem:[#allocation2 + $0x140] sm:$0xff]  ;;  %v655_v10 = vld [vmem:[#allocation2 + $0x190] sm:$0xff] }
 0x224   : > { %2175 = vst [vmem:[#allocation2 + $0x100] sm:$0xff] %v2111_v0  ;;  %v2112_v50 = vadd.f32 %v1956_v18, %v638_v61 }
 0x226   : > { %2176 = vst [vmem:[#allocation2 + $0x108] sm:$0xff] %v2112_v50  ;;  %v1671_v62 = vpop.f32.mrb[68].mxu0  ;;  %v4033_v4 = vpop.f32.mrb[68].mxu1 }
 0x227   : > { %v1961_v5 = vadd.f32 %v4029_v48, %v1671_v62  ;;  %v1673_v8 = vpop.f32.mrb[69].mxu0  ;;  %v1968_v9 = vpop.f32.mrb[69].mxu1  ;;  %v653_v62 = vld [vmem:[#allocation2 + $0x180] sm:$0xff] }
 0x228   : > { %v1674_v17 = vpop.f32.mrb[70].mxu0  ;;  %v4034_v22 = vpop.f32.mrb[70].mxu1  ;;  %v646_v8 = vld [vmem:[#allocation2 + $0x148] sm:$0xff] }
 0x229   : > { %v2113_v16 = vadd.f32 %v1961_v5, %v639_v42  ;;  %v1964_v14 = vadd.f32 %v4030_v26, %v1674_v17  ;;  %v1676_v46 = vpop.f32.mrb[71].mxu0  ;;  %v1971_v20 = vpop.f32.mrb[71].mxu1 }
 0x22b   : > { %2177 = vst [vmem:[#allocation2 + $0x110] sm:$0xff] %v2113_v16  ;;  %v2114_v21 = vadd.f32 %v1964_v14, %v640_v54  ;;  %v656_v54 = vld [vmem:[#allocation2 + $0x198] sm:$0xff] }
 0x22d   : > { %2178 = vst [vmem:[#allocation2 + $0x118] sm:$0xff] %v2114_v21  ;;  %v654_v21 = vld [vmem:[#allocation2 + $0x188] sm:$0xff] }
 0x22e   : > { %v1679_v25 = vpop.f32.mrb[72].mxu0  ;;  %v5232_v28 = vpop.f32.mrb[72].mxu1 }
 0x22f   : > { %v1969_v1 = vadd.f32 %v1968_v9, %v1679_v25  ;;  %v1681_v29 = vpop.f32.mrb[73].mxu0  ;;  %v1984_v2 = vpop.f32.mrb[73].mxu1 }
 0x230   : > { %v1682_v32 = vpop.f32.mrb[74].mxu0  ;;  %v5234_v60 = vpop.f32.mrb[74].mxu1 }
 0x231   : > { %v2115_v34 = vadd.f32 %v1969_v1, %v641_v24  ;;  %v1972_v33 = vadd.f32 %v1971_v20, %v1682_v32  ;;  %v1684_v36 = vpop.f32.mrb[75].mxu0  ;;  %v1987_v37 = vpop.f32.mrb[75].mxu1  ;;  %v659_v32 = vld [vmem:[#allocation2 + $0x1b0] sm:$0xff] }
 0x233   : > { %2179 = vst [vmem:[#allocation2 + $0x120] sm:$0xff] %v2115_v34  ;;  %v2116_v13 = vadd.f32 %v1972_v33, %v642_v58 }
 0x235   : > { %2180 = vst [vmem:[#allocation2 + $0x128] sm:$0xff] %v2116_v13 }
 0x236   : > { %v1687_v45 = vpop.f32.mrb[76].mxu0  ;;  %v5236_v6 = vpop.f32.mrb[76].mxu1 }
 0x237   : > { %v1977_v41 = vadd.f32 %v4033_v4, %v1687_v45  ;;  %v1689_v38 = vpop.f32.mrb[77].mxu0  ;;  %v5238_v44 = vpop.f32.mrb[77].mxu1 }
 0x238   : > { %v1690_v48 = vpop.f32.mrb[78].mxu0  ;;  %v5240_v49 = vpop.f32.mrb[78].mxu1 }
 0x239   : > { %v2117_v30 = vadd.f32 %v1977_v41, %v643_v40  ;;  %v1980_v52 = vadd.f32 %v4034_v22, %v1690_v48  ;;  %v1692_v53 = vpop.f32.mrb[79].mxu0  ;;  %v5242_v56 = vpop.f32.mrb[79].mxu1  ;;  %v648_v40 = vld [vmem:[#allocation2 + $0x158] sm:$0xff] }
 0x23a   : > { %v660_v41 = vld [vmem:[#allocation2 + $0x1b8] sm:$0xff] }
 0x23b   : > { %2181 = vst [vmem:[#allocation2 + $0x130] sm:$0xff] %v2117_v30  ;;  %v2118_v26 = vadd.f32 %v1980_v52, %v644_v12 }
 0x23d   : > { %2182 = vst [vmem:[#allocation2 + $0x138] sm:$0xff] %v2118_v26  ;;  %v658_v26 = vld [vmem:[#allocation2 + $0x1a8] sm:$0xff] }
 0x23e   : > { %v1695_v61 = vpop.f32.mrb[80].mxu0  ;;  %v4045_v0 = vpop.f32.mrb[80].mxu1 }
 0x23f   : > { %v1985_v18 = vadd.f32 %v1984_v2, %v1695_v61  ;;  %v2025_v50 = vadd.f32 %v4045_v0, %v5145_v3  ;;  %v1697_v42 = vpop.f32.mrb[81].mxu0  ;;  %v2016_v4 = vpop.f32.mrb[81].mxu1  ;;  %v647_v2 = vld [vmem:[#allocation2 + $0x150] sm:$0xff]  ;;  %v649_v0 = vld [vmem:[#allocation2 + $0x160] sm:$0xff] }
 0x240   : > { %v2017_v5 = vadd.f32 %v2016_v4, %v5139_v59  ;;  %v1698_v9 = vpop.f32.mrb[82].mxu0  ;;  %v4046_v17 = vpop.f32.mrb[82].mxu1  ;;  %v661_v4 = vld [vmem:[#allocation2 + $0x1c0] sm:$0xff] }
 0x241   : > { %v2119_v22 = vadd.f32 %v1985_v18, %v645_v57  ;;  %v2129_v16 = vadd.f32 %v2025_v50, %v655_v10  ;;  %v1988_v14 = vadd.f32 %v1987_v37, %v1698_v9  ;;  %v2028_v46 = vadd.f32 %v4046_v17, %v5149_v7  ;;  %v1700_v20 = vpop.f32.mrb[83].mxu0  ;;  %v2019_v24 = vpop.f32.mrb[83].mxu1  ;;  %v657_v37 = vld [vmem:[#allocation2 + $0x1a0] sm:$0xff] }
 0x242   : > { %v2127_v25 = vadd.f32 %v2017_v5, %v653_v62  ;;  %v2020_v3 = vadd.f32 %v2019_v24, %v5143_v63 }
 0x243   : > { %2183 = vst [vmem:[#allocation2 + $0x140] sm:$0xff] %v2119_v22  ;;  %2193 = vst [vmem:[#allocation2 + $0x190] sm:$0xff] %v2129_v16  ;;  %v2120_v1 = vadd.f32 %v1988_v14, %v646_v8  ;;  %v2130_v29 = vadd.f32 %v2028_v46, %v656_v54  ;;  %v650_v8 = vld [vmem:[#allocation2 + $0x168] sm:$0xff]  ;;  %v664_v54 = vld [vmem:[#allocation2 + $0x1d8] sm:$0xff] }
 0x244   : > { %2191 = vst [vmem:[#allocation2 + $0x180] sm:$0xff] %v2127_v25  ;;  %v2128_v59 = vadd.f32 %v2020_v3, %v654_v21  ;;  %v662_v21 = vld [vmem:[#allocation2 + $0x1c8] sm:$0xff] }
 0x245   : > { %2184 = vst [vmem:[#allocation2 + $0x148] sm:$0xff] %v2120_v1  ;;  %2194 = vst [vmem:[#allocation2 + $0x198] sm:$0xff] %v2130_v29  ;;  %v651_v1 = vld [vmem:[#allocation2 + $0x170] sm:$0xff] }
 0x246   : > { %2192 = vst [vmem:[#allocation2 + $0x188] sm:$0xff] %v2128_v59  ;;  %v1703_v58 = vpop.f32.mrb[84].mxu0  ;;  %v4049_v34 = vpop.f32.mrb[84].mxu1 }
 0x247   : > { %v1993_v7 = vadd.f32 %v5232_v28, %v1703_v58  ;;  %v2041_v33 = vadd.f32 %v4049_v34, %v5161_v19  ;;  %v1705_v36 = vpop.f32.mrb[85].mxu0  ;;  %v2032_v63 = vpop.f32.mrb[85].mxu1 }
 0x248   : > { %v2033_v13 = vadd.f32 %v2032_v63, %v5153_v11  ;;  %v1706_v45 = vpop.f32.mrb[86].mxu0  ;;  %v4050_v38 = vpop.f32.mrb[86].mxu1  ;;  %v668_v36 = vld [vmem:[#allocation2 + $0x1f8] sm:$0xff] }
 0x249   : > { %v2121_v12 = vadd.f32 %v1993_v7, %v647_v2  ;;  %v2133_v48 = vadd.f32 %v2041_v33, %v659_v32  ;;  %v1996_v30 = vadd.f32 %v5234_v60, %v1706_v45  ;;  %v2044_v52 = vadd.f32 %v4050_v38, %v5165_v23  ;;  %v1708_v53 = vpop.f32.mrb[87].mxu0  ;;  %v2035_v28 = vpop.f32.mrb[87].mxu1  ;;  %v663_v60 = vld [vmem:[#allocation2 + $0x1d0] sm:$0xff]  ;;  %v665_v32 = vld [vmem:[#allocation2 + $0x1e0] sm:$0xff]  ;;  %v652_v7 = vld [vmem:[#allocation2 + $0x178] sm:$0xff] }
 0x24a   : > { %v2131_v57 = vadd.f32 %v2033_v13, %v657_v37  ;;  %v2036_v19 = vadd.f32 %v2035_v28, %v5157_v15  ;;  %v666_v38 = vld [vmem:[#allocation2 + $0x1e8] sm:$0xff]  ;;  %v2214_v28 = vld [vmem:[#allocation2 + $0x18] sm:$0xff] (!%p3613_p11) }
 0x24b   : > { %2185 = vst [vmem:[#allocation2 + $0x150] sm:$0xff] %v2121_v12  ;;  %2197 = vst [vmem:[#allocation2 + $0x1b0] sm:$0xff] %v2133_v48  ;;  %v2122_v61 = vadd.f32 %v1996_v30, %v648_v40  ;;  %v2134_v11 = vadd.f32 %v2044_v52, %v660_v41  ;;  %v5270_v52 = vld [vmem:[%s5938_s2] ss:$0 sm:$0xff] (!%p3613_p11) }
 0x24c   : > { %2195 = vst [vmem:[#allocation2 + $0x1a0] sm:$0xff] %v2131_v57  ;;  %v2132_v10 = vadd.f32 %v2036_v19, %v658_v26  ;;  %v2213_v26 = vld [vmem:[#allocation2 + $0x10] sm:$0xff] (!%p3613_p11)  ;;  %v2215_v57 = vld [vmem:[#allocation2 + $0x20] sm:$0xff] (!%p3613_p11) }
 0x24d   : > { %2186 = vst [vmem:[#allocation2 + $0x158] sm:$0xff] %v2122_v61  ;;  %2198 = vst [vmem:[#allocation2 + $0x1b8] sm:$0xff] %v2134_v11  ;;  %v5279_v19 = vadd.f32 (!%p3613_p11), %v5270_v52, %v2213_v26  ;;  %v5282_v61 = vadd.f32 (!%p3613_p11), %v5270_v52, %v2214_v28  ;;  %v2216_v11 = vld [vmem:[#allocation2 + $0x28] sm:$0xff] (!%p3613_p11) }
 0x24e   : > { %2196 = vst [vmem:[#allocation2 + $0x1a8] sm:$0xff] %v2132_v10  ;;  %v1711_v18 = vpop.f32.mrb[88].mxu0  ;;  %v4053_v50 = vpop.f32.mrb[88].mxu1  ;;  %v5285_v10 = vadd.f32 (!%p3613_p11), %v5270_v52, %v2215_v57 }
 0x24f   : > { %v2001_v23 = vadd.f32 %v5238_v44, %v1711_v18  ;;  %v2057_v42 = vadd.f32 %v4053_v50, %v5177_v35  ;;  %v1713_v62 = vpop.f32.mrb[89].mxu0  ;;  %v2048_v15 = vpop.f32.mrb[89].mxu1  ;;  %v2218_v18 = vld [vmem:[#allocation2 + $0x38] sm:$0xff] (!%p3613_p11) }
 0x250   : > { %v2049_v5 = vadd.f32 %v2048_v15, %v5169_v27  ;;  %v1714_v9 = vpop.f32.mrb[90].mxu0  ;;  %v4054_v17 = vpop.f32.mrb[90].mxu1  ;;  %v2219_v62 = vld [vmem:[#allocation2 + $0x40] sm:$0xff] (!%p3613_p11)  ;;  %v2348_v15 = vmin.f32 (!%p3613_p11), %v5279_v19, 20.0 }
 0x251   : > { %v2123_v22 = vadd.f32 %v2001_v23, %v649_v0  ;;  %v2137_v16 = vadd.f32 %v2057_v42, %v663_v60  ;;  %v2004_v14 = vadd.f32 %v5242_v56, %v1714_v9  ;;  %v2060_v46 = vadd.f32 %v4054_v17, %v5181_v39  ;;  %v1716_v20 = vpop.f32.mrb[91].mxu0  ;;  %v2051_v44 = vpop.f32.mrb[91].mxu1  ;;  %v667_v56 = vld [vmem:[#allocation2 + $0x1f0] sm:$0xff]  ;;  %v2222_v17 = vld [vmem:[#allocation2 + $0x58] sm:$0xff] (!%p3613_p11) }
 0x252   : > { %v2135_v24 = vadd.f32 %v2049_v5, %v661_v4  ;;  %v2052_v35 = vadd.f32 %v2051_v44, %v5173_v31  ;;  %v2217_v0 = vld [vmem:[#allocation2 + $0x30] sm:$0xff] (!%p3613_p11)  ;;  %v5290_v23 = vadd.f32 (!%p3613_p11), %v5270_v52, %v2216_v11  ;;  %v2220_v4 = vld [vmem:[#allocation2 + $0x48] sm:$0xff] (!%p3613_p11)  ;;  %v2349_v5 = vmin.f32 (!%p3613_p11), %v5282_v61, 20.0 }
 0x253   : > { %2187 = vst [vmem:[#allocation2 + $0x160] sm:$0xff] %v2123_v22  ;;  %2201 = vst [vmem:[#allocation2 + $0x1d0] sm:$0xff] %v2137_v16  ;;  %v2124_v25 = vadd.f32 %v2004_v14, %v650_v8  ;;  %v2138_v27 = vadd.f32 %v2060_v46, %v664_v54  ;;  %v5293_v42 = vadd.f32 (!%p3613_p11), %v5270_v52, %v2217_v0  ;;  %v2350_v8 = vmin.f32 (!%p3613_p11), %v5285_v10, 20.0  ;;  %v2221_v54 = vld [vmem:[#allocation2 + $0x50] sm:$0xff] (!%p3613_p11)  ;;  %v2223_v22 = vld [vmem:[#allocation2 + $0x60] sm:$0xff] (!%p3613_p11) }
 0x254   : > { %2199 = vst [vmem:[#allocation2 + $0x1c0] sm:$0xff] %v2135_v24  ;;  %v2136_v3 = vadd.f32 %v2052_v35, %v662_v21  ;;  %v5299_v9 = vadd.f32 (!%p3613_p11), %v5270_v52, %v2218_v18  ;;  %v2351_v46 = vmin.f32 (!%p3613_p11), %v5290_v23, 20.0  ;;  %v2414_v21 = vmul.f32 (!%p3613_p11), 1.442695, %v2348_v15 }
 0x255   : > { %2188 = vst [vmem:[#allocation2 + $0x168] sm:$0xff] %v2124_v25  ;;  %2202 = vst [vmem:[#allocation2 + $0x1d8] sm:$0xff] %v2138_v27  ;;  %v2352_v20 = vmin.f32 (!%p3613_p11), %v5293_v42, 20.0  ;;  %v2416_v44 = vmul.f32 (!%p3613_p11), 1.442695, %v2349_v5  ;;  %v5304_v35 = vadd.f32 (!%p3613_p11), %v5270_v52, %v2219_v62 }
 0x256   : > { %2200 = vst [vmem:[#allocation2 + $0x1c8] sm:$0xff] %v2136_v3  ;;  %v1719_v29 = vpop.f32.mrb[92].mxu0  ;;  %v4057_v59 = vpop.f32.mrb[92].mxu1  ;;  %v2418_v24 = vmul.f32 (!%p3613_p11), 1.442695, %v2350_v8  ;;  %v2353_v27 = vmin.f32 (!%p3613_p11), %v5299_v9, 20.0 }
 0x257   : > { %v2009_v39 = vadd.f32 %v5236_v6, %v1719_v29  ;;  %v2073_v2 = vadd.f32 %v4057_v59, %v5193_v51  ;;  %v1721_v58 = vpop.f32.mrb[93].mxu0  ;;  %v2064_v31 = vpop.f32.mrb[93].mxu1  ;;  %v2420_v25 = vmul.f32 (!%p3613_p11), 1.442695, %v2351_v46  ;;  %v2422_v3 = vmul.f32 (!%p3613_p11), 1.442695, %v2352_v20 }
 0x258   : > { %v2065_v34 = vadd.f32 %v2064_v31, %v5185_v43  ;;  %v1722_v33 = vpop.f32.mrb[94].mxu0  ;;  %v4058_v37 = vpop.f32.mrb[94].mxu1  ;;  %2210 = sbr.rel (%p3613_p11) target bundleno = 792 (0x318), region = 66  ;;  %v2354_v29 = vmin.f32 (!%p3613_p11), %v5304_v35, 20.0  ;;  %v2224_v59 = vld [vmem:[#allocation2 + $0x68] sm:$0xff] (!%p3613_p11)  ;;  %v5318_v58 = vadd.f32 (!%p3613_p11), %v5270_v52, %v2223_v22 }
 0x259   : > { %v2125_v63 = vadd.f32 %v2009_v39, %v651_v1  ;;  %v2141_v13 = vadd.f32 %v2073_v2, %v667_v56  ;;  %v2012_v40 = vadd.f32 %v5240_v49, %v1722_v33  ;;  %v2076_v45 = vadd.f32 %v4058_v37, %v5197_v55  ;;  %v1724_v41 = vpop.f32.mrb[95].mxu0  ;;  %v2067_v6 = vpop.f32.mrb[95].mxu1  ;;  %v2211_v49 = vld [vmem:[#allocation2] sm:$0xff] (!%p3613_p11)  ;;  %v2212_v55 = vld [vmem:[#allocation2 + $0x8] sm:$0xff] (!%p3613_p11) }
 0x25a   : > { %v2139_v12 = vadd.f32 %v2065_v34, %v665_v32  ;;  %v2068_v51 = vadd.f32 %v2067_v6, %v5189_v47  ;;  %v5273_v47 = vadd.f32 (!%p3613_p11), %v5270_v52, %v2211_v49  ;;  %v5276_v53 = vadd.f32 (!%p3613_p11), %v5270_v52, %v2212_v55  ;;  %v2225_v32 = vld [vmem:[#allocation2 + $0x70] sm:$0xff] (!%p3613_p11)  ;;  %v2230_v55 = vld [vmem:[#allocation2 + $0x98] sm:$0xff] (!%p3613_p11) }
 0x25b   : > { %2189 = vst [vmem:[#allocation2 + $0x170] sm:$0xff] %v2125_v63  ;;  %2205 = vst [vmem:[#allocation2 + $0x1f0] sm:$0xff] %v2141_v13  ;;  %v2126_v48 = vadd.f32 %v2012_v40, %v652_v7  ;;  %v2142_v43 = vadd.f32 %v2076_v45, %v668_v36  ;;  %v5308_v1 = vadd.f32 (!%p3613_p11), %v5270_v52, %v2220_v4  ;;  %v2424_v39 = vmul.f32 (!%p3613_p11), 1.442695, %v2353_v27  ;;  %v2226_v63 = vld [vmem:[#allocation2 + $0x78] sm:$0xff] (!%p3613_p11)  ;;  %v2227_v13 = vld [vmem:[#allocation2 + $0x80] sm:$0xff] (!%p3613_p11) }
 0x25c   : > { %2203 = vst [vmem:[#allocation2 + $0x1e0] sm:$0xff] %v2139_v12  ;;  %v2140_v30 = vadd.f32 %v2068_v51, %v666_v38  ;;  %v2346_v60 = vmin.f32 (!%p3613_p11), %v5273_v47, 20.0  ;;  %v2347_v50 = vmin.f32 (!%p3613_p11), %v5276_v53, 20.0  ;;  %v5312_v56 = vadd.f32 (!%p3613_p11), %v5270_v52, %v2221_v54  ;;  %v2228_v38 = vld [vmem:[#allocation2 + $0x88] sm:$0xff] (!%p3613_p11)  ;;  %v2229_v6 = vld [vmem:[#allocation2 + $0x90] sm:$0xff] (!%p3613_p11) }
 0x25d   : > { %2190 = vst [vmem:[#allocation2 + $0x178] sm:$0xff] %v2126_v48  ;;  %2206 = vst [vmem:[#allocation2 + $0x1f8] sm:$0xff] %v2142_v43  ;;  %v5315_v2 = vadd.f32 (!%p3613_p11), %v5270_v52, %v2222_v17  ;;  %v2355_v31 = vmin.f32 (!%p3613_p11), %v5308_v1, 20.0  ;;  %v2426_v34 = vmul.f32 (!%p3613_p11), 1.442695, %v2354_v29  ;;  %v5324_v36 = vadd.f32 (!%p3613_p11), %v5270_v52, %v2224_v59 }
 0x25e   : > { %2204 = vst [vmem:[#allocation2 + $0x1e8] sm:$0xff] %v2140_v30  ;;  %v2410_v16 = vmul.f32 (!%p3613_p11), 1.442695, %v2346_v60  ;;  %v2412_v14 = vmul.f32 (!%p3613_p11), 1.442695, %v2347_v50  ;;  %v2356_v7 = vmin.f32 (!%p3613_p11), %v5312_v56, 20.0  ;;  %v5328_v41 = vadd.f32 (!%p3613_p11), %v5270_v52, %v2225_v32 }
 0x25f   : > { %v2357_v33 = vmin.f32 %v5315_v2, 20.0  ;;  %v2358_v37 = vmin.f32 %v5318_v58, 20.0  ;;  %v2428_v40 = vmul.f32 1.442695, %v2355_v31  ;;  %v2359_v51 = vmin.f32 %v5324_v36, 20.0 }
 0x260   : > { %4287 = vpow2.f32 %v2410_v16  ;;  %v2430_v45 = vmul.f32 1.442695, %v2356_v7  ;;  %v5332_v43 = vadd.f32 %v5270_v52, %v2226_v63  ;;  %v2360_v30 = vmin.f32 %v5328_v41, 20.0 }
 0x261   : > { %4289 = vpow2.f32 %v2412_v14  ;;  %v2432_v12 = vmul.f32 1.442695, %v2357_v33  ;;  %v2434_v48 = vmul.f32 1.442695, %v2358_v37  ;;  %v5336_v49 = vadd.f32 %v5270_v52, %v2227_v13 }
 0x262   : > { %4291 = vpow2.f32 %v2414_v21  ;;  %v2436_v26 = vmul.f32 1.442695, %v2359_v51  ;;  %v5339_v28 = vadd.f32 %v5270_v52, %v2228_v38  ;;  %v5342_v57 = vadd.f32 %v5270_v52, %v2229_v6 }
 0x263   : > { %4293 = vpow2.f32 %v2416_v44  ;;  %v2361_v11 = vmin.f32 %v5332_v43, 20.0  ;;  %v2438_v0 = vmul.f32 1.442695, %v2360_v30  ;;  %v2362_v18 = vmin.f32 %v5336_v49, 20.0 }
 0x264   : > { %4295 = vpow2.f32 %v2418_v24  ;;  %v2363_v50 = vmin.f32 %v5339_v28, 20.0  ;;  %v5348_v62 = vadd.f32 %v5270_v52, %v2230_v55  ;;  %v2364_v4 = vmin.f32 %v5342_v57, 20.0 }
 0x265   : > { %4297 = vpow2.f32 %v2420_v25  ;;  %v2440_v8 = vmul.f32 1.442695, %v2361_v11  ;;  %v2442_v54 = vmul.f32 1.442695, %v2362_v18 }
 0x266   : > { %4299 = vpow2.f32 %v2422_v3  ;;  %v5351_v16 = vmul.f32 1.442695, %v2363_v50  ;;  %v2365_v14 = vmin.f32 %v5348_v62, 20.0  ;;  %v5356_v44 = vmul.f32 1.442695, %v2364_v4 }
 0x267   : > { %4301 = vpow2.f32 %v2424_v39 }
 0x268   : > { %4303 = vpow2.f32 %v2426_v34  ;;  %v5360_v3 = vmul.f32 1.442695, %v2365_v14 }
 0x269   : > { %4305 = vpow2.f32 %v2428_v40 }
 0x26a   : > { %v4288_v60 = vpop.eup %4287  ;;  %4307 = vpow2.f32 %v2430_v45 }
 0x26b   : > { %v4290_v15 = vpop.eup %4289  ;;  %v2538_v5 = vadd.f32 2.0, %v4288_v60  ;;  %4309 = vpow2.f32 %v2432_v12 }
 0x26c   : > { %v4292_v17 = vpop.eup %4291  ;;  %v2539_v22 = vadd.f32 2.0, %v4290_v15  ;;  %4311 = vpow2.f32 %v2434_v48 }
 0x26d   : > { %v4294_v46 = vpop.eup %4293  ;;  %v5354_v20 = vmul.f32 %v4288_v60, %v2538_v5  ;;  %v2540_v21 = vadd.f32 2.0, %v4292_v17  ;;  %4313 = vpow2.f32 %v2436_v26 }
 0x26e   : > { %v4296_v24 = vpop.eup %4295  ;;  %v5358_v25 = vmul.f32 %v4290_v15, %v2539_v22  ;;  %v2541_v27 = vadd.f32 2.0, %v4294_v46  ;;  %4315 = vpow2.f32 %v2438_v0 }
 0x26f   : > { %v4298_v29 = vpop.eup %4297  ;;  %v2666_v59 = vadd.f32 2.0, %v5354_v20  ;;  %v5363_v39 = vmul.f32 %v4292_v17, %v2540_v21  ;;  %v2542_v32 = vadd.f32 2.0, %v4296_v24  ;;  %4317 = vpow2.f32 %v2440_v8 }
 0x270   : > { %v4300_v31 = vpop.eup %4299  ;;  %v2667_v34 = vadd.f32 2.0, %v5358_v25  ;;  %v5366_v7 = vmul.f32 %v4294_v46, %v2541_v27  ;;  %v2543_v33 = vadd.f32 2.0, %v4298_v29  ;;  %4319 = vpow2.f32 %v2442_v54 }
 0x271   : > { %v4302_v37 = vpop.eup %4301  ;;  %4321 = vrcp.f32 %v2666_v59  ;;  %v2668_v63 = vadd.f32 2.0, %v5363_v39  ;;  %v5369_v13 = vmul.f32 %v4296_v24, %v2542_v32  ;;  %v2544_v40 = vadd.f32 2.0, %v4300_v31 }
 0x272   : > { %v4304_v45 = vpop.eup %4303  ;;  %4323 = vrcp.f32 %v2667_v34  ;;  %v2669_v38 = vadd.f32 2.0, %v5366_v7  ;;  %v5372_v6 = vmul.f32 %v4298_v29, %v2543_v33  ;;  %v2545_v12 = vadd.f32 2.0, %v4302_v37 }
 0x273   : > { %v4306_v51 = vpop.eup %4305  ;;  %4325 = vrcp.f32 %v2668_v63  ;;  %v2670_v48 = vadd.f32 2.0, %v5369_v13  ;;  %v5375_v30 = vmul.f32 %v4300_v31, %v2544_v40  ;;  %v2546_v55 = vadd.f32 2.0, %v4304_v45 }
 0x274   : > { %v4308_v26 = vpop.eup %4307  ;;  %4327 = vrcp.f32 %v2669_v38  ;;  %v2671_v11 = vadd.f32 2.0, %v5372_v6  ;;  %v5378_v0 = vmul.f32 %v4302_v37, %v2545_v12  ;;  %v2547_v18 = vadd.f32 2.0, %v4306_v51 }
 0x275   : > { %v4310_v60 = vpop.eup %4309  ;;  %4329 = vrcp.f32 %v2670_v48  ;;  %v2672_v50 = vadd.f32 2.0, %v5375_v30  ;;  %v5381_v4 = vmul.f32 %v4304_v45, %v2546_v55  ;;  %v2548_v15 = vadd.f32 2.0, %v4308_v26 }
 0x276   : > { %v4312_v5 = vpop.eup %4311  ;;  %4331 = vrcp.f32 %v2671_v11  ;;  %v2673_v8 = vadd.f32 2.0, %v5378_v0  ;;  %v5384_v54 = vmul.f32 %v4306_v51, %v2547_v18  ;;  %v2549_v17 = vadd.f32 2.0, %v4310_v60 }
 0x277   : > { %v4314_v22 = vpop.eup %4313  ;;  %4333 = vrcp.f32 %v2672_v50  ;;  %v2674_v14 = vadd.f32 2.0, %v5381_v4  ;;  %v5387_v46 = vmul.f32 %v4308_v26, %v2548_v15  ;;  %v2550_v21 = vadd.f32 2.0, %v4312_v5 }
 0x278   : > { %v4316_v24 = vpop.eup %4315  ;;  %4335 = vrcp.f32 %v2673_v8  ;;  %v2675_v27 = vadd.f32 2.0, %v5384_v54  ;;  %v5390_v29 = vmul.f32 %v4310_v60, %v2549_v17  ;;  %v2551_v59 = vadd.f32 2.0, %v4314_v22  ;;  %v2231_v8 = vld [vmem:[#allocation2 + $0xa0] sm:$0xff] }
 0x279   : > { %v4318_v32 = vpop.eup %4317  ;;  %4337 = vrcp.f32 %v2674_v14  ;;  %v2676_v31 = vadd.f32 2.0, %v5387_v46  ;;  %v5393_v34 = vmul.f32 %v4312_v5, %v2550_v21  ;;  %v2552_v33 = vadd.f32 2.0, %v4316_v24 }
 0x27a   : > { %v4320_v37 = vpop.eup %4319  ;;  %4339 = vrcp.f32 %v2675_v27  ;;  %v2677_v63 = vadd.f32 2.0, %v5390_v29  ;;  %v5396_v40 = vmul.f32 %v4314_v22, %v2551_v59  ;;  %v2553_v45 = vadd.f32 2.0, %v4318_v32  ;;  %v2232_v59 = vld [vmem:[#allocation2 + $0xa8] sm:$0xff] }
 0x27b   : > { %v4322_v38 = vpop.eup %4321  ;;  %4341 = vrcp.f32 %v2676_v31  ;;  %v2678_v12 = vadd.f32 2.0, %v5393_v34  ;;  %v5399_v51 = vmul.f32 %v4316_v24, %v2552_v33  ;;  %v2554_v48 = vadd.f32 2.0, %v4320_v37 }
 0x27c   : > { %v4324_v55 = vpop.eup %4323  ;;  %v2731_v26 = vmul.f32 %v4322_v38, %v5354_v20  ;;  %4343 = vrcp.f32 %v2677_v63  ;;  %v2679_v11 = vadd.f32 2.0, %v5396_v40  ;;  %v5403_v18 = vmul.f32 %v4318_v32, %v2553_v45 }
 0x27d   : > { %v4326_v60 = vpop.eup %4325  ;;  %v2733_v50 = vmul.f32 %v4324_v55, %v5358_v25  ;;  %4345 = vrcp.f32 %v2678_v12  ;;  %v2680_v15 = vadd.f32 2.0, %v5399_v51  ;;  %v5407_v5 = vmul.f32 %v4320_v37, %v2554_v48 }
 0x27e   : > { %v4328_v17 = vpop.eup %4327  ;;  %v2858_v22 = vmul.f32 %v2731_v26, %v5273_v47  ;;  %v2735_v14 = vmul.f32 %v4326_v60, %v5363_v39  ;;  %4347 = vrcp.f32 %v2679_v11  ;;  %v2681_v20 = vadd.f32 2.0, %v5403_v18  ;;  %v2234_v60 = vld [vmem:[#allocation2 + $0xb8] sm:$0xff] }
 0x27f   : > { %v4330_v21 = vpop.eup %4329  ;;  %v2859_v24 = vmul.f32 %v2733_v50, %v5276_v53  ;;  %v2737_v27 = vmul.f32 %v4328_v17, %v5366_v7  ;;  %4349 = vrcp.f32 %v2680_v15  ;;  %v2682_v25 = vadd.f32 2.0, %v5407_v5 }
 0x280   : > { %v4332_v32 = vpop.eup %4331  ;;  %v2860_v31 = vmul.f32 %v2735_v14, %v5279_v19  ;;  %v2739_v33 = vmul.f32 %v4330_v21, %v5369_v13  ;;  %4351 = vrcp.f32 %v2681_v20  ;;  %v5418_v47 = vadd.f32 %v5270_v52, %v2231_v8  ;;  %v2235_v21 = vld [vmem:[#allocation2 + $0xc0] sm:$0xff] }
 0x281   : > { %v4334_v39 = vpop.eup %4333  ;;  %v3751_v37 = vpack.c.bf16 %v2859_v24, %v2858_v22  ;;  %v2861_v63 = vmul.f32 %v2737_v27, %v5282_v61  ;;  %v2741_v53 = vmul.f32 %v4332_v32, %v5372_v6  ;;  %4353 = vpow2.f32 %v5351_v16  ;;  %v2233_v16 = vld [vmem:[#allocation2 + $0xb0] sm:$0xff] }
 0x282   : > { %v4336_v7 = vpop.eup %4335  ;;  %v2862_v45 = vmul.f32 %v2739_v33, %v5285_v10  ;;  %v2743_v38 = vmul.f32 %v4334_v39, %v5375_v30  ;;  %4355 = vrcp.f32 %v2682_v25  ;;  %v5426_v19 = vadd.f32 %v5270_v52, %v2232_v59 }
 0x283   : > { %v4338_v13 = vpop.eup %4337  ;;  %3752 = vst [vmem:[%s5939_s3] sm:$0xff] %v3751_v37   ;;  %v3756_v12 = vpack.c.bf16 %v2861_v63, %v2860_v31  ;;  %v2863_v61 = vmul.f32 %v2741_v53, %v5290_v23  ;;  %v2745_v6 = vmul.f32 %v4336_v7, %v5378_v0  ;;  %4357 = vpow2.f32 %v5356_v44  ;;  %v2236_v31 = vld [vmem:[#allocation2 + $0xc8] sm:$0xff] }
 0x284   : > { %v4340_v10 = vpop.eup %4339  ;;  %v2864_v30 = vmul.f32 %v2743_v38, %v5293_v42  ;;  %v2747_v48 = vmul.f32 %v4338_v13, %v5381_v4  ;;  %4359 = vpow2.f32 %v5360_v3  ;;  %v2366_v55 = vmin.f32 %v5418_v47, 20.0 }
 0x285   : > { %v4342_v26 = vpop.eup %4341  ;;  %3908 = vst [vmem:[%s5939_s3 + $0x8] sm:$0xff] %v3756_v12   ;;  %v3761_v23 = vpack.c.bf16 %v2863_v61, %v2862_v45  ;;  %v2865_v0 = vmul.f32 %v2745_v6, %v5299_v9  ;;  %v2749_v44 = vmul.f32 %v4340_v10, %v5384_v54  ;;  %v2367_v11 = vmin.f32 %v5426_v19, 20.0  ;;  %v2238_v10 = vld [vmem:[#allocation2 + $0xd8] sm:$0xff] }
 0x286   : > { %v4344_v42 = vpop.eup %4343  ;;  %v2866_v4 = vmul.f32 %v2747_v48, %v5304_v35  ;;  %v2751_v3 = vmul.f32 %v4342_v26, %v5387_v46  ;;  %v2450_v50 = vmul.f32 1.442695, %v2366_v55  ;;  %v5447_v15 = vadd.f32 %v5270_v52, %v2233_v16  ;;  %v2237_v16 = vld [vmem:[#allocation2 + $0xd0] sm:$0xff]  ;;  %v2240_v55 = vld [vmem:[#allocation2 + $0xe8] sm:$0xff] }
 0x287   : > { %v4346_v8 = vpop.eup %4345  ;;  %3909 = vst [vmem:[%s5939_s3 + $0x10] sm:$0xff] %v3761_v23   ;;  %v3766_v9 = vpack.c.bf16 %v2865_v0, %v2864_v30  ;;  %v2867_v54 = vmul.f32 %v2749_v44, %v5308_v1  ;;  %v2753_v17 = vmul.f32 %v4344_v42, %v5390_v29  ;;  %v2452_v22 = vmul.f32 1.442695, %v2367_v11  ;;  %v2239_v30 = vld [vmem:[#allocation2 + $0xe0] sm:$0xff] }
 0x288   : > { %v4348_v14 = vpop.eup %4347  ;;  %v2868_v35 = vmul.f32 %v2751_v3, %v5312_v56  ;;  %v2755_v46 = vmul.f32 %v4346_v8, %v5393_v34  ;;  %4361 = vpow2.f32 %v2450_v50  ;;  %v5457_v20 = vadd.f32 %v5270_v52, %v2234_v60 }
 0x289   : > { %v4350_v24 = vpop.eup %4349  ;;  %3910 = vst [vmem:[%s5939_s3 + $0x18] sm:$0xff] %v3766_v9   ;;  %v3771_v27 = vpack.c.bf16 %v2867_v54, %v2866_v4  ;;  %v2869_v1 = vmul.f32 %v2753_v17, %v5315_v2  ;;  %v2757_v29 = vmul.f32 %v4348_v14, %v5396_v40  ;;  %4363 = vpow2.f32 %v2452_v22 }
 0x28a   : > { %v4352_v25 = vpop.eup %4351  ;;  %v2870_v56 = vmul.f32 %v2755_v46, %v5318_v58  ;;  %v2759_v34 = vmul.f32 %v4350_v24, %v5399_v51  ;;  %v2368_v59 = vmin.f32 %v5447_v15, 20.0  ;;  %v2369_v32 = vmin.f32 %v5457_v20, 20.0 }
 0x28b   : > { %v4354_v33 = vpop.eup %4353  ;;  %3911 = vst [vmem:[%s5939_s3 + $0x20] sm:$0xff] %v3771_v27   ;;  %v3776_v39 = vpack.c.bf16 %v2869_v1, %v2868_v35  ;;  %v2871_v2 = vmul.f32 %v2757_v29, %v5324_v36  ;;  %v2761_v40 = vmul.f32 %v4352_v25, %v5403_v18  ;;  %v5474_v37 = vadd.f32 %v5270_v52, %v2235_v21  ;;  %v2241_v21 = vld [vmem:[#allocation2 + $0xf0] sm:$0xff]  ;;  %v2242_v29 = vld [vmem:[#allocation2 + $0xf8] sm:$0xff]  ;;  %v2243_v25 = vld [vmem:[#allocation2 + $0x100] sm:$0xff] }
 0x28c   : > { %v4356_v58 = vpop.eup %4355  ;;  %v2872_v51 = vmul.f32 %v2759_v34, %v5328_v41  ;;  %v2555_v63 = vadd.f32 2.0, %v4354_v33  ;;  %v2454_v53 = vmul.f32 1.442695, %v2368_v59  ;;  %v2456_v7 = vmul.f32 1.442695, %v2369_v32  ;;  %v2244_v32 = vld [vmem:[#allocation2 + $0x108] sm:$0xff] }
 0x28d   : > { %v4358_v45 = vpop.eup %4357  ;;  %3912 = vst [vmem:[%s5939_s3 + $0x28] sm:$0xff] %v3776_v39   ;;  %v3781_v38 = vpack.c.bf16 %v2871_v2, %v2870_v56  ;;  %v2873_v13 = vmul.f32 %v2761_v40, %v5332_v43  ;;  %v2763_v36 = vmul.f32 %v4356_v58, %v5407_v5  ;;  %v5483_v18 = vadd.f32 %v5270_v52, %v2236_v31 }
 0x28e   : > { %v4360_v12 = vpop.eup %4359  ;;  %v5485_v61 = vmul.f32 %v4354_v33, %v2555_v63  ;;  %v2556_v41 = vadd.f32 2.0, %v4358_v45  ;;  %4365 = vpow2.f32 %v2454_v53  ;;  %v2370_v6 = vmin.f32 %v5474_v37, 20.0 }
 0x28f   : > { %3913 = vst [vmem:[%s5939_s3 + $0x30] sm:$0xff] %v3781_v38   ;;  %v3786_v43 = vpack.c.bf16 %v2873_v13, %v2872_v51  ;;  %v5492_v5 = vmul.f32 %v2763_v36, %v5336_v49  ;;  %v2557_v48 = vadd.f32 2.0, %v4360_v12  ;;  %4367 = vpow2.f32 %v2456_v7 }
 0x290   : > { %v2683_v26 = vadd.f32 2.0, %v5485_v61  ;;  %v5495_v23 = vmul.f32 %v4358_v45, %v2556_v41  ;;  %v2371_v0 = vmin.f32 %v5483_v18, 20.0  ;;  %v2458_v44 = vmul.f32 1.442695, %v2370_v6 }
 0x291   : > { %3914 = vst [vmem:[%s5939_s3 + $0x38] sm:$0xff] %v3786_v43   ;;  %v5501_v11 = vmul.f32 %v4360_v12, %v2557_v48  ;;  %v5504_v60 = vadd.f32 %v5270_v52, %v2237_v16  ;;  %v5507_v49 = vadd.f32 %v5270_v52, %v2238_v10  ;;  %v5510_v42 = vadd.f32 %v5270_v52, %v2239_v30  ;;  %v2245_v16 = vld [vmem:[#allocation2 + $0x110] sm:$0xff] }
 0x292   : > { %v4362_v4 = vpop.eup %4361  ;;  %4369 = vrcp.f32 %v2683_v26  ;;  %v2684_v3 = vadd.f32 2.0, %v5495_v23  ;;  %v2460_v50 = vmul.f32 1.442695, %v2371_v0  ;;  %v5514_v8 = vadd.f32 %v5270_v52, %v2240_v55  ;;  %v2246_v55 = vld [vmem:[#allocation2 + $0x118] sm:$0xff] }
 0x293   : > { %v4364_v9 = vpop.eup %4363  ;;  %v2685_v54 = vadd.f32 2.0, %v5501_v11  ;;  %v2558_v17 = vadd.f32 2.0, %v4362_v4  ;;  %4371 = vpow2.f32 %v2458_v44  ;;  %v2372_v22 = vmin.f32 %v5504_v60, 20.0 }
 0x294   : > { %4373 = vrcp.f32 %v2684_v3  ;;  %v2559_v14 = vadd.f32 2.0, %v4364_v9  ;;  %v2373_v35 = vmin.f32 %v5507_v49, 20.0  ;;  %v2374_v46 = vmin.f32 %v5510_v42, 20.0 }
 0x295   : > { %4375 = vrcp.f32 %v2685_v54  ;;  %v5520_v24 = vmul.f32 %v4362_v4, %v2558_v17  ;;  %v2462_v27 = vmul.f32 1.442695, %v2372_v22  ;;  %v2375_v1 = vmin.f32 %v5514_v8, 20.0 }
 0x296   : > { %v5523_v56 = vmul.f32 %v4364_v9, %v2559_v14  ;;  %4377 = vpow2.f32 %v2460_v50  ;;  %v2464_v34 = vmul.f32 1.442695, %v2373_v35  ;;  %v2466_v59 = vmul.f32 1.442695, %v2374_v46 }
 0x297   : > { %v2686_v31 = vadd.f32 2.0, %v5520_v24  ;;  %4379 = vpow2.f32 %v2462_v27  ;;  %v2468_v33 = vmul.f32 1.442695, %v2375_v1  ;;  %v5527_v39 = vadd.f32 %v5270_v52, %v2241_v21 }
 0x298   : > { %v4366_v2 = vpop.eup %4365  ;;  %v2687_v40 = vadd.f32 2.0, %v5523_v56  ;;  %4381 = vpow2.f32 %v2464_v34  ;;  %v5531_v58 = vadd.f32 %v5270_v52, %v2242_v29  ;;  %v5534_v51 = vadd.f32 %v5270_v52, %v2243_v25 }
 0x299   : > { %v4368_v63 = vpop.eup %4367  ;;  %4383 = vrcp.f32 %v2686_v31  ;;  %v2560_v53 = vadd.f32 2.0, %v4366_v2  ;;  %v2376_v7 = vmin.f32 %v5527_v39, 20.0  ;;  %v5538_v45 = vadd.f32 %v5270_v52, %v2244_v32 }
 0x29a   : > { %4385 = vrcp.f32 %v2687_v40  ;;  %v2561_v38 = vadd.f32 2.0, %v4368_v63  ;;  %v2377_v13 = vmin.f32 %v5531_v58, 20.0  ;;  %v2378_v36 = vmin.f32 %v5534_v51, 20.0 }
 0x29b   : > { %v5542_v12 = vmul.f32 %v4366_v2, %v2560_v53  ;;  %4387 = vpow2.f32 %v2466_v59  ;;  %v2470_v41 = vmul.f32 1.442695, %v2376_v7  ;;  %v2379_v6 = vmin.f32 %v5538_v45, 20.0 }
 0x29c   : > { %v4370_v10 = vpop.eup %4369  ;;  %v5545_v30 = vmul.f32 %v4368_v63, %v2561_v38  ;;  %4389 = vpow2.f32 %v2468_v33  ;;  %v2472_v43 = vmul.f32 1.442695, %v2377_v13  ;;  %v2474_v48 = vmul.f32 1.442695, %v2378_v36  ;;  %v2247_v36 = vld [vmem:[#allocation2 + $0x120] sm:$0xff] }
 0x29d   : > { %v4372_v26 = vpop.eup %4371  ;;  %v2765_v0 = vmul.f32 %v4370_v10, %v5485_v61  ;;  %v2688_v44 = vadd.f32 2.0, %v5542_v12  ;;  %4391 = vpow2.f32 %v2470_v41  ;;  %v2476_v4 = vmul.f32 1.442695, %v2379_v6 }
 0x29e   : > { %v4374_v3 = vpop.eup %4373  ;;  %v2689_v50 = vadd.f32 2.0, %v5545_v30  ;;  %v2562_v9 = vadd.f32 2.0, %v4372_v26  ;;  %4393 = vpow2.f32 %v2472_v43  ;;  %v5551_v54 = vadd.f32 %v5270_v52, %v2245_v16 }
 0x29f   : > { %v4376_v17 = vpop.eup %4375  ;;  %v2875_v22 = vmul.f32 %v2765_v0, %v5339_v28  ;;  %v2767_v14 = vmul.f32 %v4374_v3, %v5495_v23  ;;  %4395 = vrcp.f32 %v2688_v44  ;;  %v5556_v61 = vadd.f32 %v5270_v52, %v2246_v55 }
 0x2a0   : > { %v4378_v35 = vpop.eup %4377  ;;  %v2769_v46 = vmul.f32 %v4376_v17, %v5501_v11  ;;  %4397 = vrcp.f32 %v2689_v50  ;;  %v5559_v21 = vmul.f32 %v4372_v26, %v2562_v9  ;;  %v2380_v27 = vmin.f32 %v5551_v54, 20.0 }
 0x2a1   : > { %v4380_v1 = vpop.eup %4379  ;;  %v3791_v29 = vpack.c.bf16 %v2875_v22, %v5492_v5  ;;  %v2876_v25 = vmul.f32 %v2767_v14, %v5342_v57  ;;  %v2563_v28 = vadd.f32 2.0, %v4378_v35  ;;  %4399 = vpow2.f32 %v2474_v48 }
 0x2a2   : > { %v4382_v23 = vpop.eup %4381  ;;  %v2877_v34 = vmul.f32 %v2769_v46, %v5348_v62  ;;  %v2690_v59 = vadd.f32 2.0, %v5559_v21  ;;  %v2564_v32 = vadd.f32 2.0, %v4380_v1  ;;  %4401 = vpow2.f32 %v2476_v4  ;;  %v2248_v4 = vld [vmem:[#allocation2 + $0x128] sm:$0xff] }
 0x2a3   : > { %v4384_v11 = vpop.eup %4383  ;;  %3915 = vst [vmem:[%s5939_s3 + $0x40] sm:$0xff] %v3791_v29   ;;  %v5569_v31 = vmul.f32 %v4378_v35, %v2563_v28  ;;  %v2565_v33 = vadd.f32 2.0, %v4382_v23  ;;  %v2381_v5 = vmin.f32 %v5556_v61, 20.0  ;;  %v2478_v57 = vmul.f32 1.442695, %v2380_v27 }
 0x2a4   : > { %v4386_v2 = vpop.eup %4385  ;;  %v3796_v40 = vpack.c.bf16 %v2877_v34, %v2876_v25  ;;  %v2771_v63 = vmul.f32 %v4384_v11, %v5520_v24  ;;  %4403 = vrcp.f32 %v2690_v59  ;;  %v5573_v62 = vmul.f32 %v4380_v1, %v2564_v32 }
 0x2a5   : > { %v4388_v53 = vpop.eup %4387  ;;  %v2773_v7 = vmul.f32 %v4386_v2, %v5523_v56  ;;  %v2691_v38 = vadd.f32 2.0, %v5569_v31  ;;  %v5577_v13 = vmul.f32 %v4382_v23, %v2565_v33  ;;  %4405 = vpow2.f32 %v2478_v57  ;;  %v2249_v2 = vld [vmem:[#allocation2 + $0x130] sm:$0xff] }
 0x2a6   : > { %v4390_v41 = vpop.eup %4389  ;;  %3916 = vst [vmem:[%s5939_s3 + $0x48] sm:$0xff] %v3796_v40   ;;  %v2878_v6 = vmul.f32 %v2771_v63, %v5418_v47  ;;  %v2692_v24 = vadd.f32 2.0, %v5573_v62  ;;  %v2566_v16 = vadd.f32 2.0, %v4388_v53  ;;  %v2480_v10 = vmul.f32 1.442695, %v2381_v5 }
 0x2a7   : > { %v4392_v43 = vpop.eup %4391  ;;  %v2879_v56 = vmul.f32 %v2773_v7, %v5426_v19  ;;  %4407 = vrcp.f32 %v2691_v38  ;;  %v2693_v48 = vadd.f32 2.0, %v5577_v13  ;;  %v2567_v55 = vadd.f32 2.0, %v4390_v41  ;;  %v2251_v7 = vld [vmem:[#allocation2 + $0x140] sm:$0xff] }
 0x2a8   : > { %v4394_v26 = vpop.eup %4393  ;;  %4409 = vrcp.f32 %v2692_v24  ;;  %v5586_v0 = vmul.f32 %v4388_v53, %v2566_v16  ;;  %v2568_v44 = vadd.f32 2.0, %v4392_v43  ;;  %v5589_v3 = vadd.f32 %v5270_v52, %v2247_v36 }
 0x2a9   : > { %v4396_v47 = vpop.eup %4395  ;;  %v3801_v50 = vpack.c.bf16 %v2879_v56, %v2878_v6  ;;  %4411 = vrcp.f32 %v2693_v48  ;;  %v5591_v9 = vmul.f32 %v4390_v41, %v2567_v55  ;;  %v2569_v17 = vadd.f32 2.0, %v4394_v26 }
 0x2aa   : > { %v4398_v19 = vpop.eup %4397  ;;  %v2775_v22 = vmul.f32 %v4396_v47, %v5542_v12  ;;  %v2694_v14 = vadd.f32 2.0, %v5586_v0  ;;  %v5595_v35 = vmul.f32 %v4392_v43, %v2568_v44  ;;  %4413 = vpow2.f32 %v2480_v10 }
 0x2ab   : > { %v4400_v46 = vpop.eup %4399  ;;  %3917 = vst [vmem:[%s5939_s3 + $0x50] sm:$0xff] %v3801_v50   ;;  %v2777_v27 = vmul.f32 %v4398_v19, %v5545_v30  ;;  %v2695_v1 = vadd.f32 2.0, %v5591_v9  ;;  %v5602_v29 = vmul.f32 %v4394_v26, %v2569_v17  ;;  %v5605_v25 = vadd.f32 %v5270_v52, %v2248_v4 }
 0x2ac   : > { %v4402_v12 = vpop.eup %4401  ;;  %v2880_v28 = vmul.f32 %v2775_v22, %v5447_v15  ;;  %4415 = vrcp.f32 %v2694_v14  ;;  %v2696_v23 = vadd.f32 2.0, %v5595_v35  ;;  %v2570_v34 = vadd.f32 2.0, %v4400_v46  ;;  %v2250_v15 = vld [vmem:[#allocation2 + $0x138] sm:$0xff]  ;;  %v2252_v22 = vld [vmem:[#allocation2 + $0x148] sm:$0xff] }
 0x2ad   : > { %v2881_v59 = vmul.f32 %v2777_v27, %v5457_v20  ;;  %4417 = vrcp.f32 %v2695_v1  ;;  %v2697_v32 = vadd.f32 2.0, %v5602_v29  ;;  %v2571_v30 = vadd.f32 2.0, %v4402_v12 }
 0x2ae   : > { %v4404_v11 = vpop.eup %4403  ;;  %4419 = vrcp.f32 %v2696_v23  ;;  %v5611_v33 = vmul.f32 %v4400_v46, %v2570_v34  ;;  %v2382_v5 = vmin.f32 %v5589_v3, 20.0  ;;  %v2383_v57 = vmin.f32 %v5605_v25, 20.0 }
 0x2af   : > { %v4406_v40 = vpop.eup %4405  ;;  %v3806_v63 = vpack.c.bf16 %v2881_v59, %v2880_v28  ;;  %v2779_v53 = vmul.f32 %v4404_v11, %v5559_v21  ;;  %4421 = vrcp.f32 %v2697_v32  ;;  %v5616_v20 = vmul.f32 %v4402_v12, %v2571_v30  ;;  %v2253_v59 = vld [vmem:[#allocation2 + $0x150] sm:$0xff]  ;;  %v2254_v11 = vld [vmem:[#allocation2 + $0x158] sm:$0xff] }
 0x2b0   : > { %v2698_v38 = vadd.f32 2.0, %v5611_v33  ;;  %v2572_v36 = vadd.f32 2.0, %v4406_v40  ;;  %v2482_v41 = vmul.f32 1.442695, %v2382_v5  ;;  %v2484_v6 = vmul.f32 1.442695, %v2383_v57 }
 0x2b1   : > { %v4408_v24 = vpop.eup %4407  ;;  %3918 = vst [vmem:[%s5939_s3 + $0x58] sm:$0xff] %v3806_v63   ;;  %v2882_v16 = vmul.f32 %v2779_v53, %v5474_v37  ;;  %v2699_v10 = vadd.f32 2.0, %v5616_v20  ;;  %v5625_v21 = vadd.f32 %v5270_v52, %v2249_v2  ;;  %v5628_v43 = vadd.f32 %v5270_v52, %v2250_v15 }
 0x2b2   : > { %v4410_v56 = vpop.eup %4409  ;;  %v2781_v48 = vmul.f32 %v4408_v24, %v5569_v31  ;;  %4423 = vrcp.f32 %v2698_v38  ;;  %v5631_v55 = vmul.f32 %v4406_v40, %v2572_v36  ;;  %v5634_v26 = vadd.f32 %v5270_v52, %v2251_v7  ;;  %v2255_v7 = vld [vmem:[#allocation2 + $0x160] sm:$0xff] }
 0x2b3   : > { %v4412_v44 = vpop.eup %4411  ;;  %v2783_v37 = vmul.f32 %v4410_v56, %v5573_v62  ;;  %4425 = vrcp.f32 %v2699_v10  ;;  %v2384_v4 = vmin.f32 %v5625_v21, 20.0  ;;  %v2385_v47 = vmin.f32 %v5628_v43, 20.0  ;;  %v5671_v38 = vld [vmem:[%s5938_s2] ss:$0 sm:$0xff] }
 0x2b4   : > { %v4414_v50 = vpop.eup %4413  ;;  %v2883_v17 = vmul.f32 %v2781_v48, %v5483_v18  ;;  %v2785_v19 = vmul.f32 %v4412_v44, %v5577_v13  ;;  %v2700_v31 = vadd.f32 2.0, %v5631_v55  ;;  %4427 = vpow2.f32 %v2482_v41 }
 0x2b5   : > { %v2884_v14 = vmul.f32 %v2783_v37, %v5504_v60  ;;  %v2573_v46 = vadd.f32 2.0, %v4414_v50  ;;  %4429 = vpow2.f32 %v2484_v6  ;;  %v2486_v27 = vmul.f32 1.442695, %v2384_v4 }
 0x2b6   : > { %v4416_v62 = vpop.eup %4415  ;;  %v3811_v1 = vpack.c.bf16 %v2883_v17, %v2882_v16  ;;  %v2885_v12 = vmul.f32 %v2785_v19, %v5507_v49  ;;  %4431 = vrcp.f32 %v2700_v31  ;;  %v2488_v28 = vmul.f32 1.442695, %v2385_v47 }
 0x2b7   : > { %v4418_v23 = vpop.eup %4417  ;;  %v2787_v18 = vmul.f32 %v4416_v62, %v5586_v0  ;;  %v5645_v34 = vmul.f32 %v4414_v50, %v2573_v46  ;;  %4433 = vpow2.f32 %v2486_v27  ;;  %v5648_v13 = vadd.f32 %v5270_v52, %v2252_v22  ;;  %v2257_v62 = vld [vmem:[#allocation2 + $0x170] sm:$0xff] }
 0x2b8   : > { %v4420_v60 = vpop.eup %4419  ;;  %3919 = vst [vmem:[%s5939_s3 + $0x60] sm:$0xff] %v3811_v1   ;;  %v3816_v32 = vpack.c.bf16 %v2885_v12, %v2884_v14  ;;  %v2789_v49 = vmul.f32 %v4418_v23, %v5591_v9  ;;  %4435 = vpow2.f32 %v2488_v28  ;;  %v2386_v30 = vmin.f32 %v5634_v26, 20.0 }
 0x2b9   : > { %v4422_v0 = vpop.eup %4421  ;;  %v2886_v5 = vmul.f32 %v2787_v18, %v5510_v42  ;;  %v2791_v57 = vmul.f32 %v4420_v60, %v5595_v35  ;;  %v2701_v2 = vadd.f32 2.0, %v5645_v34  ;;  %v2387_v15 = vmin.f32 %v5648_v13, 20.0 }
 0x2ba   : > { %3920 = vst [vmem:[%s5939_s3 + $0x68] sm:$0xff] %v3816_v32   ;;  %v2887_v40 = vmul.f32 %v2789_v49, %v5514_v8  ;;  %v2793_v9 = vmul.f32 %v4422_v0, %v5602_v29  ;;  %v2490_v63 = vmul.f32 1.442695, %v2386_v30  ;;  %v5665_v53 = vadd.f32 %v5270_v52, %v2253_v59  ;;  %v2256_v8 = vld [vmem:[#allocation2 + $0x168] sm:$0xff]  ;;  %v2258_v59 = vld [vmem:[#allocation2 + $0x178] sm:$0xff] }
 0x2bb   : > { %v2888_v42 = vmul.f32 %v2791_v57, %v5527_v39  ;;  %4437 = vrcp.f32 %v2701_v2  ;;  %v2492_v35 = vmul.f32 1.442695, %v2387_v15  ;;  %v5674_v36 = vadd.f32 %v5671_v38, %v2254_v11  ;;  %v2260_v0 = vld [vmem:[#allocation2 + $0x188] sm:$0xff] }
 0x2bc   : > { %v4424_v41 = vpop.eup %4423  ;;  %v3821_v29 = vpack.c.bf16 %v2887_v40, %v2886_v5  ;;  %v2889_v6 = vmul.f32 %v2793_v9, %v5531_v58  ;;  %4439 = vpow2.f32 %v2490_v63  ;;  %v2388_v52 = vmin.f32 %v5665_v53, 20.0 }
 0x2bd   : > { %v4426_v24 = vpop.eup %4425  ;;  %v2795_v39 = vmul.f32 %v4424_v41, %v5611_v33  ;;  %4441 = vpow2.f32 %v2492_v35  ;;  %v2389_v16 = vmin.f32 %v5674_v36, 20.0  ;;  %v5681_v10 = vadd.f32 %v5671_v38, %v2255_v7 }
 0x2be   : > { %v4428_v56 = vpop.eup %4427  ;;  %3921 = vst [vmem:[%s5939_s3 + $0x70] sm:$0xff] %v3821_v29   ;;  %v3826_v48 = vpack.c.bf16 %v2889_v6, %v2888_v42  ;;  %v2797_v58 = vmul.f32 %v4426_v24, %v5616_v20  ;;  %v2494_v44 = vmul.f32 1.442695, %v2388_v52  ;;  %v5688_v37 = vadd.f32 %v5671_v38, %v2256_v8 }
 0x2bf   : > { %v4430_v4 = vpop.eup %4429  ;;  %v2890_v33 = vmul.f32 %v2795_v39, %v5534_v51  ;;  %v2574_v47 = vadd.f32 2.0, %v4428_v56  ;;  %v2496_v50 = vmul.f32 1.442695, %v2389_v16  ;;  %v2390_v17 = vmin.f32 %v5681_v10, 20.0  ;;  %v2261_v16 = vld [vmem:[#allocation2 + $0x190] sm:$0xff] }
 0x2c0   : > { %v4432_v19 = vpop.eup %4431  ;;  %3922 = vst [vmem:[%s5939_s3 + $0x78] sm:$0xff] %v3826_v48   ;;  %v2891_v31 = vmul.f32 %v2797_v58, %v5538_v45  ;;  %v2575_v22 = vadd.f32 2.0, %v4430_v4  ;;  %4443 = vpow2.f32 %v2494_v44  ;;  %v2391_v20 = vmin.f32 %v5688_v37, 20.0  ;;  %v2259_v45 = vld [vmem:[#allocation2 + $0x180] sm:$0xff] }
 0x2c1   : > { %v4434_v14 = vpop.eup %4433  ;;  %v2799_v46 = vmul.f32 %v4432_v19, %v5631_v55  ;;  %v5698_v27 = vmul.f32 %v4428_v56, %v2574_v47  ;;  %4445 = vpow2.f32 %v2496_v50  ;;  %v2498_v51 = vmul.f32 1.442695, %v2390_v17 }
 0x2c2   : > { %v4436_v1 = vpop.eup %4435  ;;  %v3831_v12 = vpack.c.bf16 %v2891_v31, %v2890_v33  ;;  %v5700_v28 = vmul.f32 %v4430_v4, %v2575_v22  ;;  %v2576_v23 = vadd.f32 2.0, %v4434_v14  ;;  %v2500_v18 = vmul.f32 1.442695, %v2391_v20  ;;  %v2262_v4 = vld [vmem:[#allocation2 + $0x198] sm:$0xff]  ;;  %v2263_v33 = vld [vmem:[#allocation2 + $0x1a0] sm:$0xff] }
 0x2c3   : > { %v2892_v60 = vmul.f32 %v2799_v46, %v5551_v54  ;;  %v2702_v32 = vadd.f32 2.0, %v5698_v27  ;;  %v2577_v49 = vadd.f32 2.0, %v4436_v1  ;;  %4447 = vpow2.f32 %v2498_v51 }
 0x2c4   : > { %3923 = vst [vmem:[%s5939_s3 + $0x80] sm:$0xff] %v3831_v12   ;;  %v2703_v55 = vadd.f32 2.0, %v5700_v28  ;;  %v5708_v30 = vmul.f32 %v4434_v14, %v2576_v23  ;;  %4449 = vpow2.f32 %v2500_v18  ;;  %v5711_v11 = vadd.f32 %v5671_v38, %v2257_v62 }
 0x2c5   : > { %v4438_v5 = vpop.eup %4437  ;;  %4451 = vrcp.f32 %v2702_v32  ;;  %v5713_v54 = vmul.f32 %v4436_v1, %v2577_v49  ;;  %v5716_v57 = vadd.f32 %v5671_v38, %v2258_v59  ;;  %v5719_v2 = vadd.f32 %v5671_v38, %v2259_v45 }
 0x2c6   : > { %v4440_v15 = vpop.eup %4439  ;;  %v2801_v40 = vmul.f32 %v4438_v5, %v5645_v34  ;;  %4453 = vrcp.f32 %v2703_v55  ;;  %v2704_v9 = vadd.f32 2.0, %v5708_v30  ;;  %v2392_v63 = vmin.f32 %v5711_v11, 20.0 }
 0x2c7   : > { %v4442_v7 = vpop.eup %4441  ;;  %v2705_v42 = vadd.f32 2.0, %v5713_v54  ;;  %v2578_v35 = vadd.f32 2.0, %v4440_v15  ;;  %v2393_v8 = vmin.f32 %v5716_v57, 20.0  ;;  %v5727_v41 = vadd.f32 %v5671_v38, %v2260_v0 }
 0x2c8   : > { %v2893_v29 = vmul.f32 %v2801_v40, %v5556_v61  ;;  %4455 = vrcp.f32 %v2704_v9  ;;  %v2579_v6 = vadd.f32 2.0, %v4442_v7  ;;  %v2502_v52 = vmul.f32 1.442695, %v2392_v63  ;;  %v2264_v63 = vld [vmem:[#allocation2 + $0x1a8] sm:$0xff] }
 0x2c9   : > { %4457 = vrcp.f32 %v2705_v42  ;;  %v5730_v34 = vmul.f32 %v4440_v15, %v2578_v35  ;;  %v2504_v24 = vmul.f32 1.442695, %v2393_v8  ;;  %v2394_v39 = vmin.f32 %v5719_v2, 20.0 }
 0x2ca   : > { %v4444_v56 = vpop.eup %4443  ;;  %v3836_v48 = vpack.c.bf16 %v2893_v29, %v2892_v60  ;;  %v5733_v58 = vmul.f32 %v4442_v7, %v2579_v6  ;;  %4459 = vpow2.f32 %v2502_v52  ;;  %v2395_v44 = vmin.f32 %v5727_v41, 20.0 }
 0x2cb   : > { %v4446_v61 = vpop.eup %4445  ;;  %v2706_v47 = vadd.f32 2.0, %v5730_v34  ;;  %v2580_v50 = vadd.f32 2.0, %v4444_v56  ;;  %4461 = vpow2.f32 %v2504_v24  ;;  %v2506_v17 = vmul.f32 1.442695, %v2394_v39 }
 0x2cc   : > { %3924 = vst [vmem:[%s5939_s3 + $0x88] sm:$0xff] %v3836_v48   ;;  %v2707_v19 = vadd.f32 2.0, %v5733_v58  ;;  %v2581_v31 = vadd.f32 2.0, %v4446_v61  ;;  %v2508_v22 = vmul.f32 1.442695, %v2395_v44  ;;  %v5742_v20 = vadd.f32 %v5671_v38, %v2261_v16  ;;  %v2265_v16 = vld [vmem:[#allocation2 + $0x1b0] sm:$0xff] }
 0x2cd   : > { %v4448_v14 = vpop.eup %4447  ;;  %4463 = vrcp.f32 %v2706_v47  ;;  %v5744_v46 = vmul.f32 %v4444_v56, %v2580_v50  ;;  %v5747_v51 = vadd.f32 %v5671_v38, %v2262_v4  ;;  %v5750_v62 = vadd.f32 %v5671_v38, %v2263_v33  ;;  %v2266_v56 = vld [vmem:[#allocation2 + $0x1b8] sm:$0xff] }
 0x2ce   : > { %v4450_v1 = vpop.eup %4449  ;;  %4465 = vrcp.f32 %v2707_v19  ;;  %v5752_v12 = vmul.f32 %v4446_v61, %v2581_v31  ;;  %v2582_v23 = vadd.f32 2.0, %v4448_v14  ;;  %v2396_v18 = vmin.f32 %v5742_v20, 20.0 }
 0x2cf   : > { %v4452_v59 = vpop.eup %4451  ;;  %v2708_v45 = vadd.f32 2.0, %v5744_v46  ;;  %v2583_v60 = vadd.f32 2.0, %v4450_v1  ;;  %4467 = vpow2.f32 %v2506_v17  ;;  %v2397_v32 = vmin.f32 %v5747_v51, 20.0 }
 0x2d0   : > { %v4454_v49 = vpop.eup %4453  ;;  %v2803_v55 = vmul.f32 %v4452_v59, %v5698_v27  ;;  %v2709_v0 = vadd.f32 2.0, %v5752_v12  ;;  %v5759_v5 = vmul.f32 %v4448_v14, %v2582_v23  ;;  %4469 = vpow2.f32 %v2508_v22 }
 0x2d1   : > { %v2805_v15 = vmul.f32 %v4454_v49, %v5700_v28  ;;  %4471 = vrcp.f32 %v2708_v45  ;;  %v5762_v40 = vmul.f32 %v4450_v1, %v2583_v60  ;;  %v2510_v9 = vmul.f32 1.442695, %v2396_v18 }
 0x2d2   : > { %v4456_v7 = vpop.eup %4455  ;;  %v2894_v42 = vmul.f32 %v2803_v55, %v5589_v3  ;;  %4473 = vrcp.f32 %v2709_v0  ;;  %v2710_v35 = vadd.f32 2.0, %v5759_v5  ;;  %v2512_v8 = vmul.f32 1.442695, %v2397_v32 }
 0x2d3   : > { %v4458_v27 = vpop.eup %4457  ;;  %v2895_v29 = vmul.f32 %v2805_v15, %v5605_v25  ;;  %v2807_v6 = vmul.f32 %v4456_v7, %v5708_v30  ;;  %v2711_v52 = vadd.f32 2.0, %v5762_v40  ;;  %4475 = vpow2.f32 %v2510_v9 }
 0x2d4   : > { %v4460_v28 = vpop.eup %4459  ;;  %v2809_v24 = vmul.f32 %v4458_v27, %v5713_v54  ;;  %4477 = vrcp.f32 %v2710_v35  ;;  %v5771_v39 = vadd.f32 %v5671_v38, %v2264_v63  ;;  %v2398_v3 = vmin.f32 %v5750_v62, 20.0 }
 0x2d5   : > { %v4462_v48 = vpop.eup %4461  ;;  %v3841_v44 = vpack.c.bf16 %v2895_v29, %v2894_v42  ;;  %v2896_v25 = vmul.f32 %v2807_v6, %v5625_v21  ;;  %4479 = vrcp.f32 %v2711_v52  ;;  %v2584_v30 = vadd.f32 2.0, %v4460_v28  ;;  %v2267_v29 = vld [vmem:[#allocation2 + $0x1c0] sm:$0xff] }
 0x2d6   : > { %v2897_v4 = vmul.f32 %v2809_v24, %v5628_v43  ;;  %v2585_v33 = vadd.f32 2.0, %v4462_v48  ;;  %4481 = vpow2.f32 %v2512_v8  ;;  %v2399_v54 = vmin.f32 %v5771_v39, 20.0 }
 0x2d7   : > { %v4464_v61 = vpop.eup %4463  ;;  %3925 = vst [vmem:[%s5939_s3 + $0x90] sm:$0xff] %v3841_v44   ;;  %v5780_v47 = vmul.f32 %v4460_v28, %v2584_v30  ;;  %v2514_v50 = vmul.f32 1.442695, %v2398_v3  ;;  %v5783_v17 = vadd.f32 %v5671_v38, %v2265_v16  ;;  %v5786_v21 = vadd.f32 %v5671_v38, %v2266_v56  ;;  %v2268_v16 = vld [vmem:[#allocation2 + $0x1c8] sm:$0xff]  ;;  %v2270_v30 = vld [vmem:[#allocation2 + $0x1d8] sm:$0xff] }
 0x2d8   : > { %v4466_v19 = vpop.eup %4465  ;;  %v3846_v43 = vpack.c.bf16 %v2897_v4, %v2896_v25  ;;  %v2811_v31 = vmul.f32 %v4464_v61, %v5730_v34  ;;  %v5789_v22 = vmul.f32 %v4462_v48, %v2585_v33  ;;  %v2516_v14 = vmul.f32 1.442695, %v2399_v54  ;;  %v2269_v25 = vld [vmem:[#allocation2 + $0x1d0] sm:$0xff]  ;;  %v2271_v4 = vld [vmem:[#allocation2 + $0x1e0] sm:$0xff] }
 0x2d9   : > { %v4468_v1 = vpop.eup %4467  ;;  %v2813_v23 = vmul.f32 %v4466_v19, %v5733_v58  ;;  %v2712_v18 = vadd.f32 2.0, %v5780_v47  ;;  %4483 = vpow2.f32 %v2514_v50  ;;  %v2400_v59 = vmin.f32 %v5783_v17, 20.0 }
 0x2da   : > { %v4470_v45 = vpop.eup %4469  ;;  %3926 = vst [vmem:[%s5939_s3 + $0x98] sm:$0xff] %v3846_v43   ;;  %v2898_v60 = vmul.f32 %v2811_v31, %v5634_v26  ;;  %v2713_v34 = vadd.f32 2.0, %v5789_v22  ;;  %v2586_v32 = vadd.f32 2.0, %v4468_v1  ;;  %4485 = vpow2.f32 %v2516_v14 }
 0x2db   : > { %v4472_v49 = vpop.eup %4471  ;;  %v2899_v55 = vmul.f32 %v2813_v23, %v5648_v13  ;;  %4487 = vrcp.f32 %v2712_v18  ;;  %v2587_v58 = vadd.f32 2.0, %v4470_v45  ;;  %v2401_v0 = vmin.f32 %v5786_v21, 20.0 }
 0x2dc   : > { %v4474_v15 = vpop.eup %4473  ;;  %v2815_v9 = vmul.f32 %v4472_v49, %v5744_v46  ;;  %4489 = vrcp.f32 %v2713_v34  ;;  %v5802_v63 = vmul.f32 %v4468_v1, %v2586_v32  ;;  %v2518_v7 = vmul.f32 1.442695, %v2400_v59 }
 0x2dd   : > { %v4476_v42 = vpop.eup %4475  ;;  %v3851_v26 = vpack.c.bf16 %v2899_v55, %v2898_v60  ;;  %v2817_v35 = vmul.f32 %v4474_v15, %v5752_v12  ;;  %v5805_v8 = vmul.f32 %v4470_v45, %v2587_v58  ;;  %v2520_v27 = vmul.f32 1.442695, %v2401_v0 }
 0x2de   : > { %v4478_v13 = vpop.eup %4477  ;;  %v2900_v6 = vmul.f32 %v2815_v9, %v5665_v53  ;;  %v2714_v52 = vadd.f32 2.0, %v5802_v63  ;;  %v2588_v28 = vadd.f32 2.0, %v4476_v42  ;;  %4491 = vpow2.f32 %v2518_v7 }
 0x2df   : > { %v4480_v46 = vpop.eup %4479  ;;  %3927 = vst [vmem:[%s5939_s3 + $0xa0] sm:$0xff] %v3851_v26   ;;  %v2901_v24 = vmul.f32 %v2817_v35, %v5674_v36  ;;  %v2819_v12 = vmul.f32 %v4478_v13, %v5759_v5  ;;  %v2715_v3 = vadd.f32 2.0, %v5805_v8  ;;  %4493 = vpow2.f32 %v2520_v27  ;;  %v2272_v26 = vld [vmem:[#allocation2 + $0x1e8] sm:$0xff] }
 0x2e0   : > { %v4482_v56 = vpop.eup %4481  ;;  %v2821_v53 = vmul.f32 %v4480_v46, %v5762_v40  ;;  %4495 = vrcp.f32 %v2714_v52  ;;  %v5816_v48 = vmul.f32 %v4476_v42, %v2588_v28  ;;  %v5819_v44 = vadd.f32 %v5671_v38, %v2267_v29 }
 0x2e1   : > { %v3856_v33 = vpack.c.bf16 %v2901_v24, %v2900_v6  ;;  %v2902_v36 = vmul.f32 %v2819_v12, %v5681_v10  ;;  %4497 = vrcp.f32 %v2715_v3  ;;  %v2589_v5 = vadd.f32 2.0, %v4482_v56 }
 0x2e2   : > { %v2903_v54 = vmul.f32 %v2821_v53, %v5688_v37  ;;  %v2716_v61 = vadd.f32 2.0, %v5816_v48  ;;  %v5825_v40 = vadd.f32 %v5671_v38, %v2268_v16  ;;  %v2402_v50 = vmin.f32 %v5819_v44, 20.0  ;;  %v2273_v53 = vld [vmem:[#allocation2 + $0x1f0] sm:$0xff] }
 0x2e3   : > { %v4484_v19 = vpop.eup %4483  ;;  %3928 = vst [vmem:[%s5939_s3 + $0xa8] sm:$0xff] %v3856_v33   ;;  %v5831_v43 = vmul.f32 %v4482_v56, %v2589_v5  ;;  %v5834_v10 = vadd.f32 %v5671_v38, %v2269_v25  ;;  %v5837_v31 = vadd.f32 %v5671_v38, %v2270_v30  ;;  %v5840_v37 = vadd.f32 %v5671_v38, %v2271_v4  ;;  %v2274_v4 = vld [vmem:[#allocation2 + $0x1f8] sm:$0xff] }
 0x2e4   : > { %v4486_v14 = vpop.eup %4485  ;;  %v3861_v1 = vpack.c.bf16 %v2903_v54, %v2902_v36  ;;  %4499 = vrcp.f32 %v2716_v61  ;;  %v2590_v23 = vadd.f32 2.0, %v4484_v19  ;;  %v2403_v18 = vmin.f32 %v5825_v40, 20.0 }
 0x2e5   : > { %v4488_v59 = vpop.eup %4487  ;;  %v2717_v45 = vadd.f32 2.0, %v5831_v43  ;;  %v2591_v60 = vadd.f32 2.0, %v4486_v14  ;;  %v2522_v34 = vmul.f32 1.442695, %v2402_v50  ;;  %v2404_v32 = vmin.f32 %v5834_v10, 20.0 }
 0x2e6   : > { %v4490_v49 = vpop.eup %4489  ;;  %3929 = vst [vmem:[%s5939_s3 + $0xb0] sm:$0xff] %v3861_v1   ;;  %v2823_v55 = vmul.f32 %v4488_v59, %v5780_v47  ;;  %v5849_v58 = vmul.f32 %v4484_v19, %v2590_v23  ;;  %v2524_v0 = vmul.f32 1.442695, %v2403_v18  ;;  %v2405_v15 = vmin.f32 %v5837_v31, 20.0 }
 0x2e7   : > { %v2825_v9 = vmul.f32 %v4490_v49, %v5789_v22  ;;  %4501 = vrcp.f32 %v2717_v45  ;;  %v5853_v7 = vmul.f32 %v4486_v14, %v2591_v60  ;;  %v2526_v42 = vmul.f32 1.442695, %v2404_v32 }
 0x2e8   : > { %v4492_v35 = vpop.eup %4491  ;;  %v2904_v27 = vmul.f32 %v2823_v55, %v5711_v11  ;;  %v2718_v29 = vadd.f32 2.0, %v5849_v58  ;;  %4503 = vpow2.f32 %v2522_v34  ;;  %v2528_v13 = vmul.f32 1.442695, %v2405_v15 }
 0x2e9   : > { %v4494_v47 = vpop.eup %4493  ;;  %v2905_v6 = vmul.f32 %v2825_v9, %v5716_v57  ;;  %v2719_v52 = vadd.f32 2.0, %v5853_v7  ;;  %v2592_v28 = vadd.f32 2.0, %v4492_v35  ;;  %4505 = vpow2.f32 %v2524_v0 }
 0x2ea   : > { %v4496_v22 = vpop.eup %4495  ;;  %4507 = vrcp.f32 %v2718_v29  ;;  %v2593_v46 = vadd.f32 2.0, %v4494_v47  ;;  %v5860_v24 = vadd.f32 %v5671_v38, %v2272_v26  ;;  %v2406_v12 = vmin.f32 %v5840_v37, 20.0 }
 0x2eb   : > { %v4498_v11 = vpop.eup %4497  ;;  %v3866_v3 = vpack.c.bf16 %v2905_v6, %v2904_v27  ;;  %v2827_v16 = vmul.f32 %v4496_v22, %v5802_v63  ;;  %4509 = vrcp.f32 %v2719_v52  ;;  %v2656_v56 = vmul.f32 %v4492_v35, %v2592_v28 }
 0x2ec   : > { %v2829_v57 = vmul.f32 %v4498_v11, %v5805_v8  ;;  %v2657_v25 = vmul.f32 %v4494_v47, %v2593_v46  ;;  %4511 = vpow2.f32 %v2526_v42  ;;  %v2407_v30 = vmin.f32 %v5860_v24, 20.0 }
 0x2ed   : > { %3930 = vst [vmem:[%s5939_s3 + $0xb8] sm:$0xff] %v3866_v3   ;;  %v2906_v33 = vmul.f32 %v2827_v16, %v5719_v2  ;;  %v2720_v36 = vadd.f32 2.0, %v2656_v56  ;;  %4513 = vpow2.f32 %v2528_v13  ;;  %v2530_v5 = vmul.f32 1.442695, %v2406_v12 }
 0x2ee   : > { %v4500_v63 = vpop.eup %4499  ;;  %v2907_v54 = vmul.f32 %v2829_v57, %v5727_v41  ;;  %v2721_v61 = vadd.f32 2.0, %v2657_v25  ;;  %v2532_v50 = vmul.f32 1.442695, %v2407_v30  ;;  %v5872_v8 = vadd.f32 %v5671_v38, %v2273_v53 }
 0x2ef   : > { %v2831_v19 = vmul.f32 %v4500_v63, %v5816_v48  ;;  %4515 = vrcp.f32 %v2720_v36  ;;  %v5876_v14 = vadd.f32 %v5671_v38, %v2274_v4 }
 0x2f0   : > { %v3871_v1 = vpack.c.bf16 %v2907_v54, %v2906_v33  ;;  %4517 = vrcp.f32 %v2721_v61  ;;  %v2408_v2 = vmin.f32 %v5872_v8, 20.0 }
 0x2f1   : > { %v4502_v23 = vpop.eup %4501  ;;  %4519 = vpow2.f32 %v2530_v5  ;;  %v2409_v18 = vmin.f32 %v5876_v14, 20.0  ;;  %v2908_v48 = vmul.f32 %v2831_v19, %v5742_v20 }
 0x2f2   : > { %v4504_v41 = vpop.eup %4503  ;;  %3931 = vst [vmem:[%s5939_s3 + $0xc0] sm:$0xff] %v3871_v1   ;;  %v2833_v59 = vmul.f32 %v4502_v23, %v5831_v43  ;;  %4521 = vpow2.f32 %v2532_v50  ;;  %v2534_v38 = vmul.f32 1.442695, %v2408_v2 }
 0x2f3   : > { %v4506_v45 = vpop.eup %4505  ;;  %v2594_v60 = vadd.f32 2.0, %v4504_v41  ;;  %v2536_v34 = vmul.f32 1.442695, %v2409_v18 }
 0x2f4   : > { %v4508_v32 = vpop.eup %4507  ;;  %v2909_v49 = vmul.f32 %v2833_v59, %v5747_v51  ;;  %v2595_v55 = vadd.f32 2.0, %v4506_v45  ;;  %4523 = vpow2.f32 %v2534_v38 }
 0x2f5   : > { %v4510_v0 = vpop.eup %4509  ;;  %v2835_v15 = vmul.f32 %v4508_v32, %v5849_v58  ;;  %v2658_v9 = vmul.f32 %v4504_v41, %v2594_v60  ;;  %4525 = vpow2.f32 %v2536_v34 }
 0x2f6   : > { %v4512_v42 = vpop.eup %4511  ;;  %v3876_v26 = vpack.c.bf16 %v2909_v49, %v2908_v48  ;;  %v2837_v43 = vmul.f32 %v4510_v0, %v5853_v7  ;;  %v2659_v20 = vmul.f32 %v4506_v45, %v2595_v55 }
 0x2f7   : > { %v4514_v35 = vpop.eup %4513  ;;  %v2910_v27 = vmul.f32 %v2835_v15, %v5750_v62  ;;  %v2722_v29 = vadd.f32 2.0, %v2658_v9  ;;  %v2596_v13 = vadd.f32 2.0, %v4512_v42 }
 0x2f8   : > { %3932 = vst [vmem:[%s5939_s3 + $0xc8] sm:$0xff] %v3876_v26   ;;  %v2911_v51 = vmul.f32 %v2837_v43, %v5771_v39  ;;  %v2723_v47 = vadd.f32 2.0, %v2659_v20  ;;  %v2597_v58 = vadd.f32 2.0, %v4514_v35 }
 0x2f9   : > { %v4516_v6 = vpop.eup %4515  ;;  %4527 = vrcp.f32 %v2722_v29  ;;  %v2660_v52 = vmul.f32 %v4512_v42, %v2596_v13 }
 0x2fa   : > { %v4518_v28 = vpop.eup %4517  ;;  %v3881_v22 = vpack.c.bf16 %v2911_v51, %v2910_v27  ;;  %v2839_v7 = vmul.f32 %v4516_v6, %v2656_v56  ;;  %4529 = vrcp.f32 %v2723_v47  ;;  %v2661_v46 = vmul.f32 %v4514_v35, %v2597_v58 }
 0x2fb   : > { %v4520_v12 = vpop.eup %4519  ;;  %v2841_v62 = vmul.f32 %v4518_v28, %v2657_v25  ;;  %v2724_v11 = vadd.f32 2.0, %v2660_v52 }
 0x2fc   : > { %v4522_v3 = vpop.eup %4521  ;;  %3933 = vst [vmem:[%s5939_s3 + $0xd0] sm:$0xff] %v3881_v22   ;;  %v2912_v39 = vmul.f32 %v2839_v7, %v5783_v17  ;;  %v2725_v16 = vadd.f32 2.0, %v2661_v46  ;;  %v2598_v53 = vadd.f32 2.0, %v4520_v12 }
 0x2fd   : > { %v2913_v57 = vmul.f32 %v2841_v62, %v5786_v21  ;;  %4531 = vrcp.f32 %v2724_v11  ;;  %v2599_v30 = vadd.f32 2.0, %v4522_v3 }
 0x2fe   : > { %v4524_v4 = vpop.eup %4523  ;;  %4533 = vrcp.f32 %v2725_v16  ;;  %v2662_v56 = vmul.f32 %v4520_v12, %v2598_v53 }
 0x2ff   : > { %v4526_v33 = vpop.eup %4525  ;;  %v3886_v36 = vpack.c.bf16 %v2913_v57, %v2912_v39  ;;  %v2663_v25 = vmul.f32 %v4522_v3, %v2599_v30  ;;  %v2600_v5 = vadd.f32 2.0, %v4524_v4 }
 0x300   : > { %v2726_v63 = vadd.f32 2.0, %v2662_v56  ;;  %v2601_v54 = vadd.f32 2.0, %v4526_v33 }
 0x301   : > { %3934 = vst [vmem:[%s5939_s3 + $0xd8] sm:$0xff] %v3886_v36   ;;  %v2727_v17 = vadd.f32 2.0, %v2663_v25  ;;  %v2664_v61 = vmul.f32 %v4524_v4, %v2600_v5 }
 0x302   : > { %4535 = vrcp.f32 %v2726_v63  ;;  %v2665_v50 = vmul.f32 %v4526_v33, %v2601_v54 }
 0x303   : > { %v4528_v21 = vpop.eup %4527  ;;  %4537 = vrcp.f32 %v2727_v17  ;;  %v2728_v19 = vadd.f32 2.0, %v2664_v61 }
 0x304   : > { %v4530_v1 = vpop.eup %4529  ;;  %v2843_v2 = vmul.f32 %v4528_v21, %v2658_v9  ;;  %v2729_v23 = vadd.f32 2.0, %v2665_v50 }
 0x305   : > { %v2845_v18 = vmul.f32 %v4530_v1, %v2659_v20  ;;  %4539 = vrcp.f32 %v2728_v19 }
 0x306   : > { %v2914_v41 = vmul.f32 %v2843_v2, %v5819_v44  ;;  %4541 = vrcp.f32 %v2729_v23 }
 0x307   : > { %v4532_v59 = vpop.eup %4531  ;;  %v2915_v48 = vmul.f32 %v2845_v18, %v5825_v40 }
 0x308   : > { %v4534_v38 = vpop.eup %4533  ;;  %v2847_v45 = vmul.f32 %v4532_v59, %v2660_v52 }
 0x309   : > { %v3891_v60 = vpack.c.bf16 %v2915_v48, %v2914_v41  ;;  %v2849_v34 = vmul.f32 %v4534_v38, %v2661_v46 }
 0x30a   : > { %v2916_v32 = vmul.f32 %v2847_v45, %v5834_v10 }
 0x30b   : > { %3935 = vst [vmem:[%s5939_s3 + $0xe0] sm:$0xff] %v3891_v60   ;;  %v2917_v49 = vmul.f32 %v2849_v34, %v5837_v31 }
 0x30c   : > { %v4536_v55 = vpop.eup %4535 }
 0x30d   : > { %v4538_v0 = vpop.eup %4537  ;;  %v3896_v15 = vpack.c.bf16 %v2917_v49, %v2916_v32  ;;  %v2851_v44 = vmul.f32 %v4536_v55, %v2662_v56 }
 0x30e   : > { %v2853_v9 = vmul.f32 %v4538_v0, %v2663_v25 }
 0x30f   : > { %v4540_v42 = vpop.eup %4539  ;;  %3936 = vst [vmem:[%s5939_s3 + $0xe8] sm:$0xff] %v3896_v15   ;;  %v2918_v40 = vmul.f32 %v2851_v44, %v5840_v37 }
 0x310   : > { %v4542_v26 = vpop.eup %4541  ;;  %v2919_v10 = vmul.f32 %v2853_v9, %v5860_v24  ;;  %v2855_v43 = vmul.f32 %v4540_v42, %v2664_v61 }
 0x311   : > { %v2857_v20 = vmul.f32 %v4542_v26, %v2665_v50 }
 0x312   : > { %v3901_v35 = vpack.c.bf16 %v2919_v10, %v2918_v40  ;;  %v2920_v31 = vmul.f32 %v2855_v43, %v5872_v8 }
 0x313   : > { %v2921_v27 = vmul.f32 %v2857_v20, %v5876_v14 }
 0x314   : > { %3937 = vst [vmem:[%s5939_s3 + $0xf0] sm:$0xff] %v3901_v35  }
 0x315   : > { %v3906_v29 = vpack.c.bf16 %v2921_v27, %v2920_v31 }
 0x317   : > { %3938 = vst [vmem:[%s5939_s3 + $0xf8] sm:$0xff] %v3906_v29  }
 0x318 PF: > { %s13_s16 = sadd.s32 1, %s4582_s16   ;;  %s5940_s12 = smov %s4570_s13 }
 0x319   : > { %p10_p12 = scmp.ge.s32.totalorder %s13_s16, 5   ;;  %s5941_s13 = smov %s4641_s20 }
 0x31a   : > { %s5942_s14 = smov %s4578_s15  ;;  %s5943_s15 = smov %s5945_s17 }
 0x31b   :  { %12 = sbr.rel (!%p10_p12) target bundleno = 3 (0x3), region = 113 }

// kernel: seg_to_seg_forward.12
= control target key start
LH: loop header
LB: loop body
LE: loop exit
PB: predicated region body
PF: predicated region fallthrough
CT: control target
= control target key end

     0   :  { %s1799_s15 = smov 0   ;;  %s1801_s16 = smov 0   ;;  %s2016_s0 = inlined_call_operand.vmem [shape: bf16[128,1152], index: 0, kind: input, shape index: {}]   ;;  %s2017_s1 = inlined_call_operand.vmem [shape: bf16[1152,128], index: 1, kind: input, shape index: {}]   ;;  %s2018_s2 = inlined_call_operand.vmem [shape: bf16[128,128], index: 2, kind: output, shape index: {0}]   ;;  %s2019_s3 = inlined_call_operand.vmem [shape: f32[8,128], index: 3, kind: output, shape index: {1}]   ;;  %s2020_s4 = inlined_call_operand.vmem [shape: f32[8,128], index: 4, kind: output, shape index: {2}]  }
   0x1   :  { %s1803_s17 = smov 0   ;;  %s1805_s18 = smov 0  }
   0x2   :  { %s1807_s19 = smov 0  }
   0x3 LB: > { %s27_s20 = sadd.s32 1, %s1767_s18  ;;  %p50_p1 = scmp.ne.s32.totalorder %s1759_s16, %s1755_s15  ;;  %s1771_s19 = sphi %s1807_s19, %s15_s19   ;;  %s1767_s18 = sphi %s1805_s18, %s2024_s18   ;;  %s1763_s17 = sphi %s1803_s17, %s2023_s17   ;;  %s1759_s16 = sphi %s1801_s16, %s2022_s16   ;;  %s1755_s15 = sphi %s1799_s15, %s2021_s15  }
   0x4   : > { %p28_p0 = scmp.ge.s32.totalorder %s27_s20, 3  ;;  %p51_p2 = scmp.eq.s32.totalorder %s1771_s19, 0 }
   0x5   : > { %s43_s22 = sadd.s32 1, %s1759_s16  ;;  %p1350_p5 = scmp.ge.s32.totalorder %s1771_s19, 3 }
   0x6   : > { %s2026_s20 = smov (%p28_p0, %s27_s20), 0  ;;  %p52_p3 = por %p51_p2, %p50_p1 }
   0x7   : > { %s39_s21 = ssub.s32 %s1767_s18, %s2026_s20  ;;  %188 = sbr.rel (%p1350_p5) target bundleno = 37 (0x25), region = 16 }
   0x8   : > { %p41_p4 = scmp.eq.s32.totalorder %s39_s21, 0 }
   0xa   : > { %s1834_s23 = scalar_select %p41_p4, %s1759_s16, %s43_s22  }
   0xe   : > { %191 = sbr.rel (!%p52_p3) target bundleno = 37 (0x25), region = 20  ;;  %s193_s24 = sand.u32 (%p52_p3), 1, %s1759_s16  }
   0xf   : > { %s1458_s25 = smul.u32 (%p52_p3), 12, %s1767_s18 }
  0x10   : > { %s1634_s26 = smul.u32 (%p52_p3), 192, %s193_s24 }
  0x11   : > { %s1842_s29 = scalar_lea.vmem (%p52_p3), %s2016_s0, %s1458_s25 }
  0x12   : > { %v216_v0 = vld [vmem:[%s1842_s29] sm:$0xff] (%p52_p3)  ;;  %v220_v2 = vld [vmem:[%s1842_s29 + $0x48] sm:$0xff] (%p52_p3)  ;;  %s1847_s30 = scalar_lea.vmem (%p52_p3), [#allocation3], %s1634_s26  ;;  %v224_v4 = vld [vmem:[%s1842_s29 + $0x90] sm:$0xff] (%p52_p3) }
  0x13   : > { %v218_v1 = vld [vmem:[%s1842_s29 + $0x24] sm:$0xff] (%p52_p3)  ;;  %217 = vst [vmem:[%s1847_s30] sm:$0xff] (%p52_p3), %v216_v0  ;;  %221 = vst [vmem:[%s1847_s30 + $0x18] sm:$0xff] (%p52_p3), %v220_v2  ;;  %v222_v3 = vld [vmem:[%s1842_s29 + $0x6c] sm:$0xff] (%p52_p3) }
  0x14   : > { %219 = vst [vmem:[%s1847_s30 + $0xc] sm:$0xff] (%p52_p3), %v218_v1  ;;  %v226_v5 = vld [vmem:[%s1842_s29 + $0xb4] sm:$0xff] (%p52_p3)  ;;  %223 = vst [vmem:[%s1847_s30 + $0x24] sm:$0xff] (%p52_p3), %v222_v3  ;;  %v230_v7 = vld [vmem:[%s1842_s29 + $0xfc] sm:$0xff] (%p52_p3) }
  0x15   : > { %225 = vst [vmem:[%s1847_s30 + $0x30] sm:$0xff] %v224_v4  ;;  %227 = vst [vmem:[%s1847_s30 + $0x3c] sm:$0xff] %v226_v5  ;;  %v228_v6 = vld [vmem:[%s1842_s29 + $0xd8] sm:$0xff]  ;;  %v232_v8 = vld [vmem:[%s1842_s29 + $0x120] sm:$0xff] }
  0x16   : > { %229 = vst [vmem:[%s1847_s30 + $0x48] sm:$0xff] %v228_v6  ;;  %231 = vst [vmem:[%s1847_s30 + $0x54] sm:$0xff] %v230_v7  ;;  %v234_v9 = vld [vmem:[%s1842_s29 + $0x144] sm:$0xff]  ;;  %v238_v11 = vld [vmem:[%s1842_s29 + $0x18c] sm:$0xff] }
  0x17   : > { %233 = vst [vmem:[%s1847_s30 + $0x60] sm:$0xff] %v232_v8  ;;  %v236_v10 = vld [vmem:[%s1842_s29 + $0x168] sm:$0xff]  ;;  %235 = vst [vmem:[%s1847_s30 + $0x6c] sm:$0xff] %v234_v9  ;;  %v240_v12 = vld [vmem:[%s1842_s29 + $0x1b0] sm:$0xff] }
  0x18   : > { %237 = vst [vmem:[%s1847_s30 + $0x78] sm:$0xff] %v236_v10  ;;  %239 = vst [vmem:[%s1847_s30 + $0x84] sm:$0xff] %v238_v11  ;;  %v242_v13 = vld [vmem:[%s1842_s29 + $0x1d4] sm:$0xff]  ;;  %v246_v15 = vld [vmem:[%s1842_s29 + $0x21c] sm:$0xff] }
  0x19   : > { %v244_v14 = vld [vmem:[%s1842_s29 + $0x1f8] sm:$0xff]  ;;  %241 = vst [vmem:[%s1847_s30 + $0x90] sm:$0xff] %v240_v12  ;;  %243 = vst [vmem:[%s1847_s30 + $0x9c] sm:$0xff] %v242_v13  ;;  %v1352_v16 = vld [vmem:[%s1842_s29 + $0x8] sm:$0xf] }
  0x1a   : > { %245 = vst [vmem:[%s1847_s30 + $0xa8] sm:$0xff] %v244_v14  ;;  %v1354_v17 = vld [vmem:[%s1842_s29 + $0x2c] sm:$0xf]  ;;  %247 = vst [vmem:[%s1847_s30 + $0xb4] sm:$0xff] %v246_v15  ;;  %v1356_v18 = vld [vmem:[%s1842_s29 + $0x50] sm:$0xf] }
  0x1b   : > { %1353 = vst [vmem:[%s1847_s30 + $0x8] sm:$0xf] %v1352_v16  ;;  %1355 = vst [vmem:[%s1847_s30 + $0x14] sm:$0xf] %v1354_v17  ;;  %v1358_v19 = vld [vmem:[%s1842_s29 + $0x74] sm:$0xf] }
  0x1c   : > { %v1360_v20 = vld [vmem:[%s1842_s29 + $0x98] sm:$0xf]  ;;  %1357 = vst [vmem:[%s1847_s30 + $0x20] sm:$0xf] %v1356_v18  ;;  %1359 = vst [vmem:[%s1847_s30 + $0x2c] sm:$0xf] %v1358_v19 }
  0x1d   : > { %1361 = vst [vmem:[%s1847_s30 + $0x38] sm:$0xf] %v1360_v20  ;;  %v1362_v21 = vld [vmem:[%s1842_s29 + $0xbc] sm:$0xf]  ;;  %v1364_v22 = vld [vmem:[%s1842_s29 + $0xe0] sm:$0xf] }
  0x1e   : > { %v1366_v23 = vld [vmem:[%s1842_s29 + $0x104] sm:$0xf]  ;;  %1363 = vst [vmem:[%s1847_s30 + $0x44] sm:$0xf] %v1362_v21  ;;  %1365 = vst [vmem:[%s1847_s30 + $0x50] sm:$0xf] %v1364_v22 }
  0x1f   : > { %1367 = vst [vmem:[%s1847_s30 + $0x5c] sm:$0xf] %v1366_v23  ;;  %v1368_v24 = vld [vmem:[%s1842_s29 + $0x128] sm:$0xf]  ;;  %v1370_v25 = vld [vmem:[%s1842_s29 + $0x14c] sm:$0xf] }
  0x20   : > { %v1372_v26 = vld [vmem:[%s1842_s29 + $0x170] sm:$0xf]  ;;  %1369 = vst [vmem:[%s1847_s30 + $0x68] sm:$0xf] %v1368_v24  ;;  %1371 = vst [vmem:[%s1847_s30 + $0x74] sm:$0xf] %v1370_v25 }
  0x21   : > { %1373 = vst [vmem:[%s1847_s30 + $0x80] sm:$0xf] %v1372_v26  ;;  %v1374_v27 = vld [vmem:[%s1842_s29 + $0x194] sm:$0xf]  ;;  %v1376_v28 = vld [vmem:[%s1842_s29 + $0x1b8] sm:$0xf] }
  0x22   : > { %v1378_v29 = vld [vmem:[%s1842_s29 + $0x1dc] sm:$0xf]  ;;  %1375 = vst [vmem:[%s1847_s30 + $0x8c] sm:$0xf] %v1374_v27  ;;  %1377 = vst [vmem:[%s1847_s30 + $0x98] sm:$0xf] %v1376_v28 }
  0x23   : > { %1379 = vst [vmem:[%s1847_s30 + $0xa4] sm:$0xf] %v1378_v29  ;;  %v1380_v30 = vld [vmem:[%s1842_s29 + $0x200] sm:$0xf]  ;;  %v1382_v31 = vld [vmem:[%s1842_s29 + $0x224] sm:$0xf] }
  0x24   : > { %1381 = vst [vmem:[%s1847_s30 + $0xb0] sm:$0xf] %v1380_v30  ;;  %1383 = vst [vmem:[%s1847_s30 + $0xbc] sm:$0xf] %v1382_v31 }
  0x25 PF: > { %p1384_p6 = scmp.ge.s32.totalorder %s1771_s19, 1  ;;  %p303_p7 = scmp.lt.s32.totalorder %s1771_s19, 4 }
  0x27   : > { %p304_p8 = pnand %p1384_p6, %p303_p7 }
  0x28   : > { %s310_s5 = sand.u32 (!%p304_p8), 1, %s1755_s15   ;;  %s362_s6 = smul.u32 (!%p304_p8), 48, %s1763_s17 }
  0x29   : > { %307 = sbr.rel (%p304_p8) target bundleno = 405 (0x195), region = 50  ;;  %p1386_p10 = scmp.ne.s32.totalorder (!%p304_p8), %s1763_s17, 0 }
  0x2a   : > { %s1635_s7 = smul.u32 (!%p304_p8), 192, %s310_s5  ;;  %p363_p9 = scmp.lt.s32.totalorder (!%p304_p8), %s362_s6, 143 }
  0x2c   : > { %s1919_s12 = scalar_lea.vmem (!%p304_p8), [#allocation3], %s1635_s7 }
  0x30   : > { %s2028_s6 = smov (!%p363_p9, %s362_s6), 143  ;;  %398 = sbr.rel (%p1386_p10) target bundleno = 58 (0x3a), region = 58 }
  0x31   : > { %s1385_s8 = sshll.u32 %s2028_s6, 2  ;;  %v1773_v32 = vmov (!%p1386_p10), 0.0  }
  0x32   : > { %s1917_s11 = scalar_lea.vmem %s2017_s1, %s1385_s8  ;;  %399 = vst [vmem:[#allocation2] sm:$0xff] (!%p1386_p10), %v1773_v32  ;;  %400 = vst [vmem:[#allocation2 + $0x8] sm:$0xff] (!%p1386_p10), %v1773_v32 }
  0x33   : > { %401 = vst [vmem:[#allocation2 + $0x10] sm:$0xff] (!%p1386_p10), %v1773_v32  ;;  %402 = vst [vmem:[#allocation2 + $0x18] sm:$0xff] (!%p1386_p10), %v1773_v32 }
  0x34   : > { %403 = vst [vmem:[#allocation2 + $0x20] sm:$0xff] (!%p1386_p10), %v1773_v32  ;;  %404 = vst [vmem:[#allocation2 + $0x28] sm:$0xff] (!%p1386_p10), %v1773_v32 }
  0x35   : > { %405 = vst [vmem:[#allocation2 + $0x30] sm:$0xff] (!%p1386_p10), %v1773_v32  ;;  %406 = vst [vmem:[#allocation2 + $0x38] sm:$0xff] (!%p1386_p10), %v1773_v32 }
  0x36   : > { %407 = vst [vmem:[#allocation2 + $0x40] sm:$0xff] (!%p1386_p10), %v1773_v32  ;;  %408 = vst [vmem:[#allocation2 + $0x48] sm:$0xff] (!%p1386_p10), %v1773_v32 }
  0x37   : > { %409 = vst [vmem:[#allocation2 + $0x50] sm:$0xff] %v1773_v32  ;;  %410 = vst [vmem:[#allocation2 + $0x58] sm:$0xff] %v1773_v32 }
  0x38   : > { %411 = vst [vmem:[#allocation2 + $0x60] sm:$0xff] %v1773_v32  ;;  %412 = vst [vmem:[#allocation2 + $0x68] sm:$0xff] %v1773_v32 }
  0x39   : > { %413 = vst [vmem:[#allocation2 + $0x70] sm:$0xff] %v1773_v32  ;;  %414 = vst [vmem:[#allocation2 + $0x78] sm:$0xff] %v1773_v32 }
  0x3a PF: > { %v1677_v33 = vld [vmem:[%s1917_s11 + $0x40] sm:$0xff]   ;;  %v1680_v36 = vld [vmem:[%s1917_s11 + $0x48] sm:$0xff]   ;;  %v1683_v39 = vld [vmem:[%s1917_s11 + $0x50] sm:$0xff]   ;;  %p1435_p11 = scmp.ne.s32.totalorder %s1763_s17, 2 }
  0x3b   : > { %v1678_v34 = vld [vmem:[%s1917_s11] sm:$0xff]   ;;  %1522 = vmatprep.subr.bf16.mxu0 %v1677_v33  ;;  %v1681_v37 = vld [vmem:[%s1917_s11 + $0x8] sm:$0xff]   ;;  %v1684_v40 = vld [vmem:[%s1917_s11 + $0x10] sm:$0xff]  }
  0x3c   : > { %v1679_v35 = vld [vmem:[%s1917_s11 + $0x80] sm:$0xff]   ;;  %1523 = vmatpush3.bf16.msra.mxu0 %v1678_v34  ;;  %v1682_v38 = vld [vmem:[%s1917_s11 + $0x88] sm:$0xff]   ;;  %v1685_v41 = vld [vmem:[%s1917_s11 + $0x90] sm:$0xff]  }
  0x3d   : > { %1602 = vmatprep.subr.bf16.mxu1 %v1679_v35  ;;  %1524 = vmatprep.subr.bf16.mxu0 %v1680_v36  ;;  %v1686_v42 = vld [vmem:[%s1917_s11 + $0x58] sm:$0xff]   ;;  %v1689_v45 = vld [vmem:[%s1917_s11 + $0x60] sm:$0xff]   ;;  %v1692_v48 = vld [vmem:[%s1917_s11 + $0x68] sm:$0xff]  }
  0x3e   : > { %1603 = vmatpush3.bf16.msra.mxu1 %v1679_v35  ;;  %v1687_v43 = vld [vmem:[%s1917_s11 + $0x18] sm:$0xff]   ;;  %v1691_v46 = vld [vmem:[%s1917_s11 + $0xa0] sm:$0xff]   ;;  %v1694_v49 = vld [vmem:[%s1917_s11 + $0xa8] sm:$0xff]  }
  0x3f   : > { %1604 = vmatprep.subr.bf16.mxu1 %v1682_v38  ;;  %v1688_v44 = vld [vmem:[%s1917_s11 + $0x98] sm:$0xff]   ;;  %v1690_v47 = vld [vmem:[%s1917_s11 + $0x20] sm:$0xff]   ;;  %v1693_v50 = vld [vmem:[%s1917_s11 + $0x28] sm:$0xff]  }
  0x40   : > { %1525 = vmatpush3.bf16.msra.mxu0 %v1681_v37  ;;  %v1695_v51 = vld [vmem:[%s1917_s11 + $0x70] sm:$0xff]   ;;  %v1698_v54 = vld [vmem:[%s1917_s11 + $0x78] sm:$0xff]   ;;  %v1701_v59 = vld [vmem:[%s1919_s12] ss:$12 sps:$4 sm:$0xff]  }
  0x41   : > { %1526 = vmatprep.subr.bf16.mxu0 %v1683_v39  ;;  %v1696_v52 = vld [vmem:[%s1917_s11 + $0x30] sm:$0xff]   ;;  %v1700_v55 = vld [vmem:[%s1917_s11 + $0xb8] sm:$0xff]   ;;  %v1705_v61 = vld [vmem:[%s1919_s12 + $0x20] ss:$12 sps:$4 sm:$0xff]  }
  0x42   : > { %1605 = vmatpush3.bf16.msra.mxu1 %v1682_v38  ;;  %v1697_v53 = vld [vmem:[%s1917_s11 + $0xb0] sm:$0xff]   ;;  %v1699_v58 = vld [vmem:[%s1917_s11 + $0x38] sm:$0xff]   ;;  %v1721_v5 = vld [vmem:[%s1919_s12 + $0x80] ss:$12 sps:$4 sm:$0xff]  }
  0x43   : > { %1606 = vmatprep.subr.bf16.mxu1 %v1685_v41  ;;  %v1703_v56 = vld [vmem:[%s1919_s12 + $0x4] ss:$12 sps:$4 sm:$0xff]   ;;  %v1704_v57 = vld [vmem:[%s1919_s12 + $0x8] ss:$12 sps:$4 sm:$0xff]   ;;  %v1714_v4 = vld [vmem:[%s1919_s12 + $0x4c] ss:$12 sps:$4 sm:$0xff]  }
  0x44   : > { %1527 = vmatpush3.bf16.msra.mxu0 %v1684_v40  ;;  %815 = vmatprep.mubr.bf16.mxu0 %v1703_v56  ;;  %v1706_v60 = vld [vmem:[%s1919_s12 + $0x1c] ss:$12 sps:$4 sm:$0xff]   ;;  %v1712_v62 = vld [vmem:[%s1919_s12 + $0x38] ss:$12 sps:$4 sm:$0xff]   ;;  %v1709_v0 = vld [vmem:[%s1919_s12 + $0x34] ss:$12 sps:$4 sm:$0xff]  }
  0x45   : > { %1528 = vmatprep.subr.bf16.mxu0 %v1686_v42  ;;  %1618 = vmatprep.mubr.bf16.mxu1 %v1704_v57  ;;  %v1708_v63 = vld [vmem:[%s1919_s12 + $0x18] ss:$12 sps:$4 sm:$0xff]   ;;  %v1713_v1 = vld [vmem:[%s1919_s12 + $0x50] ss:$12 sps:$4 sm:$0xff]   ;;  %v1720_v2 = vld [vmem:[%s1919_s12 + $0x68] ss:$12 sps:$4 sm:$0xff]  }
  0x46   : > { %1607 = vmatpush3.bf16.msra.mxu1 %v1685_v41  ;;  %v1711_v3 = vld [vmem:[%s1919_s12 + $0x30] ss:$12 sps:$4 sm:$0xff]   ;;  %v1728_v6 = vld [vmem:[%s1919_s12 + $0x98] ss:$12 sps:$4 sm:$0xff]   ;;  %v1716_v7 = vld [vmem:[%s1919_s12 + $0x48] ss:$12 sps:$4 sm:$0xff]  }
  0x47   : > { %1608 = vmatprep.subr.bf16.mxu1 %v1688_v44  ;;  %v1717_v8 = vld [vmem:[%s1919_s12 + $0x64] ss:$12 sps:$4 sm:$0xff]   ;;  %v1719_v10 = vld [vmem:[%s1919_s12 + $0x60] ss:$12 sps:$4 sm:$0xff]   ;;  %v1722_v11 = vld [vmem:[%s1919_s12 + $0x7c] ss:$12 sps:$4 sm:$0xff]  }
  0x48   : > { %1529 = vmatpush3.bf16.msra.mxu0 %v1687_v43  ;;  %v1729_v9 = vld [vmem:[%s1919_s12 + $0xb0] ss:$12 sps:$4 sm:$0xff]   ;;  %v1724_v12 = vld [vmem:[%s1919_s12 + $0x78] ss:$12 sps:$4 sm:$0xff]   ;;  %v1725_v13 = vld [vmem:[%s1919_s12 + $0x94] ss:$12 sps:$4 sm:$0xff]  }
  0x49   : > { %1530 = vmatprep.subr.bf16.mxu0 %v1689_v45  ;;  %v1727_v14 = vld [vmem:[%s1919_s12 + $0x90] ss:$12 sps:$4 sm:$0xff]   ;;  %v1730_v15 = vld [vmem:[%s1919_s12 + $0xac] ss:$12 sps:$4 sm:$0xff]   ;;  %v1732_v16 = vld [vmem:[%s1919_s12 + $0xa8] ss:$12 sps:$4 sm:$0xff]  }
  0x4a   : > { %1609 = vmatpush3.bf16.msra.mxu1 %v1688_v44  ;;  %v415_v23 = vld [vmem:[#allocation2] sm:$0xff]  ;;  %v416_v28 = vld [vmem:[#allocation2 + $0x8] sm:$0xff]  ;;  %v417_v38 = vld [vmem:[#allocation2 + $0x10] sm:$0xff] }
  0x4b   : > { %1610 = vmatprep.subr.bf16.mxu1 %v1691_v46  ;;  %v418_v44 = vld [vmem:[#allocation2 + $0x18] sm:$0xff] }
  0x4c   : > { %1531 = vmatpush3.bf16.msra.mxu0 %v1690_v47 }
  0x4d   : > { %1532 = vmatprep.subr.bf16.mxu0 %v1692_v48 }
  0x4e   : > { %1611 = vmatpush3.bf16.msra.mxu1 %v1691_v46 }
  0x4f   : > { %1612 = vmatprep.subr.bf16.mxu1 %v1694_v49 }
  0x50   : > { %1533 = vmatpush3.bf16.msra.mxu0 %v1693_v50 }
  0x51   : > { %1534 = vmatprep.subr.bf16.mxu0 %v1695_v51 }
  0x52   : > { %1613 = vmatpush3.bf16.msra.mxu1 %v1694_v49 }
  0x53   : > { %1614 = vmatprep.subr.bf16.mxu1 %v1697_v53 }
  0x54   : > { %1535 = vmatpush3.bf16.msra.mxu0 %v1696_v52 }
  0x55   : > { %1536 = vmatprep.subr.bf16.mxu0 %v1698_v54 }
  0x56   : > { %1615 = vmatpush3.bf16.msra.mxu1 %v1697_v53 }
  0x57   : > { %1616 = vmatprep.subr.bf16.mxu1 %v1700_v55 }
  0x58   : > { %1537 = vmatpush3.bf16.msra.mxu0 %v1699_v58 }
  0x5a   : > { %1617 = vmatpush3.bf16.msra.mxu1 %v1700_v55  ;;  %v419_v55 = vld [vmem:[#allocation2 + $0x20] sm:$0xff] }
  0x5b   : > { %816 = vmatmul.mubr.bf16.vlgmr.msra.gmra.mrb[0].mxu0 %v1701_v59 }
  0x5c   : > { %823 = vmatprep.mubr.bf16.mxu0 %v1706_v60  ;;  %v420_v60 = vld [vmem:[#allocation2 + $0x28] sm:$0xff] }
  0x5d   : > { %1619 = vmatmul.mubr.bf16.vlgmr.msra.gmra.mrb[0].mxu1 %v1705_v61 }
  0x5e   : > { %1622 = vmatprep.mubr.bf16.mxu1 %v1712_v62 }
  0x63   : > { %824 = vmatmul.mubr.bf16.gmra.mrb[4].mxu0 %v1708_v63 }
  0x64   : > { %831 = vmatprep.mubr.bf16.mxu0 %v1709_v0 }
  0x65   : > { %1623 = vmatmul.mubr.bf16.gmra.mrb[4].mxu1 %v1713_v1 }
  0x66   : > { %1626 = vmatprep.mubr.bf16.mxu1 %v1720_v2 }
  0x6b   : > { %832 = vmatmul.mubr.bf16.gmra.mrb[8].mxu0 %v1711_v3 }
  0x6c   : > { %839 = vmatprep.mubr.bf16.mxu0 %v1714_v4 }
  0x6d   : > { %1627 = vmatmul.mubr.bf16.gmra.mrb[8].mxu1 %v1721_v5 }
  0x6e   : > { %1630 = vmatprep.mubr.bf16.mxu1 %v1728_v6  ;;  %v421_v6 = vld [vmem:[#allocation2 + $0x30] sm:$0xff] }
  0x73   : > { %840 = vmatmul.mubr.bf16.gmra.mrb[12].mxu0 %v1716_v7 }
  0x74   : > { %847 = vmatprep.mubr.bf16.mxu0 %v1717_v8 }
  0x75   : > { %1631 = vmatmul.mubr.bf16.gmra.mrb[12].mxu1 %v1729_v9 }
  0x7b   : > { %848 = vmatmul.mubr.bf16.gmra.mrb[16].mxu0 %v1719_v10 }
  0x7c   : > { %855 = vmatprep.mubr.bf16.mxu0 %v1722_v11 }
  0x83   : > { %856 = vmatmul.mubr.bf16.gmra.mrb[20].mxu0 %v1724_v12  ;;  %v422_v12 = vld [vmem:[#allocation2 + $0x38] sm:$0xff] }
  0x84   : > { %863 = vmatprep.mubr.bf16.mxu0 %v1725_v13 }
  0x8b   : > { %864 = vmatmul.mubr.bf16.gmra.mrb[24].mxu0 %v1727_v14 }
  0x8c   : > { %871 = vmatprep.mubr.bf16.mxu0 %v1730_v15 }
  0x93   : > { %872 = vmatmul.mubr.bf16.gmra.mrb[28].mxu0 %v1732_v16 }
 0x12e   : > { %v1538_v17 = vpop.f32.mrb[0].mxu0 }
 0x12f   : > { %v1539_v18 = vpop.f32.mrb[1].mxu0 }
 0x130   : > { %v1540_v19 = vadd.f32 %v1539_v18, %v1538_v17  ;;  %v1541_v20 = vpop.f32.mrb[2].mxu0  ;;  %v1620_v21 = vpop.f32.mrb[0].mxu1 }
 0x131   : > { %v1542_v22 = vpop.f32.mrb[3].mxu0  ;;  %v914_v24 = vpop.f32.mrb[1].mxu1 }
 0x132   : > { %v1543_v25 = vadd.f32 %v1542_v22, %v1541_v20  ;;  %v915_v26 = vadd.f32 %v1540_v19, %v914_v24  ;;  %v1621_v27 = vpop.f32.mrb[2].mxu1  ;;  %v423_v22 = vld [vmem:[#allocation2 + $0x40] sm:$0xff] }
 0x133   : > { %v917_v29 = vpop.f32.mrb[3].mxu1 }
 0x134   : > { %v977_v30 = vadd.f32 %v915_v26, %v415_v23  ;;  %v918_v31 = vadd.f32 %v1543_v25, %v917_v29  ;;  %v424_v25 = vld [vmem:[#allocation2 + $0x48] sm:$0xff] }
 0x136   : > { %993 = vst [vmem:[#allocation2] sm:$0xff] %v977_v30  ;;  %v978_v32 = vadd.f32 %v918_v31, %v416_v28  ;;  %v1544_v33 = vpop.f32.mrb[4].mxu0 }
 0x137   : > { %v1545_v34 = vpop.f32.mrb[5].mxu0 }
 0x138   : > { %994 = vst [vmem:[#allocation2 + $0x8] sm:$0xff] %v978_v32  ;;  %v1546_v35 = vadd.f32 %v1545_v34, %v1544_v33  ;;  %v1547_v36 = vpop.f32.mrb[6].mxu0  ;;  %v1624_v37 = vpop.f32.mrb[4].mxu1  ;;  %v425_v33 = vld [vmem:[#allocation2 + $0x50] sm:$0xff] }
 0x139   : > { %v1548_v39 = vpop.f32.mrb[7].mxu0  ;;  %v930_v40 = vpop.f32.mrb[5].mxu1 }
 0x13a   : > { %v923_v41 = vadd.f32 %v1620_v21, %v1546_v35  ;;  %v1549_v42 = vadd.f32 %v1548_v39, %v1547_v36  ;;  %v1625_v43 = vpop.f32.mrb[6].mxu1 }
 0x13b   : > { %v933_v45 = vpop.f32.mrb[7].mxu1 }
 0x13c   : > { %v979_v46 = vadd.f32 %v923_v41, %v417_v38  ;;  %v926_v47 = vadd.f32 %v1621_v27, %v1549_v42 }
 0x13e   : > { %995 = vst [vmem:[#allocation2 + $0x10] sm:$0xff] %v979_v46  ;;  %v980_v48 = vadd.f32 %v926_v47, %v418_v44  ;;  %v1550_v49 = vpop.f32.mrb[8].mxu0  ;;  %v427_v46 = vld [vmem:[#allocation2 + $0x60] sm:$0xff] }
 0x13f   : > { %v1551_v50 = vpop.f32.mrb[9].mxu0 }
 0x140   : > { %996 = vst [vmem:[#allocation2 + $0x18] sm:$0xff] %v980_v48  ;;  %v1552_v51 = vadd.f32 %v1551_v50, %v1550_v49  ;;  %v1553_v52 = vpop.f32.mrb[10].mxu0  ;;  %v1628_v53 = vpop.f32.mrb[8].mxu1  ;;  %v428_v49 = vld [vmem:[#allocation2 + $0x68] sm:$0xff] }
 0x141   : > { %v1554_v54 = vpop.f32.mrb[11].mxu0  ;;  %v946_v56 = vpop.f32.mrb[9].mxu1 }
 0x142   : > { %v1555_v57 = vadd.f32 %v1554_v54, %v1553_v52  ;;  %v931_v58 = vadd.f32 %v1552_v51, %v930_v40  ;;  %v1629_v59 = vpop.f32.mrb[10].mxu1 }
 0x143   : > { %v949_v61 = vpop.f32.mrb[11].mxu1 }
 0x144   : > { %v981_v62 = vadd.f32 %v931_v58, %v419_v55  ;;  %v934_v63 = vadd.f32 %v1555_v57, %v933_v45  ;;  %v429_v57 = vld [vmem:[#allocation2 + $0x70] sm:$0xff] }
 0x146   : > { %997 = vst [vmem:[#allocation2 + $0x20] sm:$0xff] %v981_v62  ;;  %v982_v0 = vadd.f32 %v934_v63, %v420_v60  ;;  %v1556_v1 = vpop.f32.mrb[12].mxu0 }
 0x147   : > { %v1557_v2 = vpop.f32.mrb[13].mxu0 }
 0x148   : > { %998 = vst [vmem:[#allocation2 + $0x28] sm:$0xff] %v982_v0  ;;  %v1558_v3 = vadd.f32 %v1557_v2, %v1556_v1  ;;  %v1559_v4 = vpop.f32.mrb[14].mxu0  ;;  %v1632_v5 = vpop.f32.mrb[12].mxu1  ;;  %v1013_v1 = vld [vmem:[#allocation2] sm:$0xff] (!%p1435_p11)  ;;  %v1014_v2 = vld [vmem:[#allocation2 + $0x8] sm:$0xff] (!%p1435_p11) }
 0x149   : > { %v1560_v7 = vpop.f32.mrb[15].mxu0  ;;  %v962_v8 = vpop.f32.mrb[13].mxu1 }
 0x14a   : > { %v939_v9 = vadd.f32 %v1624_v37, %v1558_v3  ;;  %v1561_v10 = vadd.f32 %v1560_v7, %v1559_v4  ;;  %v1633_v11 = vpop.f32.mrb[14].mxu1  ;;  %v426_v37 = vld [vmem:[#allocation2 + $0x58] sm:$0xff]  ;;  %v1015_v3 = vld [vmem:[#allocation2 + $0x10] sm:$0xff] (!%p1435_p11)  ;;  %v1051_v7 = vmul.f32 (!%p1435_p11), %v1013_v1, %v1013_v1 }
 0x14b   : > { %v965_v13 = vpop.f32.mrb[15].mxu1  ;;  %v1016_v4 = vld [vmem:[#allocation2 + $0x18] sm:$0xff] (!%p1435_p11) }
 0x14c   : > { %v983_v14 = vadd.f32 %v939_v9, %v421_v6  ;;  %v942_v15 = vadd.f32 %v1625_v43, %v1561_v10  ;;  %v1029_v6 = vadd.f32 (!%p1435_p11), %v1014_v2, %v1013_v1  ;;  %v1053_v9 = vmul.f32 (!%p1435_p11), %v1015_v3, %v1015_v3 }
 0x14d   : > { %v1478_v10 = vpack.c.bf16 (!%p1435_p11), %v1014_v2, %v1013_v1 }
 0x14e   : > { %999 = vst [vmem:[#allocation2 + $0x30] sm:$0xff] %v983_v14  ;;  %v984_v16 = vadd.f32 %v942_v15, %v422_v12  ;;  %v1562_v17 = vpop.f32.mrb[16].mxu0  ;;  %v1030_v12 = vadd.f32 (!%p1435_p11), %v1029_v6, %v1015_v3 }
 0x14f   : > { %v1563_v18 = vpop.f32.mrb[17].mxu0  ;;  %1479 = vst [vmem:[%s2018_s2] sm:$0xff] (!%p1435_p11), %v1478_v10  }
 0x150   : > { %1000 = vst [vmem:[#allocation2 + $0x38] sm:$0xff] %v984_v16  ;;  %v1564_v19 = vadd.f32 %v1563_v18, %v1562_v17  ;;  %v1565_v20 = vpop.f32.mrb[18].mxu0 }
 0x151   : > { %v1566_v21 = vpop.f32.mrb[19].mxu0 }
 0x152   : > { %v1567_v23 = vadd.f32 %v1566_v21, %v1565_v20  ;;  %v947_v24 = vadd.f32 %v1564_v19, %v946_v56  ;;  %v1031_v19 = vadd.f32 (!%p1435_p11), %v1030_v12, %v1016_v4 }
 0x154   : > { %v985_v26 = vadd.f32 %v947_v24, %v423_v22  ;;  %v950_v27 = vadd.f32 %v1567_v23, %v949_v61  ;;  %v430_v61 = vld [vmem:[#allocation2 + $0x78] sm:$0xff] }
 0x155   : > { %v1019_v14 = vld [vmem:[#allocation2 + $0x30] sm:$0xff] (!%p1435_p11) }
 0x156   : > { %1001 = vst [vmem:[#allocation2 + $0x40] sm:$0xff] %v985_v26  ;;  %v986_v28 = vadd.f32 %v950_v27, %v424_v25  ;;  %v1568_v29 = vpop.f32.mrb[20].mxu0  ;;  %v1483_v25 = vpack.c.bf16 (!%p1435_p11), %v1016_v4, %v1015_v3 }
 0x157   : > { %v1569_v30 = vpop.f32.mrb[21].mxu0  ;;  %v1020_v16 = vld [vmem:[#allocation2 + $0x38] sm:$0xff] (!%p1435_p11) }
 0x158   : > { %1002 = vst [vmem:[#allocation2 + $0x48] sm:$0xff] %v986_v28  ;;  %v1570_v31 = vadd.f32 %v1569_v30, %v1568_v29  ;;  %v1571_v32 = vpop.f32.mrb[22].mxu0  ;;  %1515 = vst [vmem:[%s2018_s2 + $0x8] sm:$0xff] (!%p1435_p11), %v1483_v25  }
 0x159   : > { %v1572_v34 = vpop.f32.mrb[23].mxu0 }
 0x15a   : > { %v955_v35 = vadd.f32 %v1628_v53, %v1570_v31  ;;  %v1573_v36 = vadd.f32 %v1572_v34, %v1571_v32  ;;  %v1493_v31 = vpack.c.bf16 (!%p1435_p11), %v1020_v16, %v1019_v14 }
 0x15c   : > { %v987_v38 = vadd.f32 %v955_v35, %v425_v33  ;;  %v958_v39 = vadd.f32 %v1629_v59, %v1573_v36  ;;  %1517 = vst [vmem:[%s2018_s2 + $0x18] sm:$0xff] (!%p1435_p11), %v1493_v31  }
 0x15d   : > { %v1021_v17 = vld [vmem:[#allocation2 + $0x40] sm:$0xff] (!%p1435_p11) }
 0x15e   : > { %1003 = vst [vmem:[#allocation2 + $0x50] sm:$0xff] %v987_v38  ;;  %v988_v40 = vadd.f32 %v958_v39, %v426_v37  ;;  %v1574_v41 = vpop.f32.mrb[24].mxu0  ;;  %v1057_v39 = vmul.f32 (!%p1435_p11), %v1019_v14, %v1019_v14 }
 0x15f   : > { %v1575_v42 = vpop.f32.mrb[25].mxu0  ;;  %v1022_v18 = vld [vmem:[#allocation2 + $0x48] sm:$0xff] (!%p1435_p11) }
 0x160   : > { %1004 = vst [vmem:[#allocation2 + $0x58] sm:$0xff] %v988_v40  ;;  %v1576_v43 = vadd.f32 %v1575_v42, %v1574_v41  ;;  %v1577_v44 = vpop.f32.mrb[26].mxu0  ;;  %v1498_v32 = vpack.c.bf16 (!%p1435_p11), %v1022_v18, %v1021_v17  ;;  %v1058_v42 = vmul.f32 (!%p1435_p11), %v1020_v16, %v1020_v16 }
 0x161   : > { %v1578_v45 = vpop.f32.mrb[27].mxu0 }
 0x162   : > { %v1579_v47 = vadd.f32 %v1578_v45, %v1577_v44  ;;  %v963_v48 = vadd.f32 %v1576_v43, %v962_v8  ;;  %v1052_v8 = vmul.f32 (!%p1435_p11), %v1014_v2, %v1014_v2  ;;  %1518 = vst [vmem:[%s2018_s2 + $0x20] sm:$0xff] (!%p1435_p11), %v1498_v32   ;;  %v1059_v45 = vmul.f32 (!%p1435_p11), %v1021_v17, %v1021_v17 }
 0x164   : > { %v989_v50 = vadd.f32 %v963_v48, %v427_v46  ;;  %v966_v51 = vadd.f32 %v1579_v47, %v965_v13  ;;  %v1018_v13 = vld [vmem:[#allocation2 + $0x28] sm:$0xff] (!%p1435_p11)  ;;  %v1067_v15 = vadd.f32 (!%p1435_p11), %v1052_v8, %v1051_v7  ;;  %v1060_v48 = vmul.f32 (!%p1435_p11), %v1022_v18, %v1022_v18 }
 0x165   : > { %v1023_v20 = vld [vmem:[#allocation2 + $0x50] sm:$0xff] (!%p1435_p11)  ;;  %v1056_v34 = vmul.f32 (!%p1435_p11), %v1018_v13, %v1018_v13 }
 0x166   : > { %1005 = vst [vmem:[#allocation2 + $0x60] sm:$0xff] %v989_v50  ;;  %v990_v52 = vadd.f32 %v966_v51, %v428_v49  ;;  %v1580_v53 = vpop.f32.mrb[28].mxu0  ;;  %v1068_v24 = vadd.f32 (!%p1435_p11), %v1067_v15, %v1053_v9  ;;  %v1061_v51 = vmul.f32 (!%p1435_p11), %v1023_v20, %v1023_v20 }
 0x167   : > { %v1581_v54 = vpop.f32.mrb[29].mxu0  ;;  %v1024_v21 = vld [vmem:[#allocation2 + $0x58] sm:$0xff] (!%p1435_p11) }
 0x168   : > { %1006 = vst [vmem:[#allocation2 + $0x68] sm:$0xff] %v990_v52  ;;  %v1582_v55 = vadd.f32 %v1581_v54, %v1580_v53  ;;  %v1583_v56 = vpop.f32.mrb[30].mxu0  ;;  %v1503_v33 = vpack.c.bf16 (!%p1435_p11), %v1024_v21, %v1023_v20  ;;  %v1062_v54 = vmul.f32 (!%p1435_p11), %v1024_v21, %v1024_v21 }
 0x169   : > { %v1584_v58 = vpop.f32.mrb[31].mxu0 }
 0x16a   : > { %v971_v59 = vadd.f32 %v1632_v5, %v1582_v55  ;;  %v1585_v60 = vadd.f32 %v1584_v58, %v1583_v56  ;;  %1012 = sbr.rel (%p1435_p11) target bundleno = 405 (0x195), region = 62  ;;  %v1017_v5 = vld [vmem:[#allocation2 + $0x20] sm:$0xff] (!%p1435_p11)  ;;  %1519 = vst [vmem:[%s2018_s2 + $0x28] sm:$0xff] (!%p1435_p11), %v1503_v33  }
 0x16b   : > { %v1055_v23 = vmul.f32 (!%p1435_p11), %v1017_v5, %v1017_v5  ;;  %v1488_v26 = vpack.c.bf16 (!%p1435_p11), %v1018_v13, %v1017_v5  ;;  %v1032_v30 = vadd.f32 (!%p1435_p11), %v1031_v19, %v1017_v5 }
 0x16c   : > { %v991_v62 = vadd.f32 %v971_v59, %v429_v57  ;;  %v974_v63 = vadd.f32 %v1633_v11, %v1585_v60  ;;  %v1054_v11 = vmul.f32 (!%p1435_p11), %v1016_v4, %v1016_v4 }
 0x16d   : > { %v1025_v22 = vld [vmem:[#allocation2 + $0x60] sm:$0xff] (!%p1435_p11)  ;;  %1516 = vst [vmem:[%s2018_s2 + $0x10] sm:$0xff] (!%p1435_p11), %v1488_v26   ;;  %v1033_v38 = vadd.f32 (!%p1435_p11), %v1032_v30, %v1018_v13 }
 0x16e   : > { %1007 = vst [vmem:[#allocation2 + $0x70] sm:$0xff] %v991_v62  ;;  %v992_v0 = vadd.f32 %v974_v63, %v430_v61  ;;  %v1069_v35 = vadd.f32 (!%p1435_p11), %v1068_v24, %v1054_v11  ;;  %v1063_v57 = vmul.f32 (!%p1435_p11), %v1025_v22, %v1025_v22 }
 0x16f   : > { %v1026_v27 = vld [vmem:[#allocation2 + $0x68] sm:$0xff] (!%p1435_p11)  ;;  %v1034_v41 = vadd.f32 (!%p1435_p11), %v1033_v38, %v1019_v14 }
 0x170   : > { %1008 = vst [vmem:[#allocation2 + $0x78] sm:$0xff] %v992_v0  ;;  %v1508_v36 = vpack.c.bf16 (!%p1435_p11), %v1026_v27, %v1025_v22  ;;  %v1070_v40 = vadd.f32 (!%p1435_p11), %v1069_v35, %v1055_v23  ;;  %v1064_v60 = vmul.f32 (!%p1435_p11), %v1026_v27, %v1026_v27 }
 0x171   : > { %v1035_v44 = vadd.f32 %v1034_v41, %v1020_v16 }
 0x172   : > { %1520 = vst [vmem:[%s2018_s2 + $0x30] sm:$0xff] %v1508_v36   ;;  %v1071_v43 = vadd.f32 %v1070_v40, %v1056_v34 }
 0x173   : > { %v1036_v47 = vadd.f32 %v1035_v44, %v1021_v17 }
 0x174   : > { %v1072_v46 = vadd.f32 %v1071_v43, %v1057_v39 }
 0x175   : > { %v1027_v28 = vld [vmem:[#allocation2 + $0x70] sm:$0xff]  ;;  %v1037_v50 = vadd.f32 %v1036_v47, %v1022_v18 }
 0x176   : > { %v1073_v49 = vadd.f32 %v1072_v46, %v1058_v42  ;;  %v1065_v63 = vmul.f32 %v1027_v28, %v1027_v28 }
 0x177   : > { %v1028_v29 = vld [vmem:[#allocation2 + $0x78] sm:$0xff]  ;;  %v1038_v53 = vadd.f32 %v1037_v50, %v1023_v20 }
 0x178   : > { %v1513_v37 = vpack.c.bf16 %v1028_v29, %v1027_v28  ;;  %v1074_v52 = vadd.f32 %v1073_v49, %v1059_v45  ;;  %v1066_v2 = vmul.f32 %v1028_v29, %v1028_v29 }
 0x179   : > { %v1039_v56 = vadd.f32 %v1038_v53, %v1024_v21 }
 0x17a   : > { %1521 = vst [vmem:[%s2018_s2 + $0x38] sm:$0xff] %v1513_v37   ;;  %v1075_v55 = vadd.f32 %v1074_v52, %v1060_v48 }
 0x17b   : > { %v1040_v59 = vadd.f32 %v1039_v56, %v1025_v22 }
 0x17c   : > { %v1076_v58 = vadd.f32 %v1075_v55, %v1061_v51 }
 0x17d   : > { %v1041_v62 = vadd.f32 %v1040_v59, %v1026_v27 }
 0x17e   : > { %v1077_v61 = vadd.f32 %v1076_v58, %v1062_v54 }
 0x17f   : > { %v1042_v1 = vadd.f32 %v1041_v62, %v1027_v28 }
 0x180   : > { %v1078_v0 = vadd.f32 %v1077_v61, %v1063_v57 }
 0x181   : > { %v1043_v4 = vadd.f32 %v1042_v1, %v1028_v29 }
 0x182   : > { %v1079_v3 = vadd.f32 %v1078_v0, %v1064_v60 }
 0x183   : > { %v1044_v7 = vrot.slane %v1043_v4, 4 }
 0x184   : > { %v1080_v6 = vadd.f32 %v1079_v3, %v1065_v63 }
 0x185   : > { %v1045_v9 = vadd.f32 %v1044_v7, %v1043_v4 }
 0x186   : > { %v1081_v8 = vadd.f32 %v1080_v6, %v1066_v2 }
 0x187   : > { %v1046_v5 = vrot.slane %v1045_v9, 2 }
 0x188   : > { %v1082_v10 = vrot.slane %v1081_v8, 4 }
 0x189   : > { %v1047_v13 = vadd.f32 %v1046_v5, %v1045_v9 }
 0x18a   : > { %v1083_v12 = vadd.f32 %v1082_v10, %v1081_v8 }
 0x18b   : > { %v1048_v11 = vrot.slane %v1047_v13, 1 }
 0x18c   : > { %v1084_v14 = vrot.slane %v1083_v12, 2 }
 0x18d   : > { %v1049_v16 = vadd.f32 %v1048_v11, %v1047_v13 }
 0x18e   : > { %v1085_v15 = vadd.f32 %v1084_v14, %v1083_v12 }
 0x18f   : > { %1050 = vst [vmem:[%s2019_s3] sm:$0xff] %v1049_v16 }
 0x190   : > { %v1086_v17 = vrot.slane %v1085_v15, 1 }
 0x192   : > { %v1087_v18 = vadd.f32 %v1086_v17, %v1085_v15 }
 0x194   : > { %1088 = vst [vmem:[%s2020_s4] sm:$0xff] %v1087_v18 }
 0x195 PF: > { %s15_s19 = sadd.s32 1, %s1771_s19   ;;  %s2021_s15 = smov %s1759_s16 }
 0x196   : > { %p12_p12 = scmp.ge.s32.totalorder %s15_s19, 5   ;;  %s2022_s16 = smov %s1834_s23 }
 0x197   : > { %s2023_s17 = smov %s1767_s18  ;;  %s2024_s18 = smov %s2026_s20 }
 0x198   :  { %14 = sbr.rel (!%p12_p12) target bundleno = 3 (0x3), region = 130 }

// kernel: seg_to_seg_forward.13
= control target key start
LH: loop header
LB: loop body
LE: loop exit
PB: predicated region body
PF: predicated region fallthrough
CT: control target
= control target key end

     0   :  { %s730_s0 = inlined_call_operand.vmem [shape: bf16[128,128], index: 0, kind: input, shape index: {}]   ;;  %s731_s1 = inlined_call_operand.vmem [shape: f32[1,128], index: 1, kind: input, shape index: {}]   ;;  %s732_s2 = inlined_call_operand.vmem [shape: f32[1,128], index: 2, kind: input, shape index: {}]   ;;  %s733_s3 = inlined_call_operand.vmem [shape: bf16[128,128], index: 3, kind: output, shape index: {}]  }
   0x1   :  { %v355_v0 = vld [vmem:[%s730_s0] sm:$0xff]   ;;  %v426_v4 = vld [vmem:[%s730_s0 + $0x8] sm:$0xff]   ;;  %v427_v5 = vld [vmem:[%s730_s0 + $0x10] sm:$0xff]  }
   0x2   :  { %v530_v1 = vld [vmem:[%s731_s1] ss:$0 sm:$0xff]  ;;  %v356_v2 = vunpack.c.l.bf16 %v355_v0  ;;  %v357_v3 = vunpack.c.h.bf16 %v355_v0  ;;  %v428_v6 = vld [vmem:[%s730_s0 + $0x18] sm:$0xff]   ;;  %v360_v8 = vunpack.c.l.bf16 %v426_v4  ;;  %v361_v9 = vunpack.c.h.bf16 %v426_v4  ;;  %v430_v37 = vld [vmem:[%s730_s0 + $0x28] sm:$0xff]  }
   0x3   :  { %v544_v7 = vld [vmem:[%s732_s2] ss:$0 sm:$0xff]  ;;  %v364_v10 = vunpack.c.l.bf16 %v427_v5  ;;  %v365_v11 = vunpack.c.h.bf16 %v427_v5  ;;  %v368_v14 = vunpack.c.l.bf16 %v428_v6  ;;  %v369_v15 = vunpack.c.h.bf16 %v428_v6  ;;  %v431_v38 = vld [vmem:[%s730_s0 + $0x30] sm:$0xff]  }
   0x4   :  { %v53_v12 = vmul.f32 %v356_v2, %v530_v1  ;;  %v54_v13 = vmul.f32 %v357_v3, %v530_v1  ;;  %v55_v16 = vmul.f32 %v360_v8, %v530_v1  ;;  %v56_v17 = vmul.f32 %v361_v9, %v530_v1  ;;  %v429_v32 = vld [vmem:[%s730_s0 + $0x20] sm:$0xff]   ;;  %v432_v2 = vld [vmem:[%s730_s0 + $0x38] sm:$0xff]  }
   0x5   :  { %v57_v18 = vmul.f32 %v364_v10, %v530_v1  ;;  %v58_v19 = vmul.f32 %v365_v11, %v530_v1  ;;  %v59_v22 = vmul.f32 %v368_v14, %v530_v1  ;;  %v60_v23 = vmul.f32 %v369_v15, %v530_v1 }
   0x6   :  { %v553_v20 = vadd.f32 %v544_v7, %v53_v12  ;;  %v556_v21 = vadd.f32 %v544_v7, %v54_v13  ;;  %v561_v24 = vadd.f32 %v544_v7, %v55_v16  ;;  %v564_v25 = vadd.f32 %v544_v7, %v56_v17 }
   0x7   :  { %v567_v26 = vadd.f32 %v544_v7, %v57_v18  ;;  %v570_v27 = vadd.f32 %v544_v7, %v58_v19  ;;  %v575_v30 = vadd.f32 %v544_v7, %v59_v22  ;;  %v578_v31 = vadd.f32 %v544_v7, %v60_v23 }
   0x8   :  { %v92_v28 = vmin.f32 %v553_v20, 20.0  ;;  %v93_v29 = vmin.f32 %v556_v21, 20.0  ;;  %v94_v33 = vmin.f32 %v561_v24, 20.0  ;;  %v95_v34 = vmin.f32 %v564_v25, 20.0 }
   0x9   :  { %v96_v35 = vmin.f32 %v567_v26, 20.0  ;;  %v97_v36 = vmin.f32 %v570_v27, 20.0  ;;  %v98_v41 = vmin.f32 %v575_v30, 20.0  ;;  %v99_v42 = vmin.f32 %v578_v31, 20.0 }
   0xa   :  { %v108_v39 = vmul.f32 1.442695, %v92_v28  ;;  %v110_v40 = vmul.f32 1.442695, %v93_v29  ;;  %v112_v43 = vmul.f32 1.442695, %v94_v33  ;;  %v372_v46 = vunpack.c.l.bf16 %v429_v32 }
   0xb   :  { %v114_v44 = vmul.f32 1.442695, %v95_v34  ;;  %v116_v45 = vmul.f32 1.442695, %v96_v35  ;;  %v118_v47 = vmul.f32 1.442695, %v97_v36  ;;  %v373_v50 = vunpack.c.h.bf16 %v429_v32 }
   0xc   :  { %440 = vpow2.f32 %v108_v39  ;;  %v120_v48 = vmul.f32 1.442695, %v98_v41  ;;  %v122_v49 = vmul.f32 1.442695, %v99_v42  ;;  %v61_v51 = vmul.f32 %v372_v46, %v530_v1 }
   0xd   :  { %442 = vpow2.f32 %v110_v40  ;;  %v376_v52 = vunpack.c.l.bf16 %v430_v37  ;;  %v377_v53 = vunpack.c.h.bf16 %v430_v37  ;;  %v380_v54 = vunpack.c.l.bf16 %v431_v38 }
   0xe   :  { %444 = vpow2.f32 %v112_v43  ;;  %v381_v55 = vunpack.c.h.bf16 %v431_v38  ;;  %v62_v56 = vmul.f32 %v373_v50, %v530_v1  ;;  %v598_v57 = vadd.f32 %v544_v7, %v61_v51 }
   0xf   :  { %446 = vpow2.f32 %v114_v44  ;;  %v63_v58 = vmul.f32 %v376_v52, %v530_v1  ;;  %v64_v59 = vmul.f32 %v377_v53, %v530_v1  ;;  %v65_v60 = vmul.f32 %v380_v54, %v530_v1 }
  0x10   :  { %448 = vpow2.f32 %v116_v45  ;;  %v66_v61 = vmul.f32 %v381_v55, %v530_v1  ;;  %v605_v62 = vadd.f32 %v544_v7, %v62_v56  ;;  %v100_v63 = vmin.f32 %v598_v57, 20.0 }
  0x11   :  { %450 = vpow2.f32 %v118_v47  ;;  %v609_v0 = vadd.f32 %v544_v7, %v63_v58  ;;  %v615_v3 = vadd.f32 %v544_v7, %v64_v59  ;;  %v618_v4 = vadd.f32 %v544_v7, %v65_v60 }
  0x12   :  { %452 = vpow2.f32 %v120_v48  ;;  %v621_v5 = vadd.f32 %v544_v7, %v66_v61  ;;  %v101_v6 = vmin.f32 %v605_v62, 20.0  ;;  %v124_v8 = vmul.f32 1.442695, %v100_v63 }
  0x13   :  { %454 = vpow2.f32 %v122_v49  ;;  %v102_v9 = vmin.f32 %v609_v0, 20.0  ;;  %v103_v10 = vmin.f32 %v615_v3, 20.0  ;;  %v104_v11 = vmin.f32 %v618_v4, 20.0 }
  0x14   :  { %v105_v12 = vmin.f32 %v621_v5, 20.0  ;;  %v384_v13 = vunpack.c.l.bf16 %v432_v2  ;;  %456 = vpow2.f32 %v124_v8  ;;  %v126_v14 = vmul.f32 1.442695, %v101_v6 }
  0x15   :  { %v128_v15 = vmul.f32 1.442695, %v102_v9  ;;  %v385_v16 = vunpack.c.h.bf16 %v432_v2  ;;  %v130_v18 = vmul.f32 1.442695, %v103_v10  ;;  %v132_v19 = vmul.f32 1.442695, %v104_v11 }
  0x16   :  { %v441_v17 = vpop.eup %440  ;;  %v67_v22 = vmul.f32 %v384_v13, %v530_v1  ;;  %458 = vpow2.f32 %v126_v14  ;;  %v134_v29 = vmul.f32 1.442695, %v105_v12 }
  0x17   :  { %v443_v23 = vpop.eup %442  ;;  %v140_v28 = vadd.f32 2.0, %v441_v17  ;;  %v68_v32 = vmul.f32 %v385_v16, %v530_v1  ;;  %460 = vpow2.f32 %v128_v15 }
  0x18   :  { %v445_v33 = vpop.eup %444  ;;  %v141_v34 = vadd.f32 2.0, %v443_v23  ;;  %v631_v35 = vadd.f32 %v544_v7, %v67_v22  ;;  %462 = vpow2.f32 %v130_v18 }
  0x19   :  { %v447_v36 = vpop.eup %446  ;;  %v633_v37 = vmul.f32 %v441_v17, %v140_v28  ;;  %v142_v38 = vadd.f32 2.0, %v445_v33  ;;  %464 = vpow2.f32 %v132_v19  ;;  %v638_v42 = vadd.f32 %v544_v7, %v68_v32 }
  0x1a   :  { %v449_v39 = vpop.eup %448  ;;  %v635_v40 = vmul.f32 %v443_v23, %v141_v34  ;;  %v143_v41 = vadd.f32 2.0, %v447_v36  ;;  %466 = vpow2.f32 %v134_v29  ;;  %v106_v50 = vmin.f32 %v631_v35, 20.0 }
  0x1b   :  { %v451_v1 = vpop.eup %450  ;;  %v172_v43 = vadd.f32 2.0, %v633_v37  ;;  %v641_v44 = vmul.f32 %v445_v33, %v142_v38  ;;  %v144_v45 = vadd.f32 2.0, %v449_v39  ;;  %v107_v61 = vmin.f32 %v638_v42, 20.0 }
  0x1c   :  { %v453_v46 = vpop.eup %452  ;;  %v173_v47 = vadd.f32 2.0, %v635_v40  ;;  %v644_v48 = vmul.f32 %v447_v36, %v143_v41  ;;  %v145_v49 = vadd.f32 2.0, %v451_v1  ;;  %v136_v10 = vmul.f32 1.442695, %v106_v50 }
  0x1d   :  { %v455_v51 = vpop.eup %454  ;;  %468 = vrcp.f32 %v172_v43  ;;  %v174_v7 = vadd.f32 2.0, %v641_v44  ;;  %v648_v52 = vmul.f32 %v449_v39, %v144_v45  ;;  %v146_v53 = vadd.f32 2.0, %v453_v46 }
  0x1e   :  { %470 = vrcp.f32 %v173_v47  ;;  %v175_v54 = vadd.f32 2.0, %v644_v48  ;;  %v651_v55 = vmul.f32 %v451_v1, %v145_v49  ;;  %v147_v56 = vadd.f32 2.0, %v455_v51  ;;  %v457_v58 = vpop.eup %456 }
  0x1f   :  { %472 = vrcp.f32 %v174_v7  ;;  %v176_v59 = vadd.f32 2.0, %v648_v52  ;;  %v654_v60 = vmul.f32 %v453_v46, %v146_v53  ;;  %v148_v6 = vadd.f32 2.0, %v457_v58 }
  0x20   :  { %474 = vrcp.f32 %v175_v54  ;;  %v177_v63 = vadd.f32 2.0, %v651_v55  ;;  %v658_v2 = vmul.f32 %v455_v51, %v147_v56  ;;  %v459_v8 = vpop.eup %458  ;;  %v138_v17 = vmul.f32 1.442695, %v107_v61 }
  0x21   :  { %476 = vrcp.f32 %v176_v59  ;;  %v178_v9 = vadd.f32 2.0, %v654_v60  ;;  %v461_v11 = vpop.eup %460  ;;  %v149_v13 = vadd.f32 2.0, %v459_v8  ;;  %v662_v14 = vmul.f32 %v457_v58, %v148_v6 }
  0x22   :  { %478 = vrcp.f32 %v177_v63  ;;  %v179_v12 = vadd.f32 2.0, %v658_v2  ;;  %v463_v15 = vpop.eup %462  ;;  %v150_v16 = vadd.f32 2.0, %v461_v11 }
  0x23   :  { %480 = vrcp.f32 %v178_v9  ;;  %v465_v18 = vpop.eup %464  ;;  %v664_v19 = vmul.f32 %v459_v8, %v149_v13  ;;  %v180_v22 = vadd.f32 2.0, %v662_v14  ;;  %v151_v23 = vadd.f32 2.0, %v463_v15 }
  0x24   :  { %482 = vrcp.f32 %v179_v12  ;;  %v467_v28 = vpop.eup %466  ;;  %v667_v29 = vmul.f32 %v461_v11, %v150_v16  ;;  %v152_v32 = vadd.f32 2.0, %v465_v18 }
  0x25   :  { %484 = vpow2.f32 %v136_v10  ;;  %v181_v33 = vadd.f32 2.0, %v664_v19  ;;  %v670_v34 = vmul.f32 %v463_v15, %v151_v23  ;;  %v153_v36 = vadd.f32 2.0, %v467_v28 }
  0x26   :  { %486 = vrcp.f32 %v180_v22  ;;  %v182_v39 = vadd.f32 2.0, %v667_v29  ;;  %v673_v41 = vmul.f32 %v465_v18, %v152_v32 }
  0x27   :  { %v469_v38 = vpop.eup %468  ;;  %488 = vpow2.f32 %v138_v17  ;;  %v183_v45 = vadd.f32 2.0, %v670_v34  ;;  %v169_v46 = vmul.f32 %v467_v28, %v153_v36 }
  0x28   :  { %v471_v1 = vpop.eup %470  ;;  %v189_v43 = vmul.f32 %v469_v38, %v633_v37  ;;  %490 = vrcp.f32 %v181_v33  ;;  %v184_v50 = vadd.f32 2.0, %v673_v41 }
  0x29   :  { %v473_v47 = vpop.eup %472  ;;  %v191_v49 = vmul.f32 %v471_v1, %v635_v40  ;;  %492 = vrcp.f32 %v182_v39  ;;  %v185_v54 = vadd.f32 2.0, %v169_v46 }
  0x2a   :  { %v475_v51 = vpop.eup %474  ;;  %v220_v7 = vmul.f32 %v189_v43, %v553_v20  ;;  %v193_v53 = vmul.f32 %v473_v47, %v641_v44  ;;  %494 = vrcp.f32 %v183_v45 }
  0x2b   :  { %v477_v56 = vpop.eup %476  ;;  %v221_v37 = vmul.f32 %v191_v49, %v556_v21  ;;  %v195_v58 = vmul.f32 %v475_v51, %v644_v48  ;;  %496 = vrcp.f32 %v184_v50 }
  0x2c   :  { %v479_v59 = vpop.eup %478  ;;  %v222_v61 = vmul.f32 %v193_v53, %v561_v24  ;;  %v197_v40 = vmul.f32 %v477_v56, %v648_v52  ;;  %498 = vrcp.f32 %v185_v54 }
  0x2d   :  { %v481_v63 = vpop.eup %480  ;;  %v389_v6 = vpack.c.bf16 %v221_v37, %v220_v7  ;;  %v223_v20 = vmul.f32 %v195_v58, %v564_v25  ;;  %v199_v44 = vmul.f32 %v479_v59, %v651_v55 }
  0x2e   :  { %v483_v8 = vpop.eup %482  ;;  %v224_v9 = vmul.f32 %v197_v40, %v567_v26  ;;  %v201_v21 = vmul.f32 %v481_v63, %v654_v60 }
  0x2f   :  { %v485_v10 = vpop.eup %484  ;;  %390 = vst [vmem:[%s733_s3] sm:$0xff] %v389_v6   ;;  %v394_v24 = vpack.c.bf16 %v223_v20, %v222_v61  ;;  %v225_v48 = vmul.f32 %v199_v44, %v570_v27  ;;  %v203_v52 = vmul.f32 %v483_v8, %v658_v2 }
  0x30   :  { %v487_v11 = vpop.eup %486  ;;  %v226_v25 = vmul.f32 %v201_v21, %v575_v30  ;;  %v154_v12 = vadd.f32 2.0, %v485_v10 }
  0x31   :  { %v489_v55 = vpop.eup %488  ;;  %433 = vst [vmem:[%s733_s3 + $0x8] sm:$0xff] %v394_v24   ;;  %v399_v26 = vpack.c.bf16 %v225_v48, %v224_v9  ;;  %v227_v60 = vmul.f32 %v203_v52, %v578_v31  ;;  %v205_v13 = vmul.f32 %v487_v11, %v662_v14 }
  0x32   :  { %v491_v15 = vpop.eup %490  ;;  %v155_v16 = vadd.f32 2.0, %v489_v55  ;;  %v170_v17 = vmul.f32 %v485_v10, %v154_v12 }
  0x33   :  { %v493_v27 = vpop.eup %492  ;;  %434 = vst [vmem:[%s733_s3 + $0x10] sm:$0xff] %v399_v26   ;;  %v404_v30 = vpack.c.bf16 %v227_v60, %v226_v25  ;;  %v207_v2 = vmul.f32 %v491_v15, %v664_v19  ;;  %v228_v18 = vmul.f32 %v205_v13, %v598_v57 }
  0x34   :  { %v495_v22 = vpop.eup %494  ;;  %v209_v23 = vmul.f32 %v493_v27, %v667_v29  ;;  %v171_v28 = vmul.f32 %v489_v55, %v155_v16  ;;  %v186_v31 = vadd.f32 2.0, %v170_v17 }
  0x35   :  { %v497_v32 = vpop.eup %496  ;;  %435 = vst [vmem:[%s733_s3 + $0x18] sm:$0xff] %v404_v30   ;;  %v229_v14 = vmul.f32 %v207_v2, %v605_v62  ;;  %v211_v33 = vmul.f32 %v495_v22, %v670_v34 }
  0x36   :  { %v499_v36 = vpop.eup %498  ;;  %v230_v38 = vmul.f32 %v209_v23, %v609_v0  ;;  %v213_v19 = vmul.f32 %v497_v32, %v673_v41  ;;  %v187_v57 = vadd.f32 2.0, %v171_v28  ;;  %500 = vrcp.f32 %v186_v31 }
  0x37   :  { %v409_v39 = vpack.c.bf16 %v229_v14, %v228_v18  ;;  %v231_v29 = vmul.f32 %v211_v33, %v615_v3  ;;  %v215_v1 = vmul.f32 %v499_v36, %v169_v46 }
  0x38   :  { %v232_v43 = vmul.f32 %v213_v19, %v618_v4  ;;  %502 = vrcp.f32 %v187_v57 }
  0x39   :  { %436 = vst [vmem:[%s733_s3 + $0x20] sm:$0xff] %v409_v39   ;;  %v414_v62 = vpack.c.bf16 %v231_v29, %v230_v38  ;;  %v233_v34 = vmul.f32 %v215_v1, %v621_v5 }
  0x3b   :  { %437 = vst [vmem:[%s733_s3 + $0x28] sm:$0xff] %v414_v62   ;;  %v419_v0 = vpack.c.bf16 %v233_v34, %v232_v43 }
  0x3d   :  { %438 = vst [vmem:[%s733_s3 + $0x30] sm:$0xff] %v419_v0  }
  0x40   :  { %v501_v3 = vpop.eup %500 }
  0x41   :  { %v217_v41 = vmul.f32 %v501_v3, %v170_v17 }
  0x42   :  { %v503_v4 = vpop.eup %502 }
  0x43   :  { %v219_v45 = vmul.f32 %v503_v4, %v171_v28  ;;  %v234_v46 = vmul.f32 %v217_v41, %v631_v35 }
  0x45   :  { %v235_v47 = vmul.f32 %v219_v45, %v638_v42 }
  0x47   :  { %v424_v49 = vpack.c.bf16 %v235_v47, %v234_v46 }
  0x49   :  { %439 = vst [vmem:[%s733_s3 + $0x38] sm:$0xff] %v424_v49  }

// kernel: seg_to_seg_forward.17
= control target key start
LH: loop header
LB: loop body
LE: loop exit
PB: predicated region body
PF: predicated region fallthrough
CT: control target
= control target key end

     0   :  { %s879_s0 = inlined_call_operand.vmem [shape: bf16[128,128], index: 0, kind: input, shape index: {}]   ;;  %s880_s1 = inlined_call_operand.vmem [shape: f32[1,128], index: 1, kind: input, shape index: {}]   ;;  %s881_s2 = inlined_call_operand.vmem [shape: f32[1,128], index: 2, kind: input, shape index: {}]   ;;  %s882_s3 = inlined_call_operand.vmem [shape: bf16[128,128], index: 3, kind: input, shape index: {}]   ;;  %s883_s4 = inlined_call_operand.vmem [shape: bf16[128,128], index: 4, kind: output, shape index: {}]  }
   0x1   :  { %v406_v0 = vld [vmem:[%s879_s0] sm:$0xff]   ;;  %v509_v4 = vld [vmem:[%s879_s0 + $0x8] sm:$0xff]   ;;  %v510_v8 = vld [vmem:[%s879_s0 + $0x10] sm:$0xff]  }
   0x2   :  { %v625_v1 = vld [vmem:[%s880_s1] ss:$0 sm:$0xff]  ;;  %v407_v2 = vunpack.c.l.bf16 %v406_v0  ;;  %v408_v3 = vunpack.c.h.bf16 %v406_v0  ;;  %v411_v6 = vunpack.c.l.bf16 %v509_v4  ;;  %v412_v7 = vunpack.c.h.bf16 %v509_v4  ;;  %v511_v15 = vld [vmem:[%s879_s0 + $0x18] sm:$0xff]   ;;  %v513_v46 = vld [vmem:[%s879_s0 + $0x28] sm:$0xff]  }
   0x3   :  { %v633_v5 = vld [vmem:[%s881_s2] ss:$0 sm:$0xff]  ;;  %v415_v13 = vunpack.c.l.bf16 %v510_v8  ;;  %v416_v14 = vunpack.c.h.bf16 %v510_v8  ;;  %v419_v24 = vunpack.c.l.bf16 %v511_v15  ;;  %v420_v25 = vunpack.c.h.bf16 %v511_v15  ;;  %v514_v55 = vld [vmem:[%s879_s0 + $0x30] sm:$0xff]   ;;  %v701_v57 = vld [vmem:[%s882_s3 + $0x8] sm:$0xff]  }
   0x4   :  { %v56_v9 = vmul.f32 %v407_v2, %v625_v1  ;;  %v57_v10 = vmul.f32 %v408_v3, %v625_v1  ;;  %v58_v11 = vmul.f32 %v411_v6, %v625_v1  ;;  %v59_v12 = vmul.f32 %v412_v7, %v625_v1  ;;  %v512_v34 = vld [vmem:[%s879_s0 + $0x20] sm:$0xff]   ;;  %v714_v62 = vld [vmem:[%s879_s0 + $0x38] sm:$0xff]  }
   0x5   :  { %v60_v20 = vmul.f32 %v415_v13, %v625_v1  ;;  %v61_v21 = vmul.f32 %v416_v14, %v625_v1  ;;  %v62_v32 = vmul.f32 %v419_v24, %v625_v1  ;;  %v63_v33 = vmul.f32 %v420_v25, %v625_v1  ;;  %v690_v47 = vld [vmem:[%s882_s3] sm:$0xff]  }
   0x6   :  { %v646_v16 = vadd.f32 %v633_v5, %v56_v9  ;;  %v649_v17 = vadd.f32 %v633_v5, %v57_v10  ;;  %v652_v18 = vadd.f32 %v633_v5, %v58_v11  ;;  %v655_v19 = vadd.f32 %v633_v5, %v59_v12 }
   0x7   :  { %v664_v28 = vadd.f32 %v633_v5, %v60_v20  ;;  %v667_v29 = vadd.f32 %v633_v5, %v61_v21  ;;  %v677_v39 = vadd.f32 %v633_v5, %v62_v32  ;;  %v680_v40 = vadd.f32 %v633_v5, %v63_v33 }
   0x8   :  { %v95_v22 = vmin.f32 %v646_v16, 20.0  ;;  %v96_v23 = vmin.f32 %v649_v17, 20.0  ;;  %v97_v26 = vmin.f32 %v652_v18, 20.0  ;;  %v98_v27 = vmin.f32 %v655_v19, 20.0 }
   0x9   :  { %v99_v37 = vmin.f32 %v664_v28, 20.0  ;;  %v100_v38 = vmin.f32 %v667_v29, 20.0  ;;  %v101_v43 = vmin.f32 %v677_v39, 20.0  ;;  %v102_v44 = vmin.f32 %v680_v40, 20.0 }
   0xa   :  { %v111_v30 = vmul.f32 1.442695, %v95_v22  ;;  %v113_v31 = vmul.f32 1.442695, %v96_v23  ;;  %v115_v35 = vmul.f32 1.442695, %v97_v26  ;;  %v423_v45 = vunpack.c.l.bf16 %v512_v34 }
   0xb   :  { %v117_v36 = vmul.f32 1.442695, %v98_v27  ;;  %v119_v41 = vmul.f32 1.442695, %v99_v37  ;;  %v121_v42 = vmul.f32 1.442695, %v100_v38  ;;  %v424_v48 = vunpack.c.h.bf16 %v512_v34 }
   0xc   :  { %530 = vpow2.f32 %v111_v30  ;;  %v123_v49 = vmul.f32 1.442695, %v101_v43  ;;  %v125_v50 = vmul.f32 1.442695, %v102_v44  ;;  %v64_v51 = vmul.f32 %v423_v45, %v625_v1 }
   0xd   :  { %532 = vpow2.f32 %v113_v31  ;;  %v65_v52 = vmul.f32 %v424_v48, %v625_v1  ;;  %v427_v53 = vunpack.c.l.bf16 %v513_v46  ;;  %v428_v54 = vunpack.c.h.bf16 %v513_v46 }
   0xe   :  { %534 = vpow2.f32 %v115_v35  ;;  %v439_v56 = vunpack.c.l.bf16 %v690_v47  ;;  %v704_v58 = vadd.f32 %v633_v5, %v64_v51  ;;  %v440_v63 = vunpack.c.h.bf16 %v690_v47 }
   0xf   :  { %536 = vpow2.f32 %v117_v36  ;;  %v707_v59 = vadd.f32 %v633_v5, %v65_v52  ;;  %v66_v60 = vmul.f32 %v427_v53, %v625_v1  ;;  %v67_v61 = vmul.f32 %v428_v54, %v625_v1 }
  0x10   :  { %538 = vpow2.f32 %v119_v41  ;;  %v103_v0 = vmin.f32 %v704_v58, 20.0  ;;  %v431_v2 = vunpack.c.l.bf16 %v514_v55  ;;  %v432_v3 = vunpack.c.h.bf16 %v514_v55 }
  0x11   :  { %540 = vpow2.f32 %v121_v42  ;;  %v443_v4 = vunpack.c.l.bf16 %v701_v57  ;;  %v104_v6 = vmin.f32 %v707_v59, 20.0  ;;  %v721_v7 = vadd.f32 %v633_v5, %v66_v60 }
  0x12   :  { %542 = vpow2.f32 %v123_v49  ;;  %v724_v8 = vadd.f32 %v633_v5, %v67_v61  ;;  %v127_v10 = vmul.f32 1.442695, %v103_v0  ;;  %v68_v11 = vmul.f32 %v431_v2, %v625_v1 }
  0x13   :  { %544 = vpow2.f32 %v125_v50  ;;  %v69_v12 = vmul.f32 %v432_v3, %v625_v1  ;;  %v435_v13 = vunpack.c.l.bf16 %v714_v62  ;;  %v129_v20 = vmul.f32 1.442695, %v104_v6  ;;  %v763_v6 = vld [vmem:[%s882_s3 + $0x10] sm:$0xff]  }
  0x14   :  { %v105_v21 = vmin.f32 %v721_v7, 20.0  ;;  %v106_v22 = vmin.f32 %v724_v8, 20.0  ;;  %546 = vpow2.f32 %v127_v10  ;;  %v732_v25 = vadd.f32 %v633_v5, %v68_v11 }
  0x15   :  { %v735_v26 = vadd.f32 %v633_v5, %v69_v12  ;;  %548 = vpow2.f32 %v129_v20  ;;  %v444_v2 = vunpack.c.h.bf16 %v701_v57  ;;  %v436_v12 = vunpack.c.h.bf16 %v714_v62  ;;  %v773_v20 = vld [vmem:[%s882_s3 + $0x18] sm:$0xff]  }
  0x16   :  { %v531_v9 = vpop.eup %530  ;;  %v131_v32 = vmul.f32 1.442695, %v105_v21  ;;  %v133_v36 = vmul.f32 1.442695, %v106_v22  ;;  %v107_v37 = vmin.f32 %v732_v25, 20.0  ;;  %v70_v22 = vmul.f32 %v435_v13, %v625_v1 }
  0x17   :  { %v533_v14 = vpop.eup %532  ;;  %v143_v15 = vadd.f32 2.0, %v531_v9  ;;  %v108_v0 = vmin.f32 %v735_v26, 20.0  ;;  %v448_v62 = vunpack.c.h.bf16 %v763_v6 }
  0x18   :  { %v535_v23 = vpop.eup %534  ;;  %v144_v24 = vadd.f32 2.0, %v533_v14  ;;  %550 = vpow2.f32 %v131_v32  ;;  %v135_v11 = vmul.f32 1.442695, %v107_v37 }
  0x19   :  { %v537_v27 = vpop.eup %536  ;;  %v737_v30 = vmul.f32 %v531_v9, %v143_v15  ;;  %v145_v31 = vadd.f32 2.0, %v535_v23  ;;  %552 = vpow2.f32 %v133_v36  ;;  %v137_v21 = vmul.f32 1.442695, %v108_v0 }
  0x1a   :  { %v539_v33 = vpop.eup %538  ;;  %v739_v34 = vmul.f32 %v533_v14, %v144_v24  ;;  %v146_v35 = vadd.f32 2.0, %v537_v27  ;;  %v447_v24 = vunpack.c.l.bf16 %v763_v6  ;;  %v451_v36 = vunpack.c.l.bf16 %v773_v20 }
  0x1b   :  { %v541_v38 = vpop.eup %540  ;;  %v175_v41 = vadd.f32 2.0, %v737_v30  ;;  %v743_v42 = vmul.f32 %v535_v23, %v145_v31  ;;  %v147_v43 = vadd.f32 2.0, %v539_v33  ;;  %v71_v31 = vmul.f32 %v436_v12, %v625_v1 }
  0x1c   :  { %v543_v44 = vpop.eup %542  ;;  %v176_v45 = vadd.f32 2.0, %v739_v34  ;;  %v746_v46 = vmul.f32 %v537_v27, %v146_v35  ;;  %v148_v48 = vadd.f32 2.0, %v541_v38 }
  0x1d   :  { %v545_v49 = vpop.eup %544  ;;  %554 = vrcp.f32 %v175_v41  ;;  %v177_v50 = vadd.f32 2.0, %v743_v42  ;;  %v749_v51 = vmul.f32 %v539_v33, %v147_v43  ;;  %v149_v52 = vadd.f32 2.0, %v543_v44 }
  0x1e   :  { %556 = vrcp.f32 %v176_v45  ;;  %v178_v53 = vadd.f32 2.0, %v746_v46  ;;  %v752_v54 = vmul.f32 %v541_v38, %v148_v48  ;;  %v150_v55 = vadd.f32 2.0, %v545_v49  ;;  %v547_v14 = vpop.eup %546 }
  0x1f   :  { %558 = vrcp.f32 %v177_v50  ;;  %v179_v60 = vadd.f32 2.0, %v749_v51  ;;  %v755_v61 = vmul.f32 %v543_v44, %v149_v52  ;;  %v549_v23 = vpop.eup %548  ;;  %v151_v27 = vadd.f32 2.0, %v547_v14 }
  0x20   :  { %560 = vrcp.f32 %v178_v53  ;;  %v180_v3 = vadd.f32 2.0, %v752_v54  ;;  %v765_v9 = vmul.f32 %v545_v49, %v150_v55  ;;  %v152_v32 = vadd.f32 2.0, %v549_v23 }
  0x21   :  { %562 = vrcp.f32 %v179_v60  ;;  %v181_v10 = vadd.f32 2.0, %v755_v61  ;;  %v780_v33 = vadd.f32 %v633_v5, %v70_v22  ;;  %v783_v37 = vmul.f32 %v547_v14, %v151_v27 }
  0x22   :  { %564 = vrcp.f32 %v180_v3  ;;  %v182_v15 = vadd.f32 2.0, %v765_v9  ;;  %v551_v35 = vpop.eup %550  ;;  %v786_v13 = vadd.f32 %v633_v5, %v71_v31  ;;  %v788_v41 = vmul.f32 %v549_v23, %v152_v32 }
  0x23   :  { %566 = vrcp.f32 %v181_v10  ;;  %v553_v38 = vpop.eup %552  ;;  %v153_v1 = vadd.f32 2.0, %v551_v35  ;;  %v109_v43 = vmin.f32 %v780_v33, 20.0  ;;  %v452_v45 = vunpack.c.h.bf16 %v773_v20 }
  0x24   :  { %568 = vrcp.f32 %v182_v15  ;;  %v183_v48 = vadd.f32 2.0, %v783_v37  ;;  %v154_v49 = vadd.f32 2.0, %v553_v38  ;;  %v110_v50 = vmin.f32 %v786_v13, 20.0 }
  0x25   :  { %570 = vpow2.f32 %v135_v11  ;;  %v184_v5 = vadd.f32 2.0, %v788_v41  ;;  %v796_v55 = vmul.f32 %v551_v35, %v153_v1  ;;  %v139_v60 = vmul.f32 1.442695, %v109_v43 }
  0x26   :  { %572 = vpow2.f32 %v137_v21  ;;  %v799_v10 = vmul.f32 %v553_v38, %v154_v49  ;;  %v141_v11 = vmul.f32 1.442695, %v110_v50 }
  0x27   :  { %v555_v44 = vpop.eup %554  ;;  %574 = vrcp.f32 %v183_v48 }
  0x28   :  { %v557_v52 = vpop.eup %556  ;;  %v192_v53 = vmul.f32 %v555_v44, %v737_v30  ;;  %576 = vrcp.f32 %v184_v5  ;;  %v185_v30 = vadd.f32 2.0, %v796_v55  ;;  %v186_v27 = vadd.f32 2.0, %v799_v10 }
  0x29   :  { %v559_v0 = vpop.eup %558  ;;  %v194_v3 = vmul.f32 %v557_v52, %v739_v34  ;;  %578 = vpow2.f32 %v139_v60 }
  0x2a   :  { %v561_v12 = vpop.eup %560  ;;  %v223_v14 = vmul.f32 %v192_v53, %v646_v16  ;;  %v196_v15 = vmul.f32 %v559_v0, %v743_v42  ;;  %580 = vrcp.f32 %v185_v30  ;;  %v520_v53 = vld [vmem:[%s882_s3 + $0x28] sm:$0xff]  }
  0x2b   :  { %v563_v21 = vpop.eup %562  ;;  %v224_v22 = vmul.f32 %v194_v3, %v649_v17  ;;  %v198_v23 = vmul.f32 %v561_v12, %v746_v46  ;;  %582 = vrcp.f32 %v186_v27  ;;  %v459_v30 = vunpack.c.l.bf16 %v520_v53 }
  0x2c   :  { %v565_v34 = vpop.eup %564  ;;  %v271_v31 = vadd.f32 %v439_v56, %v223_v14  ;;  %v225_v32 = vmul.f32 %v196_v15, %v652_v18  ;;  %v200_v16 = vmul.f32 %v563_v21, %v749_v51  ;;  %584 = vpow2.f32 %v141_v11 }
  0x2d   :  { %v567_v42 = vpop.eup %566  ;;  %v272_v35 = vadd.f32 %v440_v63, %v224_v22  ;;  %v226_v17 = vmul.f32 %v198_v23, %v655_v19  ;;  %v202_v46 = vmul.f32 %v565_v34, %v752_v54  ;;  %v460_v23 = vunpack.c.h.bf16 %v520_v53 }
  0x2e   :  { %v569_v38 = vpop.eup %568  ;;  %v273_v1 = vadd.f32 %v443_v4, %v225_v32  ;;  %v227_v56 = vmul.f32 %v200_v16, %v664_v28  ;;  %v204_v18 = vmul.f32 %v567_v42, %v755_v61 }
  0x2f   :  { %v571_v51 = vpop.eup %570  ;;  %v472_v43 = vpack.c.bf16 %v272_v35, %v271_v31  ;;  %v274_v47 = vadd.f32 %v444_v2, %v226_v17  ;;  %v228_v63 = vmul.f32 %v202_v46, %v667_v29  ;;  %v206_v19 = vmul.f32 %v569_v38, %v765_v9  ;;  %v519_v29 = vld [vmem:[%s882_s3 + $0x20] sm:$0xff]   ;;  %v521_v46 = vld [vmem:[%s882_s3 + $0x30] sm:$0xff]  }
  0x30   :  { %v573_v54 = vpop.eup %572  ;;  %v275_v44 = vadd.f32 %v447_v24, %v227_v56  ;;  %v229_v4 = vmul.f32 %v204_v18, %v677_v39  ;;  %v155_v48 = vadd.f32 2.0, %v571_v51  ;;  %v455_v52 = vunpack.c.l.bf16 %v519_v29 }
  0x31   :  { %473 = vst [vmem:[%s883_s4] sm:$0xff] %v472_v43   ;;  %v477_v28 = vpack.c.bf16 %v274_v47, %v273_v1  ;;  %v276_v57 = vadd.f32 %v448_v62, %v228_v63  ;;  %v230_v61 = vmul.f32 %v206_v19, %v680_v40  ;;  %v156_v2 = vadd.f32 2.0, %v573_v54  ;;  %v575_v24 = vpop.eup %574  ;;  %v522_v63 = vld [vmem:[%s882_s3 + $0x38] sm:$0xff]  }
  0x32   :  { %v277_v9 = vadd.f32 %v451_v36, %v229_v4  ;;  %v171_v39 = vmul.f32 %v571_v51, %v155_v48  ;;  %v577_v62 = vpop.eup %576  ;;  %v208_v40 = vmul.f32 %v575_v24, %v783_v37  ;;  %v456_v0 = vunpack.c.h.bf16 %v519_v29 }
  0x33   :  { %523 = vst [vmem:[%s883_s4 + $0x8] sm:$0xff] %v477_v28   ;;  %v482_v49 = vpack.c.bf16 %v276_v57, %v275_v44  ;;  %v278_v50 = vadd.f32 %v452_v45, %v230_v61  ;;  %v172_v6 = vmul.f32 %v573_v54, %v156_v2  ;;  %v579_v20 = vpop.eup %578  ;;  %v210_v60 = vmul.f32 %v577_v62, %v788_v41 }
  0x34   :  { %v187_v5 = vadd.f32 2.0, %v171_v39  ;;  %v581_v3 = vpop.eup %580  ;;  %v231_v11 = vmul.f32 %v208_v40, %v704_v58  ;;  %v157_v37 = vadd.f32 2.0, %v579_v20  ;;  %v463_v1 = vunpack.c.l.bf16 %v521_v46 }
  0x35   :  { %524 = vst [vmem:[%s883_s4 + $0x10] sm:$0xff] %v482_v49   ;;  %v487_v36 = vpack.c.bf16 %v278_v50, %v277_v9  ;;  %v188_v45 = vadd.f32 2.0, %v172_v6  ;;  %v583_v12 = vpop.eup %582  ;;  %v232_v14 = vmul.f32 %v210_v60, %v707_v59  ;;  %v212_v15 = vmul.f32 %v581_v3, %v796_v55 }
  0x36   :  { %586 = vrcp.f32 %v187_v5  ;;  %v585_v21 = vpop.eup %584  ;;  %v279_v41 = vadd.f32 %v455_v52, %v231_v11  ;;  %v214_v22 = vmul.f32 %v583_v12, %v799_v10  ;;  %v173_v27 = vmul.f32 %v579_v20, %v157_v37 }
  0x37   :  { %525 = vst [vmem:[%s883_s4 + $0x18] sm:$0xff] %v487_v36   ;;  %588 = vrcp.f32 %v188_v45  ;;  %v280_v58 = vadd.f32 %v456_v0, %v232_v14  ;;  %v233_v34 = vmul.f32 %v212_v15, %v721_v7  ;;  %v158_v31 = vadd.f32 2.0, %v585_v21 }
  0x38   :  { %v234_v32 = vmul.f32 %v214_v22, %v724_v8  ;;  %v189_v16 = vadd.f32 2.0, %v173_v27  ;;  %v464_v18 = vunpack.c.h.bf16 %v521_v46  ;;  %v467_v48 = vunpack.c.l.bf16 %v522_v63 }
  0x39   :  { %v492_v42 = vpack.c.bf16 %v280_v58, %v279_v41  ;;  %v281_v35 = vadd.f32 %v459_v30, %v233_v34  ;;  %v174_v59 = vmul.f32 %v585_v21, %v158_v31  ;;  %v468_v61 = vunpack.c.h.bf16 %v522_v63 }
  0x3a   :  { %v282_v17 = vadd.f32 %v460_v23, %v234_v32  ;;  %590 = vrcp.f32 %v189_v16 }
  0x3b   :  { %526 = vst [vmem:[%s883_s4 + $0x20] sm:$0xff] %v492_v42   ;;  %v190_v55 = vadd.f32 2.0, %v174_v59 }
  0x3c   :  { %v497_v10 = vpack.c.bf16 %v282_v17, %v281_v35 }
  0x3d   :  { %592 = vrcp.f32 %v190_v55 }
  0x3e   :  { %527 = vst [vmem:[%s883_s4 + $0x28] sm:$0xff] %v497_v10  }
  0x40   :  { %v587_v7 = vpop.eup %586 }
  0x41   :  { %v589_v8 = vpop.eup %588  ;;  %v216_v38 = vmul.f32 %v587_v7, %v171_v39 }
  0x42   :  { %v218_v56 = vmul.f32 %v589_v8, %v172_v6 }
  0x43   :  { %v235_v51 = vmul.f32 %v216_v38, %v732_v25 }
  0x44   :  { %v236_v43 = vmul.f32 %v218_v56, %v735_v26  ;;  %v591_v19 = vpop.eup %590 }
  0x45   :  { %v283_v47 = vadd.f32 %v463_v1, %v235_v51  ;;  %v220_v44 = vmul.f32 %v591_v19, %v173_v27 }
  0x46   :  { %v284_v54 = vadd.f32 %v464_v18, %v236_v43 }
  0x47   :  { %v593_v28 = vpop.eup %592  ;;  %v237_v57 = vmul.f32 %v220_v44, %v780_v33 }
  0x48   :  { %v502_v4 = vpack.c.bf16 %v284_v54, %v283_v47  ;;  %v222_v25 = vmul.f32 %v593_v28, %v174_v59 }
  0x49   :  { %v285_v29 = vadd.f32 %v467_v48, %v237_v57 }
  0x4a   :  { %528 = vst [vmem:[%s883_s4 + $0x30] sm:$0xff] %v502_v4   ;;  %v238_v26 = vmul.f32 %v222_v25, %v786_v13 }
  0x4c   :  { %v286_v2 = vadd.f32 %v468_v61, %v238_v26 }
  0x4e   :  { %v507_v9 = vpack.c.bf16 %v286_v2, %v285_v29 }
  0x50   :  { %529 = vst [vmem:[%s883_s4 + $0x38] sm:$0xff] %v507_v9  }

// kernel: seg_to_seg_forward.18
= control target key start
LH: loop header
LB: loop body
LE: loop exit
PB: predicated region body
PF: predicated region fallthrough
CT: control target
= control target key end

     0   :  { %s602_s1 = inlined_call_operand.vmem [shape: bf16[128,128], index: 1, kind: input, shape index: {}]   ;;  %s603_s0 = inlined_call_operand.vmem [shape: bf16[128,128], index: 0, kind: input, shape index: {}]   ;;  %s604_s2 = inlined_call_operand.vmem [shape: f32[1,128], index: 2, kind: input, shape index: {}]   ;;  %s605_s3 = inlined_call_operand.vmem [shape: bf16[128,128], index: 3, kind: output, shape index: {}]  }
   0x1   :  { %v491_v0 = vld [vmem:[%s602_s1] sm:$0xff]   ;;  %v492_v1 = vld [vmem:[%s602_s1 + $0x8] sm:$0xff]   ;;  %v493_v2 = vld [vmem:[%s602_s1 + $0x10] sm:$0xff]  }
   0x2   :  { %443 = vmatprep.subr.bf16.mxu0 %v491_v0  ;;  %475 = vmatprep.subr.bf16.mxu1 %v491_v0  ;;  %v494_v3 = vld [vmem:[%s602_s1 + $0x18] sm:$0xff]   ;;  %v499_v4 = vld [vmem:[%s603_s0] sm:$0xff]   ;;  %v496_v7 = vld [vmem:[%s602_s1 + $0x28] sm:$0xff]  }
   0x3   :  { %444 = vmatpush3.bf16.msra.mxu0 %v491_v0  ;;  %483 = vmatpush3.bf16.msra.mxu1 %v491_v0  ;;  %v500_v5 = vld [vmem:[%s603_s0 + $0x20] sm:$0xff]   ;;  %v497_v8 = vld [vmem:[%s602_s1 + $0x30] sm:$0xff]   ;;  %v498_v9 = vld [vmem:[%s602_s1 + $0x38] sm:$0xff]  }
   0x4   :  { %445 = vmatprep.subr.bf16.mxu0 %v492_v1  ;;  %476 = vmatprep.subr.bf16.mxu1 %v492_v1  ;;  %v495_v6 = vld [vmem:[%s602_s1 + $0x20] sm:$0xff]   ;;  %v501_v10 = vld [vmem:[%s603_s0 + $0x8] sm:$0xff]   ;;  %v503_v12 = vld [vmem:[%s603_s0 + $0x10] sm:$0xff]  }
   0x5   :  { %459 = vmatprep.mubr.bf16.mxu0 %v499_v4  ;;  %467 = vmatprep.mubr.bf16.mxu1 %v500_v5  ;;  %v502_v11 = vld [vmem:[%s603_s0 + $0x28] sm:$0xff]   ;;  %v504_v13 = vld [vmem:[%s603_s0 + $0x30] sm:$0xff]   ;;  %v505_v14 = vld [vmem:[%s603_s0 + $0x18] sm:$0xff]  }
   0x6   :  { %v506_v15 = vld [vmem:[%s603_s0 + $0x38] sm:$0xff]   ;;  %v331_v17 = vld [vmem:[%s604_s2] ss:$0 sm:$0xff] }
   0x7   :  { %446 = vmatpush3.bf16.msra.mxu0 %v492_v1  ;;  %484 = vmatpush3.bf16.msra.mxu1 %v492_v1 }
   0x8   :  { %447 = vmatprep.subr.bf16.mxu0 %v493_v2  ;;  %477 = vmatprep.subr.bf16.mxu1 %v493_v2 }
   0xb   :  { %448 = vmatpush3.bf16.msra.mxu0 %v493_v2  ;;  %485 = vmatpush3.bf16.msra.mxu1 %v493_v2 }
   0xc   :  { %449 = vmatprep.subr.bf16.mxu0 %v494_v3  ;;  %478 = vmatprep.subr.bf16.mxu1 %v494_v3 }
   0xf   :  { %450 = vmatpush3.bf16.msra.mxu0 %v494_v3  ;;  %486 = vmatpush3.bf16.msra.mxu1 %v494_v3 }
  0x10   :  { %451 = vmatprep.subr.bf16.mxu0 %v495_v6  ;;  %479 = vmatprep.subr.bf16.mxu1 %v495_v6 }
  0x13   :  { %452 = vmatpush3.bf16.msra.mxu0 %v495_v6  ;;  %487 = vmatpush3.bf16.msra.mxu1 %v495_v6 }
  0x14   :  { %453 = vmatprep.subr.bf16.mxu0 %v496_v7  ;;  %480 = vmatprep.subr.bf16.mxu1 %v496_v7 }
  0x17   :  { %454 = vmatpush3.bf16.msra.mxu0 %v496_v7  ;;  %488 = vmatpush3.bf16.msra.mxu1 %v496_v7 }
  0x18   :  { %455 = vmatprep.subr.bf16.mxu0 %v497_v8  ;;  %481 = vmatprep.subr.bf16.mxu1 %v497_v8 }
  0x1b   :  { %456 = vmatpush3.bf16.msra.mxu0 %v497_v8  ;;  %489 = vmatpush3.bf16.msra.mxu1 %v497_v8 }
  0x1c   :  { %457 = vmatprep.subr.bf16.mxu0 %v498_v9  ;;  %482 = vmatprep.subr.bf16.mxu1 %v498_v9 }
  0x1f   :  { %458 = vmatpush3.bf16.msra.mxu0 %v498_v9  ;;  %490 = vmatpush3.bf16.msra.mxu1 %v498_v9 }
  0x22   :  { %460 = vmatmul.mubr.bf16.vlgmr.msra.gmra.mrb[0].mxu0 %v501_v10  ;;  %468 = vmatmul.mubr.bf16.vlgmr.msra.gmra.mrb[0].mxu1 %v502_v11 }
  0x23   :  { %463 = vmatprep.mubr.bf16.mxu0 %v503_v12  ;;  %471 = vmatprep.mubr.bf16.mxu1 %v504_v13 }
  0x2a   :  { %464 = vmatmul.mubr.bf16.gmra.mrb[4].mxu0 %v505_v14  ;;  %472 = vmatmul.mubr.bf16.gmra.mrb[4].mxu1 %v506_v15 }
  0xf5   :  { %v461_v16 = vpop.f32.mrb[0].mxu0  ;;  %v469_v18 = vpop.f32.mrb[0].mxu1 }
  0xf6   :  { %v184_v19 = vpop.f32.mrb[1].mxu0  ;;  %v216_v20 = vpop.f32.mrb[1].mxu1  ;;  %v193_v23 = vadd.f32 %v461_v16, %v331_v17  ;;  %v225_v24 = vadd.f32 %v469_v18, %v331_v17 }
  0xf7   :  { %v462_v21 = vpop.f32.mrb[2].mxu0  ;;  %v470_v22 = vpop.f32.mrb[2].mxu1  ;;  %v185_v29 = vadd.f32 %v331_v17, %v184_v19  ;;  %v217_v30 = vadd.f32 %v331_v17, %v216_v20 }
  0xf8   :  { %v196_v25 = vadd.f32 %v462_v21, %v331_v17  ;;  %v228_v26 = vadd.f32 %v470_v22, %v331_v17  ;;  %v187_v27 = vpop.f32.mrb[3].mxu0  ;;  %v219_v28 = vpop.f32.mrb[3].mxu1 }
  0xf9   :  { %v188_v31 = vadd.f32 %v331_v17, %v187_v27  ;;  %v220_v32 = vadd.f32 %v331_v17, %v219_v28 }
  0xfa   :  { %v388_v33 = vpack.c.bf16 %v196_v25, %v193_v23  ;;  %v408_v34 = vpack.c.bf16 %v228_v26, %v225_v24 }
  0xfb   :  { %v383_v35 = vpack.c.bf16 %v188_v31, %v185_v29  ;;  %v403_v36 = vpack.c.bf16 %v220_v32, %v217_v30 }
  0xfc   :  { %420 = vst [vmem:[%s605_s3 + $0x8] sm:$0xff] %v388_v33   ;;  %424 = vst [vmem:[%s605_s3 + $0x28] sm:$0xff] %v408_v34  }
  0xfd   :  { %384 = vst [vmem:[%s605_s3] sm:$0xff] %v383_v35   ;;  %423 = vst [vmem:[%s605_s3 + $0x20] sm:$0xff] %v403_v36   ;;  %v465_v37 = vpop.f32.mrb[4].mxu0  ;;  %v473_v38 = vpop.f32.mrb[4].mxu1 }
  0xfe   :  { %v200_v39 = vpop.f32.mrb[5].mxu0  ;;  %v232_v40 = vpop.f32.mrb[5].mxu1  ;;  %v209_v43 = vadd.f32 %v465_v37, %v331_v17  ;;  %v241_v44 = vadd.f32 %v473_v38, %v331_v17 }
  0xff   :  { %v466_v41 = vpop.f32.mrb[6].mxu0  ;;  %v474_v42 = vpop.f32.mrb[6].mxu1  ;;  %v201_v49 = vadd.f32 %v331_v17, %v200_v39  ;;  %v233_v50 = vadd.f32 %v331_v17, %v232_v40 }
 0x100   :  { %v212_v45 = vadd.f32 %v466_v41, %v331_v17  ;;  %v244_v46 = vadd.f32 %v474_v42, %v331_v17  ;;  %v203_v47 = vpop.f32.mrb[7].mxu0  ;;  %v235_v48 = vpop.f32.mrb[7].mxu1 }
 0x101   :  { %v204_v51 = vadd.f32 %v331_v17, %v203_v47  ;;  %v236_v52 = vadd.f32 %v331_v17, %v235_v48 }
 0x102   :  { %v398_v53 = vpack.c.bf16 %v212_v45, %v209_v43  ;;  %v418_v54 = vpack.c.bf16 %v244_v46, %v241_v44 }
 0x103   :  { %v393_v55 = vpack.c.bf16 %v204_v51, %v201_v49  ;;  %v413_v56 = vpack.c.bf16 %v236_v52, %v233_v50 }
 0x104   :  { %422 = vst [vmem:[%s605_s3 + $0x18] sm:$0xff] %v398_v53   ;;  %426 = vst [vmem:[%s605_s3 + $0x38] sm:$0xff] %v418_v54  }
 0x105   :  { %421 = vst [vmem:[%s605_s3 + $0x10] sm:$0xff] %v393_v55   ;;  %425 = vst [vmem:[%s605_s3 + $0x30] sm:$0xff] %v413_v56  }

// kernel: seg_to_seg_forward.21
= control target key start
LH: loop header
LB: loop body
LE: loop exit
PB: predicated region body
PF: predicated region fallthrough
CT: control target
= control target key end

     0   :  { %s1317_s1 = inlined_call_operand.vmem [shape: bf16[128,128], index: 1, kind: input, shape index: {}]   ;;  %s1318_s0 = inlined_call_operand.vmem [shape: bf16[512,128], index: 0, kind: input, shape index: {}]   ;;  %s1319_s2 = inlined_call_operand.vmem [shape: f32[1,128], index: 2, kind: input, shape index: {}]   ;;  %s1320_s3 = inlined_call_operand.vmem [shape: f32[512,128], index: 3, kind: output, shape index: {}]  }
   0x1   :  { %v876_v0 = vld [vmem:[%s1317_s1] sm:$0xff]   ;;  %v877_v1 = vld [vmem:[%s1317_s1 + $0x8] sm:$0xff]   ;;  %v878_v2 = vld [vmem:[%s1317_s1 + $0x10] sm:$0xff]  }
   0x2   :  { %780 = vmatprep.subr.bf16.mxu0 %v876_v0  ;;  %860 = vmatprep.subr.bf16.mxu1 %v876_v0  ;;  %v879_v3 = vld [vmem:[%s1317_s1 + $0x18] sm:$0xff]   ;;  %v884_v4 = vld [vmem:[%s1318_s0] sm:$0xff]   ;;  %v881_v7 = vld [vmem:[%s1317_s1 + $0x28] sm:$0xff]  }
   0x3   :  { %781 = vmatpush3.bf16.msra.mxu0 %v876_v0  ;;  %868 = vmatpush3.bf16.msra.mxu1 %v876_v0  ;;  %v885_v5 = vld [vmem:[%s1318_s0 + $0x80] sm:$0xff]   ;;  %v882_v8 = vld [vmem:[%s1317_s1 + $0x30] sm:$0xff]   ;;  %v883_v9 = vld [vmem:[%s1317_s1 + $0x38] sm:$0xff]  }
   0x4   :  { %782 = vmatprep.subr.bf16.mxu0 %v877_v1  ;;  %861 = vmatprep.subr.bf16.mxu1 %v877_v1  ;;  %v880_v6 = vld [vmem:[%s1317_s1 + $0x20] sm:$0xff]   ;;  %v886_v10 = vld [vmem:[%s1318_s0 + $0x8] sm:$0xff]   ;;  %v888_v12 = vld [vmem:[%s1318_s0 + $0x10] sm:$0xff]  }
   0x5   :  { %796 = vmatprep.mubr.bf16.mxu0 %v884_v4  ;;  %828 = vmatprep.mubr.bf16.mxu1 %v885_v5  ;;  %v887_v11 = vld [vmem:[%s1318_s0 + $0x88] sm:$0xff]   ;;  %v889_v13 = vld [vmem:[%s1318_s0 + $0x90] sm:$0xff]   ;;  %v890_v14 = vld [vmem:[%s1318_s0 + $0x18] sm:$0xff]  }
   0x6   :  { %v891_v15 = vld [vmem:[%s1318_s0 + $0x98] sm:$0xff]   ;;  %v892_v16 = vld [vmem:[%s1318_s0 + $0x20] sm:$0xff]   ;;  %v894_v18 = vld [vmem:[%s1318_s0 + $0x28] sm:$0xff]  }
   0x7   :  { %783 = vmatpush3.bf16.msra.mxu0 %v877_v1  ;;  %869 = vmatpush3.bf16.msra.mxu1 %v877_v1  ;;  %v893_v17 = vld [vmem:[%s1318_s0 + $0xa0] sm:$0xff]   ;;  %v895_v19 = vld [vmem:[%s1318_s0 + $0xa8] sm:$0xff]   ;;  %v896_v20 = vld [vmem:[%s1318_s0 + $0x30] sm:$0xff]  }
   0x8   :  { %784 = vmatprep.subr.bf16.mxu0 %v878_v2  ;;  %862 = vmatprep.subr.bf16.mxu1 %v878_v2  ;;  %v897_v21 = vld [vmem:[%s1318_s0 + $0xb0] sm:$0xff]   ;;  %v898_v22 = vld [vmem:[%s1318_s0 + $0x38] sm:$0xff]   ;;  %v900_v24 = vld [vmem:[%s1318_s0 + $0x40] sm:$0xff]  }
   0x9   :  { %v899_v23 = vld [vmem:[%s1318_s0 + $0xb8] sm:$0xff]   ;;  %v901_v25 = vld [vmem:[%s1318_s0 + $0xc0] sm:$0xff]   ;;  %v902_v26 = vld [vmem:[%s1318_s0 + $0x48] sm:$0xff]  }
   0xa   :  { %v903_v27 = vld [vmem:[%s1318_s0 + $0xc8] sm:$0xff]   ;;  %v904_v28 = vld [vmem:[%s1318_s0 + $0x50] sm:$0xff]   ;;  %v906_v30 = vld [vmem:[%s1318_s0 + $0x58] sm:$0xff]  }
   0xb   :  { %785 = vmatpush3.bf16.msra.mxu0 %v878_v2  ;;  %870 = vmatpush3.bf16.msra.mxu1 %v878_v2  ;;  %v905_v29 = vld [vmem:[%s1318_s0 + $0xd0] sm:$0xff]   ;;  %v907_v31 = vld [vmem:[%s1318_s0 + $0xd8] sm:$0xff]   ;;  %v908_v32 = vld [vmem:[%s1318_s0 + $0x60] sm:$0xff]  }
   0xc   :  { %786 = vmatprep.subr.bf16.mxu0 %v879_v3  ;;  %863 = vmatprep.subr.bf16.mxu1 %v879_v3  ;;  %v909_v33 = vld [vmem:[%s1318_s0 + $0xe0] sm:$0xff]   ;;  %v910_v34 = vld [vmem:[%s1318_s0 + $0x68] sm:$0xff]   ;;  %v912_v36 = vld [vmem:[%s1318_s0 + $0x70] sm:$0xff]  }
   0xd   :  { %v911_v35 = vld [vmem:[%s1318_s0 + $0xe8] sm:$0xff]   ;;  %v913_v37 = vld [vmem:[%s1318_s0 + $0xf0] sm:$0xff]   ;;  %v914_v38 = vld [vmem:[%s1318_s0 + $0x78] sm:$0xff]  }
   0xe   :  { %v915_v39 = vld [vmem:[%s1318_s0 + $0xf8] sm:$0xff]   ;;  %v1059_v40 = vld [vmem:[%s1319_s2] ss:$0 sm:$0xff] }
   0xf   :  { %787 = vmatpush3.bf16.msra.mxu0 %v879_v3  ;;  %871 = vmatpush3.bf16.msra.mxu1 %v879_v3 }
  0x10   :  { %788 = vmatprep.subr.bf16.mxu0 %v880_v6  ;;  %864 = vmatprep.subr.bf16.mxu1 %v880_v6 }
  0x13   :  { %789 = vmatpush3.bf16.msra.mxu0 %v880_v6  ;;  %872 = vmatpush3.bf16.msra.mxu1 %v880_v6 }
  0x14   :  { %790 = vmatprep.subr.bf16.mxu0 %v881_v7  ;;  %865 = vmatprep.subr.bf16.mxu1 %v881_v7 }
  0x17   :  { %791 = vmatpush3.bf16.msra.mxu0 %v881_v7  ;;  %873 = vmatpush3.bf16.msra.mxu1 %v881_v7 }
  0x18   :  { %792 = vmatprep.subr.bf16.mxu0 %v882_v8  ;;  %866 = vmatprep.subr.bf16.mxu1 %v882_v8 }
  0x1b   :  { %793 = vmatpush3.bf16.msra.mxu0 %v882_v8  ;;  %874 = vmatpush3.bf16.msra.mxu1 %v882_v8 }
  0x1c   :  { %794 = vmatprep.subr.bf16.mxu0 %v883_v9  ;;  %867 = vmatprep.subr.bf16.mxu1 %v883_v9 }
  0x1f   :  { %795 = vmatpush3.bf16.msra.mxu0 %v883_v9  ;;  %875 = vmatpush3.bf16.msra.mxu1 %v883_v9 }
  0x22   :  { %797 = vmatmul.mubr.bf16.vlgmr.msra.gmra.mrb[0].mxu0 %v886_v10  ;;  %829 = vmatmul.mubr.bf16.vlgmr.msra.gmra.mrb[0].mxu1 %v887_v11 }
  0x23   :  { %800 = vmatprep.mubr.bf16.mxu0 %v888_v12  ;;  %832 = vmatprep.mubr.bf16.mxu1 %v889_v13 }
  0x2a   :  { %801 = vmatmul.mubr.bf16.gmra.mrb[4].mxu0 %v890_v14  ;;  %833 = vmatmul.mubr.bf16.gmra.mrb[4].mxu1 %v891_v15 }
  0x2b   :  { %804 = vmatprep.mubr.bf16.mxu0 %v892_v16  ;;  %836 = vmatprep.mubr.bf16.mxu1 %v893_v17 }
  0x32   :  { %805 = vmatmul.mubr.bf16.gmra.mrb[8].mxu0 %v894_v18  ;;  %837 = vmatmul.mubr.bf16.gmra.mrb[8].mxu1 %v895_v19 }
  0x33   :  { %808 = vmatprep.mubr.bf16.mxu0 %v896_v20  ;;  %840 = vmatprep.mubr.bf16.mxu1 %v897_v21 }
  0x3a   :  { %809 = vmatmul.mubr.bf16.gmra.mrb[12].mxu0 %v898_v22  ;;  %841 = vmatmul.mubr.bf16.gmra.mrb[12].mxu1 %v899_v23 }
  0x3b   :  { %812 = vmatprep.mubr.bf16.mxu0 %v900_v24  ;;  %844 = vmatprep.mubr.bf16.mxu1 %v901_v25 }
  0x42   :  { %813 = vmatmul.mubr.bf16.gmra.mrb[16].mxu0 %v902_v26  ;;  %845 = vmatmul.mubr.bf16.gmra.mrb[16].mxu1 %v903_v27 }
  0x43   :  { %816 = vmatprep.mubr.bf16.mxu0 %v904_v28  ;;  %848 = vmatprep.mubr.bf16.mxu1 %v905_v29 }
  0x4a   :  { %817 = vmatmul.mubr.bf16.gmra.mrb[20].mxu0 %v906_v30  ;;  %849 = vmatmul.mubr.bf16.gmra.mrb[20].mxu1 %v907_v31 }
  0x4b   :  { %820 = vmatprep.mubr.bf16.mxu0 %v908_v32  ;;  %852 = vmatprep.mubr.bf16.mxu1 %v909_v33 }
  0x52   :  { %821 = vmatmul.mubr.bf16.gmra.mrb[24].mxu0 %v910_v34  ;;  %853 = vmatmul.mubr.bf16.gmra.mrb[24].mxu1 %v911_v35 }
  0x53   :  { %824 = vmatprep.mubr.bf16.mxu0 %v912_v36  ;;  %856 = vmatprep.mubr.bf16.mxu1 %v913_v37 }
  0x5a   :  { %825 = vmatmul.mubr.bf16.gmra.mrb[28].mxu0 %v914_v38  ;;  %857 = vmatmul.mubr.bf16.gmra.mrb[28].mxu1 %v915_v39 }
  0xf5   :  { %v798_v41 = vpop.f32.mrb[0].mxu0  ;;  %v830_v42 = vpop.f32.mrb[0].mxu1 }
  0xf6   :  { %v385_v43 = vadd.f32 %v798_v41, %v1059_v40  ;;  %v513_v44 = vadd.f32 %v830_v42, %v1059_v40  ;;  %v376_v45 = vpop.f32.mrb[1].mxu0  ;;  %v504_v46 = vpop.f32.mrb[1].mxu1 }
  0xf7   :  { %v377_v47 = vadd.f32 %v1059_v40, %v376_v45  ;;  %v505_v48 = vadd.f32 %v1059_v40, %v504_v46  ;;  %v799_v49 = vpop.f32.mrb[2].mxu0  ;;  %v831_v50 = vpop.f32.mrb[2].mxu1 }
  0xf8   :  { %633 = vst [vmem:[%s1320_s3 + $0x10] sm:$0xff] %v385_v43  ;;  %665 = vst [vmem:[%s1320_s3 + $0x110] sm:$0xff] %v513_v44  ;;  %v388_v51 = vadd.f32 %v799_v49, %v1059_v40  ;;  %v516_v52 = vadd.f32 %v831_v50, %v1059_v40  ;;  %v379_v53 = vpop.f32.mrb[3].mxu0  ;;  %v507_v54 = vpop.f32.mrb[3].mxu1 }
  0xf9   :  { %631 = vst [vmem:[%s1320_s3] sm:$0xff] %v377_v47  ;;  %663 = vst [vmem:[%s1320_s3 + $0x100] sm:$0xff] %v505_v48  ;;  %v380_v55 = vadd.f32 %v1059_v40, %v379_v53  ;;  %v508_v56 = vadd.f32 %v1059_v40, %v507_v54 }
  0xfa   :  { %634 = vst [vmem:[%s1320_s3 + $0x18] sm:$0xff] %v388_v51  ;;  %666 = vst [vmem:[%s1320_s3 + $0x118] sm:$0xff] %v516_v52 }
  0xfb   :  { %632 = vst [vmem:[%s1320_s3 + $0x8] sm:$0xff] %v380_v55  ;;  %664 = vst [vmem:[%s1320_s3 + $0x108] sm:$0xff] %v508_v56 }
  0xfd   :  { %v802_v57 = vpop.f32.mrb[4].mxu0  ;;  %v834_v58 = vpop.f32.mrb[4].mxu1 }
  0xfe   :  { %v401_v59 = vadd.f32 %v802_v57, %v1059_v40  ;;  %v529_v60 = vadd.f32 %v834_v58, %v1059_v40  ;;  %v392_v61 = vpop.f32.mrb[5].mxu0  ;;  %v520_v62 = vpop.f32.mrb[5].mxu1 }
  0xff   :  { %v393_v63 = vadd.f32 %v1059_v40, %v392_v61  ;;  %v521_v0 = vadd.f32 %v1059_v40, %v520_v62  ;;  %v803_v1 = vpop.f32.mrb[6].mxu0  ;;  %v835_v2 = vpop.f32.mrb[6].mxu1 }
 0x100   :  { %637 = vst [vmem:[%s1320_s3 + $0x30] sm:$0xff] %v401_v59  ;;  %669 = vst [vmem:[%s1320_s3 + $0x130] sm:$0xff] %v529_v60  ;;  %v404_v3 = vadd.f32 %v803_v1, %v1059_v40  ;;  %v532_v4 = vadd.f32 %v835_v2, %v1059_v40  ;;  %v395_v5 = vpop.f32.mrb[7].mxu0  ;;  %v523_v6 = vpop.f32.mrb[7].mxu1 }
 0x101   :  { %635 = vst [vmem:[%s1320_s3 + $0x20] sm:$0xff] %v393_v63  ;;  %667 = vst [vmem:[%s1320_s3 + $0x120] sm:$0xff] %v521_v0  ;;  %v396_v7 = vadd.f32 %v1059_v40, %v395_v5  ;;  %v524_v8 = vadd.f32 %v1059_v40, %v523_v6 }
 0x102   :  { %638 = vst [vmem:[%s1320_s3 + $0x38] sm:$0xff] %v404_v3  ;;  %670 = vst [vmem:[%s1320_s3 + $0x138] sm:$0xff] %v532_v4 }
 0x103   :  { %636 = vst [vmem:[%s1320_s3 + $0x28] sm:$0xff] %v396_v7  ;;  %668 = vst [vmem:[%s1320_s3 + $0x128] sm:$0xff] %v524_v8 }
 0x105   :  { %v806_v9 = vpop.f32.mrb[8].mxu0  ;;  %v838_v10 = vpop.f32.mrb[8].mxu1 }
 0x106   :  { %v417_v11 = vadd.f32 %v806_v9, %v1059_v40  ;;  %v545_v12 = vadd.f32 %v838_v10, %v1059_v40  ;;  %v408_v13 = vpop.f32.mrb[9].mxu0  ;;  %v536_v14 = vpop.f32.mrb[9].mxu1 }
 0x107   :  { %v409_v15 = vadd.f32 %v1059_v40, %v408_v13  ;;  %v537_v16 = vadd.f32 %v1059_v40, %v536_v14  ;;  %v807_v17 = vpop.f32.mrb[10].mxu0  ;;  %v839_v18 = vpop.f32.mrb[10].mxu1 }
 0x108   :  { %641 = vst [vmem:[%s1320_s3 + $0x50] sm:$0xff] %v417_v11  ;;  %673 = vst [vmem:[%s1320_s3 + $0x150] sm:$0xff] %v545_v12  ;;  %v420_v19 = vadd.f32 %v807_v17, %v1059_v40  ;;  %v548_v20 = vadd.f32 %v839_v18, %v1059_v40  ;;  %v411_v21 = vpop.f32.mrb[11].mxu0  ;;  %v539_v22 = vpop.f32.mrb[11].mxu1 }
 0x109   :  { %639 = vst [vmem:[%s1320_s3 + $0x40] sm:$0xff] %v409_v15  ;;  %671 = vst [vmem:[%s1320_s3 + $0x140] sm:$0xff] %v537_v16  ;;  %v412_v23 = vadd.f32 %v1059_v40, %v411_v21  ;;  %v540_v24 = vadd.f32 %v1059_v40, %v539_v22 }
 0x10a   :  { %642 = vst [vmem:[%s1320_s3 + $0x58] sm:$0xff] %v420_v19  ;;  %674 = vst [vmem:[%s1320_s3 + $0x158] sm:$0xff] %v548_v20 }
 0x10b   :  { %640 = vst [vmem:[%s1320_s3 + $0x48] sm:$0xff] %v412_v23  ;;  %672 = vst [vmem:[%s1320_s3 + $0x148] sm:$0xff] %v540_v24 }
 0x10d   :  { %v810_v25 = vpop.f32.mrb[12].mxu0  ;;  %v842_v26 = vpop.f32.mrb[12].mxu1 }
 0x10e   :  { %v433_v27 = vadd.f32 %v810_v25, %v1059_v40  ;;  %v561_v28 = vadd.f32 %v842_v26, %v1059_v40  ;;  %v424_v29 = vpop.f32.mrb[13].mxu0  ;;  %v552_v30 = vpop.f32.mrb[13].mxu1 }
 0x10f   :  { %v425_v31 = vadd.f32 %v1059_v40, %v424_v29  ;;  %v553_v32 = vadd.f32 %v1059_v40, %v552_v30  ;;  %v811_v33 = vpop.f32.mrb[14].mxu0  ;;  %v843_v34 = vpop.f32.mrb[14].mxu1 }
 0x110   :  { %645 = vst [vmem:[%s1320_s3 + $0x70] sm:$0xff] %v433_v27  ;;  %677 = vst [vmem:[%s1320_s3 + $0x170] sm:$0xff] %v561_v28  ;;  %v436_v35 = vadd.f32 %v811_v33, %v1059_v40  ;;  %v564_v36 = vadd.f32 %v843_v34, %v1059_v40  ;;  %v427_v37 = vpop.f32.mrb[15].mxu0  ;;  %v555_v38 = vpop.f32.mrb[15].mxu1 }
 0x111   :  { %643 = vst [vmem:[%s1320_s3 + $0x60] sm:$0xff] %v425_v31  ;;  %675 = vst [vmem:[%s1320_s3 + $0x160] sm:$0xff] %v553_v32  ;;  %v428_v39 = vadd.f32 %v1059_v40, %v427_v37  ;;  %v556_v41 = vadd.f32 %v1059_v40, %v555_v38 }
 0x112   :  { %646 = vst [vmem:[%s1320_s3 + $0x78] sm:$0xff] %v436_v35  ;;  %678 = vst [vmem:[%s1320_s3 + $0x178] sm:$0xff] %v564_v36 }
 0x113   :  { %644 = vst [vmem:[%s1320_s3 + $0x68] sm:$0xff] %v428_v39  ;;  %676 = vst [vmem:[%s1320_s3 + $0x168] sm:$0xff] %v556_v41 }
 0x115   :  { %v814_v42 = vpop.f32.mrb[16].mxu0  ;;  %v846_v43 = vpop.f32.mrb[16].mxu1 }
 0x116   :  { %v449_v44 = vadd.f32 %v814_v42, %v1059_v40  ;;  %v577_v45 = vadd.f32 %v846_v43, %v1059_v40  ;;  %v440_v46 = vpop.f32.mrb[17].mxu0  ;;  %v568_v47 = vpop.f32.mrb[17].mxu1 }
 0x117   :  { %v441_v48 = vadd.f32 %v1059_v40, %v440_v46  ;;  %v569_v49 = vadd.f32 %v1059_v40, %v568_v47  ;;  %v815_v50 = vpop.f32.mrb[18].mxu0  ;;  %v847_v51 = vpop.f32.mrb[18].mxu1 }
 0x118   :  { %649 = vst [vmem:[%s1320_s3 + $0x90] sm:$0xff] %v449_v44  ;;  %681 = vst [vmem:[%s1320_s3 + $0x190] sm:$0xff] %v577_v45  ;;  %v452_v52 = vadd.f32 %v815_v50, %v1059_v40  ;;  %v580_v53 = vadd.f32 %v847_v51, %v1059_v40  ;;  %v443_v54 = vpop.f32.mrb[19].mxu0  ;;  %v571_v55 = vpop.f32.mrb[19].mxu1 }
 0x119   :  { %647 = vst [vmem:[%s1320_s3 + $0x80] sm:$0xff] %v441_v48  ;;  %679 = vst [vmem:[%s1320_s3 + $0x180] sm:$0xff] %v569_v49  ;;  %v444_v56 = vadd.f32 %v1059_v40, %v443_v54  ;;  %v572_v57 = vadd.f32 %v1059_v40, %v571_v55 }
 0x11a   :  { %650 = vst [vmem:[%s1320_s3 + $0x98] sm:$0xff] %v452_v52  ;;  %682 = vst [vmem:[%s1320_s3 + $0x198] sm:$0xff] %v580_v53 }
 0x11b   :  { %648 = vst [vmem:[%s1320_s3 + $0x88] sm:$0xff] %v444_v56  ;;  %680 = vst [vmem:[%s1320_s3 + $0x188] sm:$0xff] %v572_v57 }
 0x11d   :  { %v818_v58 = vpop.f32.mrb[20].mxu0  ;;  %v850_v59 = vpop.f32.mrb[20].mxu1 }
 0x11e   :  { %v465_v60 = vadd.f32 %v818_v58, %v1059_v40  ;;  %v593_v61 = vadd.f32 %v850_v59, %v1059_v40  ;;  %v456_v62 = vpop.f32.mrb[21].mxu0  ;;  %v584_v63 = vpop.f32.mrb[21].mxu1 }
 0x11f   :  { %v457_v0 = vadd.f32 %v1059_v40, %v456_v62  ;;  %v585_v1 = vadd.f32 %v1059_v40, %v584_v63  ;;  %v819_v2 = vpop.f32.mrb[22].mxu0  ;;  %v851_v3 = vpop.f32.mrb[22].mxu1 }
 0x120   :  { %653 = vst [vmem:[%s1320_s3 + $0xb0] sm:$0xff] %v465_v60  ;;  %685 = vst [vmem:[%s1320_s3 + $0x1b0] sm:$0xff] %v593_v61  ;;  %v468_v4 = vadd.f32 %v819_v2, %v1059_v40  ;;  %v596_v5 = vadd.f32 %v851_v3, %v1059_v40  ;;  %v459_v6 = vpop.f32.mrb[23].mxu0  ;;  %v587_v7 = vpop.f32.mrb[23].mxu1 }
 0x121   :  { %651 = vst [vmem:[%s1320_s3 + $0xa0] sm:$0xff] %v457_v0  ;;  %683 = vst [vmem:[%s1320_s3 + $0x1a0] sm:$0xff] %v585_v1  ;;  %v460_v8 = vadd.f32 %v1059_v40, %v459_v6  ;;  %v588_v9 = vadd.f32 %v1059_v40, %v587_v7 }
 0x122   :  { %654 = vst [vmem:[%s1320_s3 + $0xb8] sm:$0xff] %v468_v4  ;;  %686 = vst [vmem:[%s1320_s3 + $0x1b8] sm:$0xff] %v596_v5 }
 0x123   :  { %652 = vst [vmem:[%s1320_s3 + $0xa8] sm:$0xff] %v460_v8  ;;  %684 = vst [vmem:[%s1320_s3 + $0x1a8] sm:$0xff] %v588_v9 }
 0x125   :  { %v822_v10 = vpop.f32.mrb[24].mxu0  ;;  %v854_v11 = vpop.f32.mrb[24].mxu1 }
 0x126   :  { %v481_v12 = vadd.f32 %v822_v10, %v1059_v40  ;;  %v609_v13 = vadd.f32 %v854_v11, %v1059_v40  ;;  %v472_v14 = vpop.f32.mrb[25].mxu0  ;;  %v600_v15 = vpop.f32.mrb[25].mxu1 }
 0x127   :  { %v473_v16 = vadd.f32 %v1059_v40, %v472_v14  ;;  %v601_v17 = vadd.f32 %v1059_v40, %v600_v15  ;;  %v823_v18 = vpop.f32.mrb[26].mxu0  ;;  %v855_v19 = vpop.f32.mrb[26].mxu1 }
 0x128   :  { %657 = vst [vmem:[%s1320_s3 + $0xd0] sm:$0xff] %v481_v12  ;;  %689 = vst [vmem:[%s1320_s3 + $0x1d0] sm:$0xff] %v609_v13  ;;  %v484_v20 = vadd.f32 %v823_v18, %v1059_v40  ;;  %v612_v21 = vadd.f32 %v855_v19, %v1059_v40  ;;  %v475_v22 = vpop.f32.mrb[27].mxu0  ;;  %v603_v23 = vpop.f32.mrb[27].mxu1 }
 0x129   :  { %655 = vst [vmem:[%s1320_s3 + $0xc0] sm:$0xff] %v473_v16  ;;  %687 = vst [vmem:[%s1320_s3 + $0x1c0] sm:$0xff] %v601_v17  ;;  %v476_v24 = vadd.f32 %v1059_v40, %v475_v22  ;;  %v604_v25 = vadd.f32 %v1059_v40, %v603_v23 }
 0x12a   :  { %658 = vst [vmem:[%s1320_s3 + $0xd8] sm:$0xff] %v484_v20  ;;  %690 = vst [vmem:[%s1320_s3 + $0x1d8] sm:$0xff] %v612_v21 }
 0x12b   :  { %656 = vst [vmem:[%s1320_s3 + $0xc8] sm:$0xff] %v476_v24  ;;  %688 = vst [vmem:[%s1320_s3 + $0x1c8] sm:$0xff] %v604_v25 }
 0x12d   :  { %v826_v26 = vpop.f32.mrb[28].mxu0  ;;  %v858_v27 = vpop.f32.mrb[28].mxu1 }
 0x12e   :  { %v497_v28 = vadd.f32 %v826_v26, %v1059_v40  ;;  %v625_v29 = vadd.f32 %v858_v27, %v1059_v40  ;;  %v488_v30 = vpop.f32.mrb[29].mxu0  ;;  %v616_v31 = vpop.f32.mrb[29].mxu1 }
 0x12f   :  { %v489_v32 = vadd.f32 %v1059_v40, %v488_v30  ;;  %v617_v33 = vadd.f32 %v1059_v40, %v616_v31  ;;  %v827_v34 = vpop.f32.mrb[30].mxu0  ;;  %v859_v35 = vpop.f32.mrb[30].mxu1 }
 0x130   :  { %661 = vst [vmem:[%s1320_s3 + $0xf0] sm:$0xff] %v497_v28  ;;  %693 = vst [vmem:[%s1320_s3 + $0x1f0] sm:$0xff] %v625_v29  ;;  %v500_v36 = vadd.f32 %v827_v34, %v1059_v40  ;;  %v628_v37 = vadd.f32 %v859_v35, %v1059_v40  ;;  %v491_v38 = vpop.f32.mrb[31].mxu0  ;;  %v619_v39 = vpop.f32.mrb[31].mxu1 }
 0x131   :  { %659 = vst [vmem:[%s1320_s3 + $0xe0] sm:$0xff] %v489_v32  ;;  %691 = vst [vmem:[%s1320_s3 + $0x1e0] sm:$0xff] %v617_v33  ;;  %v492_v41 = vadd.f32 %v1059_v40, %v491_v38  ;;  %v620_v42 = vadd.f32 %v1059_v40, %v619_v39 }
 0x132   :  { %662 = vst [vmem:[%s1320_s3 + $0xf8] sm:$0xff] %v500_v36  ;;  %694 = vst [vmem:[%s1320_s3 + $0x1f8] sm:$0xff] %v628_v37 }
 0x133   :  { %660 = vst [vmem:[%s1320_s3 + $0xe8] sm:$0xff] %v492_v41  ;;  %692 = vst [vmem:[%s1320_s3 + $0x1e8] sm:$0xff] %v620_v42 }

// kernel: seg_to_seg_forward.19
= control target key start
LH: loop header
LB: loop body
LE: loop exit
PB: predicated region body
PF: predicated region fallthrough
CT: control target
= control target key end

     0   :  { %s4025_s15 = smov 0   ;;  %s4027_s16 = smov 0   ;;  %s5202_s0 = inlined_call_operand.vmem [shape: bf16[512,1152], index: 0, kind: input, shape index: {}]   ;;  %s5203_s1 = inlined_call_operand.vmem [shape: bf16[1152,128], index: 1, kind: input, shape index: {}]   ;;  %s5204_s2 = inlined_call_operand.vmem [shape: bf16[512,128], index: 2, kind: output, shape index: {0}]   ;;  %s5205_s3 = inlined_call_operand.vmem [shape: f32[8,128], index: 3, kind: output, shape index: {1}]   ;;  %s5206_s4 = inlined_call_operand.vmem [shape: f32[8,128], index: 4, kind: output, shape index: {2}]  }
   0x1   :  { %s4029_s17 = smov 0   ;;  %s4031_s18 = smov 0  }
   0x2   :  { %s4033_s19 = smov 0  }
   0x3 LB: > { %s27_s20 = sadd.s32 1, %s3992_s18  ;;  %p50_p1 = scmp.ne.s32.totalorder %s3984_s16, %s3980_s15  ;;  %s3996_s19 = sphi %s4033_s19, %s15_s19   ;;  %s3992_s18 = sphi %s4031_s18, %s5210_s18   ;;  %s3988_s17 = sphi %s4029_s17, %s5209_s17   ;;  %s3984_s16 = sphi %s4027_s16, %s5208_s16   ;;  %s3980_s15 = sphi %s4025_s15, %s5207_s15  }
   0x4   : > { %p28_p0 = scmp.ge.s32.totalorder %s27_s20, 3  ;;  %p51_p2 = scmp.eq.s32.totalorder %s3996_s19, 0 }
   0x5   : > { %s43_s22 = sadd.s32 1, %s3984_s16  ;;  %p3030_p5 = scmp.ge.s32.totalorder %s3996_s19, 3 }
   0x6   : > { %s5212_s20 = smov (%p28_p0, %s27_s20), 0  ;;  %p52_p3 = por %p51_p2, %p50_p1 }
   0x7   : > { %s39_s21 = ssub.s32 %s3992_s18, %s5212_s20  ;;  %188 = sbr.rel (%p3030_p5) target bundleno = 93 (0x5d), region = 16 }
   0x8   : > { %p41_p4 = scmp.eq.s32.totalorder %s39_s21, 0 }
   0xa   : > { %s4060_s23 = scalar_select %p41_p4, %s3984_s16, %s43_s22  }
   0xe   : > { %191 = sbr.rel (!%p52_p3) target bundleno = 93 (0x5d), region = 20  ;;  %s193_s24 = sand.u32 (%p52_p3), 1, %s3984_s16  }
   0xf   : > { %s3354_s25 = smul.u32 (%p52_p3), 12, %s3992_s18 }
  0x10   : > { %s3762_s26 = smul.u32 (%p52_p3), 768, %s193_s24 }
  0x11   : > { %s4068_s29 = scalar_lea.vmem (%p52_p3), %s5202_s0, %s3354_s25 }
  0x12   : > { %v216_v0 = vld [vmem:[%s4068_s29] sm:$0xff] (%p52_p3)  ;;  %v220_v2 = vld [vmem:[%s4068_s29 + $0x48] sm:$0xff] (%p52_p3)  ;;  %s4073_s30 = scalar_lea.vmem (%p52_p3), [#allocation3], %s3762_s26  ;;  %v224_v4 = vld [vmem:[%s4068_s29 + $0x90] sm:$0xff] (%p52_p3) }
  0x13   : > { %v218_v1 = vld [vmem:[%s4068_s29 + $0x24] sm:$0xff] (%p52_p3)  ;;  %217 = vst [vmem:[%s4073_s30] sm:$0xff] (%p52_p3), %v216_v0  ;;  %221 = vst [vmem:[%s4073_s30 + $0x18] sm:$0xff] (%p52_p3), %v220_v2  ;;  %v222_v3 = vld [vmem:[%s4068_s29 + $0x6c] sm:$0xff] (%p52_p3) }
  0x14   : > { %219 = vst [vmem:[%s4073_s30 + $0xc] sm:$0xff] (%p52_p3), %v218_v1  ;;  %v226_v5 = vld [vmem:[%s4068_s29 + $0xb4] sm:$0xff] (%p52_p3)  ;;  %223 = vst [vmem:[%s4073_s30 + $0x24] sm:$0xff] (%p52_p3), %v222_v3  ;;  %v230_v7 = vld [vmem:[%s4068_s29 + $0xfc] sm:$0xff] (%p52_p3) }
  0x15   : > { %225 = vst [vmem:[%s4073_s30 + $0x30] sm:$0xff] %v224_v4  ;;  %227 = vst [vmem:[%s4073_s30 + $0x3c] sm:$0xff] %v226_v5  ;;  %v228_v6 = vld [vmem:[%s4068_s29 + $0xd8] sm:$0xff]  ;;  %v232_v8 = vld [vmem:[%s4068_s29 + $0x120] sm:$0xff] }
  0x16   : > { %229 = vst [vmem:[%s4073_s30 + $0x48] sm:$0xff] %v228_v6  ;;  %231 = vst [vmem:[%s4073_s30 + $0x54] sm:$0xff] %v230_v7  ;;  %v234_v9 = vld [vmem:[%s4068_s29 + $0x144] sm:$0xff]  ;;  %v238_v11 = vld [vmem:[%s4068_s29 + $0x18c] sm:$0xff] }
  0x17   : > { %233 = vst [vmem:[%s4073_s30 + $0x60] sm:$0xff] %v232_v8  ;;  %v236_v10 = vld [vmem:[%s4068_s29 + $0x168] sm:$0xff]  ;;  %235 = vst [vmem:[%s4073_s30 + $0x6c] sm:$0xff] %v234_v9  ;;  %v240_v12 = vld [vmem:[%s4068_s29 + $0x1b0] sm:$0xff] }
  0x18   : > { %237 = vst [vmem:[%s4073_s30 + $0x78] sm:$0xff] %v236_v10  ;;  %239 = vst [vmem:[%s4073_s30 + $0x84] sm:$0xff] %v238_v11  ;;  %v242_v13 = vld [vmem:[%s4068_s29 + $0x1d4] sm:$0xff]  ;;  %v246_v15 = vld [vmem:[%s4068_s29 + $0x21c] sm:$0xff] }
  0x19   : > { %v244_v14 = vld [vmem:[%s4068_s29 + $0x1f8] sm:$0xff]  ;;  %241 = vst [vmem:[%s4073_s30 + $0x90] sm:$0xff] %v240_v12  ;;  %243 = vst [vmem:[%s4073_s30 + $0x9c] sm:$0xff] %v242_v13  ;;  %v248_v16 = vld [vmem:[%s4068_s29 + $0x240] sm:$0xff] }
  0x1a   : > { %245 = vst [vmem:[%s4073_s30 + $0xa8] sm:$0xff] %v244_v14  ;;  %v250_v17 = vld [vmem:[%s4068_s29 + $0x264] sm:$0xff]  ;;  %247 = vst [vmem:[%s4073_s30 + $0xb4] sm:$0xff] %v246_v15  ;;  %v254_v19 = vld [vmem:[%s4068_s29 + $0x2ac] sm:$0xff] }
  0x1b   : > { %249 = vst [vmem:[%s4073_s30 + $0xc0] sm:$0xff] %v248_v16  ;;  %251 = vst [vmem:[%s4073_s30 + $0xcc] sm:$0xff] %v250_v17  ;;  %v252_v18 = vld [vmem:[%s4068_s29 + $0x288] sm:$0xff]  ;;  %v256_v20 = vld [vmem:[%s4068_s29 + $0x2d0] sm:$0xff] }
  0x1c   : > { %253 = vst [vmem:[%s4073_s30 + $0xd8] sm:$0xff] %v252_v18  ;;  %255 = vst [vmem:[%s4073_s30 + $0xe4] sm:$0xff] %v254_v19  ;;  %v258_v21 = vld [vmem:[%s4068_s29 + $0x2f4] sm:$0xff]  ;;  %v262_v23 = vld [vmem:[%s4068_s29 + $0x33c] sm:$0xff] }
  0x1d   : > { %257 = vst [vmem:[%s4073_s30 + $0xf0] sm:$0xff] %v256_v20  ;;  %v260_v22 = vld [vmem:[%s4068_s29 + $0x318] sm:$0xff]  ;;  %259 = vst [vmem:[%s4073_s30 + $0xfc] sm:$0xff] %v258_v21  ;;  %v264_v24 = vld [vmem:[%s4068_s29 + $0x360] sm:$0xff] }
  0x1e   : > { %261 = vst [vmem:[%s4073_s30 + $0x108] sm:$0xff] %v260_v22  ;;  %263 = vst [vmem:[%s4073_s30 + $0x114] sm:$0xff] %v262_v23  ;;  %v266_v25 = vld [vmem:[%s4068_s29 + $0x384] sm:$0xff]  ;;  %v270_v27 = vld [vmem:[%s4068_s29 + $0x3cc] sm:$0xff] }
  0x1f   : > { %v268_v26 = vld [vmem:[%s4068_s29 + $0x3a8] sm:$0xff]  ;;  %265 = vst [vmem:[%s4073_s30 + $0x120] sm:$0xff] %v264_v24  ;;  %267 = vst [vmem:[%s4073_s30 + $0x12c] sm:$0xff] %v266_v25  ;;  %v272_v28 = vld [vmem:[%s4068_s29 + $0x3f0] sm:$0xff] }
  0x20   : > { %269 = vst [vmem:[%s4073_s30 + $0x138] sm:$0xff] %v268_v26  ;;  %v274_v29 = vld [vmem:[%s4068_s29 + $0x414] sm:$0xff]  ;;  %271 = vst [vmem:[%s4073_s30 + $0x144] sm:$0xff] %v270_v27  ;;  %v278_v31 = vld [vmem:[%s4068_s29 + $0x45c] sm:$0xff] }
  0x21   : > { %273 = vst [vmem:[%s4073_s30 + $0x150] sm:$0xff] %v272_v28  ;;  %275 = vst [vmem:[%s4073_s30 + $0x15c] sm:$0xff] %v274_v29  ;;  %v276_v30 = vld [vmem:[%s4068_s29 + $0x438] sm:$0xff]  ;;  %v280_v32 = vld [vmem:[%s4068_s29 + $0x480] sm:$0xff] }
  0x22   : > { %277 = vst [vmem:[%s4073_s30 + $0x168] sm:$0xff] %v276_v30  ;;  %279 = vst [vmem:[%s4073_s30 + $0x174] sm:$0xff] %v278_v31  ;;  %v282_v33 = vld [vmem:[%s4068_s29 + $0x4a4] sm:$0xff]  ;;  %v286_v35 = vld [vmem:[%s4068_s29 + $0x4ec] sm:$0xff] }
  0x23   : > { %281 = vst [vmem:[%s4073_s30 + $0x180] sm:$0xff] %v280_v32  ;;  %v284_v34 = vld [vmem:[%s4068_s29 + $0x4c8] sm:$0xff]  ;;  %283 = vst [vmem:[%s4073_s30 + $0x18c] sm:$0xff] %v282_v33  ;;  %v288_v36 = vld [vmem:[%s4068_s29 + $0x510] sm:$0xff] }
  0x24   : > { %285 = vst [vmem:[%s4073_s30 + $0x198] sm:$0xff] %v284_v34  ;;  %287 = vst [vmem:[%s4073_s30 + $0x1a4] sm:$0xff] %v286_v35  ;;  %v290_v37 = vld [vmem:[%s4068_s29 + $0x534] sm:$0xff]  ;;  %v294_v39 = vld [vmem:[%s4068_s29 + $0x57c] sm:$0xff] }
  0x25   : > { %v292_v38 = vld [vmem:[%s4068_s29 + $0x558] sm:$0xff]  ;;  %289 = vst [vmem:[%s4073_s30 + $0x1b0] sm:$0xff] %v288_v36  ;;  %291 = vst [vmem:[%s4073_s30 + $0x1bc] sm:$0xff] %v290_v37  ;;  %v296_v40 = vld [vmem:[%s4068_s29 + $0x5a0] sm:$0xff] }
  0x26   : > { %293 = vst [vmem:[%s4073_s30 + $0x1c8] sm:$0xff] %v292_v38  ;;  %v298_v41 = vld [vmem:[%s4068_s29 + $0x5c4] sm:$0xff]  ;;  %295 = vst [vmem:[%s4073_s30 + $0x1d4] sm:$0xff] %v294_v39  ;;  %v302_v43 = vld [vmem:[%s4068_s29 + $0x60c] sm:$0xff] }
  0x27   : > { %297 = vst [vmem:[%s4073_s30 + $0x1e0] sm:$0xff] %v296_v40  ;;  %299 = vst [vmem:[%s4073_s30 + $0x1ec] sm:$0xff] %v298_v41  ;;  %v300_v42 = vld [vmem:[%s4068_s29 + $0x5e8] sm:$0xff]  ;;  %v304_v44 = vld [vmem:[%s4068_s29 + $0x630] sm:$0xff] }
  0x28   : > { %301 = vst [vmem:[%s4073_s30 + $0x1f8] sm:$0xff] %v300_v42  ;;  %303 = vst [vmem:[%s4073_s30 + $0x204] sm:$0xff] %v302_v43  ;;  %v306_v45 = vld [vmem:[%s4068_s29 + $0x654] sm:$0xff]  ;;  %v310_v47 = vld [vmem:[%s4068_s29 + $0x69c] sm:$0xff] }
  0x29   : > { %305 = vst [vmem:[%s4073_s30 + $0x210] sm:$0xff] %v304_v44  ;;  %v308_v46 = vld [vmem:[%s4068_s29 + $0x678] sm:$0xff]  ;;  %307 = vst [vmem:[%s4073_s30 + $0x21c] sm:$0xff] %v306_v45  ;;  %v312_v48 = vld [vmem:[%s4068_s29 + $0x6c0] sm:$0xff] }
  0x2a   : > { %309 = vst [vmem:[%s4073_s30 + $0x228] sm:$0xff] %v308_v46  ;;  %311 = vst [vmem:[%s4073_s30 + $0x234] sm:$0xff] %v310_v47  ;;  %v314_v49 = vld [vmem:[%s4068_s29 + $0x6e4] sm:$0xff]  ;;  %v318_v51 = vld [vmem:[%s4068_s29 + $0x72c] sm:$0xff] }
  0x2b   : > { %v316_v50 = vld [vmem:[%s4068_s29 + $0x708] sm:$0xff]  ;;  %313 = vst [vmem:[%s4073_s30 + $0x240] sm:$0xff] %v312_v48  ;;  %315 = vst [vmem:[%s4073_s30 + $0x24c] sm:$0xff] %v314_v49  ;;  %v320_v52 = vld [vmem:[%s4068_s29 + $0x750] sm:$0xff] }
  0x2c   : > { %317 = vst [vmem:[%s4073_s30 + $0x258] sm:$0xff] %v316_v50  ;;  %v322_v53 = vld [vmem:[%s4068_s29 + $0x774] sm:$0xff]  ;;  %319 = vst [vmem:[%s4073_s30 + $0x264] sm:$0xff] %v318_v51  ;;  %v326_v55 = vld [vmem:[%s4068_s29 + $0x7bc] sm:$0xff] }
  0x2d   : > { %321 = vst [vmem:[%s4073_s30 + $0x270] sm:$0xff] %v320_v52  ;;  %323 = vst [vmem:[%s4073_s30 + $0x27c] sm:$0xff] %v322_v53  ;;  %v324_v54 = vld [vmem:[%s4068_s29 + $0x798] sm:$0xff]  ;;  %v328_v56 = vld [vmem:[%s4068_s29 + $0x7e0] sm:$0xff] }
  0x2e   : > { %325 = vst [vmem:[%s4073_s30 + $0x288] sm:$0xff] %v324_v54  ;;  %327 = vst [vmem:[%s4073_s30 + $0x294] sm:$0xff] %v326_v55  ;;  %v330_v57 = vld [vmem:[%s4068_s29 + $0x804] sm:$0xff]  ;;  %v334_v59 = vld [vmem:[%s4068_s29 + $0x84c] sm:$0xff] }
  0x2f   : > { %329 = vst [vmem:[%s4073_s30 + $0x2a0] sm:$0xff] %v328_v56  ;;  %v332_v58 = vld [vmem:[%s4068_s29 + $0x828] sm:$0xff]  ;;  %331 = vst [vmem:[%s4073_s30 + $0x2ac] sm:$0xff] %v330_v57  ;;  %v336_v60 = vld [vmem:[%s4068_s29 + $0x870] sm:$0xff] }
  0x30   : > { %333 = vst [vmem:[%s4073_s30 + $0x2b8] sm:$0xff] %v332_v58  ;;  %335 = vst [vmem:[%s4073_s30 + $0x2c4] sm:$0xff] %v334_v59  ;;  %v338_v61 = vld [vmem:[%s4068_s29 + $0x894] sm:$0xff]  ;;  %v342_v63 = vld [vmem:[%s4068_s29 + $0x8dc] sm:$0xff] }
  0x31   : > { %v340_v62 = vld [vmem:[%s4068_s29 + $0x8b8] sm:$0xff]  ;;  %337 = vst [vmem:[%s4073_s30 + $0x2d0] sm:$0xff] %v336_v60  ;;  %339 = vst [vmem:[%s4073_s30 + $0x2dc] sm:$0xff] %v338_v61  ;;  %v3032_v0 = vld [vmem:[%s4068_s29 + $0x8] sm:$0xf] }
  0x32   : > { %341 = vst [vmem:[%s4073_s30 + $0x2e8] sm:$0xff] %v340_v62  ;;  %v3034_v1 = vld [vmem:[%s4068_s29 + $0x2c] sm:$0xf]  ;;  %343 = vst [vmem:[%s4073_s30 + $0x2f4] sm:$0xff] %v342_v63  ;;  %v3036_v2 = vld [vmem:[%s4068_s29 + $0x50] sm:$0xf] }
  0x33   : > { %3033 = vst [vmem:[%s4073_s30 + $0x8] sm:$0xf] %v3032_v0  ;;  %3035 = vst [vmem:[%s4073_s30 + $0x14] sm:$0xf] %v3034_v1  ;;  %v3038_v3 = vld [vmem:[%s4068_s29 + $0x74] sm:$0xf] }
  0x34   : > { %v3040_v4 = vld [vmem:[%s4068_s29 + $0x98] sm:$0xf]  ;;  %3037 = vst [vmem:[%s4073_s30 + $0x20] sm:$0xf] %v3036_v2  ;;  %3039 = vst [vmem:[%s4073_s30 + $0x2c] sm:$0xf] %v3038_v3 }
  0x35   : > { %3041 = vst [vmem:[%s4073_s30 + $0x38] sm:$0xf] %v3040_v4  ;;  %v3042_v5 = vld [vmem:[%s4068_s29 + $0xbc] sm:$0xf]  ;;  %v3044_v6 = vld [vmem:[%s4068_s29 + $0xe0] sm:$0xf] }
  0x36   : > { %v3046_v7 = vld [vmem:[%s4068_s29 + $0x104] sm:$0xf]  ;;  %3043 = vst [vmem:[%s4073_s30 + $0x44] sm:$0xf] %v3042_v5  ;;  %3045 = vst [vmem:[%s4073_s30 + $0x50] sm:$0xf] %v3044_v6 }
  0x37   : > { %3047 = vst [vmem:[%s4073_s30 + $0x5c] sm:$0xf] %v3046_v7  ;;  %v3048_v8 = vld [vmem:[%s4068_s29 + $0x128] sm:$0xf]  ;;  %v3050_v9 = vld [vmem:[%s4068_s29 + $0x14c] sm:$0xf] }
  0x38   : > { %v3052_v10 = vld [vmem:[%s4068_s29 + $0x170] sm:$0xf]  ;;  %3049 = vst [vmem:[%s4073_s30 + $0x68] sm:$0xf] %v3048_v8  ;;  %3051 = vst [vmem:[%s4073_s30 + $0x74] sm:$0xf] %v3050_v9 }
  0x39   : > { %3053 = vst [vmem:[%s4073_s30 + $0x80] sm:$0xf] %v3052_v10  ;;  %v3054_v11 = vld [vmem:[%s4068_s29 + $0x194] sm:$0xf]  ;;  %v3056_v12 = vld [vmem:[%s4068_s29 + $0x1b8] sm:$0xf] }
  0x3a   : > { %v3058_v13 = vld [vmem:[%s4068_s29 + $0x1dc] sm:$0xf]  ;;  %3055 = vst [vmem:[%s4073_s30 + $0x8c] sm:$0xf] %v3054_v11  ;;  %3057 = vst [vmem:[%s4073_s30 + $0x98] sm:$0xf] %v3056_v12 }
  0x3b   : > { %3059 = vst [vmem:[%s4073_s30 + $0xa4] sm:$0xf] %v3058_v13  ;;  %v3060_v14 = vld [vmem:[%s4068_s29 + $0x200] sm:$0xf]  ;;  %v3062_v15 = vld [vmem:[%s4068_s29 + $0x224] sm:$0xf] }
  0x3c   : > { %v3064_v16 = vld [vmem:[%s4068_s29 + $0x248] sm:$0xf]  ;;  %3061 = vst [vmem:[%s4073_s30 + $0xb0] sm:$0xf] %v3060_v14  ;;  %3063 = vst [vmem:[%s4073_s30 + $0xbc] sm:$0xf] %v3062_v15 }
  0x3d   : > { %3065 = vst [vmem:[%s4073_s30 + $0xc8] sm:$0xf] %v3064_v16  ;;  %v3066_v17 = vld [vmem:[%s4068_s29 + $0x26c] sm:$0xf]  ;;  %v3068_v18 = vld [vmem:[%s4068_s29 + $0x290] sm:$0xf] }
  0x3e   : > { %v3070_v19 = vld [vmem:[%s4068_s29 + $0x2b4] sm:$0xf]  ;;  %3067 = vst [vmem:[%s4073_s30 + $0xd4] sm:$0xf] %v3066_v17  ;;  %3069 = vst [vmem:[%s4073_s30 + $0xe0] sm:$0xf] %v3068_v18 }
  0x3f   : > { %3071 = vst [vmem:[%s4073_s30 + $0xec] sm:$0xf] %v3070_v19  ;;  %v3072_v20 = vld [vmem:[%s4068_s29 + $0x2d8] sm:$0xf]  ;;  %v3074_v21 = vld [vmem:[%s4068_s29 + $0x2fc] sm:$0xf] }
  0x40   : > { %v3076_v22 = vld [vmem:[%s4068_s29 + $0x320] sm:$0xf]  ;;  %3073 = vst [vmem:[%s4073_s30 + $0xf8] sm:$0xf] %v3072_v20  ;;  %3075 = vst [vmem:[%s4073_s30 + $0x104] sm:$0xf] %v3074_v21 }
  0x41   : > { %3077 = vst [vmem:[%s4073_s30 + $0x110] sm:$0xf] %v3076_v22  ;;  %v3078_v23 = vld [vmem:[%s4068_s29 + $0x344] sm:$0xf]  ;;  %v3080_v24 = vld [vmem:[%s4068_s29 + $0x368] sm:$0xf] }
  0x42   : > { %v3082_v25 = vld [vmem:[%s4068_s29 + $0x38c] sm:$0xf]  ;;  %3079 = vst [vmem:[%s4073_s30 + $0x11c] sm:$0xf] %v3078_v23  ;;  %3081 = vst [vmem:[%s4073_s30 + $0x128] sm:$0xf] %v3080_v24 }
  0x43   : > { %3083 = vst [vmem:[%s4073_s30 + $0x134] sm:$0xf] %v3082_v25  ;;  %v3084_v26 = vld [vmem:[%s4068_s29 + $0x3b0] sm:$0xf]  ;;  %v3086_v27 = vld [vmem:[%s4068_s29 + $0x3d4] sm:$0xf] }
  0x44   : > { %v3088_v28 = vld [vmem:[%s4068_s29 + $0x3f8] sm:$0xf]  ;;  %3085 = vst [vmem:[%s4073_s30 + $0x140] sm:$0xf] %v3084_v26  ;;  %3087 = vst [vmem:[%s4073_s30 + $0x14c] sm:$0xf] %v3086_v27 }
  0x45   : > { %3089 = vst [vmem:[%s4073_s30 + $0x158] sm:$0xf] %v3088_v28  ;;  %v3090_v29 = vld [vmem:[%s4068_s29 + $0x41c] sm:$0xf]  ;;  %v3092_v30 = vld [vmem:[%s4068_s29 + $0x440] sm:$0xf] }
  0x46   : > { %v3094_v31 = vld [vmem:[%s4068_s29 + $0x464] sm:$0xf]  ;;  %3091 = vst [vmem:[%s4073_s30 + $0x164] sm:$0xf] %v3090_v29  ;;  %3093 = vst [vmem:[%s4073_s30 + $0x170] sm:$0xf] %v3092_v30 }
  0x47   : > { %3095 = vst [vmem:[%s4073_s30 + $0x17c] sm:$0xf] %v3094_v31  ;;  %v3096_v32 = vld [vmem:[%s4068_s29 + $0x488] sm:$0xf]  ;;  %v3098_v33 = vld [vmem:[%s4068_s29 + $0x4ac] sm:$0xf] }
  0x48   : > { %v3100_v34 = vld [vmem:[%s4068_s29 + $0x4d0] sm:$0xf]  ;;  %3097 = vst [vmem:[%s4073_s30 + $0x188] sm:$0xf] %v3096_v32  ;;  %3099 = vst [vmem:[%s4073_s30 + $0x194] sm:$0xf] %v3098_v33 }
  0x49   : > { %3101 = vst [vmem:[%s4073_s30 + $0x1a0] sm:$0xf] %v3100_v34  ;;  %v3102_v35 = vld [vmem:[%s4068_s29 + $0x4f4] sm:$0xf]  ;;  %v3104_v36 = vld [vmem:[%s4068_s29 + $0x518] sm:$0xf] }
  0x4a   : > { %v3106_v37 = vld [vmem:[%s4068_s29 + $0x53c] sm:$0xf]  ;;  %3103 = vst [vmem:[%s4073_s30 + $0x1ac] sm:$0xf] %v3102_v35  ;;  %3105 = vst [vmem:[%s4073_s30 + $0x1b8] sm:$0xf] %v3104_v36 }
  0x4b   : > { %3107 = vst [vmem:[%s4073_s30 + $0x1c4] sm:$0xf] %v3106_v37  ;;  %v3108_v38 = vld [vmem:[%s4068_s29 + $0x560] sm:$0xf]  ;;  %v3110_v39 = vld [vmem:[%s4068_s29 + $0x584] sm:$0xf] }
  0x4c   : > { %v3112_v40 = vld [vmem:[%s4068_s29 + $0x5a8] sm:$0xf]  ;;  %3109 = vst [vmem:[%s4073_s30 + $0x1d0] sm:$0xf] %v3108_v38  ;;  %3111 = vst [vmem:[%s4073_s30 + $0x1dc] sm:$0xf] %v3110_v39 }
  0x4d   : > { %3113 = vst [vmem:[%s4073_s30 + $0x1e8] sm:$0xf] %v3112_v40  ;;  %v3114_v41 = vld [vmem:[%s4068_s29 + $0x5cc] sm:$0xf]  ;;  %v3116_v42 = vld [vmem:[%s4068_s29 + $0x5f0] sm:$0xf] }
  0x4e   : > { %v3118_v43 = vld [vmem:[%s4068_s29 + $0x614] sm:$0xf]  ;;  %3115 = vst [vmem:[%s4073_s30 + $0x1f4] sm:$0xf] %v3114_v41  ;;  %3117 = vst [vmem:[%s4073_s30 + $0x200] sm:$0xf] %v3116_v42 }
  0x4f   : > { %3119 = vst [vmem:[%s4073_s30 + $0x20c] sm:$0xf] %v3118_v43  ;;  %v3120_v44 = vld [vmem:[%s4068_s29 + $0x638] sm:$0xf]  ;;  %v3122_v45 = vld [vmem:[%s4068_s29 + $0x65c] sm:$0xf] }
  0x50   : > { %v3124_v46 = vld [vmem:[%s4068_s29 + $0x680] sm:$0xf]  ;;  %3121 = vst [vmem:[%s4073_s30 + $0x218] sm:$0xf] %v3120_v44  ;;  %3123 = vst [vmem:[%s4073_s30 + $0x224] sm:$0xf] %v3122_v45 }
  0x51   : > { %3125 = vst [vmem:[%s4073_s30 + $0x230] sm:$0xf] %v3124_v46  ;;  %v3126_v47 = vld [vmem:[%s4068_s29 + $0x6a4] sm:$0xf]  ;;  %v3128_v48 = vld [vmem:[%s4068_s29 + $0x6c8] sm:$0xf] }
  0x52   : > { %v3130_v49 = vld [vmem:[%s4068_s29 + $0x6ec] sm:$0xf]  ;;  %3127 = vst [vmem:[%s4073_s30 + $0x23c] sm:$0xf] %v3126_v47  ;;  %3129 = vst [vmem:[%s4073_s30 + $0x248] sm:$0xf] %v3128_v48 }
  0x53   : > { %3131 = vst [vmem:[%s4073_s30 + $0x254] sm:$0xf] %v3130_v49  ;;  %v3132_v50 = vld [vmem:[%s4068_s29 + $0x710] sm:$0xf]  ;;  %v3134_v51 = vld [vmem:[%s4068_s29 + $0x734] sm:$0xf] }
  0x54   : > { %v3136_v52 = vld [vmem:[%s4068_s29 + $0x758] sm:$0xf]  ;;  %3133 = vst [vmem:[%s4073_s30 + $0x260] sm:$0xf] %v3132_v50  ;;  %3135 = vst [vmem:[%s4073_s30 + $0x26c] sm:$0xf] %v3134_v51 }
  0x55   : > { %3137 = vst [vmem:[%s4073_s30 + $0x278] sm:$0xf] %v3136_v52  ;;  %v3138_v53 = vld [vmem:[%s4068_s29 + $0x77c] sm:$0xf]  ;;  %v3140_v54 = vld [vmem:[%s4068_s29 + $0x7a0] sm:$0xf] }
  0x56   : > { %v3142_v55 = vld [vmem:[%s4068_s29 + $0x7c4] sm:$0xf]  ;;  %3139 = vst [vmem:[%s4073_s30 + $0x284] sm:$0xf] %v3138_v53  ;;  %3141 = vst [vmem:[%s4073_s30 + $0x290] sm:$0xf] %v3140_v54 }
  0x57   : > { %3143 = vst [vmem:[%s4073_s30 + $0x29c] sm:$0xf] %v3142_v55  ;;  %v3144_v56 = vld [vmem:[%s4068_s29 + $0x7e8] sm:$0xf]  ;;  %v3146_v57 = vld [vmem:[%s4068_s29 + $0x80c] sm:$0xf] }
  0x58   : > { %v3148_v58 = vld [vmem:[%s4068_s29 + $0x830] sm:$0xf]  ;;  %3145 = vst [vmem:[%s4073_s30 + $0x2a8] sm:$0xf] %v3144_v56  ;;  %3147 = vst [vmem:[%s4073_s30 + $0x2b4] sm:$0xf] %v3146_v57 }
  0x59   : > { %3149 = vst [vmem:[%s4073_s30 + $0x2c0] sm:$0xf] %v3148_v58  ;;  %v3150_v59 = vld [vmem:[%s4068_s29 + $0x854] sm:$0xf]  ;;  %v3152_v60 = vld [vmem:[%s4068_s29 + $0x878] sm:$0xf] }
  0x5a   : > { %v3154_v61 = vld [vmem:[%s4068_s29 + $0x89c] sm:$0xf]  ;;  %3151 = vst [vmem:[%s4073_s30 + $0x2cc] sm:$0xf] %v3150_v59  ;;  %3153 = vst [vmem:[%s4073_s30 + $0x2d8] sm:$0xf] %v3152_v60 }
  0x5b   : > { %3155 = vst [vmem:[%s4073_s30 + $0x2e4] sm:$0xf] %v3154_v61  ;;  %v3156_v62 = vld [vmem:[%s4068_s29 + $0x8c0] sm:$0xf]  ;;  %v3158_v63 = vld [vmem:[%s4068_s29 + $0x8e4] sm:$0xf] }
  0x5c   : > { %3157 = vst [vmem:[%s4073_s30 + $0x2f0] sm:$0xf] %v3156_v62  ;;  %3159 = vst [vmem:[%s4073_s30 + $0x2fc] sm:$0xf] %v3158_v63 }
  0x5d PF: > { %p3160_p6 = scmp.ge.s32.totalorder %s3996_s19, 1  ;;  %p495_p7 = scmp.lt.s32.totalorder %s3996_s19, 4 }
  0x5f   : > { %p496_p8 = pnand %p3160_p6, %p495_p7 }
  0x60   : > { %s502_s5 = sand.u32 (!%p496_p8), 1, %s3980_s15   ;;  %s554_s6 = smul.u32 (!%p496_p8), 48, %s3988_s17 }
  0x61   : > { %499 = sbr.rel (%p496_p8) target bundleno = 744 (0x2e8), region = 50  ;;  %p3162_p10 = scmp.ne.s32.totalorder (!%p496_p8), %s3988_s17, 0 }
  0x62   : > { %s3763_s7 = smul.u32 (!%p496_p8), 768, %s502_s5  ;;  %p555_p9 = scmp.lt.s32.totalorder (!%p496_p8), %s554_s6, 143 }
  0x64   : > { %s4337_s12 = scalar_lea.vmem (!%p496_p8), [#allocation3], %s3763_s7 }
  0x68   : > { %s5214_s6 = smov (!%p555_p9, %s554_s6), 143  ;;  %590 = sbr.rel (%p3162_p10) target bundleno = 138 (0x8a), region = 58 }
  0x69   : > { %s3161_s8 = sshll.u32 %s5214_s6, 2  ;;  %v3998_v0 = vmov (!%p3162_p10), 0.0  }
  0x6a   : > { %s4335_s11 = scalar_lea.vmem %s5203_s1, %s3161_s8  ;;  %591 = vst [vmem:[#allocation2] sm:$0xff] (!%p3162_p10), %v3998_v0  ;;  %592 = vst [vmem:[#allocation2 + $0x8] sm:$0xff] (!%p3162_p10), %v3998_v0 }
  0x6b   : > { %593 = vst [vmem:[#allocation2 + $0x10] sm:$0xff] (!%p3162_p10), %v3998_v0  ;;  %594 = vst [vmem:[#allocation2 + $0x18] sm:$0xff] (!%p3162_p10), %v3998_v0 }
  0x6c   : > { %595 = vst [vmem:[#allocation2 + $0x20] sm:$0xff] (!%p3162_p10), %v3998_v0  ;;  %596 = vst [vmem:[#allocation2 + $0x28] sm:$0xff] (!%p3162_p10), %v3998_v0 }
  0x6d   : > { %597 = vst [vmem:[#allocation2 + $0x30] sm:$0xff] (!%p3162_p10), %v3998_v0  ;;  %598 = vst [vmem:[#allocation2 + $0x38] sm:$0xff] (!%p3162_p10), %v3998_v0 }
  0x6e   : > { %599 = vst [vmem:[#allocation2 + $0x40] sm:$0xff] (!%p3162_p10), %v3998_v0  ;;  %600 = vst [vmem:[#allocation2 + $0x48] sm:$0xff] (!%p3162_p10), %v3998_v0 }
  0x6f   : > { %601 = vst [vmem:[#allocation2 + $0x50] sm:$0xff] %v3998_v0  ;;  %602 = vst [vmem:[#allocation2 + $0x58] sm:$0xff] %v3998_v0 }
  0x70   : > { %603 = vst [vmem:[#allocation2 + $0x60] sm:$0xff] %v3998_v0  ;;  %604 = vst [vmem:[#allocation2 + $0x68] sm:$0xff] %v3998_v0 }
  0x71   : > { %605 = vst [vmem:[#allocation2 + $0x70] sm:$0xff] %v3998_v0  ;;  %606 = vst [vmem:[#allocation2 + $0x78] sm:$0xff] %v3998_v0 }
  0x72   : > { %607 = vst [vmem:[#allocation2 + $0x80] sm:$0xff] %v3998_v0  ;;  %608 = vst [vmem:[#allocation2 + $0x88] sm:$0xff] %v3998_v0 }
  0x73   : > { %609 = vst [vmem:[#allocation2 + $0x90] sm:$0xff] %v3998_v0  ;;  %610 = vst [vmem:[#allocation2 + $0x98] sm:$0xff] %v3998_v0 }
  0x74   : > { %611 = vst [vmem:[#allocation2 + $0xa0] sm:$0xff] %v3998_v0  ;;  %612 = vst [vmem:[#allocation2 + $0xa8] sm:$0xff] %v3998_v0 }
  0x75   : > { %613 = vst [vmem:[#allocation2 + $0xb0] sm:$0xff] %v3998_v0  ;;  %614 = vst [vmem:[#allocation2 + $0xb8] sm:$0xff] %v3998_v0 }
  0x76   : > { %615 = vst [vmem:[#allocation2 + $0xc0] sm:$0xff] %v3998_v0  ;;  %616 = vst [vmem:[#allocation2 + $0xc8] sm:$0xff] %v3998_v0 }
  0x77   : > { %617 = vst [vmem:[#allocation2 + $0xd0] sm:$0xff] %v3998_v0  ;;  %618 = vst [vmem:[#allocation2 + $0xd8] sm:$0xff] %v3998_v0 }
  0x78   : > { %619 = vst [vmem:[#allocation2 + $0xe0] sm:$0xff] %v3998_v0  ;;  %620 = vst [vmem:[#allocation2 + $0xe8] sm:$0xff] %v3998_v0 }
  0x79   : > { %621 = vst [vmem:[#allocation2 + $0xf0] sm:$0xff] %v3998_v0  ;;  %622 = vst [vmem:[#allocation2 + $0xf8] sm:$0xff] %v3998_v0 }
  0x7a   : > { %623 = vst [vmem:[#allocation2 + $0x100] sm:$0xff] %v3998_v0  ;;  %624 = vst [vmem:[#allocation2 + $0x108] sm:$0xff] %v3998_v0 }
  0x7b   : > { %625 = vst [vmem:[#allocation2 + $0x110] sm:$0xff] %v3998_v0  ;;  %626 = vst [vmem:[#allocation2 + $0x118] sm:$0xff] %v3998_v0 }
  0x7c   : > { %627 = vst [vmem:[#allocation2 + $0x120] sm:$0xff] %v3998_v0  ;;  %628 = vst [vmem:[#allocation2 + $0x128] sm:$0xff] %v3998_v0 }
  0x7d   : > { %629 = vst [vmem:[#allocation2 + $0x130] sm:$0xff] %v3998_v0  ;;  %630 = vst [vmem:[#allocation2 + $0x138] sm:$0xff] %v3998_v0 }
  0x7e   : > { %631 = vst [vmem:[#allocation2 + $0x140] sm:$0xff] %v3998_v0  ;;  %632 = vst [vmem:[#allocation2 + $0x148] sm:$0xff] %v3998_v0 }
  0x7f   : > { %633 = vst [vmem:[#allocation2 + $0x150] sm:$0xff] %v3998_v0  ;;  %634 = vst [vmem:[#allocation2 + $0x158] sm:$0xff] %v3998_v0 }
  0x80   : > { %635 = vst [vmem:[#allocation2 + $0x160] sm:$0xff] %v3998_v0  ;;  %636 = vst [vmem:[#allocation2 + $0x168] sm:$0xff] %v3998_v0 }
  0x81   : > { %637 = vst [vmem:[#allocation2 + $0x170] sm:$0xff] %v3998_v0  ;;  %638 = vst [vmem:[#allocation2 + $0x178] sm:$0xff] %v3998_v0 }
  0x82   : > { %639 = vst [vmem:[#allocation2 + $0x180] sm:$0xff] %v3998_v0  ;;  %640 = vst [vmem:[#allocation2 + $0x188] sm:$0xff] %v3998_v0 }
  0x83   : > { %641 = vst [vmem:[#allocation2 + $0x190] sm:$0xff] %v3998_v0  ;;  %642 = vst [vmem:[#allocation2 + $0x198] sm:$0xff] %v3998_v0 }
  0x84   : > { %643 = vst [vmem:[#allocation2 + $0x1a0] sm:$0xff] %v3998_v0  ;;  %644 = vst [vmem:[#allocation2 + $0x1a8] sm:$0xff] %v3998_v0 }
  0x85   : > { %645 = vst [vmem:[#allocation2 + $0x1b0] sm:$0xff] %v3998_v0  ;;  %646 = vst [vmem:[#allocation2 + $0x1b8] sm:$0xff] %v3998_v0 }
  0x86   : > { %647 = vst [vmem:[#allocation2 + $0x1c0] sm:$0xff] %v3998_v0  ;;  %648 = vst [vmem:[#allocation2 + $0x1c8] sm:$0xff] %v3998_v0 }
  0x87   : > { %649 = vst [vmem:[#allocation2 + $0x1d0] sm:$0xff] %v3998_v0  ;;  %650 = vst [vmem:[#allocation2 + $0x1d8] sm:$0xff] %v3998_v0 }
  0x88   : > { %651 = vst [vmem:[#allocation2 + $0x1e0] sm:$0xff] %v3998_v0  ;;  %652 = vst [vmem:[#allocation2 + $0x1e8] sm:$0xff] %v3998_v0 }
  0x89   : > { %653 = vst [vmem:[#allocation2 + $0x1f0] sm:$0xff] %v3998_v0  ;;  %654 = vst [vmem:[#allocation2 + $0x1f8] sm:$0xff] %v3998_v0 }
  0x8a PF: > { %v3806_v1 = vld [vmem:[%s4335_s11] sm:$0xff]   ;;  %v3999_v2 = vmov 0   ;;  %v3807_v3 = vld [vmem:[%s4335_s11 + $0x8] sm:$0xff]   ;;  %v3808_v4 = vld [vmem:[%s4335_s11 + $0x10] sm:$0xff]   ;;  %p3283_p11 = scmp.ne.s32.totalorder %s3988_s17, 2 }
  0x8b   : > { %1551 = vmatprep.subr.bf16.mxu0 %v3999_v2  ;;  %3730 = vmatprep.subr.bf16.mxu1 %v3999_v2  ;;  %v3809_v5 = vld [vmem:[%s4335_s11 + $0x18] sm:$0xff]   ;;  %v3810_v6 = vld [vmem:[%s4335_s11 + $0x20] sm:$0xff]   ;;  %v3811_v8 = vld [vmem:[%s4335_s11 + $0x28] sm:$0xff]  }
  0x8c   : > { %1552 = vmatpush1.bf16.msra.mxu0 %v3806_v1  ;;  %3746 = vmatpush1.bf16.msra.mxu1 %v3806_v1  ;;  %v3824_v7 = vld [vmem:[%s4337_s12 + $0x4] ss:$12 sps:$4 sm:$0xff]   ;;  %v3813_v11 = vld [vmem:[%s4335_s11 + $0x38] sm:$0xff]   ;;  %v3815_v13 = vld [vmem:[%s4335_s11 + $0x48] sm:$0xff]  }
  0x8d   : > { %1553 = vmatprep.subr.bf16.mxu0 %v3999_v2  ;;  %3731 = vmatprep.subr.bf16.mxu1 %v3999_v2  ;;  %v3827_v9 = vld [vmem:[%s4337_s12 + $0x244] ss:$12 sps:$4 sm:$0xff]   ;;  %v3817_v15 = vld [vmem:[%s4335_s11 + $0x58] sm:$0xff]   ;;  %v3819_v17 = vld [vmem:[%s4335_s11 + $0x68] sm:$0xff]  }
  0x8e   : > { %1583 = vmatprep.mubr.bf16.mxu0 %v3824_v7  ;;  %1775 = vmatprep.mubr.bf16.mxu1 %v3827_v9  ;;  %v3812_v10 = vld [vmem:[%s4335_s11 + $0x30] sm:$0xff]   ;;  %v3814_v12 = vld [vmem:[%s4335_s11 + $0x40] sm:$0xff]   ;;  %v3821_v19 = vld [vmem:[%s4335_s11 + $0x78] sm:$0xff]  }
  0x8f   : > { %v3816_v14 = vld [vmem:[%s4335_s11 + $0x50] sm:$0xff]   ;;  %v3818_v16 = vld [vmem:[%s4335_s11 + $0x60] sm:$0xff]   ;;  %v3829_v23 = vld [vmem:[%s4337_s12 + $0x1c] ss:$12 sps:$4 sm:$0xff]  }
  0x90   : > { %1554 = vmatpush1.bf16.msra.mxu0 %v3807_v3  ;;  %3747 = vmatpush1.bf16.msra.mxu1 %v3807_v3  ;;  %v3820_v18 = vld [vmem:[%s4335_s11 + $0x70] sm:$0xff]   ;;  %v3828_v20 = vld [vmem:[%s4335_s11 + $0x80] sm:$0xff]   ;;  %v3831_v24 = vld [vmem:[%s4337_s12 + $0x25c] ss:$12 sps:$4 sm:$0xff]  }
  0x91   : > { %1555 = vmatprep.subr.bf16.mxu0 %v3999_v2  ;;  %3732 = vmatprep.subr.bf16.mxu1 %v3999_v2  ;;  %v3822_v21 = vld [vmem:[%s4337_s12] ss:$12 sps:$4 sm:$0xff]   ;;  %v3842_v26 = vld [vmem:[%s4335_s11 + $0x90] sm:$0xff]   ;;  %v3833_v27 = vld [vmem:[%s4337_s12 + $0x18] ss:$12 sps:$4 sm:$0xff]  }
  0x92   : > { %v3825_v22 = vld [vmem:[%s4337_s12 + $0x240] ss:$12 sps:$4 sm:$0xff]   ;;  %v3834_v28 = vld [vmem:[%s4337_s12 + $0x258] ss:$12 sps:$4 sm:$0xff]   ;;  %v3840_v32 = vld [vmem:[%s4337_s12 + $0x30] ss:$12 sps:$4 sm:$0xff]  }
  0x93   : > { %v3835_v25 = vld [vmem:[%s4335_s11 + $0x88] sm:$0xff]   ;;  %v3836_v29 = vld [vmem:[%s4337_s12 + $0x34] ss:$12 sps:$4 sm:$0xff]   ;;  %v3849_v31 = vld [vmem:[%s4335_s11 + $0x98] sm:$0xff]  }
  0x94   : > { %1556 = vmatpush1.bf16.msra.mxu0 %v3808_v4  ;;  %3748 = vmatpush1.bf16.msra.mxu1 %v3808_v4  ;;  %v3838_v30 = vld [vmem:[%s4337_s12 + $0x274] ss:$12 sps:$4 sm:$0xff]   ;;  %v3841_v34 = vld [vmem:[%s4337_s12 + $0x270] ss:$12 sps:$4 sm:$0xff]   ;;  %v3843_v35 = vld [vmem:[%s4337_s12 + $0x4c] ss:$12 sps:$4 sm:$0xff]  }
  0x95   : > { %1557 = vmatprep.subr.bf16.mxu0 %v3999_v2  ;;  %3733 = vmatprep.subr.bf16.mxu1 %v3999_v2  ;;  %v3856_v33 = vld [vmem:[%s4335_s11 + $0xa0] sm:$0xff]   ;;  %v3845_v36 = vld [vmem:[%s4337_s12 + $0x28c] ss:$12 sps:$4 sm:$0xff]   ;;  %v3847_v38 = vld [vmem:[%s4337_s12 + $0x48] ss:$12 sps:$4 sm:$0xff]  }
  0x96   : > { %v3863_v37 = vld [vmem:[%s4335_s11 + $0xa8] sm:$0xff]   ;;  %v3850_v40 = vld [vmem:[%s4337_s12 + $0x64] ss:$12 sps:$4 sm:$0xff]   ;;  %v3877_v43 = vld [vmem:[%s4335_s11 + $0xb8] sm:$0xff]  }
  0x97   : > { %v3848_v39 = vld [vmem:[%s4337_s12 + $0x288] ss:$12 sps:$4 sm:$0xff]   ;;  %v3852_v41 = vld [vmem:[%s4337_s12 + $0x2a4] ss:$12 sps:$4 sm:$0xff]   ;;  %v3854_v44 = vld [vmem:[%s4337_s12 + $0x60] ss:$12 sps:$4 sm:$0xff]  }
  0x98   : > { %1558 = vmatpush1.bf16.msra.mxu0 %v3809_v5  ;;  %3749 = vmatpush1.bf16.msra.mxu1 %v3809_v5  ;;  %v3870_v42 = vld [vmem:[%s4335_s11 + $0xb0] sm:$0xff]   ;;  %v3855_v45 = vld [vmem:[%s4337_s12 + $0x2a0] ss:$12 sps:$4 sm:$0xff]   ;;  %v3857_v46 = vld [vmem:[%s4337_s12 + $0x7c] ss:$12 sps:$4 sm:$0xff]  }
  0x99   : > { %1559 = vmatprep.subr.bf16.mxu0 %v3999_v2  ;;  %3734 = vmatprep.subr.bf16.mxu1 %v3999_v2  ;;  %v3859_v47 = vld [vmem:[%s4337_s12 + $0x2bc] ss:$12 sps:$4 sm:$0xff]   ;;  %v3861_v48 = vld [vmem:[%s4337_s12 + $0x78] ss:$12 sps:$4 sm:$0xff]   ;;  %v3864_v50 = vld [vmem:[%s4337_s12 + $0x94] ss:$12 sps:$4 sm:$0xff]  }
  0x9a   : > { %v3862_v49 = vld [vmem:[%s4337_s12 + $0x2b8] ss:$12 sps:$4 sm:$0xff]   ;;  %v3866_v51 = vld [vmem:[%s4337_s12 + $0x2d4] ss:$12 sps:$4 sm:$0xff]   ;;  %v3868_v52 = vld [vmem:[%s4337_s12 + $0x90] ss:$12 sps:$4 sm:$0xff]  }
  0x9b   : > { %v3869_v53 = vld [vmem:[%s4337_s12 + $0x2d0] ss:$12 sps:$4 sm:$0xff]   ;;  %v3871_v54 = vld [vmem:[%s4337_s12 + $0xac] ss:$12 sps:$4 sm:$0xff]   ;;  %v3875_v56 = vld [vmem:[%s4337_s12 + $0xa8] ss:$12 sps:$4 sm:$0xff]  }
  0x9c   : > { %1560 = vmatpush1.bf16.msra.mxu0 %v3810_v6  ;;  %3750 = vmatpush1.bf16.msra.mxu1 %v3810_v6  ;;  %v3873_v55 = vld [vmem:[%s4337_s12 + $0x2ec] ss:$12 sps:$4 sm:$0xff]   ;;  %v3876_v57 = vld [vmem:[%s4337_s12 + $0x2e8] ss:$12 sps:$4 sm:$0xff]   ;;  %v3878_v58 = vld [vmem:[%s4337_s12 + $0xc4] ss:$12 sps:$4 sm:$0xff]  }
  0x9d   : > { %1561 = vmatprep.subr.bf16.mxu0 %v3999_v2  ;;  %3735 = vmatprep.subr.bf16.mxu1 %v3999_v2  ;;  %v3880_v59 = vld [vmem:[%s4337_s12 + $0x8] ss:$12 sps:$4 sm:$0xff]   ;;  %v3881_v60 = vld [vmem:[%s4337_s12 + $0xc0] ss:$12 sps:$4 sm:$0xff]   ;;  %v3885_v63 = vld [vmem:[%s4337_s12 + $0x38] ss:$12 sps:$4 sm:$0xff]  }
  0x9e   : > { %v3882_v61 = vld [vmem:[%s4337_s12 + $0x20] ss:$12 sps:$4 sm:$0xff]   ;;  %v3883_v62 = vld [vmem:[%s4337_s12 + $0xdc] ss:$12 sps:$4 sm:$0xff]   ;;  %v3886_v0 = vld [vmem:[%s4337_s12 + $0xd8] ss:$12 sps:$4 sm:$0xff]  }
  0x9f   : > { %v3887_v1 = vld [vmem:[%s4337_s12 + $0x50] ss:$12 sps:$4 sm:$0xff]   ;;  %v3890_v3 = vld [vmem:[%s4337_s12 + $0x68] ss:$12 sps:$4 sm:$0xff]   ;;  %v3892_v5 = vld [vmem:[%s4337_s12 + $0x80] ss:$12 sps:$4 sm:$0xff]  }
  0xa0   : > { %1562 = vmatpush1.bf16.msra.mxu0 %v3811_v8  ;;  %3751 = vmatpush1.bf16.msra.mxu1 %v3811_v8  ;;  %v3891_v4 = vld [vmem:[%s4337_s12 + $0xf0] ss:$12 sps:$4 sm:$0xff]   ;;  %v3893_v6 = vld [vmem:[%s4337_s12 + $0x10c] ss:$12 sps:$4 sm:$0xff]   ;;  %v3896_v8 = vld [vmem:[%s4337_s12 + $0x108] ss:$12 sps:$4 sm:$0xff]  }
  0xa1   : > { %1563 = vmatprep.subr.bf16.mxu0 %v3999_v2  ;;  %3736 = vmatprep.subr.bf16.mxu1 %v3999_v2  ;;  %v3895_v7 = vld [vmem:[%s4337_s12 + $0x98] ss:$12 sps:$4 sm:$0xff]   ;;  %v3897_v9 = vld [vmem:[%s4337_s12 + $0xb0] ss:$12 sps:$4 sm:$0xff]  }
  0xa4   : > { %1564 = vmatpush1.bf16.msra.mxu0 %v3812_v10  ;;  %3752 = vmatpush1.bf16.msra.mxu1 %v3812_v10  ;;  %v3898_v10 = vld [vmem:[%s4337_s12 + $0x124] ss:$12 sps:$4 sm:$0xff]  }
  0xa5   : > { %1565 = vmatprep.subr.bf16.mxu0 %v3999_v2  ;;  %3737 = vmatprep.subr.bf16.mxu1 %v3999_v2 }
  0xa8   : > { %1566 = vmatpush1.bf16.msra.mxu0 %v3813_v11  ;;  %3753 = vmatpush1.bf16.msra.mxu1 %v3813_v11  ;;  %v3900_v11 = vld [vmem:[%s4337_s12 + $0xc8] ss:$12 sps:$4 sm:$0xff]  }
  0xa9   : > { %1567 = vmatprep.subr.bf16.mxu0 %v3999_v2  ;;  %3738 = vmatprep.subr.bf16.mxu1 %v3999_v2 }
  0xac   : > { %1568 = vmatpush1.bf16.msra.mxu0 %v3814_v12  ;;  %3754 = vmatpush1.bf16.msra.mxu1 %v3814_v12  ;;  %v3901_v12 = vld [vmem:[%s4337_s12 + $0x120] ss:$12 sps:$4 sm:$0xff]  }
  0xad   : > { %1569 = vmatprep.subr.bf16.mxu0 %v3999_v2  ;;  %3739 = vmatprep.subr.bf16.mxu1 %v3999_v2 }
  0xb0   : > { %1570 = vmatpush1.bf16.msra.mxu0 %v3815_v13  ;;  %3755 = vmatpush1.bf16.msra.mxu1 %v3815_v13  ;;  %v3902_v13 = vld [vmem:[%s4337_s12 + $0xe0] ss:$12 sps:$4 sm:$0xff]  }
  0xb1   : > { %1571 = vmatprep.subr.bf16.mxu0 %v3999_v2  ;;  %3740 = vmatprep.subr.bf16.mxu1 %v3999_v2 }
  0xb4   : > { %1572 = vmatpush1.bf16.msra.mxu0 %v3816_v14  ;;  %3756 = vmatpush1.bf16.msra.mxu1 %v3816_v14  ;;  %v3903_v14 = vld [vmem:[%s4337_s12 + $0x13c] ss:$12 sps:$4 sm:$0xff]  }
  0xb5   : > { %1573 = vmatprep.subr.bf16.mxu0 %v3999_v2  ;;  %3741 = vmatprep.subr.bf16.mxu1 %v3999_v2 }
  0xb8   : > { %1574 = vmatpush1.bf16.msra.mxu0 %v3817_v15  ;;  %3757 = vmatpush1.bf16.msra.mxu1 %v3817_v15  ;;  %v3905_v15 = vld [vmem:[%s4337_s12 + $0xf8] ss:$12 sps:$4 sm:$0xff]  }
  0xb9   : > { %1575 = vmatprep.subr.bf16.mxu0 %v3999_v2  ;;  %3742 = vmatprep.subr.bf16.mxu1 %v3999_v2 }
  0xbc   : > { %1576 = vmatpush1.bf16.msra.mxu0 %v3818_v16  ;;  %3758 = vmatpush1.bf16.msra.mxu1 %v3818_v16  ;;  %v3906_v16 = vld [vmem:[%s4337_s12 + $0x138] ss:$12 sps:$4 sm:$0xff]  }
  0xbd   : > { %1577 = vmatprep.subr.bf16.mxu0 %v3999_v2  ;;  %3743 = vmatprep.subr.bf16.mxu1 %v3999_v2 }
  0xc0   : > { %1578 = vmatpush1.bf16.msra.mxu0 %v3819_v17  ;;  %3759 = vmatpush1.bf16.msra.mxu1 %v3819_v17  ;;  %v3907_v17 = vld [vmem:[%s4337_s12 + $0x110] ss:$12 sps:$4 sm:$0xff]  }
  0xc1   : > { %1579 = vmatprep.subr.bf16.mxu0 %v3999_v2  ;;  %3744 = vmatprep.subr.bf16.mxu1 %v3999_v2 }
  0xc4   : > { %1580 = vmatpush1.bf16.msra.mxu0 %v3820_v18  ;;  %3760 = vmatpush1.bf16.msra.mxu1 %v3820_v18  ;;  %v3908_v18 = vld [vmem:[%s4337_s12 + $0x154] ss:$12 sps:$4 sm:$0xff]  }
  0xc5   : > { %1581 = vmatprep.subr.bf16.mxu0 %v3999_v2  ;;  %3745 = vmatprep.subr.bf16.mxu1 %v3999_v2  ;;  %v3888_v2 = vld [vmem:[%s4337_s12 + $0xf4] ss:$12 sps:$4 sm:$0xff]  }
  0xc8   : > { %1582 = vmatpush1.bf16.msra.mxu0 %v3821_v19  ;;  %3761 = vmatpush1.bf16.msra.mxu1 %v3821_v19  ;;  %v3910_v19 = vld [vmem:[%s4337_s12 + $0x128] ss:$12 sps:$4 sm:$0xff]  }
  0xc9   : > { %3650 = vmatprep.subr.bf16.mxu1 %v3828_v20 }
  0xcb   : > { %1584 = vmatmul.mubr.bf16.vlgmr.msra.gmra.mrb[0].mxu0 %v3822_v21  ;;  %1776 = vmatmul.mubr.bf16.vlgmr.msra.gmra.mrb[0].mxu1 %v3825_v22  ;;  %v3912_v21 = vld [vmem:[%s4337_s12 + $0x140] ss:$12 sps:$4 sm:$0xff]  }
  0xcc   : > { %3651 = vmatpush3.bf16.msra.mxu1 %v3828_v20  ;;  %1591 = vmatprep.mubr.bf16.mxu0 %v3829_v23  ;;  %v3911_v20 = vld [vmem:[%s4337_s12 + $0x150] ss:$12 sps:$4 sm:$0xff]   ;;  %v3913_v22 = vld [vmem:[%s4337_s12 + $0x16c] ss:$12 sps:$4 sm:$0xff]  }
  0xcd   : > { %1783 = vmatprep.mubr.bf16.mxu1 %v3831_v24  ;;  %3652 = vmatprep.subr.bf16.mxu1 %v3835_v25  ;;  %v3915_v23 = vld [vmem:[%s4337_s12 + $0x158] ss:$12 sps:$4 sm:$0xff]   ;;  %v3916_v24 = vld [vmem:[%s4337_s12 + $0x168] ss:$12 sps:$4 sm:$0xff]  }
  0xd0   : > { %3653 = vmatpush3.bf16.msra.mxu1 %v3835_v25  ;;  %v3917_v25 = vld [vmem:[%s4337_s12 + $0x170] ss:$12 sps:$4 sm:$0xff]  }
  0xd1   : > { %3654 = vmatprep.subr.bf16.mxu1 %v3842_v26 }
  0xd3   : > { %1592 = vmatmul.mubr.bf16.gmra.mrb[4].mxu0 %v3833_v27  ;;  %1784 = vmatmul.mubr.bf16.gmra.mrb[4].mxu1 %v3834_v28  ;;  %v3920_v27 = vld [vmem:[%s4337_s12 + $0x188] ss:$12 sps:$4 sm:$0xff]   ;;  %v3921_v28 = vld [vmem:[%s4337_s12 + $0x180] ss:$12 sps:$4 sm:$0xff]  }
  0xd4   : > { %1599 = vmatprep.mubr.bf16.mxu0 %v3836_v29  ;;  %1791 = vmatprep.mubr.bf16.mxu1 %v3838_v30  ;;  %v3922_v29 = vld [vmem:[%s4337_s12 + $0x1a0] ss:$12 sps:$4 sm:$0xff]   ;;  %v3923_v30 = vld [vmem:[%s4337_s12 + $0x19c] ss:$12 sps:$4 sm:$0xff]  }
  0xd5   : > { %3655 = vmatpush3.bf16.msra.mxu1 %v3842_v26  ;;  %v3918_v26 = vld [vmem:[%s4337_s12 + $0x184] ss:$12 sps:$4 sm:$0xff]  }
  0xd6   : > { %3656 = vmatprep.subr.bf16.mxu1 %v3849_v31 }
  0xd9   : > { %3657 = vmatpush3.bf16.msra.mxu1 %v3849_v31  ;;  %v3925_v31 = vld [vmem:[%s4337_s12 + $0x1b8] ss:$12 sps:$4 sm:$0xff]  }
  0xda   : > { %3658 = vmatprep.subr.bf16.mxu1 %v3856_v33 }
  0xdb   : > { %1600 = vmatmul.mubr.bf16.gmra.mrb[8].mxu0 %v3840_v32  ;;  %1792 = vmatmul.mubr.bf16.gmra.mrb[8].mxu1 %v3841_v34  ;;  %v3926_v32 = vld [vmem:[%s4337_s12 + $0x198] ss:$12 sps:$4 sm:$0xff]   ;;  %v3928_v34 = vld [vmem:[%s4337_s12 + $0x1b4] ss:$12 sps:$4 sm:$0xff]  }
  0xdc   : > { %1607 = vmatprep.mubr.bf16.mxu0 %v3843_v35  ;;  %1799 = vmatprep.mubr.bf16.mxu1 %v3845_v36  ;;  %v3930_v35 = vld [vmem:[%s4337_s12 + $0x1e8] ss:$12 sps:$4 sm:$0xff]   ;;  %v3931_v36 = vld [vmem:[%s4337_s12 + $0x1b0] ss:$12 sps:$4 sm:$0xff]  }
  0xdd   : > { %3659 = vmatpush3.bf16.msra.mxu1 %v3856_v33  ;;  %v3927_v33 = vld [vmem:[%s4337_s12 + $0x1d0] ss:$12 sps:$4 sm:$0xff]  }
  0xde   : > { %3660 = vmatprep.subr.bf16.mxu1 %v3863_v37 }
  0xe1   : > { %3661 = vmatpush3.bf16.msra.mxu1 %v3863_v37  ;;  %v3932_v37 = vld [vmem:[%s4337_s12 + $0x200] ss:$12 sps:$4 sm:$0xff]  }
  0xe2   : > { %3662 = vmatprep.subr.bf16.mxu1 %v3870_v42 }
  0xe3   : > { %1608 = vmatmul.mubr.bf16.gmra.mrb[12].mxu0 %v3847_v38  ;;  %1800 = vmatmul.mubr.bf16.gmra.mrb[12].mxu1 %v3848_v39  ;;  %v3933_v38 = vld [vmem:[%s4337_s12 + $0x1cc] ss:$12 sps:$4 sm:$0xff]  }
  0xe4   : > { %1615 = vmatprep.mubr.bf16.mxu0 %v3850_v40  ;;  %1807 = vmatprep.mubr.bf16.mxu1 %v3852_v41  ;;  %v3935_v39 = vld [vmem:[%s4337_s12 + $0x218] ss:$12 sps:$4 sm:$0xff]   ;;  %v3936_v40 = vld [vmem:[%s4337_s12 + $0x1c8] ss:$12 sps:$4 sm:$0xff]   ;;  %v3937_v41 = vld [vmem:[%s4337_s12 + $0x230] ss:$12 sps:$4 sm:$0xff]  }
  0xe5   : > { %3663 = vmatpush3.bf16.msra.mxu1 %v3870_v42  ;;  %v3938_v42 = vld [vmem:[%s4337_s12 + $0x1e4] ss:$12 sps:$4 sm:$0xff]  }
  0xe6   : > { %3664 = vmatprep.subr.bf16.mxu1 %v3877_v43 }
  0xe9   : > { %3665 = vmatpush3.bf16.msra.mxu1 %v3877_v43  ;;  %v3940_v43 = vld [vmem:[%s4337_s12 + $0x248] ss:$12 sps:$4 sm:$0xff]  }
  0xeb   : > { %1616 = vmatmul.mubr.bf16.gmra.mrb[16].mxu0 %v3854_v44  ;;  %1808 = vmatmul.mubr.bf16.gmra.mrb[16].mxu1 %v3855_v45  ;;  %v3941_v44 = vld [vmem:[%s4337_s12 + $0x1e0] ss:$12 sps:$4 sm:$0xff]  }
  0xec   : > { %1623 = vmatprep.mubr.bf16.mxu0 %v3857_v46  ;;  %1815 = vmatprep.mubr.bf16.mxu1 %v3859_v47  ;;  %v3942_v45 = vld [vmem:[%s4337_s12 + $0x260] ss:$12 sps:$4 sm:$0xff]   ;;  %v3943_v46 = vld [vmem:[%s4337_s12 + $0x1fc] ss:$12 sps:$4 sm:$0xff]   ;;  %v3945_v47 = vld [vmem:[%s4337_s12 + $0x278] ss:$12 sps:$4 sm:$0xff]  }
  0xf3   : > { %1624 = vmatmul.mubr.bf16.gmra.mrb[20].mxu0 %v3861_v48  ;;  %1816 = vmatmul.mubr.bf16.gmra.mrb[20].mxu1 %v3862_v49  ;;  %v3946_v48 = vld [vmem:[%s4337_s12 + $0x1f8] ss:$12 sps:$4 sm:$0xff]   ;;  %v3947_v49 = vld [vmem:[%s4337_s12 + $0x290] ss:$12 sps:$4 sm:$0xff]  }
  0xf4   : > { %1631 = vmatprep.mubr.bf16.mxu0 %v3864_v50  ;;  %1823 = vmatprep.mubr.bf16.mxu1 %v3866_v51  ;;  %v3948_v50 = vld [vmem:[%s4337_s12 + $0x214] ss:$12 sps:$4 sm:$0xff]  }
  0xf5   : > { %v3950_v51 = vld [vmem:[%s4337_s12 + $0x2a8] ss:$12 sps:$4 sm:$0xff]  }
  0xfb   : > { %1632 = vmatmul.mubr.bf16.gmra.mrb[24].mxu0 %v3868_v52  ;;  %1824 = vmatmul.mubr.bf16.gmra.mrb[24].mxu1 %v3869_v53  ;;  %v3951_v52 = vld [vmem:[%s4337_s12 + $0x210] ss:$12 sps:$4 sm:$0xff]   ;;  %v3952_v53 = vld [vmem:[%s4337_s12 + $0x2c0] ss:$12 sps:$4 sm:$0xff]  }
  0xfc   : > { %1639 = vmatprep.mubr.bf16.mxu0 %v3871_v54  ;;  %1831 = vmatprep.mubr.bf16.mxu1 %v3873_v55  ;;  %v3953_v54 = vld [vmem:[%s4337_s12 + $0x22c] ss:$12 sps:$4 sm:$0xff]  }
  0xfd   : > { %v3955_v55 = vld [vmem:[%s4337_s12 + $0x2d8] ss:$12 sps:$4 sm:$0xff]  }
 0x103   : > { %1640 = vmatmul.mubr.bf16.gmra.mrb[28].mxu0 %v3875_v56  ;;  %1832 = vmatmul.mubr.bf16.gmra.mrb[28].mxu1 %v3876_v57  ;;  %v3956_v56 = vld [vmem:[%s4337_s12 + $0x228] ss:$12 sps:$4 sm:$0xff]   ;;  %v3957_v57 = vld [vmem:[%s4337_s12 + $0x2f0] ss:$12 sps:$4 sm:$0xff]  }
 0x104   : > { %1647 = vmatprep.mubr.bf16.mxu0 %v3878_v58  ;;  %3666 = vmatprep.mubr.bf16.mxu1 %v3880_v59 }
 0x10b   : > { %1648 = vmatmul.mubr.bf16.gmra.mrb[32].mxu0 %v3881_v60  ;;  %3667 = vmatmul.mubr.bf16.vlgmr.msra.gmra.mrb[32].mxu1 %v3882_v61 }
 0x10c   : > { %1655 = vmatprep.mubr.bf16.mxu0 %v3883_v62  ;;  %3670 = vmatprep.mubr.bf16.mxu1 %v3885_v63 }
 0x113   : > { %1656 = vmatmul.mubr.bf16.gmra.mrb[36].mxu0 %v3886_v0  ;;  %3671 = vmatmul.mubr.bf16.gmra.mrb[36].mxu1 %v3887_v1 }
 0x114   : > { %1663 = vmatprep.mubr.bf16.mxu0 %v3888_v2  ;;  %3674 = vmatprep.mubr.bf16.mxu1 %v3890_v3 }
 0x11b   : > { %1664 = vmatmul.mubr.bf16.gmra.mrb[40].mxu0 %v3891_v4  ;;  %3675 = vmatmul.mubr.bf16.gmra.mrb[40].mxu1 %v3892_v5 }
 0x11c   : > { %1671 = vmatprep.mubr.bf16.mxu0 %v3893_v6  ;;  %3678 = vmatprep.mubr.bf16.mxu1 %v3895_v7 }
 0x123   : > { %1672 = vmatmul.mubr.bf16.gmra.mrb[44].mxu0 %v3896_v8  ;;  %3679 = vmatmul.mubr.bf16.gmra.mrb[44].mxu1 %v3897_v9 }
 0x124   : > { %1679 = vmatprep.mubr.bf16.mxu0 %v3898_v10  ;;  %3682 = vmatprep.mubr.bf16.mxu1 %v3900_v11 }
 0x12b   : > { %1680 = vmatmul.mubr.bf16.gmra.mrb[48].mxu0 %v3901_v12  ;;  %3683 = vmatmul.mubr.bf16.gmra.mrb[48].mxu1 %v3902_v13 }
 0x12c   : > { %1687 = vmatprep.mubr.bf16.mxu0 %v3903_v14  ;;  %3686 = vmatprep.mubr.bf16.mxu1 %v3905_v15 }
 0x133   : > { %1688 = vmatmul.mubr.bf16.gmra.mrb[52].mxu0 %v3906_v16  ;;  %3687 = vmatmul.mubr.bf16.gmra.mrb[52].mxu1 %v3907_v17 }
 0x134   : > { %1695 = vmatprep.mubr.bf16.mxu0 %v3908_v18  ;;  %3690 = vmatprep.mubr.bf16.mxu1 %v3910_v19 }
 0x13b   : > { %1696 = vmatmul.mubr.bf16.gmra.mrb[56].mxu0 %v3911_v20  ;;  %3691 = vmatmul.mubr.bf16.gmra.mrb[56].mxu1 %v3912_v21 }
 0x13c   : > { %1703 = vmatprep.mubr.bf16.mxu0 %v3913_v22  ;;  %3694 = vmatprep.mubr.bf16.mxu1 %v3915_v23 }
 0x143   : > { %1704 = vmatmul.mubr.bf16.gmra.mrb[60].mxu0 %v3916_v24  ;;  %3695 = vmatmul.mubr.bf16.gmra.mrb[60].mxu1 %v3917_v25 }
 0x144   : > { %1711 = vmatprep.mubr.bf16.mxu0 %v3918_v26  ;;  %3698 = vmatprep.mubr.bf16.mxu1 %v3920_v27 }
 0x14b   : > { %1712 = vmatmul.mubr.bf16.gmra.mrb[64].mxu0 %v3921_v28  ;;  %3699 = vmatmul.mubr.bf16.gmra.mrb[64].mxu1 %v3922_v29 }
 0x14c   : > { %1719 = vmatprep.mubr.bf16.mxu0 %v3923_v30  ;;  %3702 = vmatprep.mubr.bf16.mxu1 %v3925_v31 }
 0x153   : > { %1720 = vmatmul.mubr.bf16.gmra.mrb[68].mxu0 %v3926_v32  ;;  %3703 = vmatmul.mubr.bf16.gmra.mrb[68].mxu1 %v3927_v33 }
 0x154   : > { %1727 = vmatprep.mubr.bf16.mxu0 %v3928_v34  ;;  %3706 = vmatprep.mubr.bf16.mxu1 %v3930_v35 }
 0x15b   : > { %1728 = vmatmul.mubr.bf16.gmra.mrb[72].mxu0 %v3931_v36  ;;  %3707 = vmatmul.mubr.bf16.gmra.mrb[72].mxu1 %v3932_v37 }
 0x15c   : > { %1735 = vmatprep.mubr.bf16.mxu0 %v3933_v38  ;;  %3710 = vmatprep.mubr.bf16.mxu1 %v3935_v39 }
 0x163   : > { %1736 = vmatmul.mubr.bf16.gmra.mrb[76].mxu0 %v3936_v40  ;;  %3711 = vmatmul.mubr.bf16.gmra.mrb[76].mxu1 %v3937_v41 }
 0x164   : > { %1743 = vmatprep.mubr.bf16.mxu0 %v3938_v42  ;;  %3714 = vmatprep.mubr.bf16.mxu1 %v3940_v43 }
 0x16b   : > { %1744 = vmatmul.mubr.bf16.gmra.mrb[80].mxu0 %v3941_v44  ;;  %3715 = vmatmul.mubr.bf16.gmra.mrb[80].mxu1 %v3942_v45 }
 0x16c   : > { %1751 = vmatprep.mubr.bf16.mxu0 %v3943_v46  ;;  %3718 = vmatprep.mubr.bf16.mxu1 %v3945_v47 }
 0x173   : > { %1752 = vmatmul.mubr.bf16.gmra.mrb[84].mxu0 %v3946_v48  ;;  %3719 = vmatmul.mubr.bf16.gmra.mrb[84].mxu1 %v3947_v49 }
 0x174   : > { %1759 = vmatprep.mubr.bf16.mxu0 %v3948_v50  ;;  %3722 = vmatprep.mubr.bf16.mxu1 %v3950_v51 }
 0x17b   : > { %1760 = vmatmul.mubr.bf16.gmra.mrb[88].mxu0 %v3951_v52  ;;  %3723 = vmatmul.mubr.bf16.gmra.mrb[88].mxu1 %v3952_v53 }
 0x17c   : > { %1767 = vmatprep.mubr.bf16.mxu0 %v3953_v54  ;;  %3726 = vmatprep.mubr.bf16.mxu1 %v3955_v55 }
 0x183   : > { %1768 = vmatmul.mubr.bf16.gmra.mrb[92].mxu0 %v3956_v56  ;;  %3727 = vmatmul.mubr.bf16.gmra.mrb[92].mxu1 %v3957_v57 }
 0x19e   : > { %v4556_v58 = vpop.f32.mrb[0].mxu0  ;;  %v4558_v59 = vpop.f32.mrb[0].mxu1 }
 0x19f   : > { %v1587_v60 = vpop.f32.mrb[1].mxu0  ;;  %v1779_v61 = vpop.f32.mrb[1].mxu1 }
 0x1a0   : > { %v4560_v62 = vpop.f32.mrb[2].mxu0  ;;  %v4562_v63 = vpop.f32.mrb[2].mxu1  ;;  %v657_v61 = vld [vmem:[#allocation2 + $0x10] sm:$0xff] }
 0x1a1   : > { %v1590_v0 = vpop.f32.mrb[3].mxu0  ;;  %v1782_v1 = vpop.f32.mrb[3].mxu1 }
 0x1a6   : > { %v1593_v2 = vpop.f32.mrb[4].mxu0  ;;  %v4564_v3 = vpop.f32.mrb[4].mxu1 }
 0x1a7   : > { %v1595_v4 = vpop.f32.mrb[5].mxu0  ;;  %v1787_v5 = vpop.f32.mrb[5].mxu1 }
 0x1a8   : > { %v4566_v6 = vpop.f32.mrb[6].mxu0  ;;  %v4568_v7 = vpop.f32.mrb[6].mxu1  ;;  %v655_v5 = vld [vmem:[#allocation2] sm:$0xff] }
 0x1a9   : > { %v1598_v8 = vpop.f32.mrb[7].mxu0  ;;  %v1790_v9 = vpop.f32.mrb[7].mxu1 }
 0x1ae   : > { %v4570_v10 = vpop.f32.mrb[8].mxu0  ;;  %v4572_v11 = vpop.f32.mrb[8].mxu1 }
 0x1af   : > { %v1603_v12 = vpop.f32.mrb[9].mxu0  ;;  %v1795_v13 = vpop.f32.mrb[9].mxu1 }
 0x1b0   : > { %v4574_v14 = vpop.f32.mrb[10].mxu0  ;;  %v4576_v15 = vpop.f32.mrb[10].mxu1  ;;  %v658_v13 = vld [vmem:[#allocation2 + $0x18] sm:$0xff] }
 0x1b1   : > { %v1606_v16 = vpop.f32.mrb[11].mxu0  ;;  %v1798_v17 = vpop.f32.mrb[11].mxu1 }
 0x1b6   : > { %v4578_v18 = vpop.f32.mrb[12].mxu0  ;;  %v4580_v19 = vpop.f32.mrb[12].mxu1 }
 0x1b7   : > { %v1611_v20 = vpop.f32.mrb[13].mxu0  ;;  %v1803_v21 = vpop.f32.mrb[13].mxu1 }
 0x1b8   : > { %v4582_v22 = vpop.f32.mrb[14].mxu0  ;;  %v4584_v23 = vpop.f32.mrb[14].mxu1 }
 0x1b9   : > { %v1614_v24 = vpop.f32.mrb[15].mxu0  ;;  %v1806_v25 = vpop.f32.mrb[15].mxu1 }
 0x1ba   : > { %v656_v24 = vld [vmem:[#allocation2 + $0x8] sm:$0xff] }
 0x1be   : > { %v4586_v26 = vpop.f32.mrb[16].mxu0  ;;  %v4588_v27 = vpop.f32.mrb[16].mxu1 }
 0x1bf   : > { %v1619_v28 = vpop.f32.mrb[17].mxu0  ;;  %v1811_v29 = vpop.f32.mrb[17].mxu1 }
 0x1c0   : > { %v4590_v30 = vpop.f32.mrb[18].mxu0  ;;  %v4592_v31 = vpop.f32.mrb[18].mxu1 }
 0x1c1   : > { %v1622_v32 = vpop.f32.mrb[19].mxu0  ;;  %v1814_v33 = vpop.f32.mrb[19].mxu1 }
 0x1c2   : > { %v661_v33 = vld [vmem:[#allocation2 + $0x30] sm:$0xff] }
 0x1c6   : > { %v4594_v34 = vpop.f32.mrb[20].mxu0  ;;  %v4596_v35 = vpop.f32.mrb[20].mxu1 }
 0x1c7   : > { %v1627_v36 = vpop.f32.mrb[21].mxu0  ;;  %v1819_v37 = vpop.f32.mrb[21].mxu1 }
 0x1c8   : > { %v4598_v38 = vpop.f32.mrb[22].mxu0  ;;  %v4600_v39 = vpop.f32.mrb[22].mxu1 }
 0x1c9   : > { %v1630_v40 = vpop.f32.mrb[23].mxu0  ;;  %v1822_v41 = vpop.f32.mrb[23].mxu1 }
 0x1ce   : > { %v4602_v42 = vpop.f32.mrb[24].mxu0  ;;  %v4604_v43 = vpop.f32.mrb[24].mxu1 }
 0x1cf   : > { %v1635_v44 = vpop.f32.mrb[25].mxu0  ;;  %v1827_v45 = vpop.f32.mrb[25].mxu1 }
 0x1d0   : > { %v4606_v46 = vpop.f32.mrb[26].mxu0  ;;  %v4608_v47 = vpop.f32.mrb[26].mxu1 }
 0x1d1   : > { %v1638_v48 = vpop.f32.mrb[27].mxu0  ;;  %v1830_v49 = vpop.f32.mrb[27].mxu1 }
 0x1d6   : > { %v4610_v50 = vpop.f32.mrb[28].mxu0  ;;  %v4612_v51 = vpop.f32.mrb[28].mxu1 }
 0x1d7   : > { %v1643_v52 = vpop.f32.mrb[29].mxu0  ;;  %v1835_v53 = vpop.f32.mrb[29].mxu1 }
 0x1d8   : > { %v4614_v54 = vpop.f32.mrb[30].mxu0  ;;  %v4616_v55 = vpop.f32.mrb[30].mxu1 }
 0x1d9   : > { %v1646_v56 = vpop.f32.mrb[31].mxu0  ;;  %v1838_v57 = vpop.f32.mrb[31].mxu1 }
 0x1da   : > { %v660_v56 = vld [vmem:[#allocation2 + $0x28] sm:$0xff] }
 0x1de   : > { %v4618_v60 = vpop.f32.mrb[32].mxu0  ;;  %v3668_v0 = vpop.f32.mrb[32].mxu1 }
 0x1df   : > { %v1883_v1 = vadd.f32 %v3668_v0, %v1593_v2  ;;  %v1651_v4 = vpop.f32.mrb[33].mxu0  ;;  %v1874_v8 = vpop.f32.mrb[33].mxu1 }
 0x1e0   : > { %v1875_v9 = vadd.f32 %v1874_v8, %v4556_v58  ;;  %v4621_v12 = vpop.f32.mrb[34].mxu0  ;;  %v3669_v16 = vpop.f32.mrb[34].mxu1  ;;  %v665_v4 = vld [vmem:[#allocation2 + $0x50] sm:$0xff] }
 0x1e1   : > { %v2131_v17 = vadd.f32 %v1883_v1, %v657_v61  ;;  %v1886_v20 = vadd.f32 %v3669_v16, %v4566_v6  ;;  %v1654_v21 = vpop.f32.mrb[35].mxu0  ;;  %v1877_v25 = vpop.f32.mrb[35].mxu1  ;;  %v659_v6 = vld [vmem:[#allocation2 + $0x20] sm:$0xff] }
 0x1e2   : > { %v2129_v28 = vadd.f32 %v1875_v9, %v655_v5  ;;  %v1878_v29 = vadd.f32 %v1877_v25, %v4560_v62  ;;  %v662_v62 = vld [vmem:[#allocation2 + $0x38] sm:$0xff] }
 0x1e3   : > { %2195 = vst [vmem:[#allocation2 + $0x10] sm:$0xff] %v2131_v17  ;;  %v2132_v2 = vadd.f32 %v1886_v20, %v658_v13 }
 0x1e4   : > { %2193 = vst [vmem:[#allocation2] sm:$0xff] %v2129_v28  ;;  %v2130_v32 = vadd.f32 %v1878_v29, %v656_v24  ;;  %v664_v28 = vld [vmem:[#allocation2 + $0x48] sm:$0xff] }
 0x1e5   : > { %2196 = vst [vmem:[#allocation2 + $0x18] sm:$0xff] %v2132_v2 }
 0x1e6   : > { %2194 = vst [vmem:[#allocation2 + $0x8] sm:$0xff] %v2130_v32  ;;  %v4625_v58 = vpop.f32.mrb[36].mxu0  ;;  %v3672_v36 = vpop.f32.mrb[36].mxu1 }
 0x1e7   : > { %v1899_v37 = vadd.f32 %v3672_v36, %v4578_v18  ;;  %v1659_v40 = vpop.f32.mrb[37].mxu0  ;;  %v1890_v41 = vpop.f32.mrb[37].mxu1  ;;  %v669_v36 = vld [vmem:[#allocation2 + $0x70] sm:$0xff] }
 0x1e8   : > { %v1891_v44 = vadd.f32 %v1890_v41, %v4570_v10  ;;  %v4629_v45 = vpop.f32.mrb[38].mxu0  ;;  %v3673_v48 = vpop.f32.mrb[38].mxu1  ;;  %v667_v41 = vld [vmem:[#allocation2 + $0x60] sm:$0xff] }
 0x1e9   : > { %v2135_v49 = vadd.f32 %v1899_v37, %v661_v33  ;;  %v1902_v52 = vadd.f32 %v3673_v48, %v4582_v22  ;;  %v1662_v53 = vpop.f32.mrb[39].mxu0  ;;  %v1893_v57 = vpop.f32.mrb[39].mxu1  ;;  %v663_v22 = vld [vmem:[#allocation2 + $0x40] sm:$0xff]  ;;  %v670_v48 = vld [vmem:[#allocation2 + $0x78] sm:$0xff] }
 0x1ea   : > { %v2133_v61 = vadd.f32 %v1891_v44, %v659_v6  ;;  %v1894_v0 = vadd.f32 %v1893_v57, %v4574_v14  ;;  %v666_v14 = vld [vmem:[#allocation2 + $0x58] sm:$0xff] }
 0x1eb   : > { %2199 = vst [vmem:[#allocation2 + $0x30] sm:$0xff] %v2135_v49  ;;  %v2136_v18 = vadd.f32 %v1902_v52, %v662_v62 }
 0x1ec   : > { %2197 = vst [vmem:[#allocation2 + $0x20] sm:$0xff] %v2133_v61  ;;  %v2134_v1 = vadd.f32 %v1894_v0, %v660_v56  ;;  %v668_v56 = vld [vmem:[#allocation2 + $0x68] sm:$0xff] }
 0x1ed   : > { %2200 = vst [vmem:[#allocation2 + $0x38] sm:$0xff] %v2136_v18 }
 0x1ee   : > { %2198 = vst [vmem:[#allocation2 + $0x28] sm:$0xff] %v2134_v1  ;;  %v4633_v10 = vpop.f32.mrb[40].mxu0  ;;  %v3676_v5 = vpop.f32.mrb[40].mxu1 }
 0x1ef   : > { %v1915_v8 = vadd.f32 %v3676_v5, %v4594_v34  ;;  %v1667_v9 = vpop.f32.mrb[41].mxu0  ;;  %v1906_v13 = vpop.f32.mrb[41].mxu1 }
 0x1f0   : > { %v1907_v16 = vadd.f32 %v1906_v13, %v4586_v26  ;;  %v4637_v17 = vpop.f32.mrb[42].mxu0  ;;  %v3677_v20 = vpop.f32.mrb[42].mxu1  ;;  %v671_v9 = vld [vmem:[#allocation2 + $0x80] sm:$0xff] }
 0x1f1   : > { %v2139_v21 = vadd.f32 %v1915_v8, %v665_v4  ;;  %v1918_v24 = vadd.f32 %v3677_v20, %v4598_v38  ;;  %v1670_v25 = vpop.f32.mrb[43].mxu0  ;;  %v1909_v29 = vpop.f32.mrb[43].mxu1 }
 0x1f2   : > { %v2137_v2 = vadd.f32 %v1907_v16, %v663_v22  ;;  %v1910_v32 = vadd.f32 %v1909_v29, %v4590_v30  ;;  %v674_v16 = vld [vmem:[#allocation2 + $0x98] sm:$0xff] }
 0x1f3   : > { %2203 = vst [vmem:[#allocation2 + $0x50] sm:$0xff] %v2139_v21  ;;  %v2140_v34 = vadd.f32 %v1918_v24, %v666_v14  ;;  %v672_v24 = vld [vmem:[#allocation2 + $0x88] sm:$0xff] }
 0x1f4   : > { %2201 = vst [vmem:[#allocation2 + $0x40] sm:$0xff] %v2137_v2  ;;  %v2138_v33 = vadd.f32 %v1910_v32, %v664_v28 }
 0x1f5   : > { %2204 = vst [vmem:[#allocation2 + $0x58] sm:$0xff] %v2140_v34 }
 0x1f6   : > { %2202 = vst [vmem:[#allocation2 + $0x48] sm:$0xff] %v2138_v33  ;;  %v1673_v26 = vpop.f32.mrb[44].mxu0  ;;  %v3680_v37 = vpop.f32.mrb[44].mxu1 }
 0x1f7   : > { %v1931_v40 = vadd.f32 %v3680_v37, %v4610_v50  ;;  %v1675_v6 = vpop.f32.mrb[45].mxu0  ;;  %v1922_v38 = vpop.f32.mrb[45].mxu1  ;;  %v675_v37 = vld [vmem:[#allocation2 + $0xa0] sm:$0xff] }
 0x1f8   : > { %v1923_v44 = vadd.f32 %v1922_v38, %v4602_v42  ;;  %v1676_v62 = vpop.f32.mrb[46].mxu0  ;;  %v3681_v49 = vpop.f32.mrb[46].mxu1  ;;  %v673_v42 = vld [vmem:[#allocation2 + $0x90] sm:$0xff] }
 0x1f9   : > { %v2143_v30 = vadd.f32 %v1931_v40, %v669_v36  ;;  %v1934_v52 = vadd.f32 %v3681_v49, %v4614_v54  ;;  %v1678_v53 = vpop.f32.mrb[47].mxu0  ;;  %v1925_v57 = vpop.f32.mrb[47].mxu1  ;;  %v676_v49 = vld [vmem:[#allocation2 + $0xa8] sm:$0xff] }
 0x1fa   : > { %v2141_v61 = vadd.f32 %v1923_v44, %v667_v41  ;;  %v1926_v0 = vadd.f32 %v1925_v57, %v4606_v46  ;;  %v678_v41 = vld [vmem:[#allocation2 + $0xb8] sm:$0xff] }
 0x1fb   : > { %2207 = vst [vmem:[#allocation2 + $0x70] sm:$0xff] %v2143_v30  ;;  %v2144_v18 = vadd.f32 %v1934_v52, %v670_v48 }
 0x1fc   : > { %2205 = vst [vmem:[#allocation2 + $0x60] sm:$0xff] %v2141_v61  ;;  %v2142_v50 = vadd.f32 %v1926_v0, %v668_v56  ;;  %v681_v61 = vld [vmem:[#allocation2 + $0xd0] sm:$0xff] }
 0x1fd   : > { %2208 = vst [vmem:[#allocation2 + $0x78] sm:$0xff] %v2144_v18 }
 0x1fe   : > { %2206 = vst [vmem:[#allocation2 + $0x68] sm:$0xff] %v2142_v50  ;;  %v1681_v1 = vpop.f32.mrb[48].mxu0  ;;  %v3684_v4 = vpop.f32.mrb[48].mxu1  ;;  %v679_v50 = vld [vmem:[#allocation2 + $0xc0] sm:$0xff] }
 0x1ff   : > { %v1947_v5 = vadd.f32 %v3684_v4, %v4625_v58  ;;  %v1683_v8 = vpop.f32.mrb[49].mxu0  ;;  %v1938_v54 = vpop.f32.mrb[49].mxu1 }
 0x200   : > { %v1939_v22 = vadd.f32 %v1938_v54, %v4618_v60  ;;  %v1684_v13 = vpop.f32.mrb[50].mxu0  ;;  %v3685_v14 = vpop.f32.mrb[50].mxu1  ;;  %v677_v60 = vld [vmem:[#allocation2 + $0xb0] sm:$0xff] }
 0x201   : > { %v2147_v46 = vadd.f32 %v1947_v5, %v673_v42  ;;  %v1950_v20 = vadd.f32 %v3685_v14, %v4629_v45  ;;  %v1686_v21 = vpop.f32.mrb[51].mxu0  ;;  %v1941_v25 = vpop.f32.mrb[51].mxu1  ;;  %v682_v5 = vld [vmem:[#allocation2 + $0xd8] sm:$0xff] }
 0x202   : > { %v2145_v28 = vadd.f32 %v1939_v22, %v671_v9  ;;  %v1942_v29 = vadd.f32 %v1941_v25, %v4621_v12  ;;  %v680_v22 = vld [vmem:[#allocation2 + $0xc8] sm:$0xff]  ;;  %v685_v25 = vld [vmem:[#allocation2 + $0xf0] sm:$0xff] }
 0x203   : > { %2211 = vst [vmem:[#allocation2 + $0x90] sm:$0xff] %v2147_v46  ;;  %v2148_v2 = vadd.f32 %v1950_v20, %v674_v16 }
 0x204   : > { %2209 = vst [vmem:[#allocation2 + $0x80] sm:$0xff] %v2145_v28  ;;  %v2146_v58 = vadd.f32 %v1942_v29, %v672_v24 }
 0x205   : > { %2212 = vst [vmem:[#allocation2 + $0x98] sm:$0xff] %v2148_v2  ;;  %v683_v2 = vld [vmem:[#allocation2 + $0xe0] sm:$0xff] }
 0x206   : > { %2210 = vst [vmem:[#allocation2 + $0x88] sm:$0xff] %v2146_v58  ;;  %v1689_v32 = vpop.f32.mrb[52].mxu0  ;;  %v3688_v34 = vpop.f32.mrb[52].mxu1 }
 0x207   : > { %v1963_v33 = vadd.f32 %v3688_v34, %v1673_v26  ;;  %v1691_v36 = vpop.f32.mrb[53].mxu0  ;;  %v1954_v40 = vpop.f32.mrb[53].mxu1  ;;  %v686_v34 = vld [vmem:[#allocation2 + $0xf8] sm:$0xff] }
 0x208   : > { %v1955_v45 = vadd.f32 %v1954_v40, %v4633_v10  ;;  %v1692_v6 = vpop.f32.mrb[54].mxu0  ;;  %v3689_v38 = vpop.f32.mrb[54].mxu1  ;;  %v684_v40 = vld [vmem:[#allocation2 + $0xe8] sm:$0xff] }
 0x209   : > { %v2151_v44 = vadd.f32 %v1963_v33, %v677_v60  ;;  %v1966_v12 = vadd.f32 %v3689_v38, %v1676_v62  ;;  %v1694_v48 = vpop.f32.mrb[55].mxu0  ;;  %v1957_v30 = vpop.f32.mrb[55].mxu1 }
 0x20a   : > { %v2149_v52 = vadd.f32 %v1955_v45, %v675_v37  ;;  %v1958_v53 = vadd.f32 %v1957_v30, %v4637_v17  ;;  %v687_v30 = vld [vmem:[#allocation2 + $0x100] sm:$0xff] }
 0x20b   : > { %2215 = vst [vmem:[#allocation2 + $0xb0] sm:$0xff] %v2151_v44  ;;  %v2152_v56 = vadd.f32 %v1966_v12, %v678_v41 }
 0x20c   : > { %2213 = vst [vmem:[#allocation2 + $0xa0] sm:$0xff] %v2149_v52  ;;  %v2150_v26 = vadd.f32 %v1958_v53, %v676_v49 }
 0x20d   : > { %2216 = vst [vmem:[#allocation2 + $0xb8] sm:$0xff] %v2152_v56 }
 0x20e   : > { %2214 = vst [vmem:[#allocation2 + $0xa8] sm:$0xff] %v2150_v26  ;;  %v1697_v57 = vpop.f32.mrb[56].mxu0  ;;  %v3692_v10 = vpop.f32.mrb[56].mxu1 }
 0x20f   : > { %v1979_v0 = vadd.f32 %v3692_v10, %v1689_v32  ;;  %v1699_v18 = vpop.f32.mrb[57].mxu0  ;;  %v1970_v42 = vpop.f32.mrb[57].mxu1 }
 0x210   : > { %v1971_v62 = vadd.f32 %v1970_v42, %v1681_v1  ;;  %v1700_v4 = vpop.f32.mrb[58].mxu0  ;;  %v3693_v8 = vpop.f32.mrb[58].mxu1  ;;  %v689_v42 = vld [vmem:[#allocation2 + $0x110] sm:$0xff] }
 0x211   : > { %v2155_v9 = vadd.f32 %v1979_v0, %v681_v61  ;;  %v1982_v54 = vadd.f32 %v3693_v8, %v1692_v6  ;;  %v1702_v17 = vpop.f32.mrb[59].mxu0  ;;  %v1973_v16 = vpop.f32.mrb[59].mxu1  ;;  %v688_v61 = vld [vmem:[#allocation2 + $0x108] sm:$0xff] }
 0x212   : > { %v2153_v14 = vadd.f32 %v1971_v62, %v679_v50  ;;  %v1974_v46 = vadd.f32 %v1973_v16, %v1684_v13 }
 0x213   : > { %2219 = vst [vmem:[#allocation2 + $0xd0] sm:$0xff] %v2155_v9  ;;  %v2156_v20 = vadd.f32 %v1982_v54, %v682_v5  ;;  %v690_v54 = vld [vmem:[#allocation2 + $0x118] sm:$0xff] }
 0x214   : > { %2217 = vst [vmem:[#allocation2 + $0xc0] sm:$0xff] %v2153_v14  ;;  %v2154_v21 = vadd.f32 %v1974_v46, %v680_v22 }
 0x215   : > { %2220 = vst [vmem:[#allocation2 + $0xd8] sm:$0xff] %v2156_v20 }
 0x216   : > { %2218 = vst [vmem:[#allocation2 + $0xc8] sm:$0xff] %v2154_v21  ;;  %v1705_v24 = vpop.f32.mrb[60].mxu0  ;;  %v3696_v28 = vpop.f32.mrb[60].mxu1 }
 0x217   : > { %v1995_v1 = vadd.f32 %v3696_v28, %v1705_v24  ;;  %v1707_v29 = vpop.f32.mrb[61].mxu0  ;;  %v1986_v58 = vpop.f32.mrb[61].mxu1  ;;  %v691_v24 = vld [vmem:[#allocation2 + $0x120] sm:$0xff] }
 0x218   : > { %v1987_v32 = vadd.f32 %v1986_v58, %v1697_v57  ;;  %v1708_v60 = vpop.f32.mrb[62].mxu0  ;;  %v3697_v33 = vpop.f32.mrb[62].mxu1  ;;  %v692_v58 = vld [vmem:[#allocation2 + $0x128] sm:$0xff] }
 0x219   : > { %v2159_v36 = vadd.f32 %v1995_v1, %v685_v25  ;;  %v1998_v37 = vadd.f32 %v3697_v33, %v1708_v60  ;;  %v1710_v13 = vpop.f32.mrb[63].mxu0  ;;  %v1989_v45 = vpop.f32.mrb[63].mxu1 }
 0x21a   : > { %v2157_v6 = vadd.f32 %v1987_v32, %v683_v2  ;;  %v1990_v41 = vadd.f32 %v1989_v45, %v1700_v4 }
 0x21b   : > { %2223 = vst [vmem:[#allocation2 + $0xf0] sm:$0xff] %v2159_v36  ;;  %v2160_v38 = vadd.f32 %v1998_v37, %v686_v34 }
 0x21c   : > { %2221 = vst [vmem:[#allocation2 + $0xe0] sm:$0xff] %v2157_v6  ;;  %v2158_v44 = vadd.f32 %v1990_v41, %v684_v40  ;;  %v693_v40 = vld [vmem:[#allocation2 + $0x130] sm:$0xff] }
 0x21d   : > { %2224 = vst [vmem:[#allocation2 + $0xf8] sm:$0xff] %v2160_v38 }
 0x21e   : > { %2222 = vst [vmem:[#allocation2 + $0xe8] sm:$0xff] %v2158_v44  ;;  %v1713_v12 = vpop.f32.mrb[64].mxu0  ;;  %v3700_v48 = vpop.f32.mrb[64].mxu1 }
 0x21f   : > { %v1715_v49 = vpop.f32.mrb[65].mxu0  ;;  %v2002_v52 = vpop.f32.mrb[65].mxu1 }
 0x220   : > { %v2003_v53 = vadd.f32 %v2002_v52, %v1713_v12  ;;  %v1716_v56 = vpop.f32.mrb[66].mxu0  ;;  %v3701_v26 = vpop.f32.mrb[66].mxu1  ;;  %v694_v12 = vld [vmem:[#allocation2 + $0x138] sm:$0xff] }
 0x221   : > { %v1718_v57 = vpop.f32.mrb[67].mxu0  ;;  %v2005_v10 = vpop.f32.mrb[67].mxu1 }
 0x222   : > { %v2161_v0 = vadd.f32 %v2003_v53, %v687_v30  ;;  %v2006_v18 = vadd.f32 %v2005_v10, %v1716_v56  ;;  %v695_v57 = vld [vmem:[#allocation2 + $0x140] sm:$0xff]  ;;  %v705_v10 = vld [vmem:[#allocation2 + $0x190] sm:$0xff] }
 0x224   : > { %2225 = vst [vmem:[#allocation2 + $0x100] sm:$0xff] %v2161_v0  ;;  %v2162_v50 = vadd.f32 %v2006_v18, %v688_v61 }
 0x226   : > { %2226 = vst [vmem:[#allocation2 + $0x108] sm:$0xff] %v2162_v50  ;;  %v1721_v62 = vpop.f32.mrb[68].mxu0  ;;  %v3704_v4 = vpop.f32.mrb[68].mxu1 }
 0x227   : > { %v2011_v5 = vadd.f32 %v3700_v48, %v1721_v62  ;;  %v1723_v8 = vpop.f32.mrb[69].mxu0  ;;  %v2018_v9 = vpop.f32.mrb[69].mxu1  ;;  %v703_v62 = vld [vmem:[#allocation2 + $0x180] sm:$0xff] }
 0x228   : > { %v1724_v17 = vpop.f32.mrb[70].mxu0  ;;  %v3705_v22 = vpop.f32.mrb[70].mxu1  ;;  %v696_v8 = vld [vmem:[#allocation2 + $0x148] sm:$0xff] }
 0x229   : > { %v2163_v16 = vadd.f32 %v2011_v5, %v689_v42  ;;  %v2014_v14 = vadd.f32 %v3701_v26, %v1724_v17  ;;  %v1726_v46 = vpop.f32.mrb[71].mxu0  ;;  %v2021_v20 = vpop.f32.mrb[71].mxu1 }
 0x22b   : > { %2227 = vst [vmem:[#allocation2 + $0x110] sm:$0xff] %v2163_v16  ;;  %v2164_v21 = vadd.f32 %v2014_v14, %v690_v54  ;;  %v706_v54 = vld [vmem:[#allocation2 + $0x198] sm:$0xff] }
 0x22d   : > { %2228 = vst [vmem:[#allocation2 + $0x118] sm:$0xff] %v2164_v21  ;;  %v704_v21 = vld [vmem:[#allocation2 + $0x188] sm:$0xff] }
 0x22e   : > { %v1729_v25 = vpop.f32.mrb[72].mxu0  ;;  %v4651_v28 = vpop.f32.mrb[72].mxu1 }
 0x22f   : > { %v2019_v1 = vadd.f32 %v2018_v9, %v1729_v25  ;;  %v1731_v29 = vpop.f32.mrb[73].mxu0  ;;  %v2034_v2 = vpop.f32.mrb[73].mxu1 }
 0x230   : > { %v1732_v32 = vpop.f32.mrb[74].mxu0  ;;  %v4653_v60 = vpop.f32.mrb[74].mxu1 }
 0x231   : > { %v2165_v34 = vadd.f32 %v2019_v1, %v691_v24  ;;  %v2022_v33 = vadd.f32 %v2021_v20, %v1732_v32  ;;  %v1734_v36 = vpop.f32.mrb[75].mxu0  ;;  %v2037_v37 = vpop.f32.mrb[75].mxu1  ;;  %v709_v32 = vld [vmem:[#allocation2 + $0x1b0] sm:$0xff] }
 0x233   : > { %2229 = vst [vmem:[#allocation2 + $0x120] sm:$0xff] %v2165_v34  ;;  %v2166_v13 = vadd.f32 %v2022_v33, %v692_v58 }
 0x235   : > { %2230 = vst [vmem:[#allocation2 + $0x128] sm:$0xff] %v2166_v13 }
 0x236   : > { %v1737_v45 = vpop.f32.mrb[76].mxu0  ;;  %v4655_v6 = vpop.f32.mrb[76].mxu1 }
 0x237   : > { %v2027_v41 = vadd.f32 %v3704_v4, %v1737_v45  ;;  %v1739_v38 = vpop.f32.mrb[77].mxu0  ;;  %v4657_v44 = vpop.f32.mrb[77].mxu1 }
 0x238   : > { %v1740_v48 = vpop.f32.mrb[78].mxu0  ;;  %v4659_v49 = vpop.f32.mrb[78].mxu1 }
 0x239   : > { %v2167_v30 = vadd.f32 %v2027_v41, %v693_v40  ;;  %v2030_v52 = vadd.f32 %v3705_v22, %v1740_v48  ;;  %v1742_v53 = vpop.f32.mrb[79].mxu0  ;;  %v4661_v56 = vpop.f32.mrb[79].mxu1  ;;  %v698_v40 = vld [vmem:[#allocation2 + $0x158] sm:$0xff] }
 0x23a   : > { %v710_v41 = vld [vmem:[#allocation2 + $0x1b8] sm:$0xff] }
 0x23b   : > { %2231 = vst [vmem:[#allocation2 + $0x130] sm:$0xff] %v2167_v30  ;;  %v2168_v26 = vadd.f32 %v2030_v52, %v694_v12 }
 0x23d   : > { %2232 = vst [vmem:[#allocation2 + $0x138] sm:$0xff] %v2168_v26  ;;  %v708_v26 = vld [vmem:[#allocation2 + $0x1a8] sm:$0xff] }
 0x23e   : > { %v1745_v61 = vpop.f32.mrb[80].mxu0  ;;  %v3716_v0 = vpop.f32.mrb[80].mxu1 }
 0x23f   : > { %v2035_v18 = vadd.f32 %v2034_v2, %v1745_v61  ;;  %v2075_v50 = vadd.f32 %v3716_v0, %v4564_v3  ;;  %v1747_v42 = vpop.f32.mrb[81].mxu0  ;;  %v2066_v4 = vpop.f32.mrb[81].mxu1  ;;  %v697_v2 = vld [vmem:[#allocation2 + $0x150] sm:$0xff]  ;;  %v699_v0 = vld [vmem:[#allocation2 + $0x160] sm:$0xff] }
 0x240   : > { %v2067_v5 = vadd.f32 %v2066_v4, %v4558_v59  ;;  %v1748_v9 = vpop.f32.mrb[82].mxu0  ;;  %v3717_v17 = vpop.f32.mrb[82].mxu1  ;;  %v711_v4 = vld [vmem:[#allocation2 + $0x1c0] sm:$0xff] }
 0x241   : > { %v2169_v22 = vadd.f32 %v2035_v18, %v695_v57  ;;  %v2179_v16 = vadd.f32 %v2075_v50, %v705_v10  ;;  %v2038_v14 = vadd.f32 %v2037_v37, %v1748_v9  ;;  %v2078_v46 = vadd.f32 %v3717_v17, %v4568_v7  ;;  %v1750_v20 = vpop.f32.mrb[83].mxu0  ;;  %v2069_v24 = vpop.f32.mrb[83].mxu1  ;;  %v707_v37 = vld [vmem:[#allocation2 + $0x1a0] sm:$0xff] }
 0x242   : > { %v2177_v25 = vadd.f32 %v2067_v5, %v703_v62  ;;  %v2070_v3 = vadd.f32 %v2069_v24, %v4562_v63 }
 0x243   : > { %2233 = vst [vmem:[#allocation2 + $0x140] sm:$0xff] %v2169_v22  ;;  %2243 = vst [vmem:[#allocation2 + $0x190] sm:$0xff] %v2179_v16  ;;  %v2170_v1 = vadd.f32 %v2038_v14, %v696_v8  ;;  %v2180_v29 = vadd.f32 %v2078_v46, %v706_v54  ;;  %v700_v8 = vld [vmem:[#allocation2 + $0x168] sm:$0xff]  ;;  %v714_v54 = vld [vmem:[#allocation2 + $0x1d8] sm:$0xff] }
 0x244   : > { %2241 = vst [vmem:[#allocation2 + $0x180] sm:$0xff] %v2177_v25  ;;  %v2178_v59 = vadd.f32 %v2070_v3, %v704_v21  ;;  %v712_v21 = vld [vmem:[#allocation2 + $0x1c8] sm:$0xff] }
 0x245   : > { %2234 = vst [vmem:[#allocation2 + $0x148] sm:$0xff] %v2170_v1  ;;  %2244 = vst [vmem:[#allocation2 + $0x198] sm:$0xff] %v2180_v29  ;;  %v701_v1 = vld [vmem:[#allocation2 + $0x170] sm:$0xff] }
 0x246   : > { %2242 = vst [vmem:[#allocation2 + $0x188] sm:$0xff] %v2178_v59  ;;  %v1753_v58 = vpop.f32.mrb[84].mxu0  ;;  %v3720_v34 = vpop.f32.mrb[84].mxu1 }
 0x247   : > { %v2043_v7 = vadd.f32 %v4651_v28, %v1753_v58  ;;  %v2091_v33 = vadd.f32 %v3720_v34, %v4580_v19  ;;  %v1755_v36 = vpop.f32.mrb[85].mxu0  ;;  %v2082_v63 = vpop.f32.mrb[85].mxu1 }
 0x248   : > { %v2083_v13 = vadd.f32 %v2082_v63, %v4572_v11  ;;  %v1756_v45 = vpop.f32.mrb[86].mxu0  ;;  %v3721_v38 = vpop.f32.mrb[86].mxu1  ;;  %v718_v36 = vld [vmem:[#allocation2 + $0x1f8] sm:$0xff] }
 0x249   : > { %v2171_v12 = vadd.f32 %v2043_v7, %v697_v2  ;;  %v2183_v48 = vadd.f32 %v2091_v33, %v709_v32  ;;  %v2046_v30 = vadd.f32 %v4653_v60, %v1756_v45  ;;  %v2094_v52 = vadd.f32 %v3721_v38, %v4584_v23  ;;  %v1758_v53 = vpop.f32.mrb[87].mxu0  ;;  %v2085_v28 = vpop.f32.mrb[87].mxu1  ;;  %v713_v60 = vld [vmem:[#allocation2 + $0x1d0] sm:$0xff]  ;;  %v715_v32 = vld [vmem:[#allocation2 + $0x1e0] sm:$0xff]  ;;  %v702_v7 = vld [vmem:[#allocation2 + $0x178] sm:$0xff] }
 0x24a   : > { %v2181_v57 = vadd.f32 %v2083_v13, %v707_v37  ;;  %v2086_v19 = vadd.f32 %v2085_v28, %v4576_v15  ;;  %v716_v38 = vld [vmem:[#allocation2 + $0x1e8] sm:$0xff]  ;;  %v4692_v53 = vld [vmem:[#allocation2 + $0x18] sm:$0xff] (!%p3283_p11) }
 0x24b   : > { %2235 = vst [vmem:[#allocation2 + $0x150] sm:$0xff] %v2171_v12  ;;  %2247 = vst [vmem:[#allocation2 + $0x1b0] sm:$0xff] %v2183_v48  ;;  %v2172_v61 = vadd.f32 %v2046_v30, %v698_v40  ;;  %v2184_v11 = vadd.f32 %v2094_v52, %v710_v41  ;;  %v4690_v52 = vld [vmem:[#allocation2 + $0x10] sm:$0xff] (!%p3283_p11) }
 0x24c   : > { %2245 = vst [vmem:[#allocation2 + $0x1a0] sm:$0xff] %v2181_v57  ;;  %v2182_v10 = vadd.f32 %v2086_v19, %v708_v26  ;;  %v2397_v57 = vmul.f32 (!%p3283_p11), %v4690_v52, %v4690_v52  ;;  %v4702_v19 = vld [vmem:[#allocation2 + $0x20] sm:$0xff] (!%p3283_p11) }
 0x24d   : > { %2236 = vst [vmem:[#allocation2 + $0x158] sm:$0xff] %v2172_v61  ;;  %2248 = vst [vmem:[#allocation2 + $0x1b8] sm:$0xff] %v2184_v11  ;;  %v2398_v11 = vmul.f32 (!%p3283_p11), %v4692_v53, %v4692_v53 }
 0x24e   : > { %2246 = vst [vmem:[#allocation2 + $0x1a8] sm:$0xff] %v2182_v10  ;;  %v1761_v18 = vpop.f32.mrb[88].mxu0  ;;  %v3724_v50 = vpop.f32.mrb[88].mxu1 }
 0x24f   : > { %v2051_v23 = vadd.f32 %v4657_v44, %v1761_v18  ;;  %v2107_v42 = vadd.f32 %v3724_v50, %v4596_v35  ;;  %v1763_v62 = vpop.f32.mrb[89].mxu0  ;;  %v2098_v15 = vpop.f32.mrb[89].mxu1 }
 0x250   : > { %v2099_v5 = vadd.f32 %v2098_v15, %v4588_v27  ;;  %v1764_v9 = vpop.f32.mrb[90].mxu0  ;;  %v3725_v17 = vpop.f32.mrb[90].mxu1  ;;  %v4717_v15 = vld [vmem:[#allocation2 + $0x38] sm:$0xff] (!%p3283_p11) }
 0x251   : > { %v2173_v22 = vadd.f32 %v2051_v23, %v699_v0  ;;  %v2187_v16 = vadd.f32 %v2107_v42, %v713_v60  ;;  %v2054_v14 = vadd.f32 %v4661_v56, %v1764_v9  ;;  %v2110_v46 = vadd.f32 %v3725_v17, %v4600_v39  ;;  %v1766_v20 = vpop.f32.mrb[91].mxu0  ;;  %v2101_v44 = vpop.f32.mrb[91].mxu1  ;;  %v717_v56 = vld [vmem:[#allocation2 + $0x1f0] sm:$0xff]  ;;  %v4707_v0 = vld [vmem:[#allocation2 + $0x28] sm:$0xff] (!%p3283_p11) }
 0x252   : > { %v2185_v24 = vadd.f32 %v2099_v5, %v711_v4  ;;  %v2102_v35 = vadd.f32 %v2101_v44, %v4592_v31  ;;  %v2399_v60 = vmul.f32 (!%p3283_p11), %v4702_v19, %v4702_v19  ;;  %v4712_v23 = vld [vmem:[#allocation2 + $0x30] sm:$0xff] (!%p3283_p11)  ;;  %v2400_v62 = vmul.f32 (!%p3283_p11), %v4707_v0, %v4707_v0 }
 0x253   : > { %2237 = vst [vmem:[#allocation2 + $0x160] sm:$0xff] %v2173_v22  ;;  %2251 = vst [vmem:[#allocation2 + $0x1d0] sm:$0xff] %v2187_v16  ;;  %v2174_v25 = vadd.f32 %v2054_v14, %v700_v8  ;;  %v2188_v27 = vadd.f32 %v2110_v46, %v714_v54  ;;  %v2401_v8 = vmul.f32 (!%p3283_p11), %v4712_v23, %v4712_v23  ;;  %v4722_v54 = vld [vmem:[#allocation2 + $0x40] sm:$0xff] (!%p3283_p11)  ;;  %v4727_v14 = vld [vmem:[#allocation2 + $0x48] sm:$0xff] (!%p3283_p11) }
 0x254   : > { %2249 = vst [vmem:[#allocation2 + $0x1c0] sm:$0xff] %v2185_v24  ;;  %v2186_v3 = vadd.f32 %v2102_v35, %v712_v21  ;;  %v2402_v22 = vmul.f32 (!%p3283_p11), %v4717_v15, %v4717_v15  ;;  %v2403_v20 = vmul.f32 (!%p3283_p11), %v4722_v54, %v4722_v54  ;;  %v4732_v44 = vld [vmem:[#allocation2 + $0x50] sm:$0xff] (!%p3283_p11)  ;;  %v2404_v35 = vmul.f32 (!%p3283_p11), %v4727_v14, %v4727_v14 }
 0x255   : > { %2238 = vst [vmem:[#allocation2 + $0x168] sm:$0xff] %v2174_v25  ;;  %2252 = vst [vmem:[#allocation2 + $0x1d8] sm:$0xff] %v2188_v27  ;;  %v4737_v27 = vld [vmem:[#allocation2 + $0x58] sm:$0xff] (!%p3283_p11) }
 0x256   : > { %2250 = vst [vmem:[#allocation2 + $0x1c8] sm:$0xff] %v2186_v3  ;;  %v1769_v29 = vpop.f32.mrb[92].mxu0  ;;  %v3728_v59 = vpop.f32.mrb[92].mxu1  ;;  %v4739_v3 = vld [vmem:[#allocation2 + $0x60] sm:$0xff] (!%p3283_p11) }
 0x257   : > { %v2059_v39 = vadd.f32 %v4655_v6, %v1769_v29  ;;  %v2123_v2 = vadd.f32 %v3728_v59, %v4612_v51  ;;  %v1771_v58 = vpop.f32.mrb[93].mxu0  ;;  %v2114_v31 = vpop.f32.mrb[93].mxu1  ;;  %v4746_v59 = vld [vmem:[#allocation2 + $0x78] sm:$0xff] (!%p3283_p11) }
 0x258   : > { %v2115_v34 = vadd.f32 %v2114_v31, %v4604_v43  ;;  %v1772_v33 = vpop.f32.mrb[94].mxu0  ;;  %v3729_v37 = vpop.f32.mrb[94].mxu1  ;;  %2260 = sbr.rel (%p3283_p11) target bundleno = 744 (0x2e8), region = 62 }
 0x259   : > { %v2175_v63 = vadd.f32 %v2059_v39, %v701_v1  ;;  %v2191_v13 = vadd.f32 %v2123_v2, %v717_v56  ;;  %v2062_v40 = vadd.f32 %v4659_v49, %v1772_v33  ;;  %v2126_v45 = vadd.f32 %v3729_v37, %v4616_v55  ;;  %v1774_v41 = vpop.f32.mrb[95].mxu0  ;;  %v2117_v6 = vpop.f32.mrb[95].mxu1  ;;  %v4686_v49 = vld [vmem:[#allocation2] sm:$0xff] (!%p3283_p11)  ;;  %v4688_v55 = vld [vmem:[#allocation2 + $0x8] sm:$0xff] (!%p3283_p11)  ;;  %v4744_v56 = vld [vmem:[#allocation2 + $0x70] sm:$0xff] (!%p3283_p11) }
 0x25a   : > { %v2189_v12 = vadd.f32 %v2115_v34, %v715_v32  ;;  %v2118_v51 = vadd.f32 %v2117_v6, %v4608_v47  ;;  %v2325_v47 = vadd.f32 (!%p3283_p11), %v4688_v55, %v4686_v49  ;;  %v2395_v26 = vmul.f32 (!%p3283_p11), %v4686_v49, %v4686_v49  ;;  %v4741_v1 = vld [vmem:[#allocation2 + $0x68] sm:$0xff] (!%p3283_p11)  ;;  %v4748_v39 = vld [vmem:[#allocation2 + $0x80] sm:$0xff] (!%p3283_p11)  ;;  %v4778_v41 = vld [vmem:[#allocation2 + $0x98] sm:$0xff] (!%p3283_p11) }
 0x25b   : > { %2239 = vst [vmem:[#allocation2 + $0x170] sm:$0xff] %v2175_v63  ;;  %2255 = vst [vmem:[#allocation2 + $0x1f0] sm:$0xff] %v2191_v13  ;;  %v2176_v48 = vadd.f32 %v2062_v40, %v702_v7  ;;  %v2192_v43 = vadd.f32 %v2126_v45, %v718_v36  ;;  %v2396_v28 = vmul.f32 (!%p3283_p11), %v4688_v55, %v4688_v55  ;;  %v4752_v32 = vld [vmem:[#allocation2 + $0x88] sm:$0xff] (!%p3283_p11)  ;;  %v4776_v45 = vld [vmem:[#allocation2 + $0x90] sm:$0xff] (!%p3283_p11) }
 0x25c   : > { %2253 = vst [vmem:[#allocation2 + $0x1e0] sm:$0xff] %v2189_v12  ;;  %v2190_v30 = vadd.f32 %v2118_v51, %v716_v38  ;;  %v2326_v61 = vadd.f32 (!%p3283_p11), %v2325_v47, %v4690_v52  ;;  %v2405_v2 = vmul.f32 (!%p3283_p11), %v4732_v44, %v4732_v44  ;;  %v2406_v34 = vmul.f32 (!%p3283_p11), %v4737_v27, %v4737_v27  ;;  %v4780_v38 = vld [vmem:[#allocation2 + $0xa0] sm:$0xff] (!%p3283_p11)  ;;  %v4782_v6 = vld [vmem:[#allocation2 + $0xa8] sm:$0xff] (!%p3283_p11)  ;;  %v4794_v47 = vld [vmem:[#allocation2 + $0xb8] sm:$0xff] (!%p3283_p11) }
 0x25d   : > { %2240 = vst [vmem:[#allocation2 + $0x178] sm:$0xff] %v2176_v48  ;;  %2256 = vst [vmem:[#allocation2 + $0x1f8] sm:$0xff] %v2192_v43  ;;  %v2459_v10 = vadd.f32 (!%p3283_p11), %v2396_v28, %v2395_v26  ;;  %v2407_v7 = vmul.f32 (!%p3283_p11), %v4739_v3, %v4739_v3  ;;  %v4761_v33 = vmul.f32 (!%p3283_p11), %v4741_v1, %v4741_v1  ;;  %v4796_v26 = vld [vmem:[#allocation2 + $0xc0] sm:$0xff] (!%p3283_p11)  ;;  %v4798_v28 = vld [vmem:[#allocation2 + $0xc8] sm:$0xff] (!%p3283_p11) }
 0x25e   : > { %2254 = vst [vmem:[#allocation2 + $0x1e8] sm:$0xff] %v2190_v30  ;;  %v2327_v18 = vadd.f32 (!%p3283_p11), %v2326_v61, %v4692_v53  ;;  %v4766_v63 = vmul.f32 (!%p3283_p11), %v4744_v56, %v4744_v56  ;;  %v4770_v13 = vmul.f32 (!%p3283_p11), %v4746_v59, %v4746_v59  ;;  %v4774_v40 = vmul.f32 (!%p3283_p11), %v4748_v39, %v4748_v39  ;;  %v4792_v30 = vld [vmem:[#allocation2 + $0xb0] sm:$0xff] (!%p3283_p11)  ;;  %v4802_v61 = vld [vmem:[#allocation2 + $0xd8] sm:$0xff] (!%p3283_p11) }
 0x25f   : > { %v2460_v50 = vadd.f32 %v2459_v10, %v2397_v57  ;;  %v4786_v12 = vmul.f32 %v4752_v32, %v4752_v32  ;;  %v3422_v48 = vpack.c.bf16 %v4688_v55, %v4686_v49  ;;  %v3427_v43 = vpack.c.bf16 %v4692_v53, %v4690_v52  ;;  %v4800_v57 = vld [vmem:[#allocation2 + $0xd0] sm:$0xff]  ;;  %v4811_v53 = vld [vmem:[#allocation2 + $0xe0] sm:$0xff]  ;;  %v4813_v10 = vld [vmem:[#allocation2 + $0xe8] sm:$0xff] }
 0x260   : > { %v2328_v42 = vadd.f32 %v2327_v18, %v4702_v19  ;;  %v3432_v49 = vpack.c.bf16 %v4707_v0, %v4702_v19  ;;  %v3437_v55 = vpack.c.bf16 %v4717_v15, %v4712_v23  ;;  %v3442_v52 = vpack.c.bf16 %v4727_v14, %v4722_v54  ;;  %v4815_v18 = vld [vmem:[#allocation2 + $0xf0] sm:$0xff] }
 0x261   : > { %v2461_v4 = vadd.f32 %v2460_v50, %v2398_v11  ;;  %v4819_v50 = vld [vmem:[#allocation2 + $0x100] sm:$0xff]  ;;  %3423 = vst [vmem:[%s5204_s2] sm:$0xff] %v3422_v48   ;;  %3579 = vst [vmem:[%s5204_s2 + $0x8] sm:$0xff] %v3427_v43   ;;  %v3447_v19 = vpack.c.bf16 %v4737_v27, %v4732_v44  ;;  %v4920_v43 = vld [vmem:[#allocation2 + $0x1a8] sm:$0xff] }
 0x262   : > { %v2329_v5 = vadd.f32 %v2328_v42, %v4707_v0  ;;  %v4821_v42 = vld [vmem:[#allocation2 + $0x108] sm:$0xff]  ;;  %v3452_v0 = vpack.c.bf16 %v4741_v1, %v4739_v3  ;;  %3580 = vst [vmem:[%s5204_s2 + $0x10] sm:$0xff] %v3432_v49   ;;  %3581 = vst [vmem:[%s5204_s2 + $0x18] sm:$0xff] %v3437_v55   ;;  %v4918_v48 = vld [vmem:[#allocation2 + $0x1a0] sm:$0xff] }
 0x263   : > { %v2462_v9 = vadd.f32 %v2461_v4, %v2399_v60  ;;  %v4817_v60 = vld [vmem:[#allocation2 + $0xf8] sm:$0xff]  ;;  %v4835_v4 = vld [vmem:[#allocation2 + $0x110] sm:$0xff]  ;;  %3582 = vst [vmem:[%s5204_s2 + $0x20] sm:$0xff] %v3442_v52   ;;  %3583 = vst [vmem:[%s5204_s2 + $0x28] sm:$0xff] %v3447_v19  }
 0x264   : > { %v2330_v17 = vadd.f32 %v2329_v5, %v4712_v23  ;;  %v3457_v23 = vpack.c.bf16 %v4746_v59, %v4744_v56  ;;  %v4839_v5 = vld [vmem:[#allocation2 + $0x120] sm:$0xff]  ;;  %3584 = vst [vmem:[%s5204_s2 + $0x30] sm:$0xff] %v3452_v0   ;;  %v4944_v0 = vld [vmem:[#allocation2 + $0x1c8] sm:$0xff] }
 0x265   : > { %v2463_v16 = vadd.f32 %v2462_v9, %v2400_v62  ;;  %v4843_v9 = vld [vmem:[#allocation2 + $0x130] sm:$0xff]  ;;  %v4942_v19 = vld [vmem:[#allocation2 + $0x1c0] sm:$0xff] }
 0x266   : > { %v2331_v46 = vadd.f32 %v2330_v17, %v4717_v15  ;;  %v4837_v15 = vld [vmem:[#allocation2 + $0x118] sm:$0xff]  ;;  %3585 = vst [vmem:[%s5204_s2 + $0x38] sm:$0xff] %v3457_v23  }
 0x267   : > { %v2464_v21 = vadd.f32 %v2463_v16, %v2401_v8  ;;  %v4841_v8 = vld [vmem:[#allocation2 + $0x128] sm:$0xff]  ;;  %v3467_v16 = vpack.c.bf16 %v4778_v41, %v4776_v45  ;;  %v3507_v55 = vpack.c.bf16 %v4837_v15, %v4835_v4 }
 0x268   : > { %v2332_v24 = vadd.f32 %v2331_v46, %v4722_v54  ;;  %v4845_v54 = vld [vmem:[#allocation2 + $0x138] sm:$0xff]  ;;  %v4863_v46 = vld [vmem:[#allocation2 + $0x140] sm:$0xff]  ;;  %v3512_v52 = vpack.c.bf16 %v4841_v8, %v4839_v5 }
 0x269   : > { %v2465_v25 = vadd.f32 %v2464_v21, %v2402_v22  ;;  %v3462_v22 = vpack.c.bf16 %v4752_v32, %v4748_v39  ;;  %v4867_v21 = vld [vmem:[#allocation2 + $0x150] sm:$0xff]  ;;  %3587 = vst [vmem:[%s5204_s2 + $0x48] sm:$0xff] %v3467_v16   ;;  %3595 = vst [vmem:[%s5204_s2 + $0x88] sm:$0xff] %v3507_v55  }
 0x26a   : > { %v2333_v29 = vadd.f32 %v2332_v24, %v4727_v14  ;;  %v3472_v14 = vpack.c.bf16 %v4782_v6, %v4780_v38  ;;  %v4871_v24 = vld [vmem:[#allocation2 + $0x160] sm:$0xff]  ;;  %v4962_v16 = vld [vmem:[#allocation2 + $0x1d0] sm:$0xff]  ;;  %3596 = vst [vmem:[%s5204_s2 + $0x90] sm:$0xff] %v3512_v52  }
 0x26b   : > { %v2466_v58 = vadd.f32 %v2465_v25, %v2403_v20  ;;  %v4865_v20 = vld [vmem:[#allocation2 + $0x148] sm:$0xff]  ;;  %3586 = vst [vmem:[%s5204_s2 + $0x40] sm:$0xff] %v3462_v22  }
 0x26c   : > { %v2334_v31 = vadd.f32 %v2333_v29, %v4732_v44  ;;  %v4869_v44 = vld [vmem:[#allocation2 + $0x158] sm:$0xff]  ;;  %v4890_v29 = vld [vmem:[#allocation2 + $0x170] sm:$0xff]  ;;  %3588 = vst [vmem:[%s5204_s2 + $0x50] sm:$0xff] %v3472_v14  }
 0x26d   : > { %v2467_v36 = vadd.f32 %v2466_v58, %v2404_v35  ;;  %v4873_v35 = vld [vmem:[#allocation2 + $0x168] sm:$0xff]  ;;  %v4894_v58 = vld [vmem:[#allocation2 + $0x180] sm:$0xff]  ;;  %v3527_v22 = vpack.c.bf16 %v4869_v44, %v4867_v21  ;;  %v4964_v14 = vld [vmem:[#allocation2 + $0x1d8] sm:$0xff] }
 0x26e   : > { %v2335_v37 = vadd.f32 %v2334_v31, %v4737_v27  ;;  %v3477_v27 = vpack.c.bf16 %v4794_v47, %v4792_v30  ;;  %v4896_v31 = vld [vmem:[#allocation2 + $0x188] sm:$0xff] }
 0x26f   : > { %v2468_v51 = vadd.f32 %v2467_v36, %v2405_v2  ;;  %v4892_v2 = vld [vmem:[#allocation2 + $0x178] sm:$0xff]  ;;  %3599 = vst [vmem:[%s5204_s2 + $0xa8] sm:$0xff] %v3527_v22   ;;  %v2413_v22 = vmul.f32 %v4776_v45, %v4776_v45 }
 0x270   : > { %v2336_v11 = vadd.f32 %v2335_v37, %v4739_v3  ;;  %v3482_v3 = vpack.c.bf16 %v4798_v28, %v4796_v26  ;;  %v3492_v37 = vpack.c.bf16 %v4813_v10, %v4811_v53  ;;  %3589 = vst [vmem:[%s5204_s2 + $0x58] sm:$0xff] %v3477_v27  }
 0x271   : > { %v2469_v62 = vadd.f32 %v2468_v51, %v2406_v34  ;;  %v4898_v34 = vld [vmem:[#allocation2 + $0x190] sm:$0xff]  ;;  %v3497_v51 = vpack.c.bf16 %v4817_v60, %v4815_v18 }
 0x272   : > { %v2337_v17 = vadd.f32 %v2336_v11, %v4741_v1  ;;  %v3487_v1 = vpack.c.bf16 %v4802_v61, %v4800_v57  ;;  %v4922_v11 = vld [vmem:[#allocation2 + $0x1b0] sm:$0xff]  ;;  %3590 = vst [vmem:[%s5204_s2 + $0x60] sm:$0xff] %v3482_v3   ;;  %3592 = vst [vmem:[%s5204_s2 + $0x70] sm:$0xff] %v3492_v37   ;;  %v3537_v3 = vpack.c.bf16 %v4892_v2, %v4890_v29 }
 0x273   : > { %v2470_v25 = vadd.f32 %v2469_v62, %v2407_v7  ;;  %v4900_v7 = vld [vmem:[#allocation2 + $0x198] sm:$0xff]  ;;  %3593 = vst [vmem:[%s5204_s2 + $0x78] sm:$0xff] %v3497_v51   ;;  %v4986_v37 = vld [vmem:[#allocation2 + $0x1f0] sm:$0xff] }
 0x274   : > { %v2338_v36 = vadd.f32 %v2337_v17, %v4744_v56  ;;  %v3502_v56 = vpack.c.bf16 %v4821_v42, %v4819_v50  ;;  %3591 = vst [vmem:[%s5204_s2 + $0x68] sm:$0xff] %v3487_v1   ;;  %v4940_v62 = vld [vmem:[#allocation2 + $0x1b8] sm:$0xff]  ;;  %v3522_v17 = vpack.c.bf16 %v4865_v20, %v4863_v46  ;;  %v3542_v1 = vpack.c.bf16 %v4896_v31, %v4894_v58 }
 0x275   : > { %v2471_v49 = vadd.f32 %v2470_v25, %v4761_v33  ;;  %v3517_v33 = vpack.c.bf16 %v4845_v54, %v4843_v9  ;;  %v4966_v25 = vld [vmem:[#allocation2 + $0x1e0] sm:$0xff]  ;;  %v4988_v51 = vld [vmem:[#allocation2 + $0x1f8] sm:$0xff]  ;;  %v3557_v55 = vpack.c.bf16 %v4940_v62, %v4922_v11  ;;  %3601 = vst [vmem:[%s5204_s2 + $0xb8] sm:$0xff] %v3537_v3  }
 0x276   : > { %v2339_v23 = vadd.f32 %v2338_v36, %v4746_v59  ;;  %3594 = vst [vmem:[%s5204_s2 + $0x80] sm:$0xff] %v3502_v56   ;;  %v3532_v59 = vpack.c.bf16 %v4873_v35, %v4871_v24  ;;  %v4984_v36 = vld [vmem:[#allocation2 + $0x1e8] sm:$0xff]  ;;  %3598 = vst [vmem:[%s5204_s2 + $0xa0] sm:$0xff] %v3522_v17  }
 0x277   : > { %v2472_v27 = vadd.f32 %v2471_v49, %v4766_v63  ;;  %3597 = vst [vmem:[%s5204_s2 + $0x98] sm:$0xff] %v3517_v33   ;;  %v3547_v63 = vpack.c.bf16 %v4900_v7, %v4898_v34  ;;  %v3552_v49 = vpack.c.bf16 %v4920_v43, %v4918_v48  ;;  %3602 = vst [vmem:[%s5204_s2 + $0xc0] sm:$0xff] %v3542_v1  }
 0x278   : > { %v2340_v56 = vadd.f32 %v2339_v23, %v4748_v39  ;;  %3600 = vst [vmem:[%s5204_s2 + $0xb0] sm:$0xff] %v3532_v59   ;;  %v3562_v39 = vpack.c.bf16 %v4944_v0, %v4942_v19  ;;  %v3567_v33 = vpack.c.bf16 %v4964_v14, %v4962_v16  ;;  %v3572_v23 = vpack.c.bf16 %v4984_v36, %v4966_v25 }
 0x279   : > { %v2473_v52 = vadd.f32 %v2472_v27, %v4770_v13  ;;  %3603 = vst [vmem:[%s5204_s2 + $0xc8] sm:$0xff] %v3547_v63   ;;  %v3577_v13 = vpack.c.bf16 %v4988_v51, %v4986_v37  ;;  %3604 = vst [vmem:[%s5204_s2 + $0xd0] sm:$0xff] %v3552_v49   ;;  %v2414_v27 = vmul.f32 %v4778_v41, %v4778_v41 }
 0x27a   : > { %v2341_v17 = vadd.f32 %v2340_v56, %v4752_v32  ;;  %3605 = vst [vmem:[%s5204_s2 + $0xd8] sm:$0xff] %v3557_v55   ;;  %3606 = vst [vmem:[%s5204_s2 + $0xe0] sm:$0xff] %v3562_v39   ;;  %v2415_v1 = vmul.f32 %v4780_v38, %v4780_v38  ;;  %v2416_v49 = vmul.f32 %v4782_v6, %v4782_v6 }
 0x27b   : > { %v2474_v59 = vadd.f32 %v2473_v52, %v4774_v40  ;;  %3607 = vst [vmem:[%s5204_s2 + $0xe8] sm:$0xff] %v3567_v33   ;;  %3608 = vst [vmem:[%s5204_s2 + $0xf0] sm:$0xff] %v3572_v23  }
 0x27c   : > { %3609 = vst [vmem:[%s5204_s2 + $0xf8] sm:$0xff] %v3577_v13   ;;  %v2342_v32 = vadd.f32 %v2341_v17, %v4776_v45  ;;  %v2417_v45 = vmul.f32 %v4792_v30, %v4792_v30 }
 0x27d   : > { %v2475_v3 = vadd.f32 %v2474_v59, %v4786_v12 }
 0x27e   : > { %v2343_v40 = vadd.f32 %v2342_v32, %v4778_v41  ;;  %v2418_v41 = vmul.f32 %v4794_v47, %v4794_v47 }
 0x27f   : > { %v2476_v63 = vadd.f32 %v2475_v3, %v2413_v22 }
 0x280   : > { %v2344_v56 = vadd.f32 %v2343_v40, %v4780_v38  ;;  %v2419_v38 = vmul.f32 %v4796_v26, %v4796_v26 }
 0x281   : > { %v2477_v55 = vadd.f32 %v2476_v63, %v2414_v27 }
 0x282   : > { %v2345_v39 = vadd.f32 %v2344_v56, %v4782_v6  ;;  %v2420_v6 = vmul.f32 %v4798_v28, %v4798_v28 }
 0x283   : > { %v2478_v52 = vadd.f32 %v2477_v55, %v2415_v1 }
 0x284   : > { %v2346_v12 = vadd.f32 %v2345_v39, %v4792_v30  ;;  %v2421_v30 = vmul.f32 %v4800_v57, %v4800_v57 }
 0x285   : > { %v2479_v33 = vadd.f32 %v2478_v52, %v2416_v49 }
 0x286   : > { %v2347_v23 = vadd.f32 %v2346_v12, %v4794_v47  ;;  %v2422_v47 = vmul.f32 %v4802_v61, %v4802_v61 }
 0x287   : > { %v2480_v13 = vadd.f32 %v2479_v33, %v2417_v45 }
 0x288   : > { %v2348_v17 = vadd.f32 %v2347_v23, %v4796_v26  ;;  %v2423_v26 = vmul.f32 %v4811_v53, %v4811_v53 }
 0x289   : > { %v2481_v22 = vadd.f32 %v2480_v13, %v2418_v41 }
 0x28a   : > { %v2349_v59 = vadd.f32 %v2348_v17, %v4798_v28  ;;  %v2424_v28 = vmul.f32 %v4813_v10, %v4813_v10 }
 0x28b   : > { %v2482_v32 = vadd.f32 %v2481_v22, %v2419_v38 }
 0x28c   : > { %v2350_v27 = vadd.f32 %v2349_v59, %v4800_v57  ;;  %v2425_v57 = vmul.f32 %v4815_v18, %v4815_v18 }
 0x28d   : > { %v2483_v3 = vadd.f32 %v2482_v32, %v2420_v6 }
 0x28e   : > { %v2351_v40 = vadd.f32 %v2350_v27, %v4802_v61  ;;  %v2426_v61 = vmul.f32 %v4817_v60, %v4817_v60 }
 0x28f   : > { %v2484_v1 = vadd.f32 %v2483_v3, %v2421_v30 }
 0x290   : > { %v2352_v63 = vadd.f32 %v2351_v40, %v4811_v53  ;;  %v2427_v53 = vmul.f32 %v4819_v50, %v4819_v50 }
 0x291   : > { %v2485_v56 = vadd.f32 %v2484_v1, %v2422_v47 }
 0x292   : > { %v2353_v49 = vadd.f32 %v2352_v63, %v4813_v10  ;;  %v2428_v10 = vmul.f32 %v4821_v42, %v4821_v42 }
 0x293   : > { %v2486_v55 = vadd.f32 %v2485_v56, %v2423_v26 }
 0x294   : > { %v2354_v39 = vadd.f32 %v2353_v49, %v4815_v18  ;;  %v2429_v18 = vmul.f32 %v4835_v4, %v4835_v4 }
 0x295   : > { %v2487_v45 = vadd.f32 %v2486_v55, %v2424_v28 }
 0x296   : > { %v2355_v52 = vadd.f32 %v2354_v39, %v4817_v60  ;;  %v2430_v60 = vmul.f32 %v4837_v15, %v4837_v15 }
 0x297   : > { %v2488_v12 = vadd.f32 %v2487_v45, %v2425_v57 }
 0x298   : > { %v2356_v41 = vadd.f32 %v2355_v52, %v4819_v50  ;;  %v2431_v50 = vmul.f32 %v4839_v5, %v4839_v5 }
 0x299   : > { %v2489_v33 = vadd.f32 %v2488_v12, %v2426_v61 }
 0x29a   : > { %v2357_v23 = vadd.f32 %v2356_v41, %v4821_v42  ;;  %v2432_v42 = vmul.f32 %v4841_v8, %v4841_v8 }
 0x29b   : > { %v2490_v38 = vadd.f32 %v2489_v33, %v2427_v53 }
 0x29c   : > { %v2358_v13 = vadd.f32 %v2357_v23, %v4835_v4  ;;  %v2433_v4 = vmul.f32 %v4843_v9, %v4843_v9 }
 0x29d   : > { %v2491_v17 = vadd.f32 %v2490_v38, %v2428_v10 }
 0x29e   : > { %v2359_v6 = vadd.f32 %v2358_v13, %v4837_v15  ;;  %v2434_v15 = vmul.f32 %v4845_v54, %v4845_v54 }
 0x29f   : > { %v2492_v22 = vadd.f32 %v2491_v17, %v2429_v18 }
 0x2a0   : > { %v2360_v59 = vadd.f32 %v2359_v6, %v4839_v5  ;;  %v2435_v5 = vmul.f32 %v4863_v46, %v4863_v46 }
 0x2a1   : > { %v2493_v30 = vadd.f32 %v2492_v22, %v2430_v60 }
 0x2a2   : > { %v2361_v32 = vadd.f32 %v2360_v59, %v4841_v8  ;;  %v2436_v8 = vmul.f32 %v4865_v20, %v4865_v20 }
 0x2a3   : > { %v2494_v27 = vadd.f32 %v2493_v30, %v2431_v50 }
 0x2a4   : > { %v2362_v47 = vadd.f32 %v2361_v32, %v4843_v9  ;;  %v2437_v9 = vmul.f32 %v4867_v21, %v4867_v21 }
 0x2a5   : > { %v2495_v3 = vadd.f32 %v2494_v27, %v2432_v42 }
 0x2a6   : > { %v2363_v40 = vadd.f32 %v2362_v47, %v4845_v54  ;;  %v2438_v54 = vmul.f32 %v4869_v44, %v4869_v44 }
 0x2a7   : > { %v2496_v26 = vadd.f32 %v2495_v3, %v2433_v4 }
 0x2a8   : > { %v2364_v1 = vadd.f32 %v2363_v40, %v4863_v46  ;;  %v2439_v46 = vmul.f32 %v4871_v24, %v4871_v24 }
 0x2a9   : > { %v2497_v63 = vadd.f32 %v2496_v26, %v2434_v15 }
 0x2aa   : > { %v2365_v28 = vadd.f32 %v2364_v1, %v4865_v20  ;;  %v2440_v20 = vmul.f32 %v4873_v35, %v4873_v35 }
 0x2ab   : > { %v2498_v56 = vadd.f32 %v2497_v63, %v2435_v5 }
 0x2ac   : > { %v2366_v49 = vadd.f32 %v2365_v28, %v4867_v21  ;;  %v2441_v21 = vmul.f32 %v4890_v29, %v4890_v29 }
 0x2ad   : > { %v2499_v57 = vadd.f32 %v2498_v56, %v2436_v8 }
 0x2ae   : > { %v2367_v55 = vadd.f32 %v2366_v49, %v4869_v44  ;;  %v2442_v44 = vmul.f32 %v4892_v2, %v4892_v2 }
 0x2af   : > { %v2500_v39 = vadd.f32 %v2499_v57, %v2437_v9 }
 0x2b0   : > { %v2368_v61 = vadd.f32 %v2367_v55, %v4871_v24  ;;  %v2443_v24 = vmul.f32 %v4894_v58, %v4894_v58 }
 0x2b1   : > { %v2501_v45 = vadd.f32 %v2500_v39, %v2438_v54 }
 0x2b2   : > { %v2369_v52 = vadd.f32 %v2368_v61, %v4873_v35  ;;  %v2444_v35 = vmul.f32 %v4896_v31, %v4896_v31 }
 0x2b3   : > { %v2502_v53 = vadd.f32 %v2501_v45, %v2439_v46 }
 0x2b4   : > { %v2370_v12 = vadd.f32 %v2369_v52, %v4890_v29  ;;  %v2445_v29 = vmul.f32 %v4898_v34, %v4898_v34 }
 0x2b5   : > { %v2503_v41 = vadd.f32 %v2502_v53, %v2440_v20 }
 0x2b6   : > { %v2371_v10 = vadd.f32 %v2370_v12, %v4892_v2  ;;  %v2446_v2 = vmul.f32 %v4900_v7, %v4900_v7 }
 0x2b7   : > { %v2504_v33 = vadd.f32 %v2503_v41, %v2441_v21 }
 0x2b8   : > { %v2372_v23 = vadd.f32 %v2371_v10, %v4894_v58  ;;  %v2447_v58 = vmul.f32 %v4918_v48, %v4918_v48 }
 0x2b9   : > { %v2505_v18 = vadd.f32 %v2504_v33, %v2442_v44 }
 0x2ba   : > { %v2373_v38 = vadd.f32 %v2372_v23, %v4896_v31  ;;  %v2448_v31 = vmul.f32 %v4920_v43, %v4920_v43 }
 0x2bb   : > { %v2506_v13 = vadd.f32 %v2505_v18, %v2443_v24 }
 0x2bc   : > { %v2374_v60 = vadd.f32 %v2373_v38, %v4898_v34  ;;  %v2449_v34 = vmul.f32 %v4922_v11, %v4922_v11 }
 0x2bd   : > { %v2507_v17 = vadd.f32 %v2506_v13, %v2444_v35 }
 0x2be   : > { %v2375_v6 = vadd.f32 %v2374_v60, %v4900_v7  ;;  %v2450_v7 = vmul.f32 %v4940_v62, %v4940_v62 }
 0x2bf   : > { %v2508_v50 = vadd.f32 %v2507_v17, %v2445_v29 }
 0x2c0   : > { %v2376_v22 = vadd.f32 %v2375_v6, %v4918_v48  ;;  %v2451_v48 = vmul.f32 %v4942_v19, %v4942_v19 }
 0x2c1   : > { %v2509_v59 = vadd.f32 %v2508_v50, %v2446_v2 }
 0x2c2   : > { %v2377_v42 = vadd.f32 %v2376_v22, %v4920_v43  ;;  %v2452_v43 = vmul.f32 %v4944_v0, %v4944_v0 }
 0x2c3   : > { %v2510_v30 = vadd.f32 %v2509_v59, %v2447_v58 }
 0x2c4   : > { %v2378_v32 = vadd.f32 %v2377_v42, %v4922_v11  ;;  %v2453_v11 = vmul.f32 %v4962_v16, %v4962_v16 }
 0x2c5   : > { %v2511_v4 = vadd.f32 %v2510_v30, %v2448_v31 }
 0x2c6   : > { %v2379_v27 = vadd.f32 %v2378_v32, %v4940_v62  ;;  %v2454_v62 = vmul.f32 %v4964_v14, %v4964_v14 }
 0x2c7   : > { %v2512_v47 = vadd.f32 %v2511_v4, %v2449_v34 }
 0x2c8   : > { %v2380_v15 = vadd.f32 %v2379_v27, %v4942_v19  ;;  %v2455_v19 = vmul.f32 %v4966_v25, %v4966_v25 }
 0x2c9   : > { %v2513_v3 = vadd.f32 %v2512_v47, %v2450_v7 }
 0x2ca   : > { %v2381_v40 = vadd.f32 %v2380_v15, %v4944_v0  ;;  %v2456_v0 = vmul.f32 %v4984_v36, %v4984_v36 }
 0x2cb   : > { %v2514_v5 = vadd.f32 %v2513_v3, %v2451_v48 }
 0x2cc   : > { %v2382_v26 = vadd.f32 %v2381_v40, %v4962_v16  ;;  %v2457_v16 = vmul.f32 %v4986_v37, %v4986_v37 }
 0x2cd   : > { %v2515_v1 = vadd.f32 %v2514_v5, %v2452_v43 }
 0x2ce   : > { %v2383_v8 = vadd.f32 %v2382_v26, %v4964_v14  ;;  %v2458_v14 = vmul.f32 %v4988_v51, %v4988_v51 }
 0x2cf   : > { %v2516_v63 = vadd.f32 %v2515_v1, %v2453_v11 }
 0x2d0   : > { %v2384_v28 = vadd.f32 %v2383_v8, %v4966_v25 }
 0x2d1   : > { %v2517_v9 = vadd.f32 %v2516_v63, %v2454_v62 }
 0x2d2   : > { %v2385_v56 = vadd.f32 %v2384_v28, %v4984_v36 }
 0x2d3   : > { %v2518_v49 = vadd.f32 %v2517_v9, %v2455_v19 }
 0x2d4   : > { %v2386_v54 = vadd.f32 %v2385_v56, %v4986_v37 }
 0x2d5   : > { %v2519_v57 = vadd.f32 %v2518_v49, %v2456_v0 }
 0x2d6   : > { %v2387_v55 = vadd.f32 %v2386_v54, %v4988_v51 }
 0x2d7   : > { %v2520_v46 = vadd.f32 %v2519_v57, %v2457_v16 }
 0x2d8   : > { %v2388_v25 = vrot.slane %v2387_v55, 4 }
 0x2d9   : > { %v2521_v39 = vadd.f32 %v2520_v46, %v2458_v14 }
 0x2da   : > { %v2389_v61 = vadd.f32 %v2388_v25, %v2387_v55 }
 0x2db   : > { %v2522_v20 = vrot.slane %v2521_v39, 4 }
 0x2dc   : > { %v2390_v45 = vrot.slane %v2389_v61, 2 }
 0x2dd   : > { %v2523_v52 = vadd.f32 %v2522_v20, %v2521_v39 }
 0x2de   : > { %v2391_v36 = vadd.f32 %v2390_v45, %v2389_v61 }
 0x2df   : > { %v2524_v21 = vrot.slane %v2523_v52, 2 }
 0x2e0   : > { %v2392_v53 = vrot.slane %v2391_v36, 1 }
 0x2e1   : > { %v2525_v12 = vadd.f32 %v2524_v21, %v2523_v52 }
 0x2e2   : > { %v2393_v44 = vadd.f32 %v2392_v53, %v2391_v36 }
 0x2e3   : > { %v2526_v41 = vrot.slane %v2525_v12, 1 }
 0x2e4   : > { %2394 = vst [vmem:[%s5205_s3] sm:$0xff] %v2393_v44 }
 0x2e5   : > { %v2527_v37 = vadd.f32 %v2526_v41, %v2525_v12 }
 0x2e7   : > { %2528 = vst [vmem:[%s5206_s4] sm:$0xff] %v2527_v37 }
 0x2e8 PF: > { %s15_s19 = sadd.s32 1, %s3996_s19   ;;  %s5207_s15 = smov %s3984_s16 }
 0x2e9   : > { %p12_p12 = scmp.ge.s32.totalorder %s15_s19, 5   ;;  %s5208_s16 = smov %s4060_s23 }
 0x2ea   : > { %s5209_s17 = smov %s3992_s18  ;;  %s5210_s18 = smov %s5212_s20 }
 0x2eb   :  { %14 = sbr.rel (!%p12_p12) target bundleno = 3 (0x3), region = 130 }

// kernel: seg_to_seg_forward.20
= control target key start
LH: loop header
LB: loop body
LE: loop exit
PB: predicated region body
PF: predicated region fallthrough
CT: control target
= control target key end

     0   :  { %s3363_s0 = inlined_call_operand.vmem [shape: bf16[512,128], index: 0, kind: input, shape index: {}]   ;;  %s3364_s1 = inlined_call_operand.vmem [shape: f32[1,128], index: 1, kind: input, shape index: {}]   ;;  %s3365_s2 = inlined_call_operand.vmem [shape: f32[1,128], index: 2, kind: input, shape index: {}]   ;;  %s3366_s3 = inlined_call_operand.vmem [shape: bf16[512,128], index: 3, kind: input, shape index: {}]   ;;  %s3367_s4 = inlined_call_operand.vmem [shape: bf16[512,128], index: 4, kind: output, shape index: {}]  }
   0x1   :  { %v1510_v0 = vld [vmem:[%s3363_s0] sm:$0xff]   ;;  %v1925_v4 = vld [vmem:[%s3363_s0 + $0x8] sm:$0xff]   ;;  %v1926_v8 = vld [vmem:[%s3363_s0 + $0x10] sm:$0xff]  }
   0x2   :  { %v2308_v1 = vld [vmem:[%s3364_s1] ss:$0 sm:$0xff]  ;;  %v1511_v2 = vunpack.c.l.bf16 %v1510_v0  ;;  %v1512_v3 = vunpack.c.h.bf16 %v1510_v0  ;;  %v1515_v6 = vunpack.c.l.bf16 %v1925_v4  ;;  %v1516_v7 = vunpack.c.h.bf16 %v1925_v4  ;;  %v1927_v15 = vld [vmem:[%s3363_s0 + $0x18] sm:$0xff]   ;;  %v2368_v41 = vld [vmem:[%s3366_s3 + $0x8] sm:$0xff]  }
   0x3   :  { %v2316_v5 = vld [vmem:[%s3365_s2] ss:$0 sm:$0xff]  ;;  %v1519_v13 = vunpack.c.l.bf16 %v1926_v8  ;;  %v1520_v14 = vunpack.c.h.bf16 %v1926_v8  ;;  %v1523_v24 = vunpack.c.l.bf16 %v1927_v15  ;;  %v1524_v25 = vunpack.c.h.bf16 %v1927_v15  ;;  %v1929_v50 = vld [vmem:[%s3363_s0 + $0x28] sm:$0xff]   ;;  %v2387_v53 = vld [vmem:[%s3366_s3 + $0x10] sm:$0xff]  }
   0x4   :  { %v152_v9 = vmul.f32 %v1511_v2, %v2308_v1  ;;  %v153_v10 = vmul.f32 %v1512_v3, %v2308_v1  ;;  %v154_v11 = vmul.f32 %v1515_v6, %v2308_v1  ;;  %v155_v12 = vmul.f32 %v1516_v7, %v2308_v1  ;;  %v2347_v26 = vld [vmem:[%s3366_s3] sm:$0xff]   ;;  %v2393_v58 = vld [vmem:[%s3366_s3 + $0x18] sm:$0xff]   ;;  %v1930_v62 = vld [vmem:[%s3363_s0 + $0x30] sm:$0xff]  }
   0x5   :  { %v156_v20 = vmul.f32 %v1519_v13, %v2308_v1  ;;  %v157_v21 = vmul.f32 %v1520_v14, %v2308_v1  ;;  %v158_v33 = vmul.f32 %v1523_v24, %v2308_v1  ;;  %v159_v34 = vmul.f32 %v1524_v25, %v2308_v1  ;;  %v1928_v35 = vld [vmem:[%s3363_s0 + $0x20] sm:$0xff]   ;;  %v2412_v7 = vld [vmem:[%s3363_s0 + $0x38] sm:$0xff]  }
   0x6   :  { %v2329_v16 = vadd.f32 %v2316_v5, %v152_v9  ;;  %v2332_v17 = vadd.f32 %v2316_v5, %v153_v10  ;;  %v2335_v18 = vadd.f32 %v2316_v5, %v154_v11  ;;  %v2338_v19 = vadd.f32 %v2316_v5, %v155_v12 }
   0x7   :  { %v2352_v29 = vadd.f32 %v2316_v5, %v156_v20  ;;  %v2355_v30 = vadd.f32 %v2316_v5, %v157_v21  ;;  %v1639_v40 = vunpack.c.l.bf16 %v2347_v26  ;;  %v2371_v42 = vadd.f32 %v2316_v5, %v158_v33 }
   0x8   :  { %v287_v22 = vmin.f32 %v2329_v16, 20.0  ;;  %v288_v23 = vmin.f32 %v2332_v17, 20.0  ;;  %v289_v27 = vmin.f32 %v2335_v18, 20.0  ;;  %v290_v28 = vmin.f32 %v2338_v19, 20.0 }
   0x9   :  { %v291_v38 = vmin.f32 %v2352_v29, 20.0  ;;  %v292_v39 = vmin.f32 %v2355_v30, 20.0  ;;  %v2374_v43 = vadd.f32 %v2316_v5, %v159_v34  ;;  %v1640_v44 = vunpack.c.h.bf16 %v2347_v26 }
   0xa   :  { %v351_v31 = vmul.f32 1.442695, %v287_v22  ;;  %v353_v32 = vmul.f32 1.442695, %v288_v23  ;;  %v355_v36 = vmul.f32 1.442695, %v289_v27  ;;  %v1527_v49 = vunpack.c.l.bf16 %v1928_v35 }
   0xb   :  { %v357_v37 = vmul.f32 1.442695, %v290_v28  ;;  %v359_v45 = vmul.f32 1.442695, %v291_v38  ;;  %v361_v46 = vmul.f32 1.442695, %v292_v39  ;;  %v1643_v51 = vunpack.c.l.bf16 %v2368_v41 }
   0xc   :  { %2018 = vpow2.f32 %v351_v31  ;;  %v293_v47 = vmin.f32 %v2371_v42, 20.0  ;;  %v294_v48 = vmin.f32 %v2374_v43, 20.0  ;;  %v1644_v52 = vunpack.c.h.bf16 %v2368_v41 }
   0xd   :  { %2020 = vpow2.f32 %v353_v32  ;;  %v1528_v54 = vunpack.c.h.bf16 %v1928_v35  ;;  %v160_v57 = vmul.f32 %v1527_v49, %v2308_v1  ;;  %v1531_v60 = vunpack.c.l.bf16 %v1929_v50 }
   0xe   :  { %2022 = vpow2.f32 %v355_v36  ;;  %v363_v55 = vmul.f32 1.442695, %v293_v47  ;;  %v365_v56 = vmul.f32 1.442695, %v294_v48  ;;  %v1532_v61 = vunpack.c.h.bf16 %v1929_v50 }
   0xf   :  { %2024 = vpow2.f32 %v357_v37  ;;  %v161_v59 = vmul.f32 %v1528_v54, %v2308_v1  ;;  %v1647_v63 = vunpack.c.l.bf16 %v2387_v53  ;;  %v1648_v0 = vunpack.c.h.bf16 %v2387_v53 }
  0x10   :  { %2026 = vpow2.f32 %v359_v45  ;;  %v2402_v2 = vadd.f32 %v2316_v5, %v160_v57  ;;  %v162_v4 = vmul.f32 %v1531_v60, %v2308_v1  ;;  %v163_v6 = vmul.f32 %v1532_v61, %v2308_v1 }
  0x11   :  { %2028 = vpow2.f32 %v361_v46  ;;  %v2405_v3 = vadd.f32 %v2316_v5, %v161_v59  ;;  %v1651_v8 = vunpack.c.l.bf16 %v2393_v58  ;;  %v1535_v10 = vunpack.c.l.bf16 %v1930_v62 }
  0x12   :  { %2030 = vpow2.f32 %v363_v55  ;;  %v295_v9 = vmin.f32 %v2402_v2, 20.0  ;;  %v1536_v11 = vunpack.c.h.bf16 %v1930_v62  ;;  %v1652_v12 = vunpack.c.h.bf16 %v2393_v58 }
  0x13   :  { %2032 = vpow2.f32 %v365_v56  ;;  %v296_v13 = vmin.f32 %v2405_v3, 20.0  ;;  %v2419_v14 = vadd.f32 %v2316_v5, %v162_v4  ;;  %v2422_v15 = vadd.f32 %v2316_v5, %v163_v6 }
  0x14   :  { %v367_v21 = vmul.f32 1.442695, %v295_v9  ;;  %v164_v22 = vmul.f32 %v1535_v10, %v2308_v1  ;;  %v165_v23 = vmul.f32 %v1536_v11, %v2308_v1  ;;  %v1539_v24 = vunpack.c.l.bf16 %v2412_v7  ;;  %v2452_v11 = vld [vmem:[%s3366_s3 + $0x20] sm:$0xff]  }
  0x15   :  { %v369_v28 = vmul.f32 1.442695, %v296_v13  ;;  %v297_v31 = vmin.f32 %v2419_v14, 20.0  ;;  %v298_v32 = vmin.f32 %v2422_v15, 20.0 }
  0x16   :  { %v2019_v20 = vpop.eup %2018  ;;  %2034 = vpow2.f32 %v367_v21  ;;  %v2430_v35 = vadd.f32 %v2316_v5, %v164_v22  ;;  %v2433_v36 = vadd.f32 %v2316_v5, %v165_v23 }
  0x17   :  { %v2021_v25 = vpop.eup %2020  ;;  %v479_v27 = vadd.f32 2.0, %v2019_v20  ;;  %2036 = vpow2.f32 %v369_v28  ;;  %v371_v45 = vmul.f32 1.442695, %v297_v31  ;;  %v373_v49 = vmul.f32 1.442695, %v298_v32 }
  0x18   :  { %v2023_v33 = vpop.eup %2022  ;;  %v480_v34 = vadd.f32 2.0, %v2021_v25  ;;  %v299_v50 = vmin.f32 %v2430_v35, 20.0  ;;  %v1655_v31 = vunpack.c.l.bf16 %v2452_v11 }
  0x19   :  { %v2025_v37 = vpop.eup %2024  ;;  %v2435_v38 = vmul.f32 %v2019_v20, %v479_v27  ;;  %v481_v39 = vadd.f32 2.0, %v2023_v33  ;;  %2038 = vpow2.f32 %v371_v45 }
  0x1a   :  { %v2027_v46 = vpop.eup %2026  ;;  %v2437_v47 = vmul.f32 %v2021_v25, %v480_v34  ;;  %v482_v48 = vadd.f32 2.0, %v2025_v37  ;;  %2040 = vpow2.f32 %v373_v49  ;;  %v300_v25 = vmin.f32 %v2433_v36, 20.0 }
  0x1b   :  { %v2029_v54 = vpop.eup %2028  ;;  %v607_v55 = vadd.f32 2.0, %v2435_v38  ;;  %v2441_v56 = vmul.f32 %v2023_v33, %v481_v39  ;;  %v483_v57 = vadd.f32 2.0, %v2027_v46  ;;  %v375_v33 = vmul.f32 1.442695, %v299_v50 }
  0x1c   :  { %v2031_v59 = vpop.eup %2030  ;;  %v608_v60 = vadd.f32 2.0, %v2437_v47  ;;  %v2444_v61 = vmul.f32 %v2025_v37, %v482_v48  ;;  %v484_v62 = vadd.f32 2.0, %v2029_v54  ;;  %v1540_v34 = vunpack.c.h.bf16 %v2412_v7  ;;  %v2470_v37 = vld [vmem:[%s3363_s0 + $0x40] sm:$0xff]  }
  0x1d   :  { %v2033_v4 = vpop.eup %2032  ;;  %2042 = vrcp.f32 %v607_v55  ;;  %v609_v6 = vadd.f32 2.0, %v2441_v56  ;;  %v2447_v9 = vmul.f32 %v2027_v46, %v483_v57  ;;  %v485_v10 = vadd.f32 2.0, %v2031_v59 }
  0x1e   :  { %2044 = vrcp.f32 %v608_v60  ;;  %v610_v13 = vadd.f32 2.0, %v2444_v61  ;;  %v2455_v20 = vmul.f32 %v2029_v54, %v484_v62  ;;  %v486_v21 = vadd.f32 2.0, %v2033_v4 }
  0x1f   :  { %2046 = vrcp.f32 %v609_v6  ;;  %v611_v22 = vadd.f32 2.0, %v2447_v9  ;;  %v2458_v23 = vmul.f32 %v2031_v59, %v485_v10  ;;  %v377_v46 = vmul.f32 1.442695, %v300_v25 }
  0x20   :  { %2048 = vrcp.f32 %v610_v13  ;;  %v612_v27 = vadd.f32 2.0, %v2455_v20  ;;  %v2462_v28 = vmul.f32 %v2033_v4, %v486_v21  ;;  %v2035_v39 = vpop.eup %2034  ;;  %v166_v48 = vmul.f32 %v1539_v24, %v2308_v1 }
  0x21   :  { %2050 = vrcp.f32 %v611_v22  ;;  %v613_v32 = vadd.f32 2.0, %v2458_v23  ;;  %v2037_v49 = vpop.eup %2036  ;;  %v487_v54 = vadd.f32 2.0, %v2035_v39  ;;  %v167_v50 = vmul.f32 %v1540_v34, %v2308_v1 }
  0x22   :  { %2052 = vrcp.f32 %v612_v27  ;;  %v614_v45 = vadd.f32 2.0, %v2462_v28  ;;  %v488_v7 = vadd.f32 2.0, %v2037_v49  ;;  %v2477_v57 = vadd.f32 %v2316_v5, %v166_v48 }
  0x23   :  { %2054 = vrcp.f32 %v613_v32  ;;  %v1543_v59 = vunpack.c.l.bf16 %v2470_v37  ;;  %v2039_v60 = vpop.eup %2038  ;;  %v2480_v62 = vmul.f32 %v2035_v39, %v487_v54  ;;  %v2483_v24 = vadd.f32 %v2316_v5, %v167_v50 }
  0x24   :  { %2056 = vrcp.f32 %v614_v45  ;;  %v1544_v4 = vunpack.c.h.bf16 %v2470_v37  ;;  %v2041_v6 = vpop.eup %2040  ;;  %v2486_v10 = vmul.f32 %v2037_v49, %v488_v7  ;;  %v489_v13 = vadd.f32 2.0, %v2039_v60 }
  0x25   :  { %2058 = vpow2.f32 %v375_v33  ;;  %v301_v21 = vmin.f32 %v2477_v57, 20.0  ;;  %v615_v25 = vadd.f32 2.0, %v2480_v62  ;;  %v490_v27 = vadd.f32 2.0, %v2041_v6 }
  0x26   :  { %2060 = vpow2.f32 %v377_v46  ;;  %v302_v32 = vmin.f32 %v2483_v24, 20.0  ;;  %v168_v33 = vmul.f32 %v1543_v59, %v2308_v1  ;;  %v616_v37 = vadd.f32 2.0, %v2486_v10 }
  0x27   :  { %v2043_v22 = vpop.eup %2042  ;;  %v2494_v45 = vmul.f32 %v2039_v60, %v489_v13  ;;  %v379_v48 = vmul.f32 1.442695, %v301_v21  ;;  %2062 = vrcp.f32 %v615_v25  ;;  %v2497_v54 = vmul.f32 %v2041_v6, %v490_v27 }
  0x28   :  { %v2045_v34 = vpop.eup %2044  ;;  %v672_v39 = vmul.f32 %v2043_v22, %v2435_v38  ;;  %v381_v50 = vmul.f32 1.442695, %v302_v32  ;;  %2064 = vrcp.f32 %v616_v37  ;;  %v169_v37 = vmul.f32 %v1544_v4, %v2308_v1 }
  0x29   :  { %v2047_v49 = vpop.eup %2046  ;;  %v674_v46 = vmul.f32 %v2045_v34, %v2437_v47  ;;  %v617_v38 = vadd.f32 2.0, %v2494_v45  ;;  %v618_v21 = vadd.f32 2.0, %v2497_v54  ;;  %2066 = vpow2.f32 %v379_v48 }
  0x2a   :  { %v2049_v7 = vpop.eup %2048  ;;  %v799_v55 = vmul.f32 %v672_v39, %v2329_v16  ;;  %v676_v59 = vmul.f32 %v2047_v49, %v2441_v56  ;;  %v2539_v48 = vadd.f32 %v2316_v5, %v168_v33  ;;  %v2542_v4 = vadd.f32 %v2316_v5, %v169_v37 }
  0x2b   :  { %v2051_v22 = vpop.eup %2050  ;;  %v800_v60 = vmul.f32 %v674_v46, %v2332_v17  ;;  %v678_v13 = vmul.f32 %v2049_v7, %v2444_v61  ;;  %2068 = vrcp.f32 %v617_v38 }
  0x2c   :  { %v2053_v47 = vpop.eup %2052  ;;  %v991_v6 = vadd.f32 %v1639_v40, %v799_v55  ;;  %v801_v25 = vmul.f32 %v676_v59, %v2335_v18  ;;  %v680_v16 = vmul.f32 %v2051_v22, %v2447_v9  ;;  %2070 = vrcp.f32 %v618_v21 }
  0x2d   :  { %v2055_v56 = vpop.eup %2054  ;;  %v992_v27 = vadd.f32 %v1640_v44, %v800_v60  ;;  %v802_v17 = vmul.f32 %v678_v13, %v2338_v19  ;;  %v682_v61 = vmul.f32 %v2053_v47, %v2455_v20  ;;  %2072 = vpow2.f32 %v381_v50 }
  0x2e   :  { %v2057_v32 = vpop.eup %2056  ;;  %v993_v34 = vadd.f32 %v1643_v51, %v801_v25  ;;  %v803_v40 = vmul.f32 %v680_v16, %v2352_v29  ;;  %v684_v18 = vmul.f32 %v2055_v56, %v2458_v23  ;;  %v1960_v29 = vld [vmem:[%s3366_s3 + $0x28] sm:$0xff]   ;;  %v303_v7 = vmin.f32 %v2539_v48, 20.0 }
  0x2f   :  { %v2059_v9 = vpop.eup %2058  ;;  %v1768_v55 = vpack.c.bf16 %v992_v27, %v991_v6  ;;  %v994_v26 = vadd.f32 %v1644_v52, %v802_v17  ;;  %v804_v44 = vmul.f32 %v682_v61, %v2355_v30  ;;  %v686_v19 = vmul.f32 %v2057_v32, %v2462_v28  ;;  %v1933_v56 = vld [vmem:[%s3363_s0 + $0x48] sm:$0xff]  }
  0x30   :  { %v2061_v20 = vpop.eup %2060  ;;  %v995_v39 = vadd.f32 %v1647_v63, %v803_v40  ;;  %v805_v51 = vmul.f32 %v684_v18, %v2371_v42  ;;  %v491_v23 = vadd.f32 2.0, %v2059_v9  ;;  %v304_v59 = vmin.f32 %v2542_v4, 20.0 }
  0x31   :  { %1769 = vst [vmem:[%s3367_s4] sm:$0xff] %v1768_v55   ;;  %v1773_v30 = vpack.c.bf16 %v994_v26, %v993_v34  ;;  %v996_v41 = vadd.f32 %v1648_v0, %v804_v44  ;;  %v806_v52 = vmul.f32 %v686_v19, %v2374_v43  ;;  %v492_v63 = vadd.f32 2.0, %v2061_v20  ;;  %v2063_v49 = vpop.eup %2062 }
  0x32   :  { %v997_v42 = vadd.f32 %v1651_v8, %v805_v51  ;;  %v2536_v28 = vmul.f32 %v2059_v9, %v491_v23  ;;  %v1659_v0 = vunpack.c.l.bf16 %v1960_v29  ;;  %v2065_v8 = vpop.eup %2064  ;;  %v688_v50 = vmul.f32 %v2063_v49, %v2480_v62 }
  0x33   :  { %1987 = vst [vmem:[%s3367_s4 + $0x8] sm:$0xff] %v1773_v30   ;;  %v1778_v53 = vpack.c.bf16 %v996_v41, %v995_v39  ;;  %v998_v43 = vadd.f32 %v1652_v12, %v806_v52  ;;  %v2549_v46 = vmul.f32 %v2061_v20, %v492_v63  ;;  %v2067_v38 = vpop.eup %2066  ;;  %v690_v58 = vmul.f32 %v2065_v8, %v2486_v10  ;;  %v2599_v30 = vld [vmem:[%s3366_s3 + $0x38] sm:$0xff]  }
  0x34   :  { %v619_v33 = vadd.f32 2.0, %v2536_v28  ;;  %v1660_v12 = vunpack.c.h.bf16 %v1960_v29  ;;  %v807_v62 = vmul.f32 %v688_v50, %v2402_v2  ;;  %v493_v21 = vadd.f32 2.0, %v2067_v38  ;;  %v1935_v29 = vld [vmem:[%s3363_s0 + $0x58] sm:$0xff]  }
  0x35   :  { %1988 = vst [vmem:[%s3367_s4 + $0x10] sm:$0xff] %v1778_v53   ;;  %v1783_v22 = vpack.c.bf16 %v998_v43, %v997_v42  ;;  %v620_v60 = vadd.f32 2.0, %v2549_v46  ;;  %v2069_v13 = vpop.eup %2068  ;;  %v383_v47 = vmul.f32 1.442695, %v303_v7  ;;  %v808_v25 = vmul.f32 %v690_v58, %v2405_v3 }
  0x36   :  { %2074 = vrcp.f32 %v619_v33  ;;  %v2071_v6 = vpop.eup %2070  ;;  %v692_v16 = vmul.f32 %v2069_v13, %v2494_v45  ;;  %v385_v10 = vmul.f32 1.442695, %v304_v59  ;;  %v999_v2 = vadd.f32 %v1655_v31, %v807_v62  ;;  %v1934_v31 = vld [vmem:[%s3363_s0 + $0x50] sm:$0xff]  }
  0x37   :  { %1989 = vst [vmem:[%s3367_s4 + $0x18] sm:$0xff] %v1783_v22   ;;  %2076 = vrcp.f32 %v620_v60  ;;  %v2073_v27 = vpop.eup %2072  ;;  %v694_v17 = vmul.f32 %v2071_v6, %v2497_v54  ;;  %v2572_v61 = vmul.f32 %v2067_v38, %v493_v21  ;;  %v3368_v32 = vunpack.c.h.bf16 %v2452_v11  ;;  %v1961_v11 = vld [vmem:[%s3366_s3 + $0x30] sm:$0xff]  }
  0x38   :  { %2078 = vpow2.f32 %v383_v47  ;;  %v809_v45 = vmul.f32 %v692_v16, %v2419_v14  ;;  %v494_v34 = vadd.f32 2.0, %v2073_v27  ;;  %v1547_v9 = vunpack.c.l.bf16 %v1933_v56 }
  0x39   :  { %v1000_v3 = vadd.f32 %v3368_v32, %v808_v25  ;;  %2080 = vpow2.f32 %v385_v10  ;;  %v810_v40 = vmul.f32 %v694_v17, %v2422_v15  ;;  %v621_v18 = vadd.f32 2.0, %v2572_v61 }
  0x3a   :  { %v1548_v55 = vunpack.c.h.bf16 %v1933_v56  ;;  %v1001_v26 = vadd.f32 %v1659_v0, %v809_v45  ;;  %v2585_v44 = vmul.f32 %v2073_v27, %v494_v34  ;;  %v170_v15 = vmul.f32 %v1547_v9, %v2308_v1 }
  0x3b   :  { %v1788_v54 = vpack.c.bf16 %v1000_v3, %v999_v2  ;;  %v1002_v14 = vadd.f32 %v1660_v12, %v810_v40  ;;  %2082 = vrcp.f32 %v621_v18  ;;  %v1551_v39 = vunpack.c.l.bf16 %v1934_v31  ;;  %v1936_v18 = vld [vmem:[%s3363_s0 + $0x60] sm:$0xff]  }
  0x3c   :  { %v171_v19 = vmul.f32 %v1548_v55, %v2308_v1  ;;  %v622_v20 = vadd.f32 2.0, %v2585_v44  ;;  %v1552_v51 = vunpack.c.h.bf16 %v1934_v31  ;;  %v1663_v37 = vunpack.c.l.bf16 %v1961_v11  ;;  %v2648_v31 = vld [vmem:[%s3366_s3 + $0x40] sm:$0xff]  }
  0x3d   :  { %1990 = vst [vmem:[%s3367_s4 + $0x20] sm:$0xff] %v1788_v54   ;;  %v1793_v23 = vpack.c.bf16 %v1002_v14, %v1001_v26  ;;  %v2602_v41 = vadd.f32 %v2316_v5, %v170_v15  ;;  %v1664_v63 = vunpack.c.h.bf16 %v1961_v11  ;;  %v172_v42 = vmul.f32 %v1551_v39, %v2308_v1  ;;  %v1937_v39 = vld [vmem:[%s3363_s0 + $0x68] sm:$0xff]  }
  0x3e   :  { %v2605_v52 = vadd.f32 %v2316_v5, %v171_v19  ;;  %2084 = vrcp.f32 %v622_v20  ;;  %v173_v49 = vmul.f32 %v1552_v51, %v2308_v1  ;;  %v1555_v8 = vunpack.c.l.bf16 %v1935_v29 }
  0x3f   :  { %1991 = vst [vmem:[%s3367_s4 + $0x28] sm:$0xff] %v1793_v23   ;;  %v305_v43 = vmin.f32 %v2602_v41, 20.0  ;;  %v1556_v50 = vunpack.c.h.bf16 %v1935_v29  ;;  %v1667_v59 = vunpack.c.l.bf16 %v2599_v30  ;;  %v2617_v38 = vadd.f32 %v2316_v5, %v172_v42  ;;  %v2666_v29 = vld [vmem:[%s3366_s3 + $0x48] sm:$0xff]  }
  0x40   :  { %v2075_v53 = vpop.eup %2074  ;;  %v306_v0 = vmin.f32 %v2605_v52, 20.0  ;;  %v2620_v22 = vadd.f32 %v2316_v5, %v173_v49  ;;  %v174_v62 = vmul.f32 %v1555_v8, %v2308_v1  ;;  %v1668_v11 = vunpack.c.h.bf16 %v2599_v30 }
  0x41   :  { %v2077_v33 = vpop.eup %2076  ;;  %v696_v7 = vmul.f32 %v2075_v53, %v2536_v28  ;;  %v387_v60 = vmul.f32 1.442695, %v305_v43  ;;  %v307_v28 = vmin.f32 %v2617_v38, 20.0  ;;  %v175_v56 = vmul.f32 %v1556_v50, %v2308_v1  ;;  %v2674_v43 = vld [vmem:[%s3363_s0 + $0x70] sm:$0xff]  }
  0x42   :  { %v2079_v58 = vpop.eup %2078  ;;  %v698_v12 = vmul.f32 %v2077_v33, %v2549_v46  ;;  %v389_v13 = vmul.f32 1.442695, %v306_v0  ;;  %v308_v25 = vmin.f32 %v2620_v22, 20.0  ;;  %v2634_v45 = vadd.f32 %v2316_v5, %v174_v62 }
  0x43   :  { %v2081_v21 = vpop.eup %2080  ;;  %v811_v47 = vmul.f32 %v696_v7, %v2430_v35  ;;  %v495_v6 = vadd.f32 2.0, %v2079_v58  ;;  %2086 = vpow2.f32 %v387_v60  ;;  %v391_v2 = vmul.f32 1.442695, %v307_v28 }
  0x44   :  { %v812_v16 = vmul.f32 %v698_v12, %v2433_v36  ;;  %v496_v10 = vadd.f32 2.0, %v2081_v21  ;;  %2088 = vpow2.f32 %v389_v13  ;;  %v393_v35 = vmul.f32 1.442695, %v308_v25 }
  0x45   :  { %v1003_v27 = vadd.f32 %v1663_v37, %v811_v47  ;;  %v2629_v46 = vmul.f32 %v2079_v58, %v495_v6  ;;  %v2083_v17 = vpop.eup %2082  ;;  %2090 = vpow2.f32 %v391_v2  ;;  %v2639_v40 = vadd.f32 %v2316_v5, %v175_v56 }
  0x46   :  { %v1004_v32 = vadd.f32 %v1664_v63, %v812_v16  ;;  %v2631_v3 = vmul.f32 %v2081_v21, %v496_v10  ;;  %v700_v34 = vmul.f32 %v2083_v17, %v2572_v61  ;;  %2092 = vpow2.f32 %v393_v35 }
  0x47   :  { %v623_v36 = vadd.f32 2.0, %v2629_v46  ;;  %v309_v61 = vmin.f32 %v2634_v45, 20.0  ;;  %v310_v14 = vmin.f32 %v2639_v40, 20.0  ;;  %v1559_v20 = vunpack.c.l.bf16 %v1936_v18 }
  0x48   :  { %v1798_v9 = vpack.c.bf16 %v1004_v32, %v1003_v27  ;;  %v624_v55 = vadd.f32 2.0, %v2631_v3  ;;  %v2085_v54 = vpop.eup %2084  ;;  %v813_v26 = vmul.f32 %v700_v34, %v2477_v57  ;;  %v1671_v57 = vunpack.c.l.bf16 %v2648_v31 }
  0x49   :  { %2094 = vrcp.f32 %v623_v36  ;;  %v702_v15 = vmul.f32 %v2085_v54, %v2585_v44  ;;  %v395_v19 = vmul.f32 1.442695, %v309_v61  ;;  %v1672_v51 = vunpack.c.h.bf16 %v2648_v31 }
  0x4a   :  { %1992 = vst [vmem:[%s3367_s4 + $0x30] sm:$0xff] %v1798_v9   ;;  %2096 = vrcp.f32 %v624_v55  ;;  %v397_v23 = vmul.f32 1.442695, %v310_v14  ;;  %v1560_v37 = vunpack.c.h.bf16 %v1936_v18  ;;  %v1005_v30 = vadd.f32 %v1667_v59, %v813_v26 }
  0x4b   :  { %v814_v44 = vmul.f32 %v702_v15, %v2483_v24  ;;  %2098 = vpow2.f32 %v395_v19  ;;  %v176_v63 = vmul.f32 %v1559_v20, %v2308_v1  ;;  %v1563_v49 = vunpack.c.l.bf16 %v1937_v39 }
  0x4c   :  { %2100 = vpow2.f32 %v397_v23  ;;  %v177_v42 = vmul.f32 %v1560_v37, %v2308_v1  ;;  %v1564_v53 = vunpack.c.h.bf16 %v1937_v39  ;;  %v1675_v50 = vunpack.c.l.bf16 %v2666_v29 }
  0x4d   :  { %v2087_v0 = vpop.eup %2086  ;;  %v1006_v8 = vadd.f32 %v1668_v11, %v814_v44  ;;  %v1676_v24 = vunpack.c.h.bf16 %v2666_v29  ;;  %v2679_v33 = vadd.f32 %v2316_v5, %v176_v63  ;;  %v178_v12 = vmul.f32 %v1563_v49, %v2308_v1 }
  0x4e   :  { %v2089_v7 = vpop.eup %2088  ;;  %v497_v59 = vadd.f32 2.0, %v2087_v0  ;;  %v2682_v58 = vadd.f32 %v2316_v5, %v177_v42  ;;  %v179_v60 = vmul.f32 %v1564_v53, %v2308_v1  ;;  %v1567_v47 = vunpack.c.l.bf16 %v2674_v43 }
  0x4f   :  { %v1803_v13 = vpack.c.bf16 %v1006_v8, %v1005_v30  ;;  %v498_v62 = vadd.f32 2.0, %v2089_v7  ;;  %v311_v21 = vmin.f32 %v2679_v33, 20.0  ;;  %v2091_v6 = vpop.eup %2090  ;;  %v2692_v16 = vadd.f32 %v2316_v5, %v178_v12 }
  0x50   :  { %v2688_v28 = vmul.f32 %v2087_v0, %v497_v59  ;;  %v312_v25 = vmin.f32 %v2682_v58, 20.0  ;;  %v2695_v10 = vadd.f32 %v2316_v5, %v179_v60  ;;  %v2093_v56 = vpop.eup %2092  ;;  %v499_v2 = vadd.f32 2.0, %v2091_v6 }
  0x51   :  { %1993 = vst [vmem:[%s3367_s4 + $0x38] sm:$0xff] %v1803_v13   ;;  %v2700_v27 = vmul.f32 %v2089_v7, %v498_v62  ;;  %v399_v17 = vmul.f32 1.442695, %v311_v21  ;;  %v1568_v32 = vunpack.c.h.bf16 %v2674_v43  ;;  %v500_v36 = vadd.f32 2.0, %v2093_v56  ;;  %v1939_v43 = vld [vmem:[%s3363_s0 + $0x78] sm:$0xff]   ;;  %v2753_v21 = vld [vmem:[%s3363_s0 + $0x80] sm:$0xff]  }
  0x52   :  { %v625_v34 = vadd.f32 2.0, %v2688_v28  ;;  %v401_v18 = vmul.f32 1.442695, %v312_v25  ;;  %v313_v9 = vmin.f32 %v2692_v16, 20.0  ;;  %v2707_v26 = vmul.f32 %v2091_v6, %v499_v2 }
  0x53   :  { %v2095_v35 = vpop.eup %2094  ;;  %v626_v54 = vadd.f32 2.0, %v2700_v27  ;;  %2102 = vpow2.f32 %v399_v17  ;;  %v2710_v14 = vmul.f32 %v2093_v56, %v500_v36  ;;  %v314_v15 = vmin.f32 %v2695_v10, 20.0 }
  0x54   :  { %v2097_v55 = vpop.eup %2096  ;;  %v704_v61 = vmul.f32 %v2095_v35, %v2629_v46  ;;  %2104 = vrcp.f32 %v625_v34  ;;  %v627_v39 = vadd.f32 2.0, %v2707_v26  ;;  %v403_v23 = vmul.f32 1.442695, %v313_v9 }
  0x55   :  { %v706_v11 = vmul.f32 %v2097_v55, %v2631_v3  ;;  %v2099_v19 = vpop.eup %2098  ;;  %2106 = vrcp.f32 %v626_v54  ;;  %v628_v44 = vadd.f32 2.0, %v2710_v14  ;;  %v2720_v3 = vld [vmem:[%s3366_s3 + $0x50] sm:$0xff]   ;;  %v405_v42 = vmul.f32 1.442695, %v314_v15 }
  0x56   :  { %v815_v20 = vmul.f32 %v704_v61, %v2539_v48  ;;  %v2101_v46 = vpop.eup %2100  ;;  %v501_v30 = vadd.f32 2.0, %v2099_v19  ;;  %2108 = vpow2.f32 %v401_v18  ;;  %v180_v53 = vmul.f32 %v1567_v47, %v2308_v1 }
  0x57   :  { %v816_v37 = vmul.f32 %v706_v11, %v2542_v4  ;;  %2110 = vrcp.f32 %v627_v39  ;;  %v502_v48 = vadd.f32 2.0, %v2101_v46  ;;  %v1679_v0 = vunpack.c.l.bf16 %v2720_v3 }
  0x58   :  { %v1007_v63 = vadd.f32 %v1671_v57, %v815_v20  ;;  %2112 = vrcp.f32 %v628_v44  ;;  %v2726_v4 = vmul.f32 %v2099_v19, %v501_v30  ;;  %v2738_v57 = vld [vmem:[%s3366_s3 + $0x58] sm:$0xff]   ;;  %v181_v31 = vmul.f32 %v1568_v32, %v2308_v1 }
  0x59   :  { %v1008_v49 = vadd.f32 %v1672_v51, %v816_v37  ;;  %v2733_v8 = vmul.f32 %v2101_v46, %v502_v48  ;;  %2114 = vpow2.f32 %v403_v23  ;;  %v2743_v59 = vadd.f32 %v2316_v5, %v180_v53 }
  0x5a   :  { %v629_v7 = vadd.f32 2.0, %v2726_v4  ;;  %2116 = vpow2.f32 %v405_v42  ;;  %v1680_v12 = vunpack.c.h.bf16 %v2720_v3  ;;  %v2748_v13 = vadd.f32 %v2316_v5, %v181_v31 }
  0x5b   :  { %v1808_v51 = vpack.c.bf16 %v1008_v49, %v1007_v63  ;;  %v630_v60 = vadd.f32 2.0, %v2733_v8  ;;  %v1571_v62 = vunpack.c.l.bf16 %v1939_v43  ;;  %v1683_v47 = vunpack.c.l.bf16 %v2738_v57 }
  0x5c   :  { %2118 = vrcp.f32 %v629_v7  ;;  %v315_v6 = vmin.f32 %v2743_v59, 20.0  ;;  %v1572_v25 = vunpack.c.h.bf16 %v1939_v43  ;;  %v1684_v2 = vunpack.c.h.bf16 %v2738_v57 }
  0x5d   :  { %1994 = vst [vmem:[%s3367_s4 + $0x40] sm:$0xff] %v1808_v51   ;;  %v2103_v56 = vpop.eup %2102  ;;  %2120 = vrcp.f32 %v630_v60  ;;  %v316_v17 = vmin.f32 %v2748_v13, 20.0  ;;  %v182_v32 = vmul.f32 %v1571_v62, %v2308_v1  ;;  %v1575_v9 = vunpack.c.l.bf16 %v2753_v21 }
  0x5e   :  { %v2105_v35 = vpop.eup %2104  ;;  %v503_v34 = vadd.f32 2.0, %v2103_v56  ;;  %v407_v36 = vmul.f32 1.442695, %v315_v6  ;;  %v183_v18 = vmul.f32 %v1572_v25, %v2308_v1  ;;  %v1576_v15 = vunpack.c.h.bf16 %v2753_v21 }
  0x5f   :  { %v2107_v55 = vpop.eup %2106  ;;  %v708_v61 = vmul.f32 %v2105_v35, %v2688_v28  ;;  %v409_v54 = vmul.f32 1.442695, %v316_v17  ;;  %v2767_v11 = vadd.f32 %v2316_v5, %v182_v32 }
  0x60   :  { %v2109_v19 = vpop.eup %2108  ;;  %v710_v20 = vmul.f32 %v2107_v55, %v2700_v27  ;;  %v2771_v39 = vmul.f32 %v2103_v56, %v503_v34  ;;  %2122 = vpow2.f32 %v407_v36  ;;  %v2774_v23 = vadd.f32 %v2316_v5, %v183_v18 }
  0x61   :  { %v2111_v46 = vpop.eup %2110  ;;  %v817_v37 = vmul.f32 %v708_v61, %v2602_v41  ;;  %v504_v44 = vadd.f32 2.0, %v2109_v19  ;;  %2124 = vpow2.f32 %v409_v54  ;;  %v317_v28 = vmin.f32 %v2767_v11, 20.0 }
  0x62   :  { %v2113_v30 = vpop.eup %2112  ;;  %v818_v63 = vmul.f32 %v710_v20, %v2605_v52  ;;  %v712_v48 = vmul.f32 %v2111_v46, %v2707_v26  ;;  %v631_v27 = vadd.f32 2.0, %v2771_v39  ;;  %v318_v42 = vmin.f32 %v2774_v23, 20.0 }
  0x63   :  { %v2115_v49 = vpop.eup %2114  ;;  %v1009_v53 = vadd.f32 %v1675_v50, %v817_v37  ;;  %v714_v43 = vmul.f32 %v2113_v30, %v2710_v14  ;;  %v2785_v41 = vmul.f32 %v2109_v19, %v504_v44  ;;  %v411_v31 = vmul.f32 1.442695, %v317_v28 }
  0x64   :  { %v2117_v51 = vpop.eup %2116  ;;  %v1010_v7 = vadd.f32 %v1676_v24, %v818_v63  ;;  %v819_v52 = vmul.f32 %v712_v48, %v2617_v38  ;;  %2126 = vrcp.f32 %v631_v27  ;;  %v505_v26 = vadd.f32 2.0, %v2115_v49 }
  0x65   :  { %v820_v60 = vmul.f32 %v714_v43, %v2620_v22  ;;  %v632_v62 = vadd.f32 2.0, %v2785_v41  ;;  %v506_v21 = vadd.f32 2.0, %v2117_v51  ;;  %2128 = vpow2.f32 %v411_v31  ;;  %v2800_v22 = vld [vmem:[%s3366_s3 + $0x60] sm:$0xff]  }
  0x66   :  { %v2119_v50 = vpop.eup %2118  ;;  %v1813_v6 = vpack.c.bf16 %v1010_v7, %v1009_v53  ;;  %v1011_v14 = vadd.f32 %v1679_v0, %v819_v52  ;;  %v2794_v25 = vmul.f32 %v2115_v49, %v505_v26  ;;  %v413_v56 = vmul.f32 1.442695, %v318_v42  ;;  %v2854_v43 = vld [vmem:[%s3364_s1] ss:$0 sm:$0xff] }
  0x67   :  { %v2121_v29 = vpop.eup %2120  ;;  %v1012_v24 = vadd.f32 %v1680_v12, %v820_v60  ;;  %v716_v38 = vmul.f32 %v2119_v50, %v2726_v4  ;;  %2130 = vrcp.f32 %v632_v62  ;;  %v2802_v17 = vmul.f32 %v2117_v51, %v506_v21  ;;  %v1942_v21 = vld [vmem:[%s3363_s0 + $0x90] sm:$0xff]  }
  0x68   :  { %1995 = vst [vmem:[%s3367_s4 + $0x48] sm:$0xff] %v1813_v6   ;;  %v718_v3 = vmul.f32 %v2121_v29, %v2733_v8  ;;  %v633_v0 = vadd.f32 2.0, %v2794_v25  ;;  %2132 = vpow2.f32 %v413_v56  ;;  %v184_v12 = vmul.f32 %v1575_v9, %v2308_v1  ;;  %v1941_v9 = vld [vmem:[%s3363_s0 + $0x88] sm:$0xff]  }
  0x69   :  { %v1818_v4 = vpack.c.bf16 %v1012_v24, %v1011_v14  ;;  %v821_v32 = vmul.f32 %v716_v38, %v2634_v45  ;;  %v634_v35 = vadd.f32 2.0, %v2802_v17  ;;  %v185_v34 = vmul.f32 %v1576_v15, %v2308_v1  ;;  %v2829_v45 = vld [vmem:[%s3366_s3 + $0x68] sm:$0xff]  }
  0x6a   :  { %v2123_v36 = vpop.eup %2122  ;;  %v822_v18 = vmul.f32 %v718_v3, %v2639_v40  ;;  %v1687_v55 = vunpack.c.l.bf16 %v2800_v22  ;;  %2134 = vrcp.f32 %v633_v0  ;;  %v2816_v8 = vadd.f32 %v2316_v5, %v184_v12  ;;  %v2834_v40 = vld [vmem:[%s3365_s2] ss:$0 sm:$0xff] }
  0x6b   :  { %v2125_v61 = vpop.eup %2124  ;;  %1996 = vst [vmem:[%s3367_s4 + $0x50] sm:$0xff] %v1818_v4   ;;  %v1013_v1 = vadd.f32 %v1683_v47, %v821_v32  ;;  %2136 = vrcp.f32 %v634_v35  ;;  %v507_v5 = vadd.f32 2.0, %v2123_v36  ;;  %v2837_v54 = vadd.f32 %v2834_v40, %v185_v34 }
  0x6c   :  { %v1014_v15 = vadd.f32 %v1684_v2, %v822_v18  ;;  %v1688_v47 = vunpack.c.h.bf16 %v2800_v22  ;;  %v508_v19 = vadd.f32 2.0, %v2125_v61  ;;  %v319_v20 = vmin.f32 %v2816_v8, 20.0 }
  0x6d   :  { %v2843_v46 = vmul.f32 %v2123_v36, %v507_v5  ;;  %v320_v37 = vmin.f32 %v2837_v54, 20.0  ;;  %v1579_v44 = vunpack.c.l.bf16 %v1941_v9  ;;  %v1580_v28 = vunpack.c.h.bf16 %v1941_v9  ;;  %v2897_v5 = vld [vmem:[%s3366_s3 + $0x78] sm:$0xff]  }
  0x6e   :  { %v2127_v30 = vpop.eup %2126  ;;  %v1823_v63 = vpack.c.bf16 %v1014_v15, %v1013_v1  ;;  %v1691_v48 = vunpack.c.l.bf16 %v2829_v45  ;;  %v2847_v27 = vmul.f32 %v2125_v61, %v508_v19  ;;  %v415_v42 = vmul.f32 1.442695, %v319_v20  ;;  %v1943_v1 = vld [vmem:[%s3363_s0 + $0x98] sm:$0xff]  }
  0x6f   :  { %v2129_v57 = vpop.eup %2128  ;;  %v720_v2 = vmul.f32 %v2127_v30, %v2771_v39  ;;  %v635_v49 = vadd.f32 2.0, %v2843_v46  ;;  %v417_v53 = vmul.f32 1.442695, %v320_v37  ;;  %v186_v31 = vmul.f32 %v2854_v43, %v1579_v44 }
  0x70   :  { %1997 = vst [vmem:[%s3367_s4 + $0x58] sm:$0xff] %v1823_v63   ;;  %v636_v51 = vadd.f32 2.0, %v2847_v27  ;;  %v509_v7 = vadd.f32 2.0, %v2129_v57  ;;  %2138 = vpow2.f32 %v415_v42  ;;  %v187_v39 = vmul.f32 %v2854_v43, %v1580_v28 }
  0x71   :  { %v2131_v52 = vpop.eup %2130  ;;  %v823_v26 = vmul.f32 %v720_v2, %v2679_v33  ;;  %v1692_v60 = vunpack.c.h.bf16 %v2829_v45  ;;  %2140 = vrcp.f32 %v635_v49  ;;  %v2865_v62 = vadd.f32 %v2834_v40, %v186_v31 }
  0x72   :  { %v2133_v50 = vpop.eup %2132  ;;  %v722_v6 = vmul.f32 %v2131_v52, %v2785_v41  ;;  %2142 = vrcp.f32 %v636_v51  ;;  %v2871_v14 = vmul.f32 %v2129_v57, %v509_v7  ;;  %v2874_v56 = vadd.f32 %v2834_v40, %v187_v39 }
  0x73   :  { %v1015_v33 = vadd.f32 %v1687_v55, %v823_v26  ;;  %v510_v29 = vadd.f32 2.0, %v2133_v50  ;;  %2144 = vpow2.f32 %v417_v53  ;;  %v321_v24 = vmin.f32 %v2865_v62, 20.0  ;;  %v1969_v55 = vld [vmem:[%s3366_s3 + $0x70] sm:$0xff]  }
  0x74   :  { %v2135_v38 = vpop.eup %2134  ;;  %v824_v22 = vmul.f32 %v722_v6, %v2682_v58  ;;  %v637_v3 = vadd.f32 2.0, %v2871_v14  ;;  %v322_v0 = vmin.f32 %v2874_v56, 20.0  ;;  %v1583_v12 = vunpack.c.l.bf16 %v1942_v21 }
  0x75   :  { %v2137_v41 = vpop.eup %2136  ;;  %v724_v4 = vmul.f32 %v2135_v38, %v2794_v25  ;;  %v2881_v32 = vmul.f32 %v2133_v50, %v510_v29  ;;  %v419_v35 = vmul.f32 1.442695, %v321_v24  ;;  %v1584_v34 = vunpack.c.h.bf16 %v1942_v21 }
  0x76   :  { %v1016_v36 = vadd.f32 %v1688_v47, %v824_v22  ;;  %v726_v18 = vmul.f32 %v2137_v41, %v2802_v17  ;;  %2146 = vrcp.f32 %v637_v3  ;;  %v421_v58 = vmul.f32 1.442695, %v322_v0  ;;  %v1944_v41 = vld [vmem:[%s3363_s0 + $0xa0] sm:$0xff]  }
  0x77   :  { %v825_v9 = vmul.f32 %v724_v4, %v2692_v16  ;;  %v638_v61 = vadd.f32 2.0, %v2881_v32  ;;  %2148 = vpow2.f32 %v419_v35  ;;  %v188_v25 = vmul.f32 %v2854_v43, %v1583_v12 }
  0x78   :  { %v1828_v45 = vpack.c.bf16 %v1016_v36, %v1015_v33  ;;  %v826_v17 = vmul.f32 %v726_v18, %v2695_v10  ;;  %2150 = vpow2.f32 %v421_v58  ;;  %v189_v16 = vmul.f32 %v2854_v43, %v1584_v34 }
  0x79   :  { %v1017_v15 = vadd.f32 %v1691_v48, %v825_v9  ;;  %v1695_v47 = vunpack.c.l.bf16 %v1969_v55  ;;  %2152 = vrcp.f32 %v638_v61  ;;  %v2901_v19 = vadd.f32 %v2834_v40, %v188_v25 }
  0x7a   :  { %v2139_v20 = vpop.eup %2138  ;;  %1998 = vst [vmem:[%s3367_s4 + $0x60] sm:$0xff] %v1828_v45   ;;  %v1018_v10 = vadd.f32 %v1692_v60, %v826_v17  ;;  %v1696_v37 = vunpack.c.h.bf16 %v1969_v55  ;;  %v2907_v44 = vadd.f32 %v2834_v40, %v189_v16  ;;  %v1587_v28 = vunpack.c.l.bf16 %v1943_v1 }
  0x7b   :  { %v2141_v30 = vpop.eup %2140  ;;  %v1699_v63 = vunpack.c.l.bf16 %v2897_v5  ;;  %v511_v48 = vadd.f32 2.0, %v2139_v20  ;;  %v323_v42 = vmin.f32 %v2901_v19, 20.0  ;;  %v1588_v57 = vunpack.c.h.bf16 %v1943_v1  ;;  %v2945_v1 = vld [vmem:[%s3366_s3 + $0x80] sm:$0xff]  }
  0x7c   :  { %v2143_v2 = vpop.eup %2142  ;;  %v1833_v49 = vpack.c.bf16 %v1018_v10, %v1017_v15  ;;  %v728_v53 = vmul.f32 %v2141_v30, %v2843_v46  ;;  %v324_v31 = vmin.f32 %v2907_v44, 20.0  ;;  %v190_v51 = vmul.f32 %v2854_v43, %v1587_v28 }
  0x7d   :  { %v2145_v7 = vpop.eup %2144  ;;  %v730_v39 = vmul.f32 %v2143_v2, %v2847_v27  ;;  %v2915_v52 = vmul.f32 %v2139_v20, %v511_v48  ;;  %v423_v26 = vmul.f32 1.442695, %v323_v42  ;;  %v191_v60 = vmul.f32 %v2854_v43, %v1588_v57  ;;  %v2962_v20 = vld [vmem:[%s3366_s3 + $0x88] sm:$0xff]  }
  0x7e   :  { %1999 = vst [vmem:[%s3367_s4 + $0x68] sm:$0xff] %v1833_v49   ;;  %v827_v21 = vmul.f32 %v728_v53, %v2743_v59  ;;  %v512_v50 = vadd.f32 2.0, %v2145_v7  ;;  %v425_v46 = vmul.f32 1.442695, %v324_v31  ;;  %v2923_v6 = vadd.f32 %v2834_v40, %v190_v51 }
  0x7f   :  { %v828_v33 = vmul.f32 %v730_v39, %v2748_v13  ;;  %v639_v27 = vadd.f32 2.0, %v2915_v52  ;;  %2154 = vpow2.f32 %v423_v26  ;;  %v2928_v29 = vadd.f32 %v2834_v40, %v191_v60  ;;  %v1946_v60 = vld [vmem:[%s3363_s0 + $0xb0] sm:$0xff]  }
  0x80   :  { %v2147_v24 = vpop.eup %2146  ;;  %v1019_v38 = vadd.f32 %v1695_v47, %v827_v21  ;;  %v2930_v22 = vmul.f32 %v2145_v7, %v512_v50  ;;  %2156 = vpow2.f32 %v425_v46  ;;  %v325_v59 = vmin.f32 %v2923_v6, 20.0 }
  0x81   :  { %v2149_v3 = vpop.eup %2148  ;;  %v1020_v0 = vadd.f32 %v1696_v37, %v828_v33  ;;  %v732_v12 = vmul.f32 %v2147_v24, %v2871_v14  ;;  %2158 = vrcp.f32 %v639_v27  ;;  %v326_v13 = vmin.f32 %v2928_v29, 20.0 }
  0x82   :  { %v2151_v4 = vpop.eup %2150  ;;  %v1700_v35 = vunpack.c.h.bf16 %v2897_v5  ;;  %v640_v34 = vadd.f32 2.0, %v2930_v22  ;;  %v513_v36 = vadd.f32 2.0, %v2149_v3  ;;  %v427_v18 = vmul.f32 1.442695, %v325_v59 }
  0x83   :  { %v2153_v55 = vpop.eup %2152  ;;  %v1838_v58 = vpack.c.bf16 %v1020_v0, %v1019_v38  ;;  %v829_v9 = vmul.f32 %v732_v12, %v2767_v11  ;;  %v514_v61 = vadd.f32 2.0, %v2151_v4  ;;  %v429_v14 = vmul.f32 1.442695, %v326_v13 }
  0x84   :  { %v734_v25 = vmul.f32 %v2153_v55, %v2881_v32  ;;  %2160 = vrcp.f32 %v640_v34  ;;  %v2947_v45 = vmul.f32 %v2149_v3, %v513_v36  ;;  %v1591_v17 = vunpack.c.l.bf16 %v1944_v41  ;;  %v1945_v32 = vld [vmem:[%s3363_s0 + $0xa8] sm:$0xff]  }
  0x85   :  { %2000 = vst [vmem:[%s3367_s4 + $0x70] sm:$0xff] %v1838_v58   ;;  %v1021_v5 = vadd.f32 %v1699_v63, %v829_v9  ;;  %v2952_v16 = vmul.f32 %v2151_v4, %v514_v61  ;;  %2162 = vpow2.f32 %v427_v18  ;;  %v1592_v11 = vunpack.c.h.bf16 %v1944_v41 }
  0x86   :  { %v830_v15 = vmul.f32 %v734_v25, %v2774_v23  ;;  %v641_v47 = vadd.f32 2.0, %v2947_v45  ;;  %2164 = vpow2.f32 %v429_v14  ;;  %v192_v10 = vmul.f32 %v2854_v43, %v1591_v17 }
  0x87   :  { %v1703_v37 = vunpack.c.l.bf16 %v2945_v1  ;;  %v1704_v28 = vunpack.c.h.bf16 %v2945_v1  ;;  %v642_v30 = vadd.f32 2.0, %v2952_v16  ;;  %v193_v63 = vmul.f32 %v2854_v43, %v1592_v11 }
  0x88   :  { %v1022_v48 = vadd.f32 %v1700_v35, %v830_v15  ;;  %2166 = vrcp.f32 %v641_v47  ;;  %v2970_v23 = vadd.f32 %v2834_v40, %v192_v10  ;;  %v1595_v42 = vunpack.c.l.bf16 %v1945_v32 }
  0x89   :  { %v2155_v57 = vpop.eup %2154  ;;  %2168 = vrcp.f32 %v642_v30  ;;  %v1707_v2 = vunpack.c.l.bf16 %v2962_v20  ;;  %v2974_v49 = vadd.f32 %v2834_v40, %v193_v63  ;;  %v1596_v53 = vunpack.c.h.bf16 %v1945_v32 }
  0x8a   :  { %v2157_v31 = vpop.eup %2156  ;;  %v1843_v51 = vpack.c.bf16 %v1022_v48, %v1021_v5  ;;  %v515_v7 = vadd.f32 2.0, %v2155_v57  ;;  %v327_v39 = vmin.f32 %v2970_v23, 20.0  ;;  %v194_v26 = vmul.f32 %v2854_v43, %v1595_v42 }
  0x8b   :  { %v2159_v21 = vpop.eup %2158  ;;  %v1708_v50 = vunpack.c.h.bf16 %v2962_v20  ;;  %v516_v46 = vadd.f32 2.0, %v2157_v31  ;;  %v328_v33 = vmin.f32 %v2974_v49, 20.0  ;;  %v195_v27 = vmul.f32 %v2854_v43, %v1596_v53 }
  0x8c   :  { %2001 = vst [vmem:[%s3367_s4 + $0x78] sm:$0xff] %v1843_v51   ;;  %v736_v24 = vmul.f32 %v2159_v21, %v2915_v52  ;;  %v2988_v38 = vmul.f32 %v2155_v57, %v515_v7  ;;  %v431_v59 = vmul.f32 1.442695, %v327_v39  ;;  %v2991_v3 = vadd.f32 %v2834_v40, %v194_v26  ;;  %v1947_v57 = vld [vmem:[%s3363_s0 + $0xb8] sm:$0xff]  }
  0x8d   :  { %v2993_v0 = vmul.f32 %v2157_v31, %v516_v46  ;;  %v433_v12 = vmul.f32 1.442695, %v328_v33  ;;  %v2996_v13 = vadd.f32 %v2834_v40, %v195_v27  ;;  %v1599_v41 = vunpack.c.l.bf16 %v1946_v60  ;;  %v3032_v51 = vld [vmem:[%s3366_s3 + $0x98] sm:$0xff]  }
  0x8e   :  { %v2161_v4 = vpop.eup %2160  ;;  %v831_v35 = vmul.f32 %v736_v24, %v2816_v8  ;;  %v643_v34 = vadd.f32 2.0, %v2988_v38  ;;  %2170 = vpow2.f32 %v431_v59  ;;  %v329_v52 = vmin.f32 %v2991_v3, 20.0 }
  0x8f   :  { %v2163_v36 = vpop.eup %2162  ;;  %v738_v18 = vmul.f32 %v2161_v4, %v2930_v22  ;;  %v644_v55 = vadd.f32 2.0, %v2993_v0  ;;  %2172 = vpow2.f32 %v433_v12  ;;  %v330_v58 = vmin.f32 %v2996_v13, 20.0  ;;  %v3008_v22 = vld [vmem:[%s3366_s3 + $0x90] sm:$0xff]   ;;  %v1948_v4 = vld [vmem:[%s3363_s0 + $0xc0] sm:$0xff]  }
  0x90   :  { %v2165_v9 = vpop.eup %2164  ;;  %v1023_v61 = vadd.f32 %v1703_v37, %v831_v35  ;;  %2174 = vrcp.f32 %v643_v34  ;;  %v517_v14 = vadd.f32 2.0, %v2163_v36  ;;  %v435_v25 = vmul.f32 1.442695, %v329_v52 }
  0x91   :  { %v832_v8 = vmul.f32 %v738_v18, %v2837_v54  ;;  %2176 = vrcp.f32 %v644_v55  ;;  %v518_v1 = vadd.f32 2.0, %v2165_v9  ;;  %v437_v17 = vmul.f32 1.442695, %v330_v58 }
  0x92   :  { %v2167_v5 = vpop.eup %2166  ;;  %v3010_v11 = vmul.f32 %v2163_v36, %v517_v14  ;;  %2178 = vpow2.f32 %v435_v25  ;;  %v1600_v32 = vunpack.c.h.bf16 %v1946_v60  ;;  %v196_v15 = vmul.f32 %v2854_v43, %v1599_v41 }
  0x93   :  { %v2169_v47 = vpop.eup %2168  ;;  %v1024_v10 = vadd.f32 %v1704_v28, %v832_v8  ;;  %v740_v37 = vmul.f32 %v2167_v5, %v2947_v45  ;;  %v3014_v54 = vmul.f32 %v2165_v9, %v518_v1  ;;  %2180 = vpow2.f32 %v437_v17 }
  0x94   :  { %v742_v30 = vmul.f32 %v2169_v47, %v2952_v16  ;;  %v645_v63 = vadd.f32 2.0, %v3010_v11  ;;  %v197_v48 = vmul.f32 %v2854_v43, %v1600_v32  ;;  %v3020_v42 = vadd.f32 %v2834_v40, %v196_v15 }
  0x95   :  { %v1848_v53 = vpack.c.bf16 %v1024_v10, %v1023_v61  ;;  %v833_v28 = vmul.f32 %v740_v37, %v2865_v62  ;;  %v1711_v45 = vunpack.c.l.bf16 %v3008_v22  ;;  %v646_v31 = vadd.f32 2.0, %v3014_v54 }
  0x96   :  { %v834_v16 = vmul.f32 %v742_v30, %v2874_v56  ;;  %2182 = vrcp.f32 %v645_v63  ;;  %v3035_v7 = vadd.f32 %v2834_v40, %v197_v48  ;;  %v331_v39 = vmin.f32 %v3020_v42, 20.0 }
  0x97   :  { %2002 = vst [vmem:[%s3367_s4 + $0x80] sm:$0xff] %v1848_v53   ;;  %v1025_v62 = vadd.f32 %v1707_v2, %v833_v28  ;;  %v1712_v56 = vunpack.c.h.bf16 %v3008_v22  ;;  %2184 = vrcp.f32 %v646_v31  ;;  %v1603_v26 = vunpack.c.l.bf16 %v1947_v57  ;;  %v3083_v53 = vld [vmem:[%s3366_s3 + $0xa0] sm:$0xff]  }
  0x98   :  { %v2171_v60 = vpop.eup %2170  ;;  %v1026_v21 = vadd.f32 %v1708_v50, %v834_v16  ;;  %v332_v46 = vmin.f32 %v3035_v7, 20.0  ;;  %v439_v33 = vmul.f32 1.442695, %v331_v39  ;;  %v1604_v27 = vunpack.c.h.bf16 %v1947_v57 }
  0x99   :  { %v2173_v24 = vpop.eup %2172  ;;  %v1715_v59 = vunpack.c.l.bf16 %v3032_v51  ;;  %v1716_v12 = vunpack.c.h.bf16 %v3032_v51  ;;  %v519_v41 = vadd.f32 2.0, %v2171_v60  ;;  %v198_v2 = vmul.f32 %v2854_v43, %v1603_v26 }
  0x9a   :  { %v2175_v35 = vpop.eup %2174  ;;  %v1853_v34 = vpack.c.bf16 %v1026_v21, %v1025_v62  ;;  %v520_v20 = vadd.f32 2.0, %v2173_v24  ;;  %2186 = vpow2.f32 %v439_v33  ;;  %v441_v50 = vmul.f32 1.442695, %v332_v46  ;;  %v3103_v33 = vld [vmem:[%s3366_s3 + $0xa8] sm:$0xff]  }
  0x9b   :  { %v2177_v52 = vpop.eup %2176  ;;  %v744_v36 = vmul.f32 %v2175_v35, %v2988_v38  ;;  %v3054_v18 = vmul.f32 %v2171_v60, %v519_v41  ;;  %v199_v55 = vmul.f32 %v2854_v43, %v1604_v27  ;;  %v3058_v58 = vadd.f32 %v2834_v40, %v198_v2  ;;  %v1949_v60 = vld [vmem:[%s3363_s0 + $0xc8] sm:$0xff]  }
  0x9c   :  { %v2179_v9 = vpop.eup %2178  ;;  %2003 = vst [vmem:[%s3367_s4 + $0x88] sm:$0xff] %v1853_v34   ;;  %v746_v61 = vmul.f32 %v2177_v52, %v2993_v0  ;;  %v3064_v14 = vmul.f32 %v2173_v24, %v520_v20  ;;  %2188 = vpow2.f32 %v441_v50  ;;  %v1607_v25 = vunpack.c.l.bf16 %v1948_v4 }
  0x9d   :  { %v2181_v8 = vpop.eup %2180  ;;  %v835_v38 = vmul.f32 %v744_v36, %v2901_v19  ;;  %v647_v1 = vadd.f32 2.0, %v3054_v18  ;;  %v521_v17 = vadd.f32 2.0, %v2179_v9  ;;  %v3069_v5 = vadd.f32 %v2834_v40, %v199_v55 }
  0x9e   :  { %v836_v22 = vmul.f32 %v746_v61, %v2907_v44  ;;  %v648_v32 = vadd.f32 2.0, %v3064_v14  ;;  %v522_v15 = vadd.f32 2.0, %v2181_v8  ;;  %v333_v0 = vmin.f32 %v3058_v58, 20.0 }
  0x9f   :  { %v1027_v47 = vadd.f32 %v1711_v45, %v835_v38  ;;  %2190 = vrcp.f32 %v647_v1  ;;  %v3074_v10 = vmul.f32 %v2179_v9, %v521_v17  ;;  %v334_v37 = vmin.f32 %v3069_v5, 20.0 }
  0xa0   :  { %v2183_v19 = vpop.eup %2182  ;;  %v1028_v30 = vadd.f32 %v1712_v56, %v836_v22  ;;  %2192 = vrcp.f32 %v648_v32  ;;  %v3077_v63 = vmul.f32 %v2181_v8, %v522_v15  ;;  %v443_v48 = vmul.f32 1.442695, %v333_v0 }
  0xa1   :  { %v2185_v57 = vpop.eup %2184  ;;  %v748_v44 = vmul.f32 %v2183_v19, %v3010_v11  ;;  %v649_v28 = vadd.f32 2.0, %v3074_v10  ;;  %v445_v45 = vmul.f32 1.442695, %v334_v37  ;;  %v1608_v31 = vunpack.c.h.bf16 %v1948_v4 }
  0xa2   :  { %v1858_v16 = vpack.c.bf16 %v1028_v30, %v1027_v47  ;;  %v750_v39 = vmul.f32 %v2185_v57, %v3014_v54  ;;  %v650_v62 = vadd.f32 2.0, %v3077_v63  ;;  %2194 = vpow2.f32 %v443_v48 }
  0xa3   :  { %v837_v56 = vmul.f32 %v748_v44, %v2923_v6  ;;  %2196 = vrcp.f32 %v649_v28  ;;  %v200_v11 = vmul.f32 %v2854_v43, %v1607_v25  ;;  %v201_v26 = vmul.f32 %v2854_v43, %v1608_v31 }
  0xa4   :  { %v2187_v21 = vpop.eup %2186  ;;  %2004 = vst [vmem:[%s3367_s4 + $0x90] sm:$0xff] %v1858_v16   ;;  %v838_v54 = vmul.f32 %v750_v39, %v2928_v29  ;;  %v1719_v46 = vunpack.c.l.bf16 %v3083_v53  ;;  %v1720_v6 = vunpack.c.h.bf16 %v3083_v53  ;;  %2198 = vrcp.f32 %v650_v62 }
  0xa5   :  { %v1029_v27 = vadd.f32 %v1715_v59, %v837_v56  ;;  %v523_v24 = vadd.f32 2.0, %v2187_v21  ;;  %2200 = vpow2.f32 %v445_v45  ;;  %v3106_v41 = vadd.f32 %v2834_v40, %v200_v11 }
  0xa6   :  { %v2189_v2 = vpop.eup %2188  ;;  %v1030_v29 = vadd.f32 %v1716_v12, %v838_v54  ;;  %v3111_v4 = vadd.f32 %v2834_v40, %v201_v26  ;;  %v1611_v35 = vunpack.c.l.bf16 %v1949_v60  ;;  %v1612_v34 = vunpack.c.h.bf16 %v1949_v60  ;;  %v1950_v12 = vld [vmem:[%s3363_s0 + $0xd0] sm:$0xff]  }
  0xa7   :  { %v1723_v20 = vunpack.c.l.bf16 %v3103_v33  ;;  %v524_v50 = vadd.f32 2.0, %v2189_v2  ;;  %v3114_v52 = vmul.f32 %v2187_v21, %v523_v24  ;;  %v335_v59 = vmin.f32 %v3106_v41, 20.0 }
  0xa8   :  { %v1863_v36 = vpack.c.bf16 %v1030_v29, %v1029_v27  ;;  %v336_v55 = vmin.f32 %v3111_v4, 20.0  ;;  %v202_v9 = vmul.f32 %v2854_v43, %v1611_v35  ;;  %v203_v51 = vmul.f32 %v2854_v43, %v1612_v34  ;;  %v3162_v27 = vld [vmem:[%s3366_s3 + $0xb8] sm:$0xff]  }
  0xa9   :  { %v2191_v61 = vpop.eup %2190  ;;  %v1724_v25 = vunpack.c.h.bf16 %v3103_v33  ;;  %v3124_v8 = vmul.f32 %v2189_v2, %v524_v50  ;;  %v651_v38 = vadd.f32 2.0, %v3114_v52  ;;  %v447_v1 = vmul.f32 1.442695, %v335_v59  ;;  %v1952_v59 = vld [vmem:[%s3363_s0 + $0xe0] sm:$0xff]  }
  0xaa   :  { %v2193_v17 = vpop.eup %2192  ;;  %2005 = vst [vmem:[%s3367_s4 + $0x98] sm:$0xff] %v1863_v36   ;;  %v752_v22 = vmul.f32 %v2191_v61, %v3054_v18  ;;  %v449_v32 = vmul.f32 1.442695, %v336_v55  ;;  %v3132_v15 = vadd.f32 %v2834_v40, %v202_v9  ;;  %v3135_v0 = vadd.f32 %v2834_v40, %v203_v51 }
  0xab   :  { %v754_v47 = vmul.f32 %v2193_v17, %v3064_v14  ;;  %v652_v37 = vadd.f32 2.0, %v3124_v8  ;;  %2202 = vrcp.f32 %v651_v38  ;;  %v1615_v19 = vunpack.c.l.bf16 %v1950_v12 }
  0xac   :  { %v2195_v30 = vpop.eup %2194  ;;  %v839_v48 = vmul.f32 %v752_v22, %v2970_v23  ;;  %2204 = vpow2.f32 %v447_v1  ;;  %v337_v57 = vmin.f32 %v3132_v15, 20.0  ;;  %v338_v18 = vmin.f32 %v3135_v0, 20.0 }
  0xad   :  { %v2197_v44 = vpop.eup %2196  ;;  %v840_v53 = vmul.f32 %v754_v47, %v2974_v49  ;;  %2206 = vrcp.f32 %v652_v37  ;;  %v525_v28 = vadd.f32 2.0, %v2195_v30  ;;  %v1616_v45 = vunpack.c.h.bf16 %v1950_v12  ;;  %v1977_v49 = vld [vmem:[%s3366_s3 + $0xb0] sm:$0xff]  }
  0xae   :  { %v2199_v31 = vpop.eup %2198  ;;  %v1031_v14 = vadd.f32 %v1719_v46, %v839_v48  ;;  %v756_v16 = vmul.f32 %v2197_v44, %v3074_v10  ;;  %2208 = vpow2.f32 %v449_v32  ;;  %v451_v39 = vmul.f32 1.442695, %v337_v57 }
  0xaf   :  { %v2201_v62 = vpop.eup %2200  ;;  %v1032_v56 = vadd.f32 %v1720_v6, %v840_v53  ;;  %v758_v23 = vmul.f32 %v2199_v31, %v3077_v63  ;;  %v3145_v11 = vmul.f32 %v2195_v30, %v525_v28  ;;  %v453_v26 = vmul.f32 1.442695, %v338_v18  ;;  %v1951_v63 = vld [vmem:[%s3363_s0 + $0xd8] sm:$0xff]  }
  0xb0   :  { %v841_v60 = vmul.f32 %v756_v16, %v2991_v3  ;;  %v526_v21 = vadd.f32 2.0, %v2201_v62  ;;  %2210 = vpow2.f32 %v451_v39  ;;  %v204_v54 = vmul.f32 %v2854_v43, %v1615_v19 }
  0xb1   :  { %v1868_v10 = vpack.c.bf16 %v1032_v56, %v1031_v14  ;;  %v842_v46 = vmul.f32 %v758_v23, %v2996_v13  ;;  %v653_v6 = vadd.f32 2.0, %v3145_v11  ;;  %2212 = vpow2.f32 %v453_v26 }
  0xb2   :  { %v1033_v33 = vadd.f32 %v1723_v20, %v841_v60  ;;  %v3157_v3 = vmul.f32 %v2201_v62, %v526_v21  ;;  %v205_v24 = vmul.f32 %v2854_v43, %v1616_v45  ;;  %v3166_v2 = vadd.f32 %v2834_v40, %v204_v54 }
  0xb3   :  { %2006 = vst [vmem:[%s3367_s4 + $0xa0] sm:$0xff] %v1868_v10   ;;  %v1034_v13 = vadd.f32 %v1724_v25, %v842_v46  ;;  %v1727_v29 = vunpack.c.l.bf16 %v1977_v49  ;;  %2214 = vrcp.f32 %v653_v6  ;;  %v1619_v50 = vunpack.c.l.bf16 %v1951_v63 }
  0xb4   :  { %v654_v35 = vadd.f32 2.0, %v3157_v3  ;;  %v3173_v34 = vadd.f32 %v2834_v40, %v205_v24  ;;  %v339_v20 = vmin.f32 %v3166_v2, 20.0  ;;  %v1728_v9 = vunpack.c.h.bf16 %v1977_v49 }
  0xb5   :  { %v2203_v36 = vpop.eup %2202  ;;  %v1873_v55 = vpack.c.bf16 %v1034_v13, %v1033_v33  ;;  %v1731_v51 = vunpack.c.l.bf16 %v3162_v27  ;;  %v1620_v12 = vunpack.c.h.bf16 %v1951_v63  ;;  %v206_v32 = vmul.f32 %v2854_v43, %v1619_v50  ;;  %v3213_v33 = vld [vmem:[%s3366_s3 + $0xc0] sm:$0xff]  }
  0xb6   :  { %v2205_v61 = vpop.eup %2204  ;;  %v760_v25 = vmul.f32 %v2203_v36, %v3114_v52  ;;  %2216 = vrcp.f32 %v654_v35  ;;  %v340_v38 = vmin.f32 %v3173_v34, 20.0  ;;  %v455_v1 = vmul.f32 1.442695, %v339_v20 }
  0xb7   :  { %v2207_v17 = vpop.eup %2206  ;;  %2007 = vst [vmem:[%s3367_s4 + $0xa8] sm:$0xff] %v1873_v55   ;;  %v527_v22 = vadd.f32 2.0, %v2205_v61  ;;  %v207_v47 = vmul.f32 %v2854_v43, %v1620_v12  ;;  %v1623_v37 = vunpack.c.l.bf16 %v1952_v59  ;;  %v3192_v44 = vadd.f32 %v2834_v40, %v206_v32 }
  0xb8   :  { %v2209_v19 = vpop.eup %2208  ;;  %v762_v30 = vmul.f32 %v2207_v17, %v3124_v8  ;;  %v843_v52 = vmul.f32 %v760_v25, %v3020_v42  ;;  %2218 = vpow2.f32 %v455_v1  ;;  %v457_v48 = vmul.f32 1.442695, %v340_v38 }
  0xb9   :  { %v528_v57 = vadd.f32 2.0, %v2209_v19  ;;  %v3189_v18 = vmul.f32 %v2205_v61, %v527_v22  ;;  %v3195_v53 = vadd.f32 %v2834_v40, %v207_v47  ;;  %v1624_v14 = vunpack.c.h.bf16 %v1952_v59 }
  0xba   :  { %v2211_v28 = vpop.eup %2210  ;;  %v844_v45 = vmul.f32 %v762_v30, %v3035_v7  ;;  %v1035_v31 = vadd.f32 %v1727_v29, %v843_v52  ;;  %2220 = vpow2.f32 %v457_v48  ;;  %v341_v62 = vmin.f32 %v3192_v44, 20.0  ;;  %v1954_v52 = vld [vmem:[%s3363_s0 + $0xf0] sm:$0xff]  }
  0xbb   :  { %v2213_v8 = vpop.eup %2212  ;;  %v3198_v16 = vmul.f32 %v2209_v19, %v528_v57  ;;  %v655_v42 = vadd.f32 2.0, %v3189_v18  ;;  %v529_v39 = vadd.f32 2.0, %v2211_v28  ;;  %v342_v26 = vmin.f32 %v3195_v53, 20.0 }
  0xbc   :  { %v1036_v56 = vadd.f32 %v1728_v9, %v844_v45  ;;  %v530_v23 = vadd.f32 2.0, %v2213_v8  ;;  %v208_v60 = vmul.f32 %v2854_v43, %v1623_v37  ;;  %v459_v54 = vmul.f32 1.442695, %v341_v62 }
  0xbd   :  { %v2215_v49 = vpop.eup %2214  ;;  %v656_v7 = vadd.f32 2.0, %v3198_v16  ;;  %2222 = vrcp.f32 %v655_v42  ;;  %v3205_v21 = vmul.f32 %v2211_v28, %v529_v39  ;;  %v461_v63 = vmul.f32 1.442695, %v342_v26 }
  0xbe   :  { %v1878_v10 = vpack.c.bf16 %v1036_v56, %v1035_v31  ;;  %v764_v46 = vmul.f32 %v2215_v49, %v3145_v11  ;;  %v3208_v6 = vmul.f32 %v2213_v8, %v530_v23  ;;  %v209_v13 = vmul.f32 %v2854_v43, %v1624_v14  ;;  %v1953_v11 = vld [vmem:[%s3363_s0 + $0xe8] sm:$0xff]  }
  0xbf   :  { %2224 = vrcp.f32 %v656_v7  ;;  %v657_v24 = vadd.f32 2.0, %v3205_v21  ;;  %v3218_v29 = vadd.f32 %v2834_v40, %v208_v60  ;;  %v1732_v50 = vunpack.c.h.bf16 %v3162_v27  ;;  %v3239_v27 = vld [vmem:[%s3366_s3 + $0xc8] sm:$0xff]  }
  0xc0   :  { %v2217_v35 = vpop.eup %2216  ;;  %2008 = vst [vmem:[%s3367_s4 + $0xb0] sm:$0xff] %v1878_v10   ;;  %v845_v20 = vmul.f32 %v764_v46, %v3058_v58  ;;  %v658_v59 = vadd.f32 2.0, %v3208_v6  ;;  %2226 = vpow2.f32 %v459_v54  ;;  %v3231_v55 = vadd.f32 %v2834_v40, %v209_v13 }
  0xc1   :  { %v766_v36 = vmul.f32 %v2217_v35, %v3157_v3  ;;  %2228 = vrcp.f32 %v657_v24  ;;  %v343_v9 = vmin.f32 %v3218_v29, 20.0  ;;  %v1735_v25 = vunpack.c.l.bf16 %v3213_v33 }
  0xc2   :  { %v2219_v12 = vpop.eup %2218  ;;  %v1037_v61 = vadd.f32 %v1731_v51, %v845_v20  ;;  %2230 = vrcp.f32 %v658_v59  ;;  %v1627_v38 = vunpack.c.l.bf16 %v1953_v11  ;;  %v344_v1 = vmin.f32 %v3231_v55, 20.0 }
  0xc3   :  { %v846_v58 = vmul.f32 %v766_v36, %v3069_v5  ;;  %v531_v3 = vadd.f32 2.0, %v2219_v12  ;;  %2232 = vpow2.f32 %v461_v63  ;;  %v1736_v22 = vunpack.c.h.bf16 %v3213_v33 }
  0xc4   :  { %v2221_v17 = vpop.eup %2220  ;;  %v463_v32 = vmul.f32 1.442695, %v343_v9  ;;  %v1628_v51 = vunpack.c.h.bf16 %v1953_v11  ;;  %v210_v47 = vmul.f32 %v2854_v43, %v1627_v38  ;;  %v465_v5 = vmul.f32 1.442695, %v344_v1 }
  0xc5   :  { %v1038_v37 = vadd.f32 %v1732_v50, %v846_v58  ;;  %v532_v19 = vadd.f32 2.0, %v2221_v17  ;;  %v3244_v30 = vmul.f32 %v2219_v12, %v531_v3  ;;  %v1739_v48 = vunpack.c.l.bf16 %v3239_v27 }
  0xc6   :  { %2234 = vpow2.f32 %v463_v32  ;;  %v211_v57 = vmul.f32 %v2854_v43, %v1628_v51  ;;  %v3252_v28 = vadd.f32 %v2834_v40, %v210_v47  ;;  %v1631_v56 = vunpack.c.l.bf16 %v1954_v52 }
  0xc7   :  { %v2223_v45 = vpop.eup %2222  ;;  %v1883_v31 = vpack.c.bf16 %v1038_v37, %v1037_v61  ;;  %v3254_v14 = vmul.f32 %v2221_v17, %v532_v19  ;;  %v659_v8 = vadd.f32 2.0, %v3244_v30  ;;  %2236 = vpow2.f32 %v465_v5 }
  0xc8   :  { %v768_v42 = vmul.f32 %v2223_v45, %v3189_v18  ;;  %v3259_v39 = vadd.f32 %v2834_v40, %v211_v57  ;;  %v345_v62 = vmin.f32 %v3252_v28, 20.0  ;;  %v1740_v26 = vunpack.c.h.bf16 %v3239_v27 }
  0xc9   :  { %v2225_v23 = vpop.eup %2224  ;;  %2009 = vst [vmem:[%s3367_s4 + $0xb8] sm:$0xff] %v1883_v31   ;;  %v660_v60 = vadd.f32 2.0, %v3254_v14  ;;  %2238 = vrcp.f32 %v659_v8  ;;  %v1632_v49 = vunpack.c.h.bf16 %v1954_v52  ;;  %v212_v24 = vmul.f32 %v2854_v43, %v1631_v56 }
  0xca   :  { %v2227_v7 = vpop.eup %2226  ;;  %v770_v18 = vmul.f32 %v2225_v23, %v3198_v16  ;;  %v847_v54 = vmul.f32 %v768_v42, %v3106_v41  ;;  %v346_v10 = vmin.f32 %v3259_v39, 20.0  ;;  %v467_v46 = vmul.f32 1.442695, %v345_v62 }
  0xcb   :  { %v2229_v63 = vpop.eup %2228  ;;  %2240 = vrcp.f32 %v660_v60  ;;  %v533_v33 = vadd.f32 2.0, %v2227_v7  ;;  %v213_v13 = vmul.f32 %v2854_v43, %v1632_v49  ;;  %v3278_v9 = vadd.f32 %v2834_v40, %v212_v24 }
  0xcc   :  { %v2231_v11 = vpop.eup %2230  ;;  %v848_v35 = vmul.f32 %v770_v18, %v3111_v4  ;;  %v1039_v20 = vadd.f32 %v1735_v25, %v847_v54  ;;  %v772_v50 = vmul.f32 %v2229_v63, %v3205_v21  ;;  %2242 = vpow2.f32 %v467_v46  ;;  %v1981_v21 = vld [vmem:[%s3366_s3 + $0xd0] sm:$0xff]  }
  0xcd   :  { %v2233_v16 = vpop.eup %2232  ;;  %v774_v41 = vmul.f32 %v2231_v11, %v3208_v6  ;;  %v3275_v59 = vmul.f32 %v2227_v7, %v533_v33  ;;  %v469_v36 = vmul.f32 1.442695, %v346_v10  ;;  %v3282_v58 = vadd.f32 %v2834_v40, %v213_v13  ;;  %v1955_v40 = vld [vmem:[%s3363_s0 + $0xf8] sm:$0xff]   ;;  %v2276_v10 = vld [vmem:[%s3365_s2] ss:$0 sm:$0xff] }
  0xce   :  { %v1040_v12 = vadd.f32 %v1736_v22, %v848_v35  ;;  %v849_v61 = vmul.f32 %v772_v50, %v3132_v15  ;;  %v534_v38 = vadd.f32 2.0, %v2233_v16  ;;  %v347_v25 = vmin.f32 %v3278_v9, 20.0 }
  0xcf   :  { %v850_v4 = vmul.f32 %v774_v41, %v3135_v0  ;;  %v661_v6 = vadd.f32 2.0, %v3275_v59  ;;  %2244 = vpow2.f32 %v469_v36  ;;  %v348_v15 = vmin.f32 %v3282_v58, 20.0 }
  0xd0   :  { %v2235_v27 = vpop.eup %2234  ;;  %v1888_v3 = vpack.c.bf16 %v1040_v12, %v1039_v20  ;;  %v1041_v1 = vadd.f32 %v1739_v48, %v849_v61  ;;  %v3290_v17 = vmul.f32 %v2233_v16, %v534_v38  ;;  %v471_v51 = vmul.f32 1.442695, %v347_v25 }
  0xd1   :  { %v2237_v0 = vpop.eup %2236  ;;  %v1042_v22 = vadd.f32 %v1740_v26, %v850_v4  ;;  %2246 = vrcp.f32 %v661_v6  ;;  %v535_v32 = vadd.f32 2.0, %v2235_v27  ;;  %v1743_v47 = vunpack.c.l.bf16 %v1981_v21 }
  0xd2   :  { %2010 = vst [vmem:[%s3367_s4 + $0xc0] sm:$0xff] %v1888_v3   ;;  %v662_v37 = vadd.f32 2.0, %v3290_v17  ;;  %v536_v19 = vadd.f32 2.0, %v2237_v0  ;;  %v473_v5 = vmul.f32 1.442695, %v348_v15  ;;  %2248 = vpow2.f32 %v471_v51 }
  0xd3   :  { %v2239_v52 = vpop.eup %2238  ;;  %v1893_v48 = vpack.c.bf16 %v1042_v22, %v1041_v1  ;;  %v599_v57 = vmul.f32 %v2235_v27, %v535_v32  ;;  %v1635_v45 = vunpack.c.l.bf16 %v1955_v40  ;;  %v1636_v42 = vunpack.c.h.bf16 %v1955_v40 }
  0xd4   :  { %v776_v31 = vmul.f32 %v2239_v52, %v3244_v30  ;;  %2250 = vrcp.f32 %v662_v37  ;;  %v600_v8 = vmul.f32 %v2237_v0, %v536_v19  ;;  %v1744_v56 = vunpack.c.h.bf16 %v1981_v21 }
  0xd5   :  { %v2241_v62 = vpop.eup %2240  ;;  %2011 = vst [vmem:[%s3367_s4 + $0xc8] sm:$0xff] %v1893_v48   ;;  %v663_v23 = vadd.f32 2.0, %v599_v57  ;;  %2252 = vpow2.f32 %v473_v5  ;;  %v214_v26 = vmul.f32 %v2854_v43, %v1635_v45  ;;  %v215_v30 = vmul.f32 %v2854_v43, %v1636_v42  ;;  %v1982_v43 = vld [vmem:[%s3366_s3 + $0xd8] sm:$0xff]  }
  0xd6   :  { %v2243_v60 = vpop.eup %2242  ;;  %v778_v49 = vmul.f32 %v2241_v62, %v3254_v14  ;;  %v851_v7 = vmul.f32 %v776_v31, %v3166_v2  ;;  %v664_v18 = vadd.f32 2.0, %v600_v8  ;;  %v1747_v4 = vunpack.c.l.bf16 %v1982_v43 }
  0xd7   :  { %2254 = vrcp.f32 %v663_v23  ;;  %v537_v54 = vadd.f32 2.0, %v2243_v60  ;;  %v3311_v46 = vadd.f32 %v2276_v10, %v214_v26  ;;  %v3314_v24 = vadd.f32 %v2276_v10, %v215_v30 }
  0xd8   :  { %v852_v63 = vmul.f32 %v778_v49, %v3173_v34  ;;  %v1043_v33 = vadd.f32 %v1743_v47, %v851_v7  ;;  %2256 = vrcp.f32 %v664_v18  ;;  %v1748_v15 = vunpack.c.h.bf16 %v1982_v43 }
  0xd9   :  { %v2245_v14 = vpop.eup %2244  ;;  %v601_v13 = vmul.f32 %v2243_v60, %v537_v54  ;;  %v349_v2 = vmin.f32 %v3311_v46, 20.0  ;;  %v350_v20 = vmin.f32 %v3314_v24, 20.0 }
  0xda   :  { %v1044_v11 = vadd.f32 %v1744_v56, %v852_v63  ;;  %v538_v35 = vadd.f32 2.0, %v2245_v14 }
  0xdb   :  { %v2247_v50 = vpop.eup %2246  ;;  %v665_v16 = vadd.f32 2.0, %v601_v13  ;;  %v475_v41 = vmul.f32 1.442695, %v349_v2  ;;  %v477_v61 = vmul.f32 1.442695, %v350_v20 }
  0xdc   :  { %v1898_v34 = vpack.c.bf16 %v1044_v11, %v1043_v33  ;;  %v780_v36 = vmul.f32 %v2247_v50, %v3275_v59  ;;  %v602_v12 = vmul.f32 %v2245_v14, %v538_v35  ;;  %v2249_v38 = vpop.eup %2248  ;;  %v1983_v59 = vld [vmem:[%s3366_s3 + $0xe0] sm:$0xff]   ;;  %v1985_v33 = vld [vmem:[%s3366_s3 + $0xf0] sm:$0xff]  }
  0xdd   :  { %2258 = vrcp.f32 %v665_v16  ;;  %v539_v27 = vadd.f32 2.0, %v2249_v38  ;;  %v1751_v37 = vunpack.c.l.bf16 %v1983_v59  ;;  %v1752_v48 = vunpack.c.h.bf16 %v1983_v59 }
  0xde   :  { %v2251_v21 = vpop.eup %2250  ;;  %2012 = vst [vmem:[%s3367_s4 + $0xd0] sm:$0xff] %v1898_v34   ;;  %v853_v6 = vmul.f32 %v780_v36, %v3192_v44  ;;  %v666_v25 = vadd.f32 2.0, %v602_v12  ;;  %2260 = vpow2.f32 %v475_v41  ;;  %v1759_v50 = vunpack.c.l.bf16 %v1985_v33 }
  0xdf   :  { %v2253_v3 = vpop.eup %2252  ;;  %v782_v1 = vmul.f32 %v2251_v21, %v3290_v17  ;;  %2262 = vpow2.f32 %v477_v61  ;;  %v603_v0 = vmul.f32 %v2249_v38, %v539_v27  ;;  %v1986_v21 = vld [vmem:[%s3366_s3 + $0xf8] sm:$0xff]  }
  0xe0   :  { %2264 = vrcp.f32 %v666_v25  ;;  %v540_v40 = vadd.f32 2.0, %v2253_v3  ;;  %v1045_v51 = vadd.f32 %v1747_v4, %v853_v6  ;;  %v1763_v27 = vunpack.c.l.bf16 %v1986_v21 }
  0xe1   :  { %v2255_v22 = vpop.eup %2254  ;;  %v854_v32 = vmul.f32 %v782_v1, %v3195_v53  ;;  %v667_v5 = vadd.f32 2.0, %v603_v0  ;;  %v1984_v53 = vld [vmem:[%s3366_s3 + $0xe8] sm:$0xff]   ;;  %v1764_v1 = vunpack.c.h.bf16 %v1986_v21 }
  0xe2   :  { %v2257_v44 = vpop.eup %2256  ;;  %v784_v47 = vmul.f32 %v2255_v22, %v599_v57  ;;  %v604_v19 = vmul.f32 %v2253_v3, %v540_v40  ;;  %v1755_v49 = vunpack.c.l.bf16 %v1984_v53  ;;  %v1756_v10 = vunpack.c.h.bf16 %v1984_v53 }
  0xe3   :  { %v1046_v52 = vadd.f32 %v1748_v15, %v854_v32  ;;  %v786_v17 = vmul.f32 %v2257_v44, %v600_v8  ;;  %2266 = vrcp.f32 %v667_v5 }
  0xe4   :  { %v855_v45 = vmul.f32 %v784_v47, %v3218_v29  ;;  %v668_v31 = vadd.f32 2.0, %v604_v19 }
  0xe5   :  { %v1903_v42 = vpack.c.bf16 %v1046_v52, %v1045_v51  ;;  %v856_v62 = vmul.f32 %v786_v17, %v3231_v55 }
  0xe6   :  { %v1047_v56 = vadd.f32 %v1751_v37, %v855_v45  ;;  %2268 = vrcp.f32 %v668_v31 }
  0xe7   :  { %v2259_v57 = vpop.eup %2258  ;;  %2013 = vst [vmem:[%s3367_s4 + $0xd8] sm:$0xff] %v1903_v42   ;;  %v1048_v8 = vadd.f32 %v1752_v48, %v856_v62 }
  0xe8   :  { %v2261_v23 = vpop.eup %2260  ;;  %v788_v26 = vmul.f32 %v2259_v57, %v601_v13 }
  0xe9   :  { %v2263_v29 = vpop.eup %2262  ;;  %v1908_v60 = vpack.c.bf16 %v1048_v8, %v1047_v56  ;;  %v541_v7 = vadd.f32 2.0, %v2261_v23 }
  0xea   :  { %v2265_v18 = vpop.eup %2264  ;;  %v857_v55 = vmul.f32 %v788_v26, %v3252_v28  ;;  %v542_v30 = vadd.f32 2.0, %v2263_v29 }
  0xeb   :  { %2014 = vst [vmem:[%s3367_s4 + $0xe0] sm:$0xff] %v1908_v60   ;;  %v790_v54 = vmul.f32 %v2265_v18, %v602_v12  ;;  %v605_v63 = vmul.f32 %v2261_v23, %v541_v7  ;;  %v1760_v12 = vunpack.c.h.bf16 %v1985_v33 }
  0xec   :  { %v606_v14 = vmul.f32 %v2263_v29, %v542_v30  ;;  %v1049_v2 = vadd.f32 %v1755_v49, %v857_v55 }
  0xed   :  { %v858_v13 = vmul.f32 %v790_v54, %v3259_v39  ;;  %v669_v11 = vadd.f32 2.0, %v605_v63  ;;  %v2267_v43 = vpop.eup %2266 }
  0xee   :  { %v670_v35 = vadd.f32 2.0, %v606_v14  ;;  %v792_v20 = vmul.f32 %v2267_v43, %v603_v0 }
  0xef   :  { %v1050_v28 = vadd.f32 %v1756_v10, %v858_v13  ;;  %2270 = vrcp.f32 %v669_v11 }
  0xf0   :  { %v2269_v16 = vpop.eup %2268  ;;  %2272 = vrcp.f32 %v670_v35  ;;  %v859_v36 = vmul.f32 %v792_v20, %v3278_v9 }
  0xf1   :  { %v1913_v41 = vpack.c.bf16 %v1050_v28, %v1049_v2  ;;  %v794_v34 = vmul.f32 %v2269_v16, %v604_v19 }
  0xf2   :  { %v1051_v61 = vadd.f32 %v1759_v50, %v859_v36 }
  0xf3   :  { %2015 = vst [vmem:[%s3367_s4 + $0xe8] sm:$0xff] %v1913_v41   ;;  %v860_v39 = vmul.f32 %v794_v34, %v3282_v58 }
  0xf5   :  { %v1052_v38 = vadd.f32 %v1760_v12, %v860_v39 }
  0xf7   :  { %v1918_v4 = vpack.c.bf16 %v1052_v38, %v1051_v61 }
  0xf9   :  { %v2271_v6 = vpop.eup %2270  ;;  %2016 = vst [vmem:[%s3367_s4 + $0xf0] sm:$0xff] %v1918_v4  }
  0xfa   :  { %v2273_v9 = vpop.eup %2272  ;;  %v796_v25 = vmul.f32 %v2271_v6, %v605_v63 }
  0xfb   :  { %v798_v3 = vmul.f32 %v2273_v9, %v606_v14 }
  0xfc   :  { %v861_v15 = vmul.f32 %v796_v25, %v3311_v46 }
  0xfd   :  { %v862_v58 = vmul.f32 %v798_v3, %v3314_v24 }
  0xfe   :  { %v1053_v59 = vadd.f32 %v1763_v27, %v861_v15 }
  0xff   :  { %v1054_v40 = vadd.f32 %v1764_v1, %v862_v58 }
 0x101   :  { %v1923_v0 = vpack.c.bf16 %v1054_v40, %v1053_v59 }
 0x103   :  { %2017 = vst [vmem:[%s3367_s4 + $0xf8] sm:$0xff] %v1923_v0  }

</bundles_post_ra>
